<compile_context>
chip_gen: v7x
topology: tpu7x:2x2x1
jax: 0.10.0
libtpu: 0.0.40
codegen_flags: <defaults>
</compile_context>

<pallas_src>
import functools

import numpy as np
import jax
import jax.numpy as jnp
from jax import lax
from jax.experimental import pallas as pl
from jax.experimental.pallas import tpu as pltpu

_BN_EPS = 1e-5
_F32 = jnp.float32
_BF16 = jnp.bfloat16
_NEG_INF = -1e30  # additive mask value (bf16-representable); every row has a self-loop


def _elu(x):
    # ELU(alpha=1): x if x > 0 else exp(x) - 1
    return jnp.where(x > 0, x, jnp.exp(jnp.minimum(x, 0.0)) - 1.0)


def _pick_block(n):
    # dst-row block: big enough to amortize per-step overhead, small enough for VMEM.
    for b in (256, 128):
        if n % b == 0 and n > b:
            return b
    return n  # tiny graphs: single block (grid of 1)


def _row_spec(bn, cols):
    return pl.BlockSpec((bn, cols), lambda i: (i, 0))


def _full_spec(arr):
    nd = arr.ndim
    return pl.BlockSpec(arr.shape, lambda i, _nd=nd: (0,) * _nd)


def _cparams(vmem_mb):
    # Explicit scoped-VMEM budget (defaults are only 16/32 MiB) + "parallel" row axis so
    # v7x shards the grid across its two TensorCores.
    return pltpu.CompilerParams(
        dimension_semantics=("parallel",),
        vmem_limit_bytes=int(vmem_mb) << 20)


# ---------------------------------------------------------------------------
# Kernel 1 (prep): initial_linear (BN folded) -> E, E@A, and conv0 transform x@W0.
# All row-local -> gridded over node rows, "parallel".
# ---------------------------------------------------------------------------
def _prep_kernel(x_ref, w1_ref, b1_ref, w2_ref, b2_ref, a_ref, w0_ref,
                 e2_ref, ea_ref, h0_ref):
    x = x_ref[...].astype(_BF16)
    h1 = _elu(jnp.dot(x, w1_ref[...], preferred_element_type=_F32) + b1_ref[...])
    e2 = _elu(jnp.dot(h1.astype(_BF16), w2_ref[...],
                      preferred_element_type=_F32) + b2_ref[...])
    e2b = e2.astype(_BF16)
    ea = jnp.dot(e2b, a_ref[...], preferred_element_type=_F32)
    e2_ref[...] = e2b
    ea_ref[...] = ea.astype(_BF16)
    h0_ref[...] = jnp.dot(x, w0_ref[...], preferred_element_type=_F32).astype(_BF16)


def _prep_forward(prep, x, bn):
    n = x.shape[0]
    il0, il1 = prep["initial_linear"]
    a = prep["link_pred"]["a"]
    w0 = prep["convs"][0]["w"]
    d = a.shape[0]
    hf0 = w0.shape[1]
    return pl.pallas_call(
        _prep_kernel,
        grid=(n // bn,),
        out_shape=(jax.ShapeDtypeStruct((n, d), _BF16),
                   jax.ShapeDtypeStruct((n, d), _BF16),
                   jax.ShapeDtypeStruct((n, hf0), _BF16)),
        in_specs=[_row_spec(bn, x.shape[1]),
                  _full_spec(il0["w"]), _full_spec(il0["b"]),
                  _full_spec(il1["w"]), _full_spec(il1["b"]),
                  _full_spec(a), _full_spec(w0)],
        out_specs=(_row_spec(bn, d), _row_spec(bn, d), _row_spec(bn, hf0)),
        compiler_params=_cparams(32),
    )(x, il0["w"], il0["b"], il1["w"], il1["b"], a, w0)


# ---------------------------------------------------------------------------
# Kernel 2 (link): all-pairs bilinear logits  M = (E A) E^T + b,
# gridded over dst rows: each step writes one [bn, N] block.
# TODO(synk): skip lower-triangular output blocks via a scalar-prefetched block list
# (PrefetchScalarGridSpec) -- only the upper triangle is consumed downstream.
# ---------------------------------------------------------------------------
def _make_link_kernel(bn):
    def kernel(e_ref, ea_ref, b_ref, m_ref):
        row0 = pl.multiple_of(pl.program_id(0) * bn, bn)
        ea_blk = ea_ref[pl.ds(row0, bn), :]                       # [bn, d] bf16
        m = lax.dot_general(ea_blk, e_ref[...], (((1,), (1,)), ((), ())),
                            preferred_element_type=_F32)          # [bn, N]
        m_ref[...] = m + b_ref[...]
    return kernel


def _link_matrix(prep, e2, ea, bn):
    n = e2.shape[0]
    b = prep["link_pred"]["b"]
    return pl.pallas_call(
        _make_link_kernel(bn),
        grid=(n // bn,),
        out_shape=jax.ShapeDtypeStruct((n, n), _F32),
        in_specs=[_full_spec(e2), _full_spec(ea), _full_spec(b)],
        out_specs=_row_spec(bn, n),
        compiler_params=_cparams(32),
    )(e2, ea, b)


# ---------------------------------------------------------------------------
# Kernel 3 (per GAT layer): attention + aggregation for one dst-row block.
#   * softmax denominator folded into the aggregation matmul via a ones column
#     (removes the per-head XLU row-sum and the [bn, N] alpha materialization).
#   * BN / GAT bias / mean-over-heads folded into a (scale, shift) epilogue, then ELU.
#   * non-last layers also emit the NEXT layer's feature transform (row-local fusion);
#     the last layer fuses the fc head and writes one lane-dense packed output block.
# ---------------------------------------------------------------------------
def _make_agg_kernel(heads, f_out, bn, has_next, fc_has_elu, fc_has_bn, pack_cols):
    def kernel(*refs):
        it = iter(refs)
        hall_ref = next(it)     # [N, H*F] bf16 (full, resident across the row grid)
        mask_ref = next(it)     # [bn, N] bf16 additive mask (0 on edges, -1e30 else)
        attd_ref = next(it)     # [H*F, H] bf16 (block-diag att_dst columns)
        attsrc_ref = next(it)   # [H, H*F] bf16 (block-diag att_src rows)
        sc_ref = next(it)       # [1, F] f32  (bn_scale / heads)
        sh_ref = next(it)       # [1, F] f32  (bias*bn_scale + bn_shift)
        wnext_ref = next(it) if has_next else None
        fc_refs = []
        if not has_next:
            for hb in fc_has_bn:
                fc_refs.append(tuple(next(it) for _ in range(4 if hb else 2)))
        out_ref = next(it)

        row0 = pl.multiple_of(pl.program_id(0) * bn, bn)
        hall_full = hall_ref[...]                       # [N, H*F] bf16 (src side)
        hall_blk = hall_ref[pl.ds(row0, bn), :]         # [bn, H*F] bf16 (dst block)
        n_full = hall_full.shape[0]

        # Per-node attention scalars: one batched matmul for dst rows, one for all src rows.
        adst = jnp.dot(hall_blk, attd_ref[...], preferred_element_type=_F32)      # [bn, H]
        asrc_t = lax.dot_general(attsrc_ref[...], hall_full,
                                 (((1,), (1,)), ((), ())),
                                 preferred_element_type=_F32)                      # [H, N]
        mask_add = mask_ref[...].astype(_F32)                                      # [bn, N]
        ones_col = jnp.ones((n_full, 1), _BF16)

        acc = jnp.zeros((bn, f_out), _F32)
        # TODO(synk): for very large N, stream src in blocks (online softmax) and/or move
        # heads onto a grid axis to bound the [bn, N] temporaries' live ranges.
        for hd in range(heads):
            e = adst[:, hd:hd + 1] + asrc_t[hd:hd + 1, :]         # [bn, N]
            e = jnp.maximum(e, 0.2 * e) + mask_add                # LeakyReLU(0.2) + mask
            p = jnp.exp(e - jnp.max(e, axis=-1, keepdims=True))   # unnormalized softmax
            # Denominator folded into the MXU: p @ [values | 1] -> [agg | denom].
            hh_aug = jnp.concatenate(
                [hall_full[:, hd * f_out:(hd + 1) * f_out], ones_col], axis=-1)   # [N, F+1]
            agg = jnp.dot(p.astype(_BF16), hh_aug, preferred_element_type=_F32)   # [bn, F+1]
            acc = acc + agg[:, :f_out] * pl.reciprocal(agg[:, f_out:], approx=True)

        # Folded epilogue: mean-over-heads + GAT bias + BatchNorm, then ELU. (Dropout=eval.)
        h = _elu(acc * sc_ref[...] + sh_ref[...])                 # [bn, F] f32

        if has_next:
            # Fuse the next GAT layer's (row-local) feature transform.
            out_ref[...] = jnp.dot(h.astype(_BF16), wnext_ref[...],
                                   preferred_element_type=_F32).astype(_BF16)
        else:
            # Fused fc head; all fc outputs packed into one lane-dense [bn, pack_cols] store.
            z = h
            pieces = []
            for fi, fr in enumerate(fc_refs):
                z = jnp.dot(z.astype(_BF16), fr[0][...],
                            preferred_element_type=_F32) + fr[1][...]
                if fc_has_elu[fi]:
                    z = _elu(z)
                if fc_has_bn[fi]:
                    z = z * fr[2][...] + fr[3][...]
                pieces.append(z)
            packed = jnp.concatenate(pieces, axis=-1)
            pad = pack_cols - packed.shape[-1]
            if pad:
                packed = jnp.concatenate([packed, jnp.zeros((bn, pad), _F32)], axis=-1)
            out_ref[...] = packed

    return kernel


def _gat_layers(prep, h0, mask_add, heads, bn):
    n = h0.shape[0]
    convs = prep["convs"]
    fcs = prep["fcs"]
    num_convs = len(convs)
    fc_has_bn = tuple("scale" in fc for fc in fcs)
    fc_has_elu = tuple(i > 0 for i in range(len(fcs)))
    out_dims = tuple(int(fc["w"].shape[1]) for fc in fcs)
    pack_cols = ((sum(out_dims) + 127) // 128) * 128
    grid = (n // bn,)

    h_all = h0  # [N, H*F0] bf16
    for li, conv in enumerate(convs):
        f_out = conv["attd"].shape[0] // heads
        has_next = li < num_convs - 1
        args = [h_all, mask_add, conv["attd"], conv["attsrc"], conv["scale"], conv["shift"]]
        if has_next:
            args.append(convs[li + 1]["w"])
            out_cols = convs[li + 1]["w"].shape[1]
            out_shape = jax.ShapeDtypeStruct((n, out_cols), _BF16)
        else:
            for fc in fcs:
                args += [fc["w"], fc["b"]]
                if "scale" in fc:
                    args += [fc["scale"], fc["shift"]]
            out_cols = pack_cols
            out_shape = jax.ShapeDtypeStruct((n, pack_cols), _F32)

        in_specs = [_full_spec(h_all), _row_spec(bn, n)]
        in_specs += [_full_spec(a) for a in args[2:]]
        kernel = _make_agg_kernel(heads, f_out, bn, has_next,
                                  fc_has_elu, fc_has_bn, pack_cols)
        h_all = pl.pallas_call(
            kernel,
            grid=grid,
            out_shape=out_shape,
            in_specs=in_specs,
            out_specs=_row_spec(bn, out_cols),
            compiler_params=_cparams(48),
        )(*args)

    packed = h_all
    outputs, off = [], 0
    for d in out_dims:
        outputs.append(packed[:, off:off + d])
        off += d
    return outputs


# ---------------------------------------------------------------------------
# Device-side link prediction -> additive adjacency mask (no host sync, no one_hot blowup)
# ---------------------------------------------------------------------------
def _build_adj_from_logits(logits_mat, top_k):
    n = logits_mat.shape[0]
    iu = jnp.triu(jnp.ones((n, n), _F32), k=1) > 0
    diag = jnp.eye(n, dtype=_F32) > 0
    upper = jnp.where(iu, logits_mat, 0.0)
    sym = upper + upper.T                        # sym[i, j] = logit of pair (min, max)
    cand = jnp.where(diag, -jnp.inf, sym)
    # sigmoid is monotone -> top-k of probs == top-k of logits
    _, idx = lax.top_k(cand, top_k)              # [n, k]
    sel = jnp.zeros((n, n), _F32).at[jnp.arange(n)[:, None], idx].set(1.0)
    sel = jnp.maximum(sel, sel.T)                # pair kept if selected by either endpoint
    pair_upper = jnp.where(iu, sel, 0.0)         # undirected selected pairs (r < c)
    # PyG convention adj[dst, src]; edges run src=min -> dst=max; add self loops.
    adj = pair_upper.T + jnp.eye(n, dtype=_F32)
    mask_add = jnp.where(adj > 0.0, 0.0, _NEG_INF).astype(_BF16)
    return mask_add, pair_upper


@functools.partial(jax.jit, static_argnames=("heads", "top_k", "bn"))
def _device_forward_linkpred(prep, x, heads, top_k, bn):
    n = x.shape[0]
    e2, ea, h0 = _prep_forward(prep, x, bn)
    logits_mat = _link_matrix(prep, e2, ea, bn)
    mask_add, pair_upper = _build_adj_from_logits(logits_mat, top_k)
    row, col = jnp.triu_indices(n, k=1)
    link_logits = logits_mat[row, col]           # == torch.combinations order
    outputs = _gat_layers(prep, h0, mask_add, heads, bn)
    return outputs, pair_upper, link_logits


@functools.partial(jax.jit, static_argnames=("heads", "bn"))
def _device_forward_given_adj(prep, x, mask_add, heads, bn):
    # Re-runs the tiny prep kernel just for h0 = x @ W0 (link embeddings are unused here).
    _, _, h0 = _prep_forward(prep, x, bn)
    return _gat_layers(prep, h0, mask_add, heads, bn)


# ---------------------------------------------------------------------------
# Parameter initialization (deterministic, synthetic) and inference folding
# ---------------------------------------------------------------------------
def _bn_affine(key, dim):
    k1, k2, k3, k4 = jax.random.split(key, 4)
    gamma = 1.0 + 0.1 * jax.random.normal(k1, (1, dim), _F32)
    beta = 0.1 * jax.random.normal(k2, (1, dim), _F32)
    mean = 0.1 * jax.random.normal(k3, (1, dim), _F32)
    var = 1.0 + 0.1 * jnp.abs(jax.random.normal(k4, (1, dim), _F32))
    scale = gamma / jnp.sqrt(var + _BN_EPS)
    shift = beta - mean * scale
    return scale, shift


def init_params(key, in_dim, hidden_dims, out_dims, heads):
    keys = list(jax.random.split(key, 64))
    it = iter(keys)

    def nk():
        return next(it)

    def w(shape, s=0.2):
        return s * jax.random.normal(nk(), shape, _F32)

    params = {}
    convs = []
    prev = in_dim
    for hdim in hidden_dims:
        conv = {
            "w": w((prev, heads * hdim)),        # GATConv lin (bias=False)
            "att_src": w((heads, hdim)),
            "att_dst": w((heads, hdim)),
            "bias": w((1, hdim), 0.05),          # GATConv bias (concat=False)
        }
        conv["bn_scale"], conv["bn_shift"] = _bn_affine(nk(), hdim)
        convs.append(conv)
        prev = hdim
    params["convs"] = convs

    fcs = []
    for odim in out_dims:
        fc = {"w": w((prev, odim)), "b": w((1, odim), 0.05)}
        fc["bn_scale"], fc["bn_shift"] = _bn_affine(nk(), odim)
        fcs.append(fc)
        prev = odim
    params["fcs"] = fcs

    il = []
    prev = in_dim
    for dim in (hidden_dims[-1], out_dims[-1]):
        lin = {"w": w((prev, dim)), "b": w((1, dim), 0.05)}
        lin["bn_scale"], lin["bn_shift"] = _bn_affine(nk(), dim)
        il.append(lin)
        prev = dim
    params["initial_linear"] = il

    d = out_dims[-1]
    params["link_pred"] = {"a": w((d, d)), "b": w((1, 1), 0.05)}
    return params


def _block_diag_att_cols(att):  # [H, F] -> [H*F, H]; column h holds att[h] at rows h*F:(h+1)*F
    h, f = att.shape
    return (att[:, :, None] * jnp.eye(h, dtype=att.dtype)[:, None, :]).reshape(h * f, h)


def _block_diag_att_rows(att):  # [H, F] -> [H, H*F]; row h holds att[h] at cols h*F:(h+1)*F
    h, f = att.shape
    return (jnp.eye(h, dtype=att.dtype)[:, :, None] * att[None, :, :]).reshape(h, h * f)


def prepare_inference_params(params, heads):
    """Fold BatchNorm / biases into weights where legal; cast MXU operands to bf16."""
    prep = {}
    # initial_linear: BN folds straight into the Linear (no nonlinearity in between)
    il = []
    for lin in params["initial_linear"]:
        il.append({"w": (lin["w"] * lin["bn_scale"]).astype(_BF16),
                   "b": lin["b"] * lin["bn_scale"] + lin["bn_shift"]})
    prep["initial_linear"] = il
    prep["link_pred"] = {"a": params["link_pred"]["a"].astype(_BF16),
                         "b": params["link_pred"]["b"]}
    # GAT layers: mean-over-heads + GAT bias + BN folded into one (scale, shift) epilogue
    convs = []
    for conv in params["convs"]:
        convs.append({
            "w": conv["w"].astype(_BF16),
            "attd": _block_diag_att_cols(conv["att_dst"]).astype(_BF16),
            "attsrc": _block_diag_att_rows(conv["att_src"]).astype(_BF16),
            "scale": conv["bn_scale"] / float(heads),
            "shift": conv["bias"] * conv["bn_scale"] + conv["bn_shift"],
        })
    prep["convs"] = convs
    # fc head: fc0 -> BN folds into Linear; fc1 -> ELU sits between Linear and BN, keep BN explicit
    fcs = []
    for i, fc in enumerate(params["fcs"]):
        if i == 0:
            fcs.append({"w": (fc["w"] * fc["bn_scale"]).astype(_BF16),
                        "b": fc["b"] * fc["bn_scale"] + fc["bn_shift"]})
        else:
            fcs.append({"w": fc["w"].astype(_BF16), "b": fc["b"],
                        "scale": fc["bn_scale"], "shift": fc["bn_shift"]})
    prep["fcs"] = fcs
    return prep


# ---------------------------------------------------------------------------
# Forward pass
# ---------------------------------------------------------------------------
def gat_with_link_prediction_forward(prep, x, heads, top_k, edge_index=None):
    n = x.shape[0]
    bn = _pick_block(n)
    if edge_index is None:
        outputs, pair_upper, link_logits = _device_forward_linkpred(
            prep, x, heads=heads, top_k=top_k, bn=bn)
        # TODO(synk): torch.unique(dim=1) produces a dynamic-shape edge list; extracted
        # host-side from the device-built pair matrix (row-major nonzero == lexicographic sort).
        pu = np.asarray(jax.device_get(pair_upper))
        src, dst = np.nonzero(pu > 0.5)
        edge_index = np.stack([src, dst], axis=0).astype(np.int32)
    else:
        link_logits = None
        src, dst = np.asarray(edge_index)
        adj_np = np.zeros((n, n), np.float32)
        adj_np[dst, src] = 1.0
        adj_np[np.arange(n), np.arange(n)] = 1.0
        mask_np = np.where(adj_np > 0, 0.0, _NEG_INF).astype(np.float32)
        outputs = _device_forward_given_adj(
            prep, x, jnp.asarray(mask_np, dtype=_BF16), heads=heads, bn=bn)
    return outputs, edge_index, link_logits


if __name__ == "__main__":
    in_dim, hidden_dims, out_dims, heads, top_k = 8, [32, 32], [16, 8], 4, 7
    num_nodes = 256  # exercises the dst-row grid (block=128 -> grid of 2, "parallel")

    key = jax.random.PRNGKey(0)
    kx, kp = jax.random.split(key)
    x = jax.random.normal(kx, (num_nodes, in_dim), _F32)
    raw_params = init_params(kp, in_dim, hidden_dims, out_dims, heads)
    prep = prepare_inference_params(raw_params, heads)

    outputs, edge_index, link_logits = gat_with_link_prediction_forward(
        prep, x, heads, top_k)

    for o in outputs:
        jax.block_until_ready(o)
    jax.block_until_ready(link_logits)

    assert outputs[0].shape == (num_nodes, out_dims[0])
    assert outputs[1].shape == (num_nodes, out_dims[1])
    assert edge_index.shape[0] == 2
    assert link_logits.shape == (num_nodes * (num_nodes - 1) // 2,)
    assert np.all(np.isfinite(np.asarray(outputs[0])))
    assert np.all(np.isfinite(np.asarray(outputs[1])))
    print("KERNEL_OK")
</pallas_src>

<mosaic_0001>
module attributes {stable_mosaic.version = 11 : i64} {
  func.func private @main(%arg0: i32) attributes {dimension_semantics = [#tpu.dimension_semantics<core_parallel>], iteration_bounds = array<i64: 2>, tpu.core_type = #tpu.core_type<sc_scalar_subcore>, window_params = []} {
    return
  }
}

module attributes {stable_mosaic.version = 11 : i64} {
  func.func private @main(%arg0: i32) attributes {dimension_semantics = [#tpu.dimension_semantics<core_parallel>], iteration_bounds = array<i64: 2>, tpu.core_type = #tpu.core_type<sc_scalar_subcore>, window_params = []} {
    return
  }
}

module attributes {stable_mosaic.version = 11 : i64} {
  func.func @_prep_kernel(%arg0: i32, %arg1: memref<128x8xf32, #tpu.memory_space<vmem>>, %arg2: memref<8x32xbf16, #tpu.memory_space<vmem>>, %arg3: memref<1x32xf32, #tpu.memory_space<vmem>>, %arg4: memref<32x8xbf16, #tpu.memory_space<vmem>>, %arg5: memref<1x8xf32, #tpu.memory_space<vmem>>, %arg6: memref<8x8xbf16, #tpu.memory_space<vmem>>, %arg7: memref<8x128xbf16, #tpu.memory_space<vmem>>, %arg8: memref<128x8xbf16, #tpu.memory_space<vmem>>, %arg9: memref<128x8xbf16, #tpu.memory_space<vmem>>, %arg10: memref<128x128xbf16, #tpu.memory_space<vmem>>) attributes {dimension_semantics = [#tpu.dimension_semantics<parallel>], iteration_bounds = array<i64: 2>, scalar_prefetch = 0 : i64, scratch_operands = 0 : i64, tpu.core_type = #tpu.core_type<tc>, window_params = [{transform_indices = @transform_0, window_bounds = array<i64: 128, 8>}, {pipeline_mode = #tpu.pipeline_mode<synchronous>, transform_indices = @transform_1, window_bounds = array<i64: 8, 32>}, {pipeline_mode = #tpu.pipeline_mode<synchronous>, transform_indices = @transform_2, window_bounds = array<i64: 1, 32>}, {pipeline_mode = #tpu.pipeline_mode<synchronous>, transform_indices = @transform_3, window_bounds = array<i64: 32, 8>}, {pipeline_mode = #tpu.pipeline_mode<synchronous>, transform_indices = @transform_4, window_bounds = array<i64: 1, 8>}, {pipeline_mode = #tpu.pipeline_mode<synchronous>, transform_indices = @transform_5, window_bounds = array<i64: 8, 8>}, {pipeline_mode = #tpu.pipeline_mode<synchronous>, transform_indices = @transform_6, window_bounds = array<i64: 8, 128>}, {transform_indices = @transform_7, window_bounds = array<i64: 128, 8>}, {transform_indices = @transform_8, window_bounds = array<i64: 128, 8>}, {transform_indices = @transform_9, window_bounds = array<i64: 128, 128>}]} {
    %c0 = arith.constant 0 : index
    %c0_0 = arith.constant 0 : index
    %0 = vector.load %arg1[%c0, %c0_0] : memref<128x8xf32, #tpu.memory_space<vmem>>, vector<128x8xf32>
    %1 = arith.truncf %0 : vector<128x8xf32> to vector<128x8xbf16>
    %c0_1 = arith.constant 0 : index
    %c0_2 = arith.constant 0 : index
    %2 = vector.load %arg2[%c0_1, %c0_2] : memref<8x32xbf16, #tpu.memory_space<vmem>>, vector<8x32xbf16>
    %cst = arith.constant dense<0.000000e+00> : vector<128x32xf32>
    %3 = tpu.matmul %1, %2, %cst {dimension_numbers = #tpu.dot_dimension_numbers<[1], [0], [0], [1], [0, 0, 1, 1], [], []>} : vector<128x8xbf16>, vector<8x32xbf16>, vector<128x32xf32> -> vector<128x32xf32>
    %c0_3 = arith.constant 0 : index
    %c0_4 = arith.constant 0 : index
    %4 = vector.load %arg3[%c0_3, %c0_4] : memref<1x32xf32, #tpu.memory_space<vmem>>, vector<1x32xf32>
    %5 = vector.broadcast %4 : vector<1x32xf32> to vector<128x32xf32>
    %6 = arith.addf %3, %5 : vector<128x32xf32>
    %cst_5 = arith.constant 0.000000e+00 : f32
    %7 = vector.broadcast %cst_5 : f32 to vector<128x32xf32>
    %8 = arith.cmpf ogt, %6, %7 : vector<128x32xf32>
    %cst_6 = arith.constant 0.000000e+00 : f32
    %9 = vector.broadcast %cst_6 : f32 to vector<128x32xf32>
    %10 = arith.minimumf %6, %9 : vector<128x32xf32>
    %11 = math.exp %10 : vector<128x32xf32>
    %cst_7 = arith.constant 1.000000e+00 : f32
    %12 = vector.broadcast %cst_7 : f32 to vector<128x32xf32>
    %13 = arith.subf %11, %12 : vector<128x32xf32>
    %14 = arith.select %8, %6, %13 : vector<128x32xi1>, vector<128x32xf32>
    %15 = arith.truncf %14 : vector<128x32xf32> to vector<128x32xbf16>
    %c0_8 = arith.constant 0 : index
    %c0_9 = arith.constant 0 : index
    %16 = vector.load %arg4[%c0_8, %c0_9] : memref<32x8xbf16, #tpu.memory_space<vmem>>, vector<32x8xbf16>
    %cst_10 = arith.constant dense<0.000000e+00> : vector<128x8xf32>
    %17 = tpu.matmul %15, %16, %cst_10 {dimension_numbers = #tpu.dot_dimension_numbers<[1], [0], [0], [1], [0, 0, 1, 1], [], []>} : vector<128x32xbf16>, vector<32x8xbf16>, vector<128x8xf32> -> vector<128x8xf32>
    %c0_11 = arith.constant 0 : index
    %c0_12 = arith.constant 0 : index
    %18 = vector.load %arg5[%c0_11, %c0_12] : memref<1x8xf32, #tpu.memory_space<vmem>>, vector<1x8xf32>
    %19 = vector.broadcast %18 : vector<1x8xf32> to vector<128x8xf32>
    %20 = arith.addf %17, %19 : vector<128x8xf32>
    %cst_13 = arith.constant 0.000000e+00 : f32
    %21 = vector.broadcast %cst_13 : f32 to vector<128x8xf32>
    %22 = arith.cmpf ogt, %20, %21 : vector<128x8xf32>
    %cst_14 = arith.constant 0.000000e+00 : f32
    %23 = vector.broadcast %cst_14 : f32 to vector<128x8xf32>
    %24 = arith.minimumf %20, %23 : vector<128x8xf32>
    %25 = math.exp %24 : vector<128x8xf32>
    %cst_15 = arith.constant 1.000000e+00 : f32
    %26 = vector.broadcast %cst_15 : f32 to vector<128x8xf32>
    %27 = arith.subf %25, %26 : vector<128x8xf32>
    %28 = arith.select %22, %20, %27 : vector<128x8xi1>, vector<128x8xf32>
    %29 = arith.truncf %28 : vector<128x8xf32> to vector<128x8xbf16>
    %c0_16 = arith.constant 0 : index
    %c0_17 = arith.constant 0 : index
    %30 = vector.load %arg6[%c0_16, %c0_17] : memref<8x8xbf16, #tpu.memory_space<vmem>>, vector<8x8xbf16>
    %cst_18 = arith.constant dense<0.000000e+00> : vector<128x8xf32>
    %31 = tpu.matmul %29, %30, %cst_18 {dimension_numbers = #tpu.dot_dimension_numbers<[1], [0], [0], [1], [0, 0, 1, 1], [], []>} : vector<128x8xbf16>, vector<8x8xbf16>, vector<128x8xf32> -> vector<128x8xf32>
    %c0_19 = arith.constant 0 : index
    %c0_20 = arith.constant 0 : index
    %32 = vector.load %arg8[%c0_19, %c0_20] : memref<128x8xbf16, #tpu.memory_space<vmem>>, vector<128x8xbf16>
    tpu.vector_store %arg8[%c0_19, %c0_20], %29 {strides = array<i32>} : memref<128x8xbf16, #tpu.memory_space<vmem>>, vector<128x8xbf16>,
    %33 = arith.truncf %31 : vector<128x8xf32> to vector<128x8xbf16>
    %c0_21 = arith.constant 0 : index
    %c0_22 = arith.constant 0 : index
    %34 = vector.load %arg9[%c0_21, %c0_22] : memref<128x8xbf16, #tpu.memory_space<vmem>>, vector<128x8xbf16>
    tpu.vector_store %arg9[%c0_21, %c0_22], %33 {strides = array<i32>} : memref<128x8xbf16, #tpu.memory_space<vmem>>, vector<128x8xbf16>,
    %c0_23 = arith.constant 0 : index
    %c0_24 = arith.constant 0 : index
    %35 = vector.load %arg7[%c0_23, %c0_24] : memref<8x128xbf16, #tpu.memory_space<vmem>>, vector<8x128xbf16>
    %cst_25 = arith.constant dense<0.000000e+00> : vector<128x128xf32>
    %36 = tpu.matmul %1, %35, %cst_25 {dimension_numbers = #tpu.dot_dimension_numbers<[1], [0], [0], [1], [0, 0, 1, 1], [], []>} : vector<128x8xbf16>, vector<8x128xbf16>, vector<128x128xf32> -> vector<128x128xf32>
    %37 = arith.truncf %36 : vector<128x128xf32> to vector<128x128xbf16>
    %c0_26 = arith.constant 0 : index
    %c0_27 = arith.constant 0 : index
    %38 = vector.load %arg10[%c0_26, %c0_27] : memref<128x128xbf16, #tpu.memory_space<vmem>>, vector<128x128xbf16>
    tpu.vector_store %arg10[%c0_26, %c0_27], %37 {strides = array<i32>} : memref<128x128xbf16, #tpu.memory_space<vmem>>, vector<128x128xbf16>,
    return
  }
  func.func @transform_0(%arg0: i32) -> (i32, i32) {
    %c0_i32 = arith.constant 0 : i32
    %c0_i32_0 = arith.constant 0 : i32
    return %arg0, %c0_i32 : i32, i32
  }
  func.func @transform_1(%arg0: i32) -> (i32, i32) {
    %c0_i32 = arith.constant 0 : i32
    %c0_i32_0 = arith.constant 0 : i32
    %c0_i32_1 = arith.constant 0 : i32
    return %c0_i32, %c0_i32_0 : i32, i32
  }
  func.func @transform_2(%arg0: i32) -> (i32, i32) {
    %c0_i32 = arith.constant 0 : i32
    %c0_i32_0 = arith.constant 0 : i32
    %c0_i32_1 = arith.constant 0 : i32
    return %c0_i32, %c0_i32_0 : i32, i32
  }
  func.func @transform_3(%arg0: i32) -> (i32, i32) {
    %c0_i32 = arith.constant 0 : i32
    %c0_i32_0 = arith.constant 0 : i32
    %c0_i32_1 = arith.constant 0 : i32
    return %c0_i32, %c0_i32_0 : i32, i32
  }
  func.func @transform_4(%arg0: i32) -> (i32, i32) {
    %c0_i32 = arith.constant 0 : i32
    %c0_i32_0 = arith.constant 0 : i32
    %c0_i32_1 = arith.constant 0 : i32
    return %c0_i32, %c0_i32_0 : i32, i32
  }
  func.func @transform_5(%arg0: i32) -> (i32, i32) {
    %c0_i32 = arith.constant 0 : i32
    %c0_i32_0 = arith.constant 0 : i32
    %c0_i32_1 = arith.constant 0 : i32
    return %c0_i32, %c0_i32_0 : i32, i32
  }
  func.func @transform_6(%arg0: i32) -> (i32, i32) {
    %c0_i32 = arith.constant 0 : i32
    %c0_i32_0 = arith.constant 0 : i32
    %c0_i32_1 = arith.constant 0 : i32
    return %c0_i32, %c0_i32_0 : i32, i32
  }
  func.func @transform_7(%arg0: i32) -> (i32, i32) {
    %c0_i32 = arith.constant 0 : i32
    %c0_i32_0 = arith.constant 0 : i32
    return %arg0, %c0_i32 : i32, i32
  }
  func.func @transform_8(%arg0: i32) -> (i32, i32) {
    %c0_i32 = arith.constant 0 : i32
    %c0_i32_0 = arith.constant 0 : i32
    return %arg0, %c0_i32 : i32, i32
  }
  func.func @transform_9(%arg0: i32) -> (i32, i32) {
    %c0_i32 = arith.constant 0 : i32
    %c0_i32_0 = arith.constant 0 : i32
    return %arg0, %c0_i32 : i32, i32
  }
}

module attributes {stable_mosaic.version = 11 : i64} {
  func.func @kernel(%arg0: i32, %arg1: memref<256x8xbf16, #tpu.memory_space<vmem>>, %arg2: memref<256x8xbf16, #tpu.memory_space<vmem>>, %arg3: memref<1x1xf32, #tpu.memory_space<vmem>>, %arg4: memref<128x256xf32, #tpu.memory_space<vmem>>) attributes {dimension_semantics = [#tpu.dimension_semantics<parallel>], iteration_bounds = array<i64: 2>, scalar_prefetch = 0 : i64, scratch_operands = 0 : i64, tpu.core_type = #tpu.core_type<tc>, window_params = [{pipeline_mode = #tpu.pipeline_mode<synchronous>, transform_indices = @transform_0, window_bounds = array<i64: 256, 8>}, {pipeline_mode = #tpu.pipeline_mode<synchronous>, transform_indices = @transform_1, window_bounds = array<i64: 256, 8>}, {pipeline_mode = #tpu.pipeline_mode<synchronous>, transform_indices = @transform_2, window_bounds = array<i64: 1, 1>}, {transform_indices = @transform_3, window_bounds = array<i64: 128, 256>}]} {
    %c128_i32 = arith.constant 128 : i32
    %0 = arith.muli %arg0, %c128_i32 : i32
    %1 = tpu.assume_multiple %0, 128 : i32
    %2 = arith.index_cast %1 : i32 to index
    %c0 = arith.constant 0 : index
    %3 = vector.load %arg2[%2, %c0] : memref<256x8xbf16, #tpu.memory_space<vmem>>, vector<128x8xbf16>
    %c0_0 = arith.constant 0 : index
    %c0_1 = arith.constant 0 : index
    %4 = vector.load %arg1[%c0_0, %c0_1] : memref<256x8xbf16, #tpu.memory_space<vmem>>, vector<256x8xbf16>
    %cst = arith.constant dense<0.000000e+00> : vector<128x256xf32>
    %5 = tpu.matmul %3, %4, %cst {dimension_numbers = #tpu.dot_dimension_numbers<[1], [1], [0], [0], [0, 0, 1, 0], [], []>} : vector<128x8xbf16>, vector<256x8xbf16>, vector<128x256xf32> -> vector<128x256xf32>
    %c0_2 = arith.constant 0 : index
    %c0_3 = arith.constant 0 : index
    %6 = vector.load %arg3[%c0_2, %c0_3] : memref<1x1xf32, #tpu.memory_space<vmem>>, vector<1x1xf32>
    %7 = vector.broadcast %6 : vector<1x1xf32> to vector<128x256xf32>
    %8 = arith.addf %5, %7 : vector<128x256xf32>
    %c0_4 = arith.constant 0 : index
    %c0_5 = arith.constant 0 : index
    %9 = vector.load %arg4[%c0_4, %c0_5] : memref<128x256xf32, #tpu.memory_space<vmem>>, vector<128x256xf32>
    tpu.vector_store %arg4[%c0_4, %c0_5], %8 {strides = array<i32>} : memref<128x256xf32, #tpu.memory_space<vmem>>, vector<128x256xf32>,
    return
  }
  func.func @transform_0(%arg0: i32) -> (i32, i32) {
    %c0_i32 = arith.constant 0 : i32
    %c0_i32_0 = arith.constant 0 : i32
    %c0_i32_1 = arith.constant 0 : i32
    return %c0_i32, %c0_i32_0 : i32, i32
  }
  func.func @transform_1(%arg0: i32) -> (i32, i32) {
    %c0_i32 = arith.constant 0 : i32
    %c0_i32_0 = arith.constant 0 : i32
    %c0_i32_1 = arith.constant 0 : i32
    return %c0_i32, %c0_i32_0 : i32, i32
  }
  func.func @transform_2(%arg0: i32) -> (i32, i32) {
    %c0_i32 = arith.constant 0 : i32
    %c0_i32_0 = arith.constant 0 : i32
    %c0_i32_1 = arith.constant 0 : i32
    return %c0_i32, %c0_i32_0 : i32, i32
  }
  func.func @transform_3(%arg0: i32) -> (i32, i32) {
    %c0_i32 = arith.constant 0 : i32
    %c0_i32_0 = arith.constant 0 : i32
    return %arg0, %c0_i32 : i32, i32
  }
}

module attributes {stable_mosaic.version = 11 : i64} {
  func.func @kernel(%arg0: i32, %arg1: memref<256x128xbf16, #tpu.memory_space<vmem>>, %arg2: memref<128x256xbf16, #tpu.memory_space<vmem>>, %arg3: memref<128x4xbf16, #tpu.memory_space<vmem>>, %arg4: memref<4x128xbf16, #tpu.memory_space<vmem>>, %arg5: memref<1x32xf32, #tpu.memory_space<vmem>>, %arg6: memref<1x32xf32, #tpu.memory_space<vmem>>, %arg7: memref<32x128xbf16, #tpu.memory_space<vmem>>, %arg8: memref<128x128xbf16, #tpu.memory_space<vmem>>) attributes {dimension_semantics = [#tpu.dimension_semantics<parallel>], iteration_bounds = array<i64: 2>, scalar_prefetch = 0 : i64, scratch_operands = 0 : i64, tpu.core_type = #tpu.core_type<tc>, window_params = [{pipeline_mode = #tpu.pipeline_mode<synchronous>, transform_indices = @transform_0, window_bounds = array<i64: 256, 128>}, {transform_indices = @transform_1, window_bounds = array<i64: 128, 256>}, {pipeline_mode = #tpu.pipeline_mode<synchronous>, transform_indices = @transform_2, window_bounds = array<i64: 128, 4>}, {pipeline_mode = #tpu.pipeline_mode<synchronous>, transform_indices = @transform_3, window_bounds = array<i64: 4, 128>}, {pipeline_mode = #tpu.pipeline_mode<synchronous>, transform_indices = @transform_4, window_bounds = array<i64: 1, 32>}, {pipeline_mode = #tpu.pipeline_mode<synchronous>, transform_indices = @transform_5, window_bounds = array<i64: 1, 32>}, {pipeline_mode = #tpu.pipeline_mode<synchronous>, transform_indices = @transform_6, window_bounds = array<i64: 32, 128>}, {transform_indices = @transform_7, window_bounds = array<i64: 128, 128>}]} {
    %c128_i32 = arith.constant 128 : i32
    %0 = arith.muli %arg0, %c128_i32 : i32
    %1 = tpu.assume_multiple %0, 128 : i32
    %c0 = arith.constant 0 : index
    %c0_0 = arith.constant 0 : index
    %2 = vector.load %arg1[%c0, %c0_0] : memref<256x128xbf16, #tpu.memory_space<vmem>>, vector<256x128xbf16>
    %3 = arith.index_cast %1 : i32 to index
    %c0_1 = arith.constant 0 : index
    %4 = vector.load %arg1[%3, %c0_1] : memref<256x128xbf16, #tpu.memory_space<vmem>>, vector<128x128xbf16>
    %c0_2 = arith.constant 0 : index
    %c0_3 = arith.constant 0 : index
    %5 = vector.load %arg3[%c0_2, %c0_3] : memref<128x4xbf16, #tpu.memory_space<vmem>>, vector<128x4xbf16>
    %cst = arith.constant dense<0.000000e+00> : vector<128x4xf32>
    %6 = tpu.matmul %4, %5, %cst {dimension_numbers = #tpu.dot_dimension_numbers<[1], [0], [0], [1], [0, 0, 1, 1], [], []>} : vector<128x128xbf16>, vector<128x4xbf16>, vector<128x4xf32> -> vector<128x4xf32>
    %c0_4 = arith.constant 0 : index
    %c0_5 = arith.constant 0 : index
    %7 = vector.load %arg4[%c0_4, %c0_5] : memref<4x128xbf16, #tpu.memory_space<vmem>>, vector<4x128xbf16>
    %cst_6 = arith.constant dense<0.000000e+00> : vector<4x256xf32>
    %8 = tpu.matmul %7, %2, %cst_6 {dimension_numbers = #tpu.dot_dimension_numbers<[1], [1], [0], [0], [0, 0, 1, 0], [], []>} : vector<4x128xbf16>, vector<256x128xbf16>, vector<4x256xf32> -> vector<4x256xf32>
    %c0_7 = arith.constant 0 : index
    %c0_8 = arith.constant 0 : index
    %9 = vector.load %arg2[%c0_7, %c0_8] : memref<128x256xbf16, #tpu.memory_space<vmem>>, vector<128x256xbf16>
    %10 = arith.extf %9 : vector<128x256xbf16> to vector<128x256xf32>
    %cst_9 = arith.constant 1.000000e+00 : bf16
    %11 = vector.broadcast %cst_9 : bf16 to vector<256x1xbf16>
    %cst_10 = arith.constant 0.000000e+00 : f32
    %12 = vector.broadcast %cst_10 : f32 to vector<128x32xf32>
    %13 = vector.extract_strided_slice %6 {offsets = [0, 0], sizes = [128, 1], strides = [1, 1]} : vector<128x4xf32> to vector<128x1xf32>
    %14 = vector.extract_strided_slice %8 {offsets = [0, 0], sizes = [1, 256], strides = [1, 1]} : vector<4x256xf32> to vector<1x256xf32>
    %15 = vector.broadcast %13 : vector<128x1xf32> to vector<128x256xf32>
    %16 = vector.broadcast %14 : vector<1x256xf32> to vector<128x256xf32>
    %17 = arith.addf %15, %16 : vector<128x256xf32>
    %cst_11 = arith.constant 2.000000e-01 : f32
    %18 = vector.broadcast %cst_11 : f32 to vector<128x256xf32>
    %19 = arith.mulf %18, %17 : vector<128x256xf32>
    %20 = arith.maximumf %17, %19 : vector<128x256xf32>
    %21 = arith.addf %20, %10 : vector<128x256xf32>
    %cst_12 = arith.constant dense<0xFF800000> : vector<128xf32>
    %22 = vector.multi_reduction <maximumf>, %21, %cst_12 [1] : vector<128x256xf32> to vector<128xf32>
    %23 = vector.shape_cast %22 : vector<128xf32> to vector<128x1xf32>
    %24 = vector.broadcast %23 : vector<128x1xf32> to vector<128x256xf32>
    %25 = arith.subf %21, %24 : vector<128x256xf32>
    %26 = math.exp %25 : vector<128x256xf32>
    %27 = vector.extract_strided_slice %2 {offsets = [0, 0], sizes = [256, 32], strides = [1, 1]} : vector<256x128xbf16> to vector<256x32xbf16>
    %28 = tpu.concatenate %27, %11 in 1 : vector<256x32xbf16>, vector<256x1xbf16> -> vector<256x33xbf16>
    %29 = arith.truncf %26 : vector<128x256xf32> to vector<128x256xbf16>
    %cst_13 = arith.constant dense<0.000000e+00> : vector<128x33xf32>
    %30 = tpu.matmul %29, %28, %cst_13 {dimension_numbers = #tpu.dot_dimension_numbers<[1], [0], [0], [1], [0, 0, 1, 1], [], []>} : vector<128x256xbf16>, vector<256x33xbf16>, vector<128x33xf32> -> vector<128x33xf32>
    %31 = vector.extract_strided_slice %30 {offsets = [0, 0], sizes = [128, 32], strides = [1, 1]} : vector<128x33xf32> to vector<128x32xf32>
    %32 = vector.extract_strided_slice %30 {offsets = [0, 32], sizes = [128, 1], strides = [1, 1]} : vector<128x33xf32> to vector<128x1xf32>
    %33 = tpu.reciprocal %32 {approx = true} : vector<128x1xf32> -> vector<128x1xf32>
    %34 = vector.broadcast %33 : vector<128x1xf32> to vector<128x32xf32>
    %35 = arith.mulf %31, %34 : vector<128x32xf32>
    %36 = arith.addf %12, %35 : vector<128x32xf32>
    %37 = vector.extract_strided_slice %6 {offsets = [0, 1], sizes = [128, 1], strides = [1, 1]} : vector<128x4xf32> to vector<128x1xf32>
    %38 = vector.extract_strided_slice %8 {offsets = [1, 0], sizes = [1, 256], strides = [1, 1]} : vector<4x256xf32> to vector<1x256xf32>
    %39 = vector.broadcast %37 : vector<128x1xf32> to vector<128x256xf32>
    %40 = vector.broadcast %38 : vector<1x256xf32> to vector<128x256xf32>
    %41 = arith.addf %39, %40 : vector<128x256xf32>
    %cst_14 = arith.constant 2.000000e-01 : f32
    %42 = vector.broadcast %cst_14 : f32 to vector<128x256xf32>
    %43 = arith.mulf %42, %41 : vector<128x256xf32>
    %44 = arith.maximumf %41, %43 : vector<128x256xf32>
    %45 = arith.addf %44, %10 : vector<128x256xf32>
    %cst_15 = arith.constant dense<0xFF800000> : vector<128xf32>
    %46 = vector.multi_reduction <maximumf>, %45, %cst_15 [1] : vector<128x256xf32> to vector<128xf32>
    %47 = vector.shape_cast %46 : vector<128xf32> to vector<128x1xf32>
    %48 = vector.broadcast %47 : vector<128x1xf32> to vector<128x256xf32>
    %49 = arith.subf %45, %48 : vector<128x256xf32>
    %50 = math.exp %49 : vector<128x256xf32>
    %51 = vector.extract_strided_slice %2 {offsets = [0, 32], sizes = [256, 32], strides = [1, 1]} : vector<256x128xbf16> to vector<256x32xbf16>
    %52 = tpu.concatenate %51, %11 in 1 : vector<256x32xbf16>, vector<256x1xbf16> -> vector<256x33xbf16>
    %53 = arith.truncf %50 : vector<128x256xf32> to vector<128x256xbf16>
    %cst_16 = arith.constant dense<0.000000e+00> : vector<128x33xf32>
    %54 = tpu.matmul %53, %52, %cst_16 {dimension_numbers = #tpu.dot_dimension_numbers<[1], [0], [0], [1], [0, 0, 1, 1], [], []>} : vector<128x256xbf16>, vector<256x33xbf16>, vector<128x33xf32> -> vector<128x33xf32>
    %55 = vector.extract_strided_slice %54 {offsets = [0, 0], sizes = [128, 32], strides = [1, 1]} : vector<128x33xf32> to vector<128x32xf32>
    %56 = vector.extract_strided_slice %54 {offsets = [0, 32], sizes = [128, 1], strides = [1, 1]} : vector<128x33xf32> to vector<128x1xf32>
    %57 = tpu.reciprocal %56 {approx = true} : vector<128x1xf32> -> vector<128x1xf32>
    %58 = vector.broadcast %57 : vector<128x1xf32> to vector<128x32xf32>
    %59 = arith.mulf %55, %58 : vector<128x32xf32>
    %60 = arith.addf %36, %59 : vector<128x32xf32>
    %61 = vector.extract_strided_slice %6 {offsets = [0, 2], sizes = [128, 1], strides = [1, 1]} : vector<128x4xf32> to vector<128x1xf32>
    %62 = vector.extract_strided_slice %8 {offsets = [2, 0], sizes = [1, 256], strides = [1, 1]} : vector<4x256xf32> to vector<1x256xf32>
    %63 = vector.broadcast %61 : vector<128x1xf32> to vector<128x256xf32>
    %64 = vector.broadcast %62 : vector<1x256xf32> to vector<128x256xf32>
    %65 = arith.addf %63, %64 : vector<128x256xf32>
    %cst_17 = arith.constant 2.000000e-01 : f32
    %66 = vector.broadcast %cst_17 : f32 to vector<128x256xf32>
    %67 = arith.mulf %66, %65 : vector<128x256xf32>
    %68 = arith.maximumf %65, %67 : vector<128x256xf32>
    %69 = arith.addf %68, %10 : vector<128x256xf32>
    %cst_18 = arith.constant dense<0xFF800000> : vector<128xf32>
    %70 = vector.multi_reduction <maximumf>, %69, %cst_18 [1] : vector<128x256xf32> to vector<128xf32>
    %71 = vector.shape_cast %70 : vector<128xf32> to vector<128x1xf32>
    %72 = vector.broadcast %71 : vector<128x1xf32> to vector<128x256xf32>
    %73 = arith.subf %69, %72 : vector<128x256xf32>
    %74 = math.exp %73 : vector<128x256xf32>
    %75 = vector.extract_strided_slice %2 {offsets = [0, 64], sizes = [256, 32], strides = [1, 1]} : vector<256x128xbf16> to vector<256x32xbf16>
    %76 = tpu.concatenate %75, %11 in 1 : vector<256x32xbf16>, vector<256x1xbf16> -> vector<256x33xbf16>
    %77 = arith.truncf %74 : vector<128x256xf32> to vector<128x256xbf16>
    %cst_19 = arith.constant dense<0.000000e+00> : vector<128x33xf32>
    %78 = tpu.matmul %77, %76, %cst_19 {dimension_numbers = #tpu.dot_dimension_numbers<[1], [0], [0], [1], [0, 0, 1, 1], [], []>} : vector<128x256xbf16>, vector<256x33xbf16>, vector<128x33xf32> -> vector<128x33xf32>
    %79 = vector.extract_strided_slice %78 {offsets = [0, 0], sizes = [128, 32], strides = [1, 1]} : vector<128x33xf32> to vector<128x32xf32>
    %80 = vector.extract_strided_slice %78 {offsets = [0, 32], sizes = [128, 1], strides = [1, 1]} : vector<128x33xf32> to vector<128x1xf32>
    %81 = tpu.reciprocal %80 {approx = true} : vector<128x1xf32> -> vector<128x1xf32>
    %82 = vector.broadcast %81 : vector<128x1xf32> to vector<128x32xf32>
    %83 = arith.mulf %79, %82 : vector<128x32xf32>
    %84 = arith.addf %60, %83 : vector<128x32xf32>
    %85 = vector.extract_strided_slice %6 {offsets = [0, 3], sizes = [128, 1], strides = [1, 1]} : vector<128x4xf32> to vector<128x1xf32>
    %86 = vector.extract_strided_slice %8 {offsets = [3, 0], sizes = [1, 256], strides = [1, 1]} : vector<4x256xf32> to vector<1x256xf32>
    %87 = vector.broadcast %85 : vector<128x1xf32> to vector<128x256xf32>
    %88 = vector.broadcast %86 : vector<1x256xf32> to vector<128x256xf32>
    %89 = arith.addf %87, %88 : vector<128x256xf32>
    %cst_20 = arith.constant 2.000000e-01 : f32
    %90 = vector.broadcast %cst_20 : f32 to vector<128x256xf32>
    %91 = arith.mulf %90, %89 : vector<128x256xf32>
    %92 = arith.maximumf %89, %91 : vector<128x256xf32>
    %93 = arith.addf %92, %10 : vector<128x256xf32>
    %cst_21 = arith.constant dense<0xFF800000> : vector<128xf32>
    %94 = vector.multi_reduction <maximumf>, %93, %cst_21 [1] : vector<128x256xf32> to vector<128xf32>
    %95 = vector.shape_cast %94 : vector<128xf32> to vector<128x1xf32>
    %96 = vector.broadcast %95 : vector<128x1xf32> to vector<128x256xf32>
    %97 = arith.subf %93, %96 : vector<128x256xf32>
    %98 = math.exp %97 : vector<128x256xf32>
    %99 = vector.extract_strided_slice %2 {offsets = [0, 96], sizes = [256, 32], strides = [1, 1]} : vector<256x128xbf16> to vector<256x32xbf16>
    %100 = tpu.concatenate %99, %11 in 1 : vector<256x32xbf16>, vector<256x1xbf16> -> vector<256x33xbf16>
    %101 = arith.truncf %98 : vector<128x256xf32> to vector<128x256xbf16>
    %cst_22 = arith.constant dense<0.000000e+00> : vector<128x33xf32>
    %102 = tpu.matmul %101, %100, %cst_22 {dimension_numbers = #tpu.dot_dimension_numbers<[1], [0], [0], [1], [0, 0, 1, 1], [], []>} : vector<128x256xbf16>, vector<256x33xbf16>, vector<128x33xf32> -> vector<128x33xf32>
    %103 = vector.extract_strided_slice %102 {offsets = [0, 0], sizes = [128, 32], strides = [1, 1]} : vector<128x33xf32> to vector<128x32xf32>
    %104 = vector.extract_strided_slice %102 {offsets = [0, 32], sizes = [128, 1], strides = [1, 1]} : vector<128x33xf32> to vector<128x1xf32>
    %105 = tpu.reciprocal %104 {approx = true} : vector<128x1xf32> -> vector<128x1xf32>
    %106 = vector.broadcast %105 : vector<128x1xf32> to vector<128x32xf32>
    %107 = arith.mulf %103, %106 : vector<128x32xf32>
    %108 = arith.addf %84, %107 : vector<128x32xf32>
    %c0_23 = arith.constant 0 : index
    %c0_24 = arith.constant 0 : index
    %109 = vector.load %arg5[%c0_23, %c0_24] : memref<1x32xf32, #tpu.memory_space<vmem>>, vector<1x32xf32>
    %110 = vector.broadcast %109 : vector<1x32xf32> to vector<128x32xf32>
    %111 = arith.mulf %108, %110 : vector<128x32xf32>
    %c0_25 = arith.constant 0 : index
    %c0_26 = arith.constant 0 : index
    %112 = vector.load %arg6[%c0_25, %c0_26] : memref<1x32xf32, #tpu.memory_space<vmem>>, vector<1x32xf32>
    %113 = vector.broadcast %112 : vector<1x32xf32> to vector<128x32xf32>
    %114 = arith.addf %111, %113 : vector<128x32xf32>
    %cst_27 = arith.constant 0.000000e+00 : f32
    %115 = vector.broadcast %cst_27 : f32 to vector<128x32xf32>
    %116 = arith.cmpf ogt, %114, %115 : vector<128x32xf32>
    %cst_28 = arith.constant 0.000000e+00 : f32
    %117 = vector.broadcast %cst_28 : f32 to vector<128x32xf32>
    %118 = arith.minimumf %114, %117 : vector<128x32xf32>
    %119 = math.exp %118 : vector<128x32xf32>
    %cst_29 = arith.constant 1.000000e+00 : f32
    %120 = vector.broadcast %cst_29 : f32 to vector<128x32xf32>
    %121 = arith.subf %119, %120 : vector<128x32xf32>
    %122 = arith.select %116, %114, %121 : vector<128x32xi1>, vector<128x32xf32>
    %123 = arith.truncf %122 : vector<128x32xf32> to vector<128x32xbf16>
    %c0_30 = arith.constant 0 : index
    %c0_31 = arith.constant 0 : index
    %124 = vector.load %arg7[%c0_30, %c0_31] : memref<32x128xbf16, #tpu.memory_space<vmem>>, vector<32x128xbf16>
    %cst_32 = arith.constant dense<0.000000e+00> : vector<128x128xf32>
    %125 = tpu.matmul %123, %124, %cst_32 {dimension_numbers = #tpu.dot_dimension_numbers<[1], [0], [0], [1], [0, 0, 1, 1], [], []>} : vector<128x32xbf16>, vector<32x128xbf16>, vector<128x128xf32> -> vector<128x128xf32>
    %126 = arith.truncf %125 : vector<128x128xf32> to vector<128x128xbf16>
    %c0_33 = arith.constant 0 : index
    %c0_34 = arith.constant 0 : index
    %127 = vector.load %arg8[%c0_33, %c0_34] : memref<128x128xbf16, #tpu.memory_space<vmem>>, vector<128x128xbf16>
    tpu.vector_store %arg8[%c0_33, %c0_34], %126 {strides = array<i32>} : memref<128x128xbf16, #tpu.memory_space<vmem>>, vector<128x128xbf16>,
    return
  }
  func.func @transform_0(%arg0: i32) -> (i32, i32) {
    %c0_i32 = arith.constant 0 : i32
    %c0_i32_0 = arith.constant 0 : i32
    %c0_i32_1 = arith.constant 0 : i32
    return %c0_i32, %c0_i32_0 : i32, i32
  }
  func.func @transform_1(%arg0: i32) -> (i32, i32) {
    %c0_i32 = arith.constant 0 : i32
    %c0_i32_0 = arith.constant 0 : i32
    return %arg0, %c0_i32 : i32, i32
  }
  func.func @transform_2(%arg0: i32) -> (i32, i32) {
    %c0_i32 = arith.constant 0 : i32
    %c0_i32_0 = arith.constant 0 : i32
    %c0_i32_1 = arith.constant 0 : i32
    return %c0_i32, %c0_i32_0 : i32, i32
  }
  func.func @transform_3(%arg0: i32) -> (i32, i32) {
    %c0_i32 = arith.constant 0 : i32
    %c0_i32_0 = arith.constant 0 : i32
    %c0_i32_1 = arith.constant 0 : i32
    return %c0_i32, %c0_i32_0 : i32, i32
  }
  func.func @transform_4(%arg0: i32) -> (i32, i32) {
    %c0_i32 = arith.constant 0 : i32
    %c0_i32_0 = arith.constant 0 : i32
    %c0_i32_1 = arith.constant 0 : i32
    return %c0_i32, %c0_i32_0 : i32, i32
  }
  func.func @transform_5(%arg0: i32) -> (i32, i32) {
    %c0_i32 = arith.constant 0 : i32
    %c0_i32_0 = arith.constant 0 : i32
    %c0_i32_1 = arith.constant 0 : i32
    return %c0_i32, %c0_i32_0 : i32, i32
  }
  func.func @transform_6(%arg0: i32) -> (i32, i32) {
    %c0_i32 = arith.constant 0 : i32
    %c0_i32_0 = arith.constant 0 : i32
    %c0_i32_1 = arith.constant 0 : i32
    return %c0_i32, %c0_i32_0 : i32, i32
  }
  func.func @transform_7(%arg0: i32) -> (i32, i32) {
    %c0_i32 = arith.constant 0 : i32
    %c0_i32_0 = arith.constant 0 : i32
    return %arg0, %c0_i32 : i32, i32
  }
}

module attributes {stable_mosaic.version = 11 : i64} {
  func.func @kernel(%arg0: i32, %arg1: memref<256x128xbf16, #tpu.memory_space<vmem>>, %arg2: memref<128x256xbf16, #tpu.memory_space<vmem>>, %arg3: memref<128x4xbf16, #tpu.memory_space<vmem>>, %arg4: memref<4x128xbf16, #tpu.memory_space<vmem>>, %arg5: memref<1x32xf32, #tpu.memory_space<vmem>>, %arg6: memref<1x32xf32, #tpu.memory_space<vmem>>, %arg7: memref<32x16xbf16, #tpu.memory_space<vmem>>, %arg8: memref<1x16xf32, #tpu.memory_space<vmem>>, %arg9: memref<16x8xbf16, #tpu.memory_space<vmem>>, %arg10: memref<1x8xf32, #tpu.memory_space<vmem>>, %arg11: memref<1x8xf32, #tpu.memory_space<vmem>>, %arg12: memref<1x8xf32, #tpu.memory_space<vmem>>, %arg13: memref<128x128xf32, #tpu.memory_space<vmem>>) attributes {dimension_semantics = [#tpu.dimension_semantics<parallel>], iteration_bounds = array<i64: 2>, scalar_prefetch = 0 : i64, scratch_operands = 0 : i64, tpu.core_type = #tpu.core_type<tc>, window_params = [{pipeline_mode = #tpu.pipeline_mode<synchronous>, transform_indices = @transform_0, window_bounds = array<i64: 256, 128>}, {transform_indices = @transform_1, window_bounds = array<i64: 128, 256>}, {pipeline_mode = #tpu.pipeline_mode<synchronous>, transform_indices = @transform_2, window_bounds = array<i64: 128, 4>}, {pipeline_mode = #tpu.pipeline_mode<synchronous>, transform_indices = @transform_3, window_bounds = array<i64: 4, 128>}, {pipeline_mode = #tpu.pipeline_mode<synchronous>, transform_indices = @transform_4, window_bounds = array<i64: 1, 32>}, {pipeline_mode = #tpu.pipeline_mode<synchronous>, transform_indices = @transform_5, window_bounds = array<i64: 1, 32>}, {pipeline_mode = #tpu.pipeline_mode<synchronous>, transform_indices = @transform_6, window_bounds = array<i64: 32, 16>}, {pipeline_mode = #tpu.pipeline_mode<synchronous>, transform_indices = @transform_7, window_bounds = array<i64: 1, 16>}, {pipeline_mode = #tpu.pipeline_mode<synchronous>, transform_indices = @transform_8, window_bounds = array<i64: 16, 8>}, {pipeline_mode = #tpu.pipeline_mode<synchronous>, transform_indices = @transform_9, window_bounds = array<i64: 1, 8>}, {pipeline_mode = #tpu.pipeline_mode<synchronous>, transform_indices = @transform_10, window_bounds = array<i64: 1, 8>}, {pipeline_mode = #tpu.pipeline_mode<synchronous>, transform_indices = @transform_11, window_bounds = array<i64: 1, 8>}, {transform_indices = @transform_12, window_bounds = array<i64: 128, 128>}]} {
    %c128_i32 = arith.constant 128 : i32
    %0 = arith.muli %arg0, %c128_i32 : i32
    %1 = tpu.assume_multiple %0, 128 : i32
    %c0 = arith.constant 0 : index
    %c0_0 = arith.constant 0 : index
    %2 = vector.load %arg1[%c0, %c0_0] : memref<256x128xbf16, #tpu.memory_space<vmem>>, vector<256x128xbf16>
    %3 = arith.index_cast %1 : i32 to index
    %c0_1 = arith.constant 0 : index
    %4 = vector.load %arg1[%3, %c0_1] : memref<256x128xbf16, #tpu.memory_space<vmem>>, vector<128x128xbf16>
    %c0_2 = arith.constant 0 : index
    %c0_3 = arith.constant 0 : index
    %5 = vector.load %arg3[%c0_2, %c0_3] : memref<128x4xbf16, #tpu.memory_space<vmem>>, vector<128x4xbf16>
    %cst = arith.constant dense<0.000000e+00> : vector<128x4xf32>
    %6 = tpu.matmul %4, %5, %cst {dimension_numbers = #tpu.dot_dimension_numbers<[1], [0], [0], [1], [0, 0, 1, 1], [], []>} : vector<128x128xbf16>, vector<128x4xbf16>, vector<128x4xf32> -> vector<128x4xf32>
    %c0_4 = arith.constant 0 : index
    %c0_5 = arith.constant 0 : index
    %7 = vector.load %arg4[%c0_4, %c0_5] : memref<4x128xbf16, #tpu.memory_space<vmem>>, vector<4x128xbf16>
    %cst_6 = arith.constant dense<0.000000e+00> : vector<4x256xf32>
    %8 = tpu.matmul %7, %2, %cst_6 {dimension_numbers = #tpu.dot_dimension_numbers<[1], [1], [0], [0], [0, 0, 1, 0], [], []>} : vector<4x128xbf16>, vector<256x128xbf16>, vector<4x256xf32> -> vector<4x256xf32>
    %c0_7 = arith.constant 0 : index
    %c0_8 = arith.constant 0 : index
    %9 = vector.load %arg2[%c0_7, %c0_8] : memref<128x256xbf16, #tpu.memory_space<vmem>>, vector<128x256xbf16>
    %10 = arith.extf %9 : vector<128x256xbf16> to vector<128x256xf32>
    %cst_9 = arith.constant 1.000000e+00 : bf16
    %11 = vector.broadcast %cst_9 : bf16 to vector<256x1xbf16>
    %cst_10 = arith.constant 0.000000e+00 : f32
    %12 = vector.broadcast %cst_10 : f32 to vector<128x32xf32>
    %13 = vector.extract_strided_slice %6 {offsets = [0, 0], sizes = [128, 1], strides = [1, 1]} : vector<128x4xf32> to vector<128x1xf32>
    %14 = vector.extract_strided_slice %8 {offsets = [0, 0], sizes = [1, 256], strides = [1, 1]} : vector<4x256xf32> to vector<1x256xf32>
    %15 = vector.broadcast %13 : vector<128x1xf32> to vector<128x256xf32>
    %16 = vector.broadcast %14 : vector<1x256xf32> to vector<128x256xf32>
    %17 = arith.addf %15, %16 : vector<128x256xf32>
    %cst_11 = arith.constant 2.000000e-01 : f32
    %18 = vector.broadcast %cst_11 : f32 to vector<128x256xf32>
    %19 = arith.mulf %18, %17 : vector<128x256xf32>
    %20 = arith.maximumf %17, %19 : vector<128x256xf32>
    %21 = arith.addf %20, %10 : vector<128x256xf32>
    %cst_12 = arith.constant dense<0xFF800000> : vector<128xf32>
    %22 = vector.multi_reduction <maximumf>, %21, %cst_12 [1] : vector<128x256xf32> to vector<128xf32>
    %23 = vector.shape_cast %22 : vector<128xf32> to vector<128x1xf32>
    %24 = vector.broadcast %23 : vector<128x1xf32> to vector<128x256xf32>
    %25 = arith.subf %21, %24 : vector<128x256xf32>
    %26 = math.exp %25 : vector<128x256xf32>
    %27 = vector.extract_strided_slice %2 {offsets = [0, 0], sizes = [256, 32], strides = [1, 1]} : vector<256x128xbf16> to vector<256x32xbf16>
    %28 = tpu.concatenate %27, %11 in 1 : vector<256x32xbf16>, vector<256x1xbf16> -> vector<256x33xbf16>
    %29 = arith.truncf %26 : vector<128x256xf32> to vector<128x256xbf16>
    %cst_13 = arith.constant dense<0.000000e+00> : vector<128x33xf32>
    %30 = tpu.matmul %29, %28, %cst_13 {dimension_numbers = #tpu.dot_dimension_numbers<[1], [0], [0], [1], [0, 0, 1, 1], [], []>} : vector<128x256xbf16>, vector<256x33xbf16>, vector<128x33xf32> -> vector<128x33xf32>
    %31 = vector.extract_strided_slice %30 {offsets = [0, 0], sizes = [128, 32], strides = [1, 1]} : vector<128x33xf32> to vector<128x32xf32>
    %32 = vector.extract_strided_slice %30 {offsets = [0, 32], sizes = [128, 1], strides = [1, 1]} : vector<128x33xf32> to vector<128x1xf32>
    %33 = tpu.reciprocal %32 {approx = true} : vector<128x1xf32> -> vector<128x1xf32>
    %34 = vector.broadcast %33 : vector<128x1xf32> to vector<128x32xf32>
    %35 = arith.mulf %31, %34 : vector<128x32xf32>
    %36 = arith.addf %12, %35 : vector<128x32xf32>
    %37 = vector.extract_strided_slice %6 {offsets = [0, 1], sizes = [128, 1], strides = [1, 1]} : vector<128x4xf32> to vector<128x1xf32>
    %38 = vector.extract_strided_slice %8 {offsets = [1, 0], sizes = [1, 256], strides = [1, 1]} : vector<4x256xf32> to vector<1x256xf32>
    %39 = vector.broadcast %37 : vector<128x1xf32> to vector<128x256xf32>
    %40 = vector.broadcast %38 : vector<1x256xf32> to vector<128x256xf32>
    %41 = arith.addf %39, %40 : vector<128x256xf32>
    %cst_14 = arith.constant 2.000000e-01 : f32
    %42 = vector.broadcast %cst_14 : f32 to vector<128x256xf32>
    %43 = arith.mulf %42, %41 : vector<128x256xf32>
    %44 = arith.maximumf %41, %43 : vector<128x256xf32>
    %45 = arith.addf %44, %10 : vector<128x256xf32>
    %cst_15 = arith.constant dense<0xFF800000> : vector<128xf32>
    %46 = vector.multi_reduction <maximumf>, %45, %cst_15 [1] : vector<128x256xf32> to vector<128xf32>
    %47 = vector.shape_cast %46 : vector<128xf32> to vector<128x1xf32>
    %48 = vector.broadcast %47 : vector<128x1xf32> to vector<128x256xf32>
    %49 = arith.subf %45, %48 : vector<128x256xf32>
    %50 = math.exp %49 : vector<128x256xf32>
    %51 = vector.extract_strided_slice %2 {offsets = [0, 32], sizes = [256, 32], strides = [1, 1]} : vector<256x128xbf16> to vector<256x32xbf16>
    %52 = tpu.concatenate %51, %11 in 1 : vector<256x32xbf16>, vector<256x1xbf16> -> vector<256x33xbf16>
    %53 = arith.truncf %50 : vector<128x256xf32> to vector<128x256xbf16>
    %cst_16 = arith.constant dense<0.000000e+00> : vector<128x33xf32>
    %54 = tpu.matmul %53, %52, %cst_16 {dimension_numbers = #tpu.dot_dimension_numbers<[1], [0], [0], [1], [0, 0, 1, 1], [], []>} : vector<128x256xbf16>, vector<256x33xbf16>, vector<128x33xf32> -> vector<128x33xf32>
    %55 = vector.extract_strided_slice %54 {offsets = [0, 0], sizes = [128, 32], strides = [1, 1]} : vector<128x33xf32> to vector<128x32xf32>
    %56 = vector.extract_strided_slice %54 {offsets = [0, 32], sizes = [128, 1], strides = [1, 1]} : vector<128x33xf32> to vector<128x1xf32>
    %57 = tpu.reciprocal %56 {approx = true} : vector<128x1xf32> -> vector<128x1xf32>
    %58 = vector.broadcast %57 : vector<128x1xf32> to vector<128x32xf32>
    %59 = arith.mulf %55, %58 : vector<128x32xf32>
    %60 = arith.addf %36, %59 : vector<128x32xf32>
    %61 = vector.extract_strided_slice %6 {offsets = [0, 2], sizes = [128, 1], strides = [1, 1]} : vector<128x4xf32> to vector<128x1xf32>
    %62 = vector.extract_strided_slice %8 {offsets = [2, 0], sizes = [1, 256], strides = [1, 1]} : vector<4x256xf32> to vector<1x256xf32>
    %63 = vector.broadcast %61 : vector<128x1xf32> to vector<128x256xf32>
    %64 = vector.broadcast %62 : vector<1x256xf32> to vector<128x256xf32>
    %65 = arith.addf %63, %64 : vector<128x256xf32>
    %cst_17 = arith.constant 2.000000e-01 : f32
    %66 = vector.broadcast %cst_17 : f32 to vector<128x256xf32>
    %67 = arith.mulf %66, %65 : vector<128x256xf32>
    %68 = arith.maximumf %65, %67 : vector<128x256xf32>
    %69 = arith.addf %68, %10 : vector<128x256xf32>
    %cst_18 = arith.constant dense<0xFF800000> : vector<128xf32>
    %70 = vector.multi_reduction <maximumf>, %69, %cst_18 [1] : vector<128x256xf32> to vector<128xf32>
    %71 = vector.shape_cast %70 : vector<128xf32> to vector<128x1xf32>
    %72 = vector.broadcast %71 : vector<128x1xf32> to vector<128x256xf32>
    %73 = arith.subf %69, %72 : vector<128x256xf32>
    %74 = math.exp %73 : vector<128x256xf32>
    %75 = vector.extract_strided_slice %2 {offsets = [0, 64], sizes = [256, 32], strides = [1, 1]} : vector<256x128xbf16> to vector<256x32xbf16>
    %76 = tpu.concatenate %75, %11 in 1 : vector<256x32xbf16>, vector<256x1xbf16> -> vector<256x33xbf16>
    %77 = arith.truncf %74 : vector<128x256xf32> to vector<128x256xbf16>
    %cst_19 = arith.constant dense<0.000000e+00> : vector<128x33xf32>
    %78 = tpu.matmul %77, %76, %cst_19 {dimension_numbers = #tpu.dot_dimension_numbers<[1], [0], [0], [1], [0, 0, 1, 1], [], []>} : vector<128x256xbf16>, vector<256x33xbf16>, vector<128x33xf32> -> vector<128x33xf32>
    %79 = vector.extract_strided_slice %78 {offsets = [0, 0], sizes = [128, 32], strides = [1, 1]} : vector<128x33xf32> to vector<128x32xf32>
    %80 = vector.extract_strided_slice %78 {offsets = [0, 32], sizes = [128, 1], strides = [1, 1]} : vector<128x33xf32> to vector<128x1xf32>
    %81 = tpu.reciprocal %80 {approx = true} : vector<128x1xf32> -> vector<128x1xf32>
    %82 = vector.broadcast %81 : vector<128x1xf32> to vector<128x32xf32>
    %83 = arith.mulf %79, %82 : vector<128x32xf32>
    %84 = arith.addf %60, %83 : vector<128x32xf32>
    %85 = vector.extract_strided_slice %6 {offsets = [0, 3], sizes = [128, 1], strides = [1, 1]} : vector<128x4xf32> to vector<128x1xf32>
    %86 = vector.extract_strided_slice %8 {offsets = [3, 0], sizes = [1, 256], strides = [1, 1]} : vector<4x256xf32> to vector<1x256xf32>
    %87 = vector.broadcast %85 : vector<128x1xf32> to vector<128x256xf32>
    %88 = vector.broadcast %86 : vector<1x256xf32> to vector<128x256xf32>
    %89 = arith.addf %87, %88 : vector<128x256xf32>
    %cst_20 = arith.constant 2.000000e-01 : f32
    %90 = vector.broadcast %cst_20 : f32 to vector<128x256xf32>
    %91 = arith.mulf %90, %89 : vector<128x256xf32>
    %92 = arith.maximumf %89, %91 : vector<128x256xf32>
    %93 = arith.addf %92, %10 : vector<128x256xf32>
    %cst_21 = arith.constant dense<0xFF800000> : vector<128xf32>
    %94 = vector.multi_reduction <maximumf>, %93, %cst_21 [1] : vector<128x256xf32> to vector<128xf32>
    %95 = vector.shape_cast %94 : vector<128xf32> to vector<128x1xf32>
    %96 = vector.broadcast %95 : vector<128x1xf32> to vector<128x256xf32>
    %97 = arith.subf %93, %96 : vector<128x256xf32>
    %98 = math.exp %97 : vector<128x256xf32>
    %99 = vector.extract_strided_slice %2 {offsets = [0, 96], sizes = [256, 32], strides = [1, 1]} : vector<256x128xbf16> to vector<256x32xbf16>
    %100 = tpu.concatenate %99, %11 in 1 : vector<256x32xbf16>, vector<256x1xbf16> -> vector<256x33xbf16>
    %101 = arith.truncf %98 : vector<128x256xf32> to vector<128x256xbf16>
    %cst_22 = arith.constant dense<0.000000e+00> : vector<128x33xf32>
    %102 = tpu.matmul %101, %100, %cst_22 {dimension_numbers = #tpu.dot_dimension_numbers<[1], [0], [0], [1], [0, 0, 1, 1], [], []>} : vector<128x256xbf16>, vector<256x33xbf16>, vector<128x33xf32> -> vector<128x33xf32>
    %103 = vector.extract_strided_slice %102 {offsets = [0, 0], sizes = [128, 32], strides = [1, 1]} : vector<128x33xf32> to vector<128x32xf32>
    %104 = vector.extract_strided_slice %102 {offsets = [0, 32], sizes = [128, 1], strides = [1, 1]} : vector<128x33xf32> to vector<128x1xf32>
    %105 = tpu.reciprocal %104 {approx = true} : vector<128x1xf32> -> vector<128x1xf32>
    %106 = vector.broadcast %105 : vector<128x1xf32> to vector<128x32xf32>
    %107 = arith.mulf %103, %106 : vector<128x32xf32>
    %108 = arith.addf %84, %107 : vector<128x32xf32>
    %c0_23 = arith.constant 0 : index
    %c0_24 = arith.constant 0 : index
    %109 = vector.load %arg5[%c0_23, %c0_24] : memref<1x32xf32, #tpu.memory_space<vmem>>, vector<1x32xf32>
    %110 = vector.broadcast %109 : vector<1x32xf32> to vector<128x32xf32>
    %111 = arith.mulf %108, %110 : vector<128x32xf32>
    %c0_25 = arith.constant 0 : index
    %c0_26 = arith.constant 0 : index
    %112 = vector.load %arg6[%c0_25, %c0_26] : memref<1x32xf32, #tpu.memory_space<vmem>>, vector<1x32xf32>
    %113 = vector.broadcast %112 : vector<1x32xf32> to vector<128x32xf32>
    %114 = arith.addf %111, %113 : vector<128x32xf32>
    %cst_27 = arith.constant 0.000000e+00 : f32
    %115 = vector.broadcast %cst_27 : f32 to vector<128x32xf32>
    %116 = arith.cmpf ogt, %114, %115 : vector<128x32xf32>
    %cst_28 = arith.constant 0.000000e+00 : f32
    %117 = vector.broadcast %cst_28 : f32 to vector<128x32xf32>
    %118 = arith.minimumf %114, %117 : vector<128x32xf32>
    %119 = math.exp %118 : vector<128x32xf32>
    %cst_29 = arith.constant 1.000000e+00 : f32
    %120 = vector.broadcast %cst_29 : f32 to vector<128x32xf32>
    %121 = arith.subf %119, %120 : vector<128x32xf32>
    %122 = arith.select %116, %114, %121 : vector<128x32xi1>, vector<128x32xf32>
    %123 = arith.truncf %122 : vector<128x32xf32> to vector<128x32xbf16>
    %c0_30 = arith.constant 0 : index
    %c0_31 = arith.constant 0 : index
    %124 = vector.load %arg7[%c0_30, %c0_31] : memref<32x16xbf16, #tpu.memory_space<vmem>>, vector<32x16xbf16>
    %cst_32 = arith.constant dense<0.000000e+00> : vector<128x16xf32>
    %125 = tpu.matmul %123, %124, %cst_32 {dimension_numbers = #tpu.dot_dimension_numbers<[1], [0], [0], [1], [0, 0, 1, 1], [], []>} : vector<128x32xbf16>, vector<32x16xbf16>, vector<128x16xf32> -> vector<128x16xf32>
    %c0_33 = arith.constant 0 : index
    %c0_34 = arith.constant 0 : index
    %126 = vector.load %arg8[%c0_33, %c0_34] : memref<1x16xf32, #tpu.memory_space<vmem>>, vector<1x16xf32>
    %127 = vector.broadcast %126 : vector<1x16xf32> to vector<128x16xf32>
    %128 = arith.addf %125, %127 : vector<128x16xf32>
    %129 = arith.truncf %128 : vector<128x16xf32> to vector<128x16xbf16>
    %c0_35 = arith.constant 0 : index
    %c0_36 = arith.constant 0 : index
    %130 = vector.load %arg9[%c0_35, %c0_36] : memref<16x8xbf16, #tpu.memory_space<vmem>>, vector<16x8xbf16>
    %cst_37 = arith.constant dense<0.000000e+00> : vector<128x8xf32>
    %131 = tpu.matmul %129, %130, %cst_37 {dimension_numbers = #tpu.dot_dimension_numbers<[1], [0], [0], [1], [0, 0, 1, 1], [], []>} : vector<128x16xbf16>, vector<16x8xbf16>, vector<128x8xf32> -> vector<128x8xf32>
    %c0_38 = arith.constant 0 : index
    %c0_39 = arith.constant 0 : index
    %132 = vector.load %arg10[%c0_38, %c0_39] : memref<1x8xf32, #tpu.memory_space<vmem>>, vector<1x8xf32>
    %133 = vector.broadcast %132 : vector<1x8xf32> to vector<128x8xf32>
    %134 = arith.addf %131, %133 : vector<128x8xf32>
    %cst_40 = arith.constant 0.000000e+00 : f32
    %135 = vector.broadcast %cst_40 : f32 to vector<128x8xf32>
    %136 = arith.cmpf ogt, %134, %135 : vector<128x8xf32>
    %cst_41 = arith.constant 0.000000e+00 : f32
    %137 = vector.broadcast %cst_41 : f32 to vector<128x8xf32>
    %138 = arith.minimumf %134, %137 : vector<128x8xf32>
    %139 = math.exp %138 : vector<128x8xf32>
    %cst_42 = arith.constant 1.000000e+00 : f32
    %140 = vector.broadcast %cst_42 : f32 to vector<128x8xf32>
    %141 = arith.subf %139, %140 : vector<128x8xf32>
    %142 = arith.select %136, %134, %141 : vector<128x8xi1>, vector<128x8xf32>
    %c0_43 = arith.constant 0 : index
    %c0_44 = arith.constant 0 : index
    %143 = vector.load %arg11[%c0_43, %c0_44] : memref<1x8xf32, #tpu.memory_space<vmem>>, vector<1x8xf32>
    %144 = vector.broadcast %143 : vector<1x8xf32> to vector<128x8xf32>
    %145 = arith.mulf %142, %144 : vector<128x8xf32>
    %c0_45 = arith.constant 0 : index
    %c0_46 = arith.constant 0 : index
    %146 = vector.load %arg12[%c0_45, %c0_46] : memref<1x8xf32, #tpu.memory_space<vmem>>, vector<1x8xf32>
    %147 = vector.broadcast %146 : vector<1x8xf32> to vector<128x8xf32>
    %148 = arith.addf %145, %147 : vector<128x8xf32>
    %149 = tpu.concatenate %128, %148 in 1 : vector<128x16xf32>, vector<128x8xf32> -> vector<128x24xf32>
    %cst_47 = arith.constant 0.000000e+00 : f32
    %150 = vector.broadcast %cst_47 : f32 to vector<128x104xf32>
    %151 = tpu.concatenate %149, %150 in 1 : vector<128x24xf32>, vector<128x104xf32> -> vector<128x128xf32>
    %c0_48 = arith.constant 0 : index
    %c0_49 = arith.constant 0 : index
    %152 = vector.load %arg13[%c0_48, %c0_49] : memref<128x128xf32, #tpu.memory_space<vmem>>, vector<128x128xf32>
    tpu.vector_store %arg13[%c0_48, %c0_49], %151 {strides = array<i32>} : memref<128x128xf32, #tpu.memory_space<vmem>>, vector<128x128xf32>,
    return
  }
  func.func @transform_0(%arg0: i32) -> (i32, i32) {
    %c0_i32 = arith.constant 0 : i32
    %c0_i32_0 = arith.constant 0 : i32
    %c0_i32_1 = arith.constant 0 : i32
    return %c0_i32, %c0_i32_0 : i32, i32
  }
  func.func @transform_1(%arg0: i32) -> (i32, i32) {
    %c0_i32 = arith.constant 0 : i32
    %c0_i32_0 = arith.constant 0 : i32
    return %arg0, %c0_i32 : i32, i32
  }
  func.func @transform_2(%arg0: i32) -> (i32, i32) {
    %c0_i32 = arith.constant 0 : i32
    %c0_i32_0 = arith.constant 0 : i32
    %c0_i32_1 = arith.constant 0 : i32
    return %c0_i32, %c0_i32_0 : i32, i32
  }
  func.func @transform_3(%arg0: i32) -> (i32, i32) {
    %c0_i32 = arith.constant 0 : i32
    %c0_i32_0 = arith.constant 0 : i32
    %c0_i32_1 = arith.constant 0 : i32
    return %c0_i32, %c0_i32_0 : i32, i32
  }
  func.func @transform_4(%arg0: i32) -> (i32, i32) {
    %c0_i32 = arith.constant 0 : i32
    %c0_i32_0 = arith.constant 0 : i32
    %c0_i32_1 = arith.constant 0 : i32
    return %c0_i32, %c0_i32_0 : i32, i32
  }
  func.func @transform_5(%arg0: i32) -> (i32, i32) {
    %c0_i32 = arith.constant 0 : i32
    %c0_i32_0 = arith.constant 0 : i32
    %c0_i32_1 = arith.constant 0 : i32
    return %c0_i32, %c0_i32_0 : i32, i32
  }
  func.func @transform_6(%arg0: i32) -> (i32, i32) {
    %c0_i32 = arith.constant 0 : i32
    %c0_i32_0 = arith.constant 0 : i32
    %c0_i32_1 = arith.constant 0 : i32
    return %c0_i32, %c0_i32_0 : i32, i32
  }
  func.func @transform_7(%arg0: i32) -> (i32, i32) {
    %c0_i32 = arith.constant 0 : i32
    %c0_i32_0 = arith.constant 0 : i32
    %c0_i32_1 = arith.constant 0 : i32
    return %c0_i32, %c0_i32_0 : i32, i32
  }
  func.func @transform_8(%arg0: i32) -> (i32, i32) {
    %c0_i32 = arith.constant 0 : i32
    %c0_i32_0 = arith.constant 0 : i32
    %c0_i32_1 = arith.constant 0 : i32
    return %c0_i32, %c0_i32_0 : i32, i32
  }
  func.func @transform_9(%arg0: i32) -> (i32, i32) {
    %c0_i32 = arith.constant 0 : i32
    %c0_i32_0 = arith.constant 0 : i32
    %c0_i32_1 = arith.constant 0 : i32
    return %c0_i32, %c0_i32_0 : i32, i32
  }
  func.func @transform_10(%arg0: i32) -> (i32, i32) {
    %c0_i32 = arith.constant 0 : i32
    %c0_i32_0 = arith.constant 0 : i32
    %c0_i32_1 = arith.constant 0 : i32
    return %c0_i32, %c0_i32_0 : i32, i32
  }
  func.func @transform_11(%arg0: i32) -> (i32, i32) {
    %c0_i32 = arith.constant 0 : i32
    %c0_i32_0 = arith.constant 0 : i32
    %c0_i32_1 = arith.constant 0 : i32
    return %c0_i32, %c0_i32_0 : i32, i32
  }
  func.func @transform_12(%arg0: i32) -> (i32, i32) {
    %c0_i32 = arith.constant 0 : i32
    %c0_i32_0 = arith.constant 0 : i32
    return %arg0, %c0_i32 : i32, i32
  }
}

</mosaic_0001>

<bundles_post_ra>
// kernel: _device_forward_linkpred.4
= control target key start
LH: loop header
LB: loop body
LE: loop exit
PB: predicated region body
PF: predicated region fallthrough
CT: control target
= control target key end

     0   :  { %s1930_s30 = smov 0   ;;  %s2334_s0 = inlined_call_operand.vmem [shape: f32[256,8], index: 0, kind: input, shape index: {}]   ;;  %s2335_s1 = inlined_call_operand.vmem [shape: bf16[8,32], index: 1, kind: input, shape index: {}]   ;;  %s2336_s2 = inlined_call_operand.vmem [shape: f32[1,32], index: 2, kind: input, shape index: {}]   ;;  %s2337_s3 = inlined_call_operand.vmem [shape: bf16[32,8], index: 3, kind: input, shape index: {}]   ;;  %s2338_s4 = inlined_call_operand.vmem [shape: f32[1,8], index: 4, kind: input, shape index: {}]   ;;  %s2339_s5 = inlined_call_operand.vmem [shape: bf16[8,8], index: 5, kind: input, shape index: {}]   ;;  %s2340_s6 = inlined_call_operand.vmem [shape: bf16[8,128], index: 6, kind: input, shape index: {}]   ;;  %s2341_s7 = inlined_call_operand.vmem [shape: bf16[256,8], index: 7, kind: output, shape index: {0}]   ;;  %s2342_s8 = inlined_call_operand.vmem [shape: bf16[256,8], index: 8, kind: output, shape index: {1}]   ;;  %s2343_s9 = inlined_call_operand.vmem [shape: bf16[256,128], index: 9, kind: output, shape index: {2}]  }
   0x1 LB: > { %s1458_s10 = sadd.s32 4294967295, %s1878_s30   ;;  %p1462_p0 = scmp.ge.s32.totalorder %s1878_s30, 1  ;;  %s1878_s30 = sphi %s1930_s30, %s20_s30  }
   0x2   : > { %p293_p1 = scmp.lt.s32.totalorder %s1878_s30, 3 }
   0x4   : > { %p294_p2 = pnand %p1462_p0, %p293_p1 }
   0x5   : > { %v388_v0 = vld [vmem:[%s2335_s1] sm:$0xf] (!%p294_p2)  ;;  %vm421_vm0 = vcmask (!%p294_p2), 1043456   ;;  %s1463_s13 = sshll.u32 (!%p294_p2), %s1458_s10, 4  ;;  %vm396_vm1 = vcmask (!%p294_p2), 64512   ;;  %v1807_v27 = vld [vmem:[%s2337_s3 + $0x8] sm:$0xff] (!%p294_p2)  }
   0x6   : > { %297 = sbr.rel (%p294_p2) target bundleno = 742 (0x2e6), region = 48  ;;  %1795 = vmatprep.subr.msk.bf16.mxu0 (!%p294_p2), %vm421_vm0, %v388_v0  ;;  %v423_v1 = vsel (!%p294_p2), %vm421_vm0, %v388_v0, 0  ;;  %p340_p3 = scmp.lt.s32.totalorder (!%p294_p2), %s1463_s13, 31  ;;  %v1806_v26 = vld [vmem:[%s2337_s3] sm:$0xff] (!%p294_p2)   ;;  %vm649_vm3 = vcmask (!%p294_p2), 261120  }
   0x7   : > { %1722 = vmatpush3.bf16.msra.mxu0 (!%p294_p2), %v423_v1  ;;  %1739 = vmatprep.subr.bf16.mxu1 (!%p294_p2), %v1806_v26  ;;  %v875_v28 = vld [vmem:[%s2339_s5] sm:$0xf] (!%p294_p2) }
   0x8   : > { %1740 = vmatpush3.bf16.msra.mxu1 (!%p294_p2), %v1806_v26  ;;  %v2011_v29 = vld [vmem:[%s2340_s6] sm:$0xf] (!%p294_p2)  ;;  %1796 = vmatprep.subr.msk.bf16.mxu0 (!%p294_p2), %vm421_vm0, %v875_v28  ;;  %v901_v30 = vsel (!%p294_p2), %vm421_vm0, %v875_v28, 0 }
   0x9   : > { %1741 = vmatprep.subr.bf16.mxu1 (!%p294_p2), %v1807_v27  ;;  %v2020_v31 = vld [vmem:[%s2336_s2] ss:$0 sm:$0xff] (!%p294_p2) }
   0xc   : > { %1742 = vmatpush3.bf16.msra.mxu1 (!%p294_p2), %v1807_v27 }
   0xd   : > { %s2345_s13 = smov (!%p340_p3, %s1463_s13), 31  ;;  %1797 = vmatprep.subr.msk.bf16.mxu1 %vm421_vm0, %v2011_v29 }
   0xe   : > { %s1464_s14 = sshll.u32 %s2345_s13, 3  ;;  %s2164_s10 = sshll.u32 %s2345_s13, 2 }
   0xf   : > { %s1949_s17 = scalar_lea.vmem %s2334_s0, %s1464_s14  ;;  %s2176_s13 = scalar_lea.vmem %s2341_s7, %s2164_s10 }
  0x10   : > { %v364_v2 = vld [vmem:[%s1949_s17] sm:$0xff]  ;;  %v365_v3 = vld [vmem:[%s1949_s17 + $0x8] sm:$0xff]  ;;  %v366_v4 = vld [vmem:[%s1949_s17 + $0x10] sm:$0xff]  ;;  %s2246_s16 = scalar_lea.vmem %s2343_s9, %s2164_s10  ;;  %s2297_s19 = scalar_lea.vmem %s2342_s8, %s2164_s10 }
  0x11   : > { %v1954_v5 = vpack.c.bf16 %v365_v3, %v364_v2  ;;  %v367_v6 = vld [vmem:[%s1949_s17 + $0x18] sm:$0xff]  ;;  %v368_v7 = vld [vmem:[%s1949_s17 + $0x20] sm:$0xff]  ;;  %v369_v8 = vld [vmem:[%s1949_s17 + $0x28] sm:$0xff] }
  0x12   : > { %v1959_v9 = vpack.c.bf16 %v367_v6, %v366_v4  ;;  %v1961_v10 = vpack.c.bf16 %v369_v8, %v368_v7  ;;  %v370_v11 = vld [vmem:[%s1949_s17 + $0x30] sm:$0xff]  ;;  %v371_v12 = vld [vmem:[%s1949_s17 + $0x38] sm:$0xff]  ;;  %v372_v13 = vld [vmem:[%s1949_s17 + $0x40] sm:$0xff] }
  0x13   : > { %1723 = vmatprep.mubr.msk.bf16.mxu0 %vm396_vm1, %v1954_v5  ;;  %v373_v14 = vld [vmem:[%s1949_s17 + $0x48] sm:$0xff]  ;;  %v1973_v15 = vpack.c.bf16 %v371_v12, %v370_v11  ;;  %v374_v17 = vld [vmem:[%s1949_s17 + $0x50] sm:$0xff]  ;;  %v375_v18 = vld [vmem:[%s1949_s17 + $0x58] sm:$0xff] }
  0x14   : > { %1724 = vmatmul.mubr.msk.bf16.vlgmr.msra.gmra.mrb[0].mxu0 %vm396_vm1, %v1959_v9  ;;  %v1975_v16 = vpack.c.bf16 %v373_v14, %v372_v13  ;;  %v376_v19 = vld [vmem:[%s1949_s17 + $0x60] sm:$0xff]  ;;  %v377_v20 = vld [vmem:[%s1949_s17 + $0x68] sm:$0xff]  ;;  %v1985_v21 = vpack.c.bf16 %v375_v18, %v374_v17  ;;  %v378_v23 = vld [vmem:[%s1949_s17 + $0x70] sm:$0xff] }
  0x15   : > { %1727 = vmatprep.mubr.msk.bf16.mxu0 %vm396_vm1, %v1961_v10  ;;  %v1987_v22 = vpack.c.bf16 %v377_v20, %v376_v19  ;;  %v379_v24 = vld [vmem:[%s1949_s17 + $0x78] sm:$0xff]  ;;  %1760 = vmatpush3.bf16.msra.mxu0 %v901_v30 }
  0x16   : > { %v1995_v25 = vpack.c.bf16 %v379_v24, %v378_v23 }
  0x1c   : > { %1728 = vmatmul.mubr.msk.bf16.gmra.mrb[4].mxu0 %vm396_vm1, %v1973_v15 }
  0x1d   : > { %1731 = vmatprep.mubr.msk.bf16.mxu0 %vm396_vm1, %v1975_v16 }
  0x24   : > { %1732 = vmatmul.mubr.msk.bf16.gmra.mrb[8].mxu0 %vm396_vm1, %v1985_v21 }
  0x25   : > { %1735 = vmatprep.mubr.msk.bf16.mxu0 %vm396_vm1, %v1987_v22 }
  0x2c   : > { %1736 = vmatmul.mubr.msk.bf16.gmra.mrb[12].mxu0 %vm396_vm1, %v1995_v25 }
  0xe7   : > { %v1725_v32 = vpop.f32.mrb[0].mxu0 }
  0xe8   : > { %v2023_v33 = vadd.f32 %v1725_v32, %v2020_v31  ;;  %v459_v34 = vpop.f32.mrb[1].mxu0 }
  0xe9   : > { %v2026_v35 = vadd.f32 %v2020_v31, %v459_v34  ;;  %v1726_v36 = vpop.f32.mrb[2].mxu0 }
  0xea   : > { %v540_v37 = vmin.f32 %v2023_v33, 0.0  ;;  %v471_v38 = vadd.f32 %v1726_v36, %v2020_v31  ;;  %v462_v39 = vpop.f32.mrb[3].mxu0  ;;  %vm524_vm2 = vcmp.gt.f32.partialorder %v2023_v33, 0.0 }
  0xeb   : > { %v538_v40 = vmin.f32 %v2026_v35, 0.0  ;;  %v2032_v41 = vadd.f32 %v2020_v31, %v462_v39  ;;  %vm522_vm4 = vcmp.gt.f32.partialorder %v2026_v35, 0.0 }
  0xec   : > { %v558_v42 = vmul.f32 1.442695, %v540_v37  ;;  %v541_v43 = vmin.f32 %v471_v38, 0.0  ;;  %vm525_vm5 = vcmp.gt.f32.partialorder %v471_v38, 0.0 }
  0xed   : > { %v554_v44 = vmul.f32 1.442695, %v538_v40  ;;  %v539_v45 = vmin.f32 %v2032_v41, 0.0  ;;  %vm523_vm6 = vcmp.gt.f32.partialorder %v2032_v41, 0.0 }
  0xee   : > { %1808 = vpow2.f32 %v558_v42  ;;  %v560_v46 = vmul.f32 1.442695, %v541_v43 }
  0xef   : > { %1810 = vpow2.f32 %v554_v44  ;;  %v556_v47 = vmul.f32 1.442695, %v539_v45  ;;  %v1729_v48 = vpop.f32.mrb[4].mxu0  ;;  %v1155_v45 = vsel %vm421_vm0, %v2011_v29, 0 }
  0xf0   : > { %1812 = vpow2.f32 %v560_v46  ;;  %v2036_v49 = vadd.f32 %v1729_v48, %v2020_v31  ;;  %v475_v50 = vpop.f32.mrb[5].mxu0 }
  0xf1   : > { %1814 = vpow2.f32 %v556_v47  ;;  %v2039_v51 = vadd.f32 %v2020_v31, %v475_v50  ;;  %v1730_v52 = vpop.f32.mrb[6].mxu0 }
  0xf2   : > { %v544_v53 = vmin.f32 %v2036_v49, 0.0  ;;  %v2043_v54 = vadd.f32 %v1730_v52, %v2020_v31  ;;  %v478_v55 = vpop.f32.mrb[7].mxu0  ;;  %vm528_vm7 = vcmp.gt.f32.partialorder %v2036_v49, 0.0 }
  0xf3   : > { %v542_v56 = vmin.f32 %v2039_v51, 0.0  ;;  %v2047_v57 = vadd.f32 %v2020_v31, %v478_v55  ;;  %vm526_vm8 = vcmp.gt.f32.partialorder %v2039_v51, 0.0 }
  0xf4   : > { %v566_v58 = vmul.f32 1.442695, %v544_v53  ;;  %v545_v59 = vmin.f32 %v2043_v54, 0.0  ;;  %vm529_vm9 = vcmp.gt.f32.partialorder %v2043_v54, 0.0 }
  0xf5   : > { %v562_v60 = vmul.f32 1.442695, %v542_v56  ;;  %v543_v61 = vmin.f32 %v2047_v57, 0.0  ;;  %vm527_vm10 = vcmp.gt.f32.partialorder %v2047_v57, 0.0 }
  0xf6   : > { %1816 = vpow2.f32 %v566_v58  ;;  %v568_v62 = vmul.f32 1.442695, %v545_v59 }
  0xf7   : > { %1818 = vpow2.f32 %v562_v60  ;;  %v564_v63 = vmul.f32 1.442695, %v543_v61  ;;  %v1733_v0 = vpop.f32.mrb[8].mxu0 }
  0xf8   : > { %v1809_v1 = vpop.eup %1808  ;;  %1820 = vpow2.f32 %v568_v62  ;;  %v2052_v2 = vadd.f32 %v1733_v0, %v2020_v31  ;;  %v491_v3 = vpop.f32.mrb[9].mxu0 }
  0xf9   : > { %v1811_v4 = vpop.eup %1810  ;;  %v1482_v6 = vadd.f32 -1.0, %v1809_v1  ;;  %1822 = vpow2.f32 %v564_v63  ;;  %v2055_v7 = vadd.f32 %v2020_v31, %v491_v3  ;;  %v1734_v8 = vpop.f32.mrb[10].mxu0 }
  0xfa   : > { %v1813_v11 = vpop.eup %1812  ;;  %v548_v12 = vmin.f32 %v2052_v2, 0.0  ;;  %v2060_v13 = vadd.f32 %v1734_v8, %v2020_v31  ;;  %v494_v14 = vpop.f32.mrb[11].mxu0  ;;  %v1480_v20 = vadd.f32 -1.0, %v1811_v4  ;;  %vm532_vm11 = vcmp.gt.f32.partialorder %v2052_v2, 0.0 }
  0xfb   : > { %v1815_v17 = vpop.eup %1814  ;;  %v1483_v18 = vadd.f32 -1.0, %v1813_v11  ;;  %v546_v19 = vmin.f32 %v2055_v7, 0.0  ;;  %v2066_v26 = vadd.f32 %v2020_v31, %v494_v14  ;;  %v604_v27 = vsel %vm524_vm2, %v2023_v33, %v1482_v6 }
  0xfc   : > { %v574_v23 = vmul.f32 1.442695, %v548_v12  ;;  %v549_v24 = vmin.f32 %v2060_v13, 0.0  ;;  %v1481_v32 = vadd.f32 -1.0, %v1815_v17  ;;  %v602_v40 = vsel %vm522_vm4, %v2026_v35, %v1480_v20 }
  0xfd   : > { %v605_v28 = vsel %vm525_vm5, %v471_v38, %v1483_v18  ;;  %v570_v30 = vmul.f32 1.442695, %v546_v19  ;;  %v547_v37 = vmin.f32 %v2066_v26, 0.0  ;;  %vm533_vm12 = vcmp.gt.f32.partialorder %v2060_v13, 0.0 }
  0xfe   : > { %v619_v34 = vpack.c.bf16 %v605_v28, %v604_v27  ;;  %1824 = vpow2.f32 %v574_v23  ;;  %v576_v36 = vmul.f32 1.442695, %v549_v24  ;;  %v603_v42 = vsel %vm523_vm6, %v2032_v41, %v1481_v32 }
  0xff   : > { %1826 = vpow2.f32 %v570_v30  ;;  %v1737_v39 = vpop.f32.mrb[12].mxu0  ;;  %v618_v44 = vpack.c.bf16 %v603_v42, %v602_v40  ;;  %v572_v48 = vmul.f32 1.442695, %v547_v37  ;;  %vm530_vm13 = vcmp.gt.f32.partialorder %v2055_v7, 0.0 }
 0x100   : > { %v1817_v43 = vpop.eup %1816  ;;  %1828 = vpow2.f32 %v576_v36  ;;  %v2076_v33 = vadd.f32 %v1737_v39, %v2020_v31  ;;  %v507_v38 = vpop.f32.mrb[13].mxu0  ;;  %vm531_vm14 = vcmp.gt.f32.partialorder %v2066_v26, 0.0 }
 0x101   : > { %v1819_v46 = vpop.eup %1818  ;;  %v1486_v47 = vadd.f32 -1.0, %v1817_v43  ;;  %v2082_v50 = vadd.f32 %v2020_v31, %v507_v38  ;;  %v1738_v35 = vpop.f32.mrb[14].mxu0  ;;  %1743 = vmatprep.mubr.msk.bf16.mxu1 %vm649_vm3, %v618_v44  ;;  %1830 = vpow2.f32 %v572_v48 }
 0x102   : > { %v1821_v41 = vpop.eup %1820  ;;  %v1484_v52 = vadd.f32 -1.0, %v1819_v46  ;;  %v552_v53 = vmin.f32 %v2076_v33, 0.0  ;;  %v519_v55 = vadd.f32 %v1738_v35, %v2020_v31  ;;  %v510_v29 = vpop.f32.mrb[15].mxu0  ;;  %1744 = vmatmul.mubr.msk.bf16.vlgmr.msra.gmra.mrb[0].mxu1 %vm649_vm3, %v619_v34  ;;  %vm536_vm15 = vcmp.gt.f32.partialorder %v2076_v33, 0.0 }
 0x103   : > { %v1823_v56 = vpop.eup %1822  ;;  %v1487_v58 = vadd.f32 -1.0, %v1821_v41  ;;  %v608_v59 = vsel %vm528_vm7, %v2036_v49, %v1486_v47  ;;  %v550_v62 = vmin.f32 %v2082_v50, 0.0  ;;  %1778 = vmatpush3.bf16.msra.mxu1 %v1155_v45  ;;  %v511_v3 = vadd.f32 %v2020_v31, %v510_v29 }
 0x104   : > { %v1485_v60 = vadd.f32 -1.0, %v1823_v56  ;;  %v582_v61 = vmul.f32 1.442695, %v552_v53  ;;  %v606_v63 = vsel %vm526_vm8, %v2039_v51, %v1484_v52  ;;  %v553_v1 = vmin.f32 %v519_v55, 0.0 }
 0x105   : > { %v609_v0 = vsel %vm529_vm9, %v2043_v54, %v1487_v58  ;;  %v578_v8 = vmul.f32 1.442695, %v550_v62  ;;  %v551_v12 = vmin.f32 %v511_v3, 0.0  ;;  %vm537_vm0 = vcmp.gt.f32.partialorder %v519_v55, 0.0 }
 0x106   : > { %v621_v4 = vpack.c.bf16 %v609_v0, %v608_v59  ;;  %v607_v6 = vsel %vm527_vm10, %v2047_v57, %v1485_v60  ;;  %1832 = vpow2.f32 %v582_v61  ;;  %v584_v11 = vmul.f32 1.442695, %v553_v1 }
 0x107   : > { %v620_v49 = vpack.c.bf16 %v607_v6, %v606_v63  ;;  %1834 = vpow2.f32 %v578_v8  ;;  %v580_v19 = vmul.f32 1.442695, %v551_v12  ;;  %vm534_vm2 = vcmp.gt.f32.partialorder %v2082_v50, 0.0 }
 0x108   : > { %v1825_v14 = vpop.eup %1824  ;;  %1836 = vpow2.f32 %v584_v11  ;;  %vm535_vm4 = vcmp.gt.f32.partialorder %v511_v3, 0.0 }
 0x109   : > { %v1827_v17 = vpop.eup %1826  ;;  %v1490_v18 = vadd.f32 -1.0, %v1825_v14  ;;  %1747 = vmatprep.mubr.msk.bf16.mxu1 %vm649_vm3, %v620_v49  ;;  %1838 = vpow2.f32 %v580_v19 }
 0x10a   : > { %v1829_v51 = vpop.eup %1828  ;;  %1748 = vmatmul.mubr.msk.bf16.gmra.mrb[4].mxu1 %vm649_vm3, %v621_v4  ;;  %v1488_v31 = vadd.f32 -1.0, %v1827_v17 }
 0x10b   : > { %v1491_v54 = vadd.f32 -1.0, %v1829_v51  ;;  %v1831_v57 = vpop.eup %1830  ;;  %v612_v20 = vsel %vm532_vm11, %v2052_v2, %v1490_v18 }
 0x10c   : > { %v1489_v27 = vadd.f32 -1.0, %v1831_v57  ;;  %v610_v30 = vsel %vm530_vm13, %v2055_v7, %v1488_v31 }
 0x10d   : > { %v613_v23 = vsel %vm533_vm12, %v2060_v13, %v1491_v54 }
 0x10e   : > { %v623_v24 = vpack.c.bf16 %v613_v23, %v612_v20  ;;  %v611_v32 = vsel %vm531_vm14, %v2066_v26, %v1489_v27 }
 0x10f   : > { %v622_v34 = vpack.c.bf16 %v611_v32, %v610_v30 }
 0x110   : > { %v1833_v28 = vpop.eup %1832 }
 0x111   : > { %v1835_v36 = vpop.eup %1834  ;;  %v1494_v37 = vadd.f32 -1.0, %v1833_v28  ;;  %1751 = vmatprep.mubr.msk.bf16.mxu1 %vm649_vm3, %v622_v34 }
 0x112   : > { %v1837_v39 = vpop.eup %1836  ;;  %v1492_v2 = vadd.f32 -1.0, %v1835_v36  ;;  %1752 = vmatmul.mubr.msk.bf16.gmra.mrb[8].mxu1 %vm649_vm3, %v623_v24 }
 0x113   : > { %v1495_v40 = vadd.f32 -1.0, %v1837_v39  ;;  %v1839_v13 = vpop.eup %1838  ;;  %v616_v42 = vsel %vm536_vm15, %v2076_v33, %v1494_v37 }
 0x114   : > { %v1493_v7 = vadd.f32 -1.0, %v1839_v13  ;;  %v614_v38 = vsel %vm534_vm2, %v2082_v50, %v1492_v2 }
 0x115   : > { %v617_v43 = vsel %vm537_vm0, %v519_v55, %v1495_v40 }
 0x116   : > { %v625_v26 = vpack.c.bf16 %v617_v43, %v616_v42  ;;  %v615_v44 = vsel %vm535_vm4, %v511_v3, %v1493_v7 }
 0x117   : > { %v624_v45 = vpack.c.bf16 %v615_v44, %v614_v38 }
 0x119   : > { %1755 = vmatprep.mubr.msk.bf16.mxu1 %vm649_vm3, %v624_v45 }
 0x11a   : > { %1756 = vmatmul.mubr.msk.bf16.gmra.mrb[12].mxu1 %vm649_vm3, %v625_v26  ;;  %vm1056_vm3 = vcmask 60416  }
 0x11b   : > { %1779 = vmatprep.mubr.msk.bf16.mxu1 %vm396_vm1, %v1954_v5  ;;  %v2138_v5 = vld [vmem:[%s2338_s4] ss:$0 sm:$0xff] }
 0x122   : > { %1780 = vmatmul.mubr.msk.bf16.vlgmr.msra.gmra.mrb[16].mxu1 %vm396_vm1, %v1959_v9 }
 0x123   : > { %1783 = vmatprep.mubr.msk.bf16.mxu1 %vm396_vm1, %v1961_v10 }
 0x12a   : > { %1784 = vmatmul.mubr.msk.bf16.gmra.mrb[20].mxu1 %vm396_vm1, %v1973_v15 }
 0x12b   : > { %1787 = vmatprep.mubr.msk.bf16.mxu1 %vm396_vm1, %v1975_v16 }
 0x132   : > { %1788 = vmatmul.mubr.msk.bf16.gmra.mrb[24].mxu1 %vm396_vm1, %v1985_v21 }
 0x133   : > { %1791 = vmatprep.mubr.msk.bf16.mxu1 %vm396_vm1, %v1987_v22 }
 0x13a   : > { %1792 = vmatmul.mubr.msk.bf16.gmra.mrb[28].mxu1 %vm396_vm1, %v1995_v25 }
 0x1d5   : > { %v1745_v9 = vpop.f32.mrb[0].mxu1 }
 0x1d6   : > { %v717_v10 = vadd.f32 %v1745_v9, %v2138_v5  ;;  %v708_v15 = vpop.f32.mrb[1].mxu1 }
 0x1d7   : > { %v709_v16 = vadd.f32 %v2138_v5, %v708_v15  ;;  %v1746_v33 = vpop.f32.mrb[2].mxu1 }
 0x1d8   : > { %v789_v46 = vmin.f32 %v717_v10, 0.0  ;;  %v720_v21 = vadd.f32 %v1746_v33, %v2138_v5  ;;  %v711_v47 = vpop.f32.mrb[3].mxu1  ;;  %vm773_vm5 = vcmp.gt.f32.partialorder %v717_v10, 0.0 }
 0x1d9   : > { %v787_v22 = vmin.f32 %v709_v16, 0.0  ;;  %v2144_v48 = vadd.f32 %v2138_v5, %v711_v47  ;;  %vm771_vm6 = vcmp.gt.f32.partialorder %v709_v16, 0.0 }
 0x1da   : > { %v807_v25 = vmul.f32 1.442695, %v789_v46  ;;  %v790_v50 = vmin.f32 %v720_v21, 0.0  ;;  %vm774_vm7 = vcmp.gt.f32.partialorder %v720_v21, 0.0 }
 0x1db   : > { %v803_v35 = vmul.f32 1.442695, %v787_v22  ;;  %v788_v41 = vmin.f32 %v2144_v48, 0.0  ;;  %vm772_vm8 = vcmp.gt.f32.partialorder %v2144_v48, 0.0 }
 0x1dc   : > { %1840 = vpow2.f32 %v807_v25  ;;  %v809_v52 = vmul.f32 1.442695, %v790_v50 }
 0x1dd   : > { %1842 = vpow2.f32 %v803_v35  ;;  %v805_v53 = vmul.f32 1.442695, %v788_v41  ;;  %v1749_v55 = vpop.f32.mrb[4].mxu1 }
 0x1de   : > { %1844 = vpow2.f32 %v809_v52  ;;  %v2148_v29 = vadd.f32 %v1749_v55, %v2138_v5  ;;  %v724_v56 = vpop.f32.mrb[5].mxu1 }
 0x1df   : > { %1846 = vpow2.f32 %v805_v53  ;;  %v2151_v58 = vadd.f32 %v2138_v5, %v724_v56  ;;  %v1750_v59 = vpop.f32.mrb[6].mxu1 }
 0x1e0   : > { %v793_v60 = vmin.f32 %v2148_v29, 0.0  ;;  %v2155_v61 = vadd.f32 %v1750_v59, %v2138_v5  ;;  %v727_v62 = vpop.f32.mrb[7].mxu1  ;;  %vm777_vm9 = vcmp.gt.f32.partialorder %v2148_v29, 0.0 }
 0x1e1   : > { %v791_v63 = vmin.f32 %v2151_v58, 0.0  ;;  %v2159_v0 = vadd.f32 %v2138_v5, %v727_v62  ;;  %vm775_vm10 = vcmp.gt.f32.partialorder %v2151_v58, 0.0 }
 0x1e2   : > { %v815_v1 = vmul.f32 1.442695, %v793_v60  ;;  %v794_v3 = vmin.f32 %v2155_v61, 0.0  ;;  %vm778_vm11 = vcmp.gt.f32.partialorder %v2155_v61, 0.0 }
 0x1e3   : > { %v811_v4 = vmul.f32 1.442695, %v791_v63  ;;  %v792_v6 = vmin.f32 %v2159_v0, 0.0  ;;  %vm776_vm12 = vcmp.gt.f32.partialorder %v2159_v0, 0.0 }
 0x1e4   : > { %1848 = vpow2.f32 %v815_v1  ;;  %v817_v8 = vmul.f32 1.442695, %v794_v3 }
 0x1e5   : > { %1850 = vpow2.f32 %v811_v4  ;;  %v813_v49 = vmul.f32 1.442695, %v792_v6  ;;  %v1753_v12 = vpop.f32.mrb[8].mxu1 }
 0x1e6   : > { %v1841_v11 = vpop.eup %1840  ;;  %1852 = vpow2.f32 %v817_v8  ;;  %v2167_v18 = vadd.f32 %v1753_v12, %v2138_v5  ;;  %v740_v19 = vpop.f32.mrb[9].mxu1 }
 0x1e7   : > { %v1843_v14 = vpop.eup %1842  ;;  %v1509_v17 = vadd.f32 -1.0, %v1841_v11  ;;  %1854 = vpow2.f32 %v813_v49  ;;  %v2170_v31 = vadd.f32 %v2138_v5, %v740_v19  ;;  %v1754_v57 = vpop.f32.mrb[10].mxu1 }
 0x1e8   : > { %v1845_v51 = vpop.eup %1844  ;;  %v1507_v54 = vadd.f32 -1.0, %v1843_v14  ;;  %v797_v27 = vmin.f32 %v2167_v18, 0.0  ;;  %v743_v28 = vpop.f32.mrb[11].mxu1  ;;  %v2185_v43 = vadd.f32 %v1754_v57, %v2138_v5  ;;  %vm781_vm13 = vcmp.gt.f32.partialorder %v2167_v18, 0.0 }
 0x1e9   : > { %v1847_v20 = vpop.eup %1846  ;;  %v853_v23 = vsel %vm773_vm5, %v717_v10, %v1509_v17  ;;  %v1510_v24 = vadd.f32 -1.0, %v1845_v51  ;;  %v795_v2 = vmin.f32 %v2170_v31, 0.0  ;;  %v2194_v9 = vadd.f32 %v2138_v5, %v743_v28 }
 0x1ea   : > { %v1591_v30 = vpack.c.bf16 %v853_v23, %v853_v23  ;;  %v851_v32 = vsel %vm771_vm6, %v709_v16, %v1507_v54  ;;  %v1508_v34 = vadd.f32 -1.0, %v1847_v20  ;;  %v823_v39 = vmul.f32 1.442695, %v797_v27 }
 0x1eb   : > { %v1589_v36 = vpack.c.bf16 %v851_v32, %v851_v32  ;;  %v854_v37 = vsel %vm774_vm7, %v720_v21, %v1510_v24  ;;  %v819_v38 = vmul.f32 1.442695, %v795_v2  ;;  %v798_v45 = vmin.f32 %v2185_v43, 0.0 }
 0x1ec   : > { %1059 = vst.msk [vmem:[%s2176_s13 + $0x8] sm:$0xf] %vm1056_vm3, %v1591_v30  ;;  %v868_v40 = vpack.c.bf16 %v854_v37, %v853_v23  ;;  %v1592_v13 = vpack.c.bf16 %v854_v37, %v854_v37  ;;  %v852_v42 = vsel %vm772_vm8, %v2144_v48, %v1508_v34  ;;  %1856 = vpow2.f32 %v823_v39 }
 0x1ed   : > { %1057 = vst.msk [vmem:[%s2176_s13] sm:$0xf] %vm1056_vm3, %v1589_v36  ;;  %v867_v7 = vpack.c.bf16 %v852_v42, %v851_v32  ;;  %v1590_v26 = vpack.c.bf16 %v852_v42, %v852_v42  ;;  %v1757_v10 = vpop.f32.mrb[12].mxu1  ;;  %1858 = vpow2.f32 %v819_v38  ;;  %v825_v22 = vmul.f32 1.442695, %v798_v45 }
 0x1ee   : > { %v1849_v44 = vpop.eup %1848  ;;  %1060 = vst.msk [vmem:[%s2176_s13 + $0xc] sm:$0xf] %vm1056_vm3, %v1592_v13  ;;  %v2200_v33 = vadd.f32 %v1757_v10, %v2138_v5  ;;  %v756_v46 = vpop.f32.mrb[13].mxu1  ;;  %v796_v48 = vmin.f32 %v2194_v9, 0.0  ;;  %vm779_vm14 = vcmp.gt.f32.partialorder %v2170_v31, 0.0  ;;  %vm782_vm15 = vcmp.gt.f32.partialorder %v2185_v43, 0.0 }
 0x1ef   : > { %v1851_v15 = vpop.eup %1850  ;;  %1058 = vst.msk [vmem:[%s2176_s13 + $0x4] sm:$0xf] %vm1056_vm3, %v1590_v26  ;;  %v1513_v16 = vadd.f32 -1.0, %v1849_v44  ;;  %1761 = vmatprep.mubr.msk.bf16.mxu0 %vm396_vm1, %v867_v7  ;;  %v1758_v25 = vpop.f32.mrb[14].mxu1  ;;  %1860 = vpow2.f32 %v825_v22  ;;  %v2221_v6 = vadd.f32 %v2138_v5, %v756_v46  ;;  %vm780_vm0 = vcmp.gt.f32.partialorder %v2194_v9, 0.0 }
 0x1f0   : > { %v1853_v21 = vpop.eup %1852  ;;  %v1511_v47 = vadd.f32 -1.0, %v1851_v15  ;;  %1762 = vmatmul.mubr.msk.bf16.vlgmr.msra.gmra.mrb[16].mxu0 %vm396_vm1, %v868_v40  ;;  %v801_v52 = vmin.f32 %v2200_v33, 0.0  ;;  %v759_v53 = vpop.f32.mrb[15].mxu1  ;;  %v821_v62 = vmul.f32 1.442695, %v796_v48  ;;  %vm785_vm2 = vcmp.gt.f32.partialorder %v2200_v33, 0.0 }
 0x1f1   : > { %v1855_v50 = vpop.eup %1854  ;;  %v857_v35 = vsel %vm777_vm9, %v2148_v29, %v1513_v16  ;;  %v1514_v41 = vadd.f32 -1.0, %v1853_v21  ;;  %v799_v49 = vmin.f32 %v2221_v6, 0.0  ;;  %v2232_v11 = vadd.f32 %v2138_v5, %v759_v53 }
 0x1f2   : > { %v1595_v55 = vpack.c.bf16 %v857_v35, %v857_v35  ;;  %v855_v56 = vsel %vm775_vm10, %v2151_v58, %v1511_v47  ;;  %v1512_v59 = vadd.f32 -1.0, %v1855_v50  ;;  %v831_v63 = vmul.f32 1.442695, %v801_v52 }
 0x1f3   : > { %v1593_v60 = vpack.c.bf16 %v855_v56, %v855_v56  ;;  %v858_v29 = vsel %vm778_vm11, %v2155_v61, %v1514_v41  ;;  %1862 = vpow2.f32 %v821_v62  ;;  %v2226_v61 = vadd.f32 %v1758_v25, %v2138_v5 }
 0x1f4   : > { %1063 = vst.msk [vmem:[%s2176_s13 + $0x18] sm:$0xf] %vm1056_vm3, %v1595_v55  ;;  %v870_v1 = vpack.c.bf16 %v858_v29, %v857_v35  ;;  %v1596_v3 = vpack.c.bf16 %v858_v29, %v858_v29  ;;  %v856_v4 = vsel %vm776_vm12, %v2159_v0, %v1512_v59  ;;  %1864 = vpow2.f32 %v831_v63 }
 0x1f5   : > { %1061 = vst.msk [vmem:[%s2176_s13 + $0x10] sm:$0xf] %vm1056_vm3, %v1593_v60  ;;  %v869_v58 = vpack.c.bf16 %v856_v4, %v855_v56  ;;  %v1594_v8 = vpack.c.bf16 %v856_v4, %v856_v4  ;;  %v1781_v0 = vpop.f32.mrb[16].mxu1  ;;  %v802_v14 = vmin.f32 %v2226_v61, 0.0  ;;  %v827_v51 = vmul.f32 1.442695, %v799_v49 }
 0x1f6   : > { %1064 = vst.msk [vmem:[%s2176_s13 + $0x1c] sm:$0xf] %vm1056_vm3, %v1596_v3  ;;  %v1857_v12 = vpop.eup %1856  ;;  %v2238_v17 = vpop.f32.mrb[17].mxu1  ;;  %v800_v54 = vmin.f32 %v2232_v11, 0.0  ;;  %vm783_vm4 = vcmp.gt.f32.partialorder %v2221_v6, 0.0  ;;  %vm786_vm5 = vcmp.gt.f32.partialorder %v2226_v61, 0.0 }
 0x1f7   : > { %1062 = vst.msk [vmem:[%s2176_s13 + $0x14] sm:$0xf] %vm1056_vm3, %v1594_v8  ;;  %1765 = vmatprep.mubr.msk.bf16.mxu0 %vm396_vm1, %v869_v58  ;;  %v1517_v19 = vadd.f32 -1.0, %v1857_v12  ;;  %v1782_v5 = vpop.f32.mrb[18].mxu1  ;;  %v1859_v57 = vpop.eup %1858  ;;  %v833_v20 = vmul.f32 1.442695, %v802_v14  ;;  %1866 = vpow2.f32 %v827_v51 }
 0x1f8   : > { %1766 = vmatmul.mubr.msk.bf16.gmra.mrb[20].mxu0 %vm396_vm1, %v870_v1  ;;  %v1645_v23 = vpack.c.bf16 %v1782_v5, %v1781_v0  ;;  %v1515_v27 = vadd.f32 -1.0, %v1859_v57  ;;  %v829_v28 = vmul.f32 1.442695, %v800_v54  ;;  %vm784_vm6 = vcmp.gt.f32.partialorder %v2232_v11, 0.0  ;;  %v1194_v41 = vpop.f32.mrb[19].mxu1 }
 0x1f9   : > { %v861_v24 = vsel %vm781_vm13, %v2167_v18, %v1517_v19  ;;  %1868 = vpow2.f32 %v833_v20  ;;  %v1861_v32 = vpop.eup %1860  ;;  %v1640_v52 = vpack.c.bf16 %v1194_v41, %v2238_v17 }
 0x1fa   : > { %v1599_v30 = vpack.c.bf16 %v861_v24, %v861_v24  ;;  %1677 = vst [vmem:[%s2246_s16 + $0x8] sm:$0xff] %v1645_v23   ;;  %v859_v34 = vsel %vm779_vm14, %v2170_v31, %v1515_v27  ;;  %1870 = vpow2.f32 %v829_v28  ;;  %v1518_v37 = vadd.f32 -1.0, %v1861_v32 }
 0x1fb   : > { %v1597_v36 = vpack.c.bf16 %v859_v34, %v859_v34  ;;  %1641 = vst [vmem:[%s2246_s16] sm:$0xff] %v1640_v52  }
 0x1fc   : > { %1067 = vst.msk [vmem:[%s2176_s13 + $0x28] sm:$0xf] %vm1056_vm3, %v1599_v30  ;;  %v862_v39 = vsel %vm782_vm15, %v2185_v43, %v1518_v37 }
 0x1fd   : > { %v1863_v18 = vpop.eup %1862  ;;  %1065 = vst.msk [vmem:[%s2176_s13 + $0x20] sm:$0xf] %vm1056_vm3, %v1597_v36  ;;  %v872_v40 = vpack.c.bf16 %v862_v39, %v861_v24  ;;  %v1600_v13 = vpack.c.bf16 %v862_v39, %v862_v39  ;;  %v1785_v53 = vpop.f32.mrb[20].mxu1 }
 0x1fe   : > { %v1865_v2 = vpop.eup %1864  ;;  %v1516_v42 = vadd.f32 -1.0, %v1863_v18  ;;  %v1207_v55 = vpop.f32.mrb[21].mxu1 }
 0x1ff   : > { %v1521_v31 = vadd.f32 -1.0, %v1865_v2  ;;  %1068 = vst.msk [vmem:[%s2176_s13 + $0x2c] sm:$0xf] %vm1056_vm3, %v1600_v13  ;;  %v1786_v56 = vpop.f32.mrb[22].mxu1 }
 0x200   : > { %v860_v7 = vsel %vm780_vm0, %v2194_v9, %v1516_v42  ;;  %v1655_v59 = vpack.c.bf16 %v1786_v56, %v1785_v53  ;;  %v1210_v60 = vpop.f32.mrb[23].mxu1 }
 0x201   : > { %v871_v26 = vpack.c.bf16 %v860_v7, %v859_v34  ;;  %v1598_v38 = vpack.c.bf16 %v860_v7, %v860_v7  ;;  %v865_v44 = vsel %vm785_vm2, %v2200_v33, %v1521_v31  ;;  %v1867_v43 = vpop.eup %1866  ;;  %v1650_v29 = vpack.c.bf16 %v1210_v60, %v1207_v55 }
 0x202   : > { %v1603_v45 = vpack.c.bf16 %v865_v44, %v865_v44  ;;  %v1519_v15 = vadd.f32 -1.0, %v1867_v43  ;;  %1679 = vst [vmem:[%s2246_s16 + $0x18] sm:$0xff] %v1655_v59  }
 0x203   : > { %v1869_v10 = vpop.eup %1868  ;;  %1066 = vst.msk [vmem:[%s2176_s13 + $0x24] sm:$0xf] %vm1056_vm3, %v1598_v38  ;;  %1769 = vmatprep.mubr.msk.bf16.mxu0 %vm396_vm1, %v871_v26  ;;  %1678 = vst [vmem:[%s2246_s16 + $0x10] sm:$0xff] %v1650_v29  }
 0x204   : > { %v1871_v16 = vpop.eup %1870  ;;  %1071 = vst.msk [vmem:[%s2176_s13 + $0x38] sm:$0xf] %vm1056_vm3, %v1603_v45  ;;  %v1522_v9 = vadd.f32 -1.0, %v1869_v10  ;;  %1770 = vmatmul.mubr.msk.bf16.gmra.mrb[24].mxu0 %vm396_vm1, %v872_v40  ;;  %v863_v33 = vsel %vm783_vm4, %v2221_v6, %v1519_v15 }
 0x205   : > { %v1520_v46 = vadd.f32 -1.0, %v1871_v16  ;;  %v1601_v21 = vpack.c.bf16 %v863_v33, %v863_v33  ;;  %v1789_v62 = vpop.f32.mrb[24].mxu1 }
 0x206   : > { %v866_v47 = vsel %vm786_vm5, %v2226_v61, %v1522_v9  ;;  %v1223_v63 = vpop.f32.mrb[25].mxu1 }
 0x207   : > { %v874_v22 = vpack.c.bf16 %v866_v47, %v865_v44  ;;  %v1604_v48 = vpack.c.bf16 %v866_v47, %v866_v47  ;;  %v864_v25 = vsel %vm784_vm6, %v2232_v11, %v1520_v46  ;;  %1069 = vst.msk [vmem:[%s2176_s13 + $0x30] sm:$0xf] %vm1056_vm3, %v1601_v21  ;;  %v1790_v1 = vpop.f32.mrb[26].mxu1 }
 0x208   : > { %v873_v50 = vpack.c.bf16 %v864_v25, %v863_v33  ;;  %v1602_v35 = vpack.c.bf16 %v864_v25, %v864_v25  ;;  %v1665_v3 = vpack.c.bf16 %v1790_v1, %v1789_v62  ;;  %v1226_v4 = vpop.f32.mrb[27].mxu1 }
 0x209   : > { %1072 = vst.msk [vmem:[%s2176_s13 + $0x3c] sm:$0xf] %vm1056_vm3, %v1604_v48  ;;  %v1660_v6 = vpack.c.bf16 %v1226_v4, %v1223_v63 }
 0x20a   : > { %1070 = vst.msk [vmem:[%s2176_s13 + $0x34] sm:$0xf] %vm1056_vm3, %v1602_v35  ;;  %1773 = vmatprep.mubr.msk.bf16.mxu0 %vm396_vm1, %v873_v50  ;;  %1681 = vst [vmem:[%s2246_s16 + $0x28] sm:$0xff] %v1665_v3  }
 0x20b   : > { %1680 = vst [vmem:[%s2246_s16 + $0x20] sm:$0xff] %v1660_v6  }
 0x20c   : > { %1774 = vmatmul.mubr.msk.bf16.gmra.mrb[28].mxu0 %vm396_vm1, %v874_v22 }
 0x20d   : > { %v1793_v58 = vpop.f32.mrb[28].mxu1 }
 0x20e   : > { %v1239_v8 = vpop.f32.mrb[29].mxu1 }
 0x20f   : > { %v1794_v61 = vpop.f32.mrb[30].mxu1 }
 0x210   : > { %v1675_v49 = vpack.c.bf16 %v1794_v61, %v1793_v58  ;;  %v1242_v11 = vpop.f32.mrb[31].mxu1 }
 0x211   : > { %v1670_v0 = vpack.c.bf16 %v1242_v11, %v1239_v8 }
 0x212   : > { %1683 = vst [vmem:[%s2246_s16 + $0x38] sm:$0xff] %v1675_v49  }
 0x213   : > { %1682 = vst [vmem:[%s2246_s16 + $0x30] sm:$0xff] %v1670_v0  }
 0x2c3   : > { %v1763_v12 = vpop.f32.mrb[16].mxu0 }
 0x2c4   : > { %v1607_v14 = vpack.c.bf16 %v1763_v12, %v1763_v12  ;;  %v937_v17 = vpop.f32.mrb[17].mxu0 }
 0x2c5   : > { %v1605_v19 = vpack.c.bf16 %v937_v17, %v937_v17  ;;  %v1764_v51 = vpop.f32.mrb[18].mxu0 }
 0x2c6   : > { %1139 = vst.msk [vmem:[%s2297_s19 + $0x8] sm:$0xf] %vm1056_vm3, %v1607_v14  ;;  %v1608_v54 = vpack.c.bf16 %v1764_v51, %v1764_v51  ;;  %v940_v5 = vpop.f32.mrb[19].mxu0 }
 0x2c7   : > { %1137 = vst.msk [vmem:[%s2297_s19] sm:$0xf] %vm1056_vm3, %v1605_v19  ;;  %v1606_v57 = vpack.c.bf16 %v940_v5, %v940_v5 }
 0x2c8   : > { %1140 = vst.msk [vmem:[%s2297_s19 + $0xc] sm:$0xf] %vm1056_vm3, %v1608_v54 }
 0x2c9   : > { %1138 = vst.msk [vmem:[%s2297_s19 + $0x4] sm:$0xf] %vm1056_vm3, %v1606_v57 }
 0x2cb   : > { %v1767_v20 = vpop.f32.mrb[20].mxu0 }
 0x2cc   : > { %v1611_v23 = vpack.c.bf16 %v1767_v20, %v1767_v20  ;;  %v953_v24 = vpop.f32.mrb[21].mxu0 }
 0x2cd   : > { %v1609_v27 = vpack.c.bf16 %v953_v24, %v953_v24  ;;  %v1768_v28 = vpop.f32.mrb[22].mxu0 }
 0x2ce   : > { %1143 = vst.msk [vmem:[%s2297_s19 + $0x18] sm:$0xf] %vm1056_vm3, %v1611_v23  ;;  %v1612_v30 = vpack.c.bf16 %v1768_v28, %v1768_v28  ;;  %v956_v32 = vpop.f32.mrb[23].mxu0 }
 0x2cf   : > { %1141 = vst.msk [vmem:[%s2297_s19 + $0x10] sm:$0xf] %vm1056_vm3, %v1609_v27  ;;  %v1610_v34 = vpack.c.bf16 %v956_v32, %v956_v32 }
 0x2d0   : > { %1144 = vst.msk [vmem:[%s2297_s19 + $0x1c] sm:$0xf] %vm1056_vm3, %v1612_v30 }
 0x2d1   : > { %1142 = vst.msk [vmem:[%s2297_s19 + $0x14] sm:$0xf] %vm1056_vm3, %v1610_v34 }
 0x2d7   : > { %v1771_v36 = vpop.f32.mrb[24].mxu0 }
 0x2d8   : > { %v1615_v37 = vpack.c.bf16 %v1771_v36, %v1771_v36  ;;  %v969_v18 = vpop.f32.mrb[25].mxu0 }
 0x2d9   : > { %v1613_v39 = vpack.c.bf16 %v969_v18, %v969_v18  ;;  %v1772_v2 = vpop.f32.mrb[26].mxu0 }
 0x2da   : > { %1147 = vst.msk [vmem:[%s2297_s19 + $0x28] sm:$0xf] %vm1056_vm3, %v1615_v37  ;;  %v1616_v40 = vpack.c.bf16 %v1772_v2, %v1772_v2  ;;  %v972_v13 = vpop.f32.mrb[27].mxu0 }
 0x2db   : > { %1145 = vst.msk [vmem:[%s2297_s19 + $0x20] sm:$0xf] %vm1056_vm3, %v1613_v39  ;;  %v1614_v42 = vpack.c.bf16 %v972_v13, %v972_v13 }
 0x2dc   : > { %1148 = vst.msk [vmem:[%s2297_s19 + $0x2c] sm:$0xf] %vm1056_vm3, %v1616_v40 }
 0x2dd   : > { %1146 = vst.msk [vmem:[%s2297_s19 + $0x24] sm:$0xf] %vm1056_vm3, %v1614_v42 }
 0x2df   : > { %v1775_v31 = vpop.f32.mrb[28].mxu0 }
 0x2e0   : > { %v1619_v7 = vpack.c.bf16 %v1775_v31, %v1775_v31  ;;  %v985_v26 = vpop.f32.mrb[29].mxu0 }
 0x2e1   : > { %v1617_v38 = vpack.c.bf16 %v985_v26, %v985_v26  ;;  %v1776_v44 = vpop.f32.mrb[30].mxu0 }
 0x2e2   : > { %1151 = vst.msk [vmem:[%s2297_s19 + $0x38] sm:$0xf] %vm1056_vm3, %v1619_v7  ;;  %v1620_v43 = vpack.c.bf16 %v1776_v44, %v1776_v44  ;;  %v988_v45 = vpop.f32.mrb[31].mxu0 }
 0x2e3   : > { %1149 = vst.msk [vmem:[%s2297_s19 + $0x30] sm:$0xf] %vm1056_vm3, %v1617_v38  ;;  %v1618_v10 = vpack.c.bf16 %v988_v45, %v988_v45 }
 0x2e4   : > { %1152 = vst.msk [vmem:[%s2297_s19 + $0x3c] sm:$0xf] %vm1056_vm3, %v1620_v43 }
 0x2e5   : > { %1150 = vst.msk [vmem:[%s2297_s19 + $0x34] sm:$0xf] %vm1056_vm3, %v1618_v10 }
 0x2e6 PF: > { %s20_s30 = sadd.s32 1, %s1878_s30  }
 0x2e7   : > { %p17_p4 = scmp.ge.s32.totalorder %s20_s30, 4  }
 0x2e9   :  { %19 = sbr.rel (!%p17_p4) target bundleno = 1 (0x1), region = 102 }

// kernel: _device_forward_linkpred.5
= control target key start
LH: loop header
LB: loop body
LE: loop exit
PB: predicated region body
PF: predicated region fallthrough
CT: control target
= control target key end

     0   :  { %s781_s14 = smov 0   ;;  %s968_s0 = inlined_call_operand.vmem [shape: bf16[256,8], index: 0, kind: input, shape index: {}]   ;;  %s969_s1 = inlined_call_operand.vmem [shape: bf16[256,8], index: 1, kind: input, shape index: {}]   ;;  %s970_s2 = inlined_call_operand.<no memory space> [shape: f32[1,1], index: 2, kind: input, shape index: {}]   ;;  %s971_s3 = inlined_call_operand.vmem [shape: f32[256,256], index: 3, kind: output, shape index: {}]  }
   0x1   :  { %v8_v0 = vstv %s970_s2 }
   0x2   :  { %9 = vst [vmem:[#allocation2] sm:$0x1] %v8_v0 }
   0x3 LB: > { %s606_s15 = sadd.s32 4294967295, %s755_s14   ;;  %p609_p0 = scmp.ge.s32.totalorder %s755_s14, 1  ;;  %s755_s14 = sphi %s781_s14, %s15_s14  }
   0x4   : > { %p129_p1 = scmp.lt.s32.totalorder %s755_s14, 3 }
   0x6   : > { %p130_p2 = pnand %p609_p0, %p129_p1 }
   0x7   : > { %v725_v1 = vld [vmem:[%s968_s0 + $0x40] sm:$0xff] (!%p130_p2)   ;;  %vm340_vm0 = vcmask (!%p130_p2), 64512   ;;  %v727_v3 = vld [vmem:[%s968_s0 + $0x48] sm:$0xff] (!%p130_p2)   ;;  %s613_s21 = sshll.u32 (!%p130_p2), %s606_s15, 7  ;;  %v757_v6 = vmov (!%p130_p2), 0   ;;  %v729_v8 = vld [vmem:[%s968_s0 + $0x50] sm:$0xff] (!%p130_p2)  }
   0x8   : > { %133 = sbr.rel (%p130_p2) target bundleno = 315 (0x13b), region = 32  ;;  %v726_v2 = vld [vmem:[%s968_s0] sm:$0xff] (!%p130_p2)   ;;  %699 = vmatprep.subr.msk.bf16.mxu0 (!%p130_p2), %vm340_vm0, %v725_v1  ;;  %700 = vmatprep.subr.msk.bf16.mxu1 (!%p130_p2), %vm340_vm0, %v725_v1  ;;  %v728_v5 = vld [vmem:[%s968_s0 + $0x8] sm:$0xff] (!%p130_p2)   ;;  %s158_s24 = sshra.s32 (!%p130_p2), %s613_s21, 3  ;;  %v730_v9 = vld [vmem:[%s968_s0 + $0x10] sm:$0xff] (!%p130_p2)  }
   0x9   : > { %v366_v4 = vsel (!%p130_p2), %vm340_vm0, %v726_v2, 0  ;;  %724 = vset.pattern.permute.xlu0 (!%p130_p2), %v757_v6  ;;  %v369_v7 = vsel (!%p130_p2), %vm340_vm0, %v728_v5, 0  ;;  %s614_s27 = sshll.u32 (!%p130_p2), %s158_s24, 2  ;;  %v731_v10 = vld [vmem:[%s968_s0 + $0x58] sm:$0xff] (!%p130_p2)   ;;  %v372_v12 = vsel (!%p130_p2), %vm340_vm0, %v730_v9, 0  ;;  %v733_v17 = vld [vmem:[%s968_s0 + $0x60] sm:$0xff] (!%p130_p2)  }
   0xa   : > { %652 = vmatpush3.bf16.xpose.msra.mxu0 (!%p130_p2), %v366_v4  ;;  %691 = vmatpush3.bf16.xpose.msra.mxu1 (!%p130_p2), %v366_v4  ;;  %s820_s5 = scalar_lea.vmem (!%p130_p2), %s969_s1, %s614_s27  ;;  %v732_v14 = vld [vmem:[%s968_s0 + $0x18] sm:$0xff] (!%p130_p2)   ;;  %v615_v15 = vld [vmem:[#allocation2] ss:$0 sm:$0xff] (!%p130_p2)  ;;  %v735_v20 = vld [vmem:[%s968_s0 + $0x68] sm:$0xff] (!%p130_p2)   ;;  %s610_s27 = sshll.u32 (!%p130_p2), %s606_s15, 4 }
   0xb   : > { %701 = vmatprep.subr.msk.bf16.mxu0 (!%p130_p2), %vm340_vm0, %v727_v3  ;;  %702 = vmatprep.subr.msk.bf16.mxu1 (!%p130_p2), %vm340_vm0, %v727_v3  ;;  %v741_v11 = vld [vmem:[%s820_s5] sm:$0xff] (!%p130_p2)   ;;  %v375_v16 = vsel (!%p130_p2), %vm340_vm0, %v732_v14, 0  ;;  %v736_v21 = vld [vmem:[%s968_s0 + $0x28] sm:$0xff] (!%p130_p2)   ;;  %v737_v23 = vld [vmem:[%s968_s0 + $0x70] sm:$0xff] (!%p130_p2)   ;;  %p150_p3 = scmp.lt.s32.totalorder (!%p130_p2), %s610_s27, 31 }
   0xc   : > { %v742_v13 = vld [vmem:[%s820_s5 + $0x20] sm:$0xff] (!%p130_p2)   ;;  %667 = vmatprep.mubr.msk.bf16.mxu0 (!%p130_p2), %vm340_vm0, %v741_v11  ;;  %217 = vperm.xlu0 (!%p130_p2), %724, %v615_v15   ;;  %v381_v22 = vsel (!%p130_p2), %vm340_vm0, %v736_v21, 0  ;;  %v738_v24 = vld [vmem:[%s968_s0 + $0x30] sm:$0xff] (!%p130_p2)   ;;  %v739_v26 = vld [vmem:[%s968_s0 + $0x78] sm:$0xff] (!%p130_p2)  }
   0xd   : > { %675 = vmatprep.mubr.msk.bf16.mxu1 (!%p130_p2), %vm340_vm0, %v742_v13  ;;  %v734_v18 = vld [vmem:[%s968_s0 + $0x20] sm:$0xff] (!%p130_p2)   ;;  %v384_v25 = vsel (!%p130_p2), %vm340_vm0, %v738_v24, 0  ;;  %v740_v27 = vld [vmem:[%s968_s0 + $0x38] sm:$0xff] (!%p130_p2)   ;;  %v743_v29 = vld [vmem:[%s820_s5 + $0x8] sm:$0xff] (!%p130_p2)  }
   0xe   : > { %v378_v19 = vsel (!%p130_p2), %vm340_vm0, %v734_v18, 0  ;;  %v387_v28 = vsel (!%p130_p2), %vm340_vm0, %v740_v27, 0  ;;  %v744_v30 = vld [vmem:[%s820_s5 + $0x28] sm:$0xff] (!%p130_p2)   ;;  %v745_v31 = vld [vmem:[%s820_s5 + $0x10] sm:$0xff] (!%p130_p2)   ;;  %v747_v33 = vld [vmem:[%s820_s5 + $0x18] sm:$0xff] (!%p130_p2)  }
   0xf   : > { %v746_v32 = vld [vmem:[%s820_s5 + $0x30] sm:$0xff]   ;;  %v748_v34 = vld [vmem:[%s820_s5 + $0x38] sm:$0xff]   ;;  %s973_s27 = smov (!%p150_p3, %s610_s27), 31 }
  0x10   : > { %s650_s28 = sshll.u32 %s973_s27, 4 }
  0x11   : > { %s899_s4 = scalar_lea.vmem %s971_s3, %s650_s28 }
  0x12   : > { %654 = vmatpush3.bf16.xpose.msra.mxu0 %v369_v7  ;;  %692 = vmatpush3.bf16.xpose.msra.mxu1 %v369_v7 }
  0x13   : > { %703 = vmatprep.subr.msk.bf16.mxu0 %vm340_vm0, %v729_v8  ;;  %704 = vmatprep.subr.msk.bf16.mxu1 %vm340_vm0, %v729_v8 }
  0x1a   : > { %656 = vmatpush3.bf16.xpose.msra.mxu0 %v372_v12  ;;  %693 = vmatpush3.bf16.xpose.msra.mxu1 %v372_v12 }
  0x1b   : > { %705 = vmatprep.subr.msk.bf16.mxu0 %vm340_vm0, %v731_v10  ;;  %706 = vmatprep.subr.msk.bf16.mxu1 %vm340_vm0, %v731_v10 }
  0x22   : > { %658 = vmatpush3.bf16.xpose.msra.mxu0 %v375_v16  ;;  %694 = vmatpush3.bf16.xpose.msra.mxu1 %v375_v16 }
  0x23   : > { %707 = vmatprep.subr.msk.bf16.mxu0 %vm340_vm0, %v733_v17  ;;  %708 = vmatprep.subr.msk.bf16.mxu1 %vm340_vm0, %v733_v17 }
  0x2a   : > { %660 = vmatpush3.bf16.xpose.msra.mxu0 %v378_v19  ;;  %695 = vmatpush3.bf16.xpose.msra.mxu1 %v378_v19 }
  0x2b   : > { %709 = vmatprep.subr.msk.bf16.mxu0 %vm340_vm0, %v735_v20  ;;  %710 = vmatprep.subr.msk.bf16.mxu1 %vm340_vm0, %v735_v20 }
  0x32   : > { %662 = vmatpush3.bf16.xpose.msra.mxu0 %v381_v22  ;;  %696 = vmatpush3.bf16.xpose.msra.mxu1 %v381_v22 }
  0x33   : > { %711 = vmatprep.subr.msk.bf16.mxu0 %vm340_vm0, %v737_v23  ;;  %712 = vmatprep.subr.msk.bf16.mxu1 %vm340_vm0, %v737_v23 }
  0x3a   : > { %664 = vmatpush3.bf16.xpose.msra.mxu0 %v384_v25  ;;  %697 = vmatpush3.bf16.xpose.msra.mxu1 %v384_v25 }
  0x3b   : > { %713 = vmatprep.subr.msk.bf16.mxu0 %vm340_vm0, %v739_v26  ;;  %714 = vmatprep.subr.msk.bf16.mxu1 %vm340_vm0, %v739_v26 }
  0x42   : > { %666 = vmatpush3.bf16.xpose.msra.mxu0 %v387_v28  ;;  %698 = vmatpush3.bf16.xpose.msra.mxu1 %v387_v28 }
  0x49   : > { %668 = vmatmul.mubr.msk.bf16.vlgmr.msra.gmra.mrb[0].mxu0 %vm340_vm0, %v741_v11  ;;  %676 = vmatmul.mubr.msk.bf16.vlgmr.msra.gmra.mrb[0].mxu1 %vm340_vm0, %v742_v13 }
  0x4a   : > { %669 = vmatprep.mubr.msk.bf16.mxu0 %vm340_vm0, %v743_v29  ;;  %677 = vmatprep.mubr.msk.bf16.mxu1 %vm340_vm0, %v744_v30 }
  0x51   : > { %670 = vmatmul.mubr.msk.bf16.gmra.mrb[4].mxu0 %vm340_vm0, %v743_v29  ;;  %678 = vmatmul.mubr.msk.bf16.gmra.mrb[4].mxu1 %vm340_vm0, %v744_v30 }
  0x52   : > { %671 = vmatprep.mubr.msk.bf16.mxu0 %vm340_vm0, %v745_v31  ;;  %679 = vmatprep.mubr.msk.bf16.mxu1 %vm340_vm0, %v746_v32 }
  0x59   : > { %672 = vmatmul.mubr.msk.bf16.gmra.mrb[8].mxu0 %vm340_vm0, %v745_v31  ;;  %680 = vmatmul.mubr.msk.bf16.gmra.mrb[8].mxu1 %vm340_vm0, %v746_v32 }
  0x5a   : > { %673 = vmatprep.mubr.msk.bf16.mxu0 %vm340_vm0, %v747_v33  ;;  %681 = vmatprep.mubr.msk.bf16.mxu1 %vm340_vm0, %v748_v34 }
  0x61   : > { %674 = vmatmul.mubr.msk.bf16.gmra.mrb[12].mxu0 %vm340_vm0, %v747_v33  ;;  %682 = vmatmul.mubr.msk.bf16.gmra.mrb[12].mxu1 %vm340_vm0, %v748_v34 }
  0x8b   : > { %v894_v35 = vpop.permute.xlu0 %217 }
 0x11c   : > { %v447_v36 = vpop.f32.mrb[0].mxu0  ;;  %v487_v37 = vpop.f32.mrb[0].mxu1 }
 0x11d   : > { %v448_v38 = vadd.f32 %v447_v36, %v894_v35  ;;  %v488_v39 = vadd.f32 %v487_v37, %v894_v35  ;;  %v449_v40 = vpop.f32.mrb[1].mxu0  ;;  %v489_v41 = vpop.f32.mrb[1].mxu1 }
 0x11e   : > { %v450_v42 = vadd.f32 %v449_v40, %v894_v35  ;;  %v490_v43 = vadd.f32 %v489_v41, %v894_v35  ;;  %v451_v44 = vpop.f32.mrb[2].mxu0  ;;  %v491_v45 = vpop.f32.mrb[2].mxu1 }
 0x11f   : > { %526 = vst [vmem:[%s899_s4] sm:$0xff] %v448_v38  ;;  %542 = vst [vmem:[%s899_s4 + $0x80] sm:$0xff] %v488_v39  ;;  %v452_v46 = vadd.f32 %v451_v44, %v894_v35  ;;  %v492_v47 = vadd.f32 %v491_v45, %v894_v35  ;;  %v453_v48 = vpop.f32.mrb[3].mxu0  ;;  %v493_v49 = vpop.f32.mrb[3].mxu1 }
 0x120   : > { %527 = vst [vmem:[%s899_s4 + $0x8] sm:$0xff] %v450_v42  ;;  %543 = vst [vmem:[%s899_s4 + $0x88] sm:$0xff] %v490_v43  ;;  %v454_v50 = vadd.f32 %v453_v48, %v894_v35  ;;  %v494_v51 = vadd.f32 %v493_v49, %v894_v35 }
 0x121   : > { %528 = vst [vmem:[%s899_s4 + $0x10] sm:$0xff] %v452_v46  ;;  %544 = vst [vmem:[%s899_s4 + $0x90] sm:$0xff] %v492_v47 }
 0x122   : > { %529 = vst [vmem:[%s899_s4 + $0x18] sm:$0xff] %v454_v50  ;;  %545 = vst [vmem:[%s899_s4 + $0x98] sm:$0xff] %v494_v51 }
 0x124   : > { %v457_v52 = vpop.f32.mrb[4].mxu0  ;;  %v497_v53 = vpop.f32.mrb[4].mxu1 }
 0x125   : > { %v458_v54 = vadd.f32 %v457_v52, %v894_v35  ;;  %v498_v55 = vadd.f32 %v497_v53, %v894_v35  ;;  %v459_v56 = vpop.f32.mrb[5].mxu0  ;;  %v499_v57 = vpop.f32.mrb[5].mxu1 }
 0x126   : > { %v460_v58 = vadd.f32 %v459_v56, %v894_v35  ;;  %v500_v59 = vadd.f32 %v499_v57, %v894_v35  ;;  %v461_v60 = vpop.f32.mrb[6].mxu0  ;;  %v501_v61 = vpop.f32.mrb[6].mxu1 }
 0x127   : > { %530 = vst [vmem:[%s899_s4 + $0x20] sm:$0xff] %v458_v54  ;;  %546 = vst [vmem:[%s899_s4 + $0xa0] sm:$0xff] %v498_v55  ;;  %v462_v62 = vadd.f32 %v461_v60, %v894_v35  ;;  %v502_v63 = vadd.f32 %v501_v61, %v894_v35  ;;  %v463_v0 = vpop.f32.mrb[7].mxu0  ;;  %v503_v1 = vpop.f32.mrb[7].mxu1 }
 0x128   : > { %531 = vst [vmem:[%s899_s4 + $0x28] sm:$0xff] %v460_v58  ;;  %547 = vst [vmem:[%s899_s4 + $0xa8] sm:$0xff] %v500_v59  ;;  %v464_v2 = vadd.f32 %v463_v0, %v894_v35  ;;  %v504_v3 = vadd.f32 %v503_v1, %v894_v35 }
 0x129   : > { %532 = vst [vmem:[%s899_s4 + $0x30] sm:$0xff] %v462_v62  ;;  %548 = vst [vmem:[%s899_s4 + $0xb0] sm:$0xff] %v502_v63 }
 0x12a   : > { %533 = vst [vmem:[%s899_s4 + $0x38] sm:$0xff] %v464_v2  ;;  %549 = vst [vmem:[%s899_s4 + $0xb8] sm:$0xff] %v504_v3 }
 0x12c   : > { %v467_v4 = vpop.f32.mrb[8].mxu0  ;;  %v507_v5 = vpop.f32.mrb[8].mxu1 }
 0x12d   : > { %v468_v6 = vadd.f32 %v467_v4, %v894_v35  ;;  %v508_v7 = vadd.f32 %v507_v5, %v894_v35  ;;  %v469_v8 = vpop.f32.mrb[9].mxu0  ;;  %v509_v9 = vpop.f32.mrb[9].mxu1 }
 0x12e   : > { %v470_v10 = vadd.f32 %v469_v8, %v894_v35  ;;  %v510_v11 = vadd.f32 %v509_v9, %v894_v35  ;;  %v471_v12 = vpop.f32.mrb[10].mxu0  ;;  %v511_v13 = vpop.f32.mrb[10].mxu1 }
 0x12f   : > { %534 = vst [vmem:[%s899_s4 + $0x40] sm:$0xff] %v468_v6  ;;  %550 = vst [vmem:[%s899_s4 + $0xc0] sm:$0xff] %v508_v7  ;;  %v472_v14 = vadd.f32 %v471_v12, %v894_v35  ;;  %v512_v15 = vadd.f32 %v511_v13, %v894_v35  ;;  %v473_v16 = vpop.f32.mrb[11].mxu0  ;;  %v513_v17 = vpop.f32.mrb[11].mxu1 }
 0x130   : > { %535 = vst [vmem:[%s899_s4 + $0x48] sm:$0xff] %v470_v10  ;;  %551 = vst [vmem:[%s899_s4 + $0xc8] sm:$0xff] %v510_v11  ;;  %v474_v18 = vadd.f32 %v473_v16, %v894_v35  ;;  %v514_v19 = vadd.f32 %v513_v17, %v894_v35 }
 0x131   : > { %536 = vst [vmem:[%s899_s4 + $0x50] sm:$0xff] %v472_v14  ;;  %552 = vst [vmem:[%s899_s4 + $0xd0] sm:$0xff] %v512_v15 }
 0x132   : > { %537 = vst [vmem:[%s899_s4 + $0x58] sm:$0xff] %v474_v18  ;;  %553 = vst [vmem:[%s899_s4 + $0xd8] sm:$0xff] %v514_v19 }
 0x134   : > { %v477_v20 = vpop.f32.mrb[12].mxu0  ;;  %v517_v21 = vpop.f32.mrb[12].mxu1 }
 0x135   : > { %v478_v22 = vadd.f32 %v477_v20, %v894_v35  ;;  %v518_v23 = vadd.f32 %v517_v21, %v894_v35  ;;  %v479_v24 = vpop.f32.mrb[13].mxu0  ;;  %v519_v25 = vpop.f32.mrb[13].mxu1 }
 0x136   : > { %v480_v26 = vadd.f32 %v479_v24, %v894_v35  ;;  %v520_v27 = vadd.f32 %v519_v25, %v894_v35  ;;  %v481_v28 = vpop.f32.mrb[14].mxu0  ;;  %v521_v29 = vpop.f32.mrb[14].mxu1 }
 0x137   : > { %538 = vst [vmem:[%s899_s4 + $0x60] sm:$0xff] %v478_v22  ;;  %554 = vst [vmem:[%s899_s4 + $0xe0] sm:$0xff] %v518_v23  ;;  %v482_v30 = vadd.f32 %v481_v28, %v894_v35  ;;  %v522_v31 = vadd.f32 %v521_v29, %v894_v35  ;;  %v483_v32 = vpop.f32.mrb[15].mxu0  ;;  %v523_v33 = vpop.f32.mrb[15].mxu1 }
 0x138   : > { %539 = vst [vmem:[%s899_s4 + $0x68] sm:$0xff] %v480_v26  ;;  %555 = vst [vmem:[%s899_s4 + $0xe8] sm:$0xff] %v520_v27  ;;  %v484_v34 = vadd.f32 %v483_v32, %v894_v35  ;;  %v524_v36 = vadd.f32 %v523_v33, %v894_v35 }
 0x139   : > { %540 = vst [vmem:[%s899_s4 + $0x70] sm:$0xff] %v482_v30  ;;  %556 = vst [vmem:[%s899_s4 + $0xf0] sm:$0xff] %v522_v31 }
 0x13a   : > { %541 = vst [vmem:[%s899_s4 + $0x78] sm:$0xff] %v484_v34  ;;  %557 = vst [vmem:[%s899_s4 + $0xf8] sm:$0xff] %v524_v36 }
 0x13b PF: > { %s15_s14 = sadd.s32 1, %s755_s14  }
 0x13c   : > { %p12_p4 = scmp.ge.s32.totalorder %s15_s14, 4  }
 0x13e   :  { %14 = sbr.rel (!%p12_p4) target bundleno = 3 (0x3), region = 60 }

// kernel: _device_forward_linkpred.6
= control target key start
LH: loop header
LB: loop body
LE: loop exit
PB: predicated region body
PF: predicated region fallthrough
CT: control target
= control target key end

     0   :  { %s4894_s24 = smov 0   ;;  %s6882_s0 = inlined_call_operand.vmem [shape: bf16[256,128], index: 0, kind: input, shape index: {}]   ;;  %s6883_s1 = inlined_call_operand.vmem [shape: bf16[256,256], index: 1, kind: input, shape index: {}]   ;;  %s6884_s2 = inlined_call_operand.vmem [shape: bf16[128,4], index: 2, kind: input, shape index: {}]   ;;  %s6885_s3 = inlined_call_operand.vmem [shape: bf16[4,128], index: 3, kind: input, shape index: {}]   ;;  %s6886_s4 = inlined_call_operand.vmem [shape: f32[1,32], index: 4, kind: input, shape index: {}]   ;;  %s6887_s5 = inlined_call_operand.vmem [shape: f32[1,32], index: 5, kind: input, shape index: {}]   ;;  %s6888_s6 = inlined_call_operand.vmem [shape: bf16[32,128], index: 6, kind: input, shape index: {}]   ;;  %s6889_s7 = inlined_call_operand.vmem [shape: bf16[256,128], index: 7, kind: output, shape index: {}]  }
   0x1 LB: > { %s3806_s25 = sadd.s32 4294967295, %s4844_s24   ;;  %p3810_p0 = scmp.ge.s32.totalorder %s4844_s24, 1  ;;  %s4844_s24 = sphi %s4894_s24, %s17_s24  }
   0x2   : > { %p239_p1 = scmp.lt.s32.totalorder %s4844_s24, 3 }
   0x4   : > { %p240_p2 = pnand %p3810_p0, %p239_p1 }
   0x6   : > { %243 = sbr.rel (%p240_p2) target bundleno = 1975 (0x7b7), region = 48 }
   0xd   : > { %v4372_v0 = vld [vmem:[%s6884_s2] sm:$0xff]   ;;  %s3816_s28 = sshll.u32 %s3806_s25, 7  ;;  %v4373_v1 = vld [vmem:[%s6884_s2 + $0x8] sm:$0xff]   ;;  %v4374_v2 = vld [vmem:[%s6884_s2 + $0x10] sm:$0xff]   ;;  %v6890_v3 = vmov 3   ;;  %v4847_v4 = vmov 0  }
   0xe   : > { %s320_s8 = sshra.s32 %s3816_s28, 3  ;;  %4260 = vmatprep.subr.bf16.mxu0 %v4372_v0  ;;  %4330 = vset.pattern.permute.xlu0 %v6890_v3  ;;  %v4375_v5 = vld [vmem:[%s6884_s2 + $0x18] sm:$0xff]   ;;  %v4376_v7 = vld [vmem:[%s6884_s2 + $0x20] sm:$0xff]   ;;  %v4377_v10 = vld [vmem:[%s6884_s2 + $0x28] sm:$0xff]   ;;  %s4848_s27 = smov 96   ;;  %vm1095_vm0 = vcmask 261120  }
   0xf   : > { %s3817_s9 = sshll.u32 %s320_s8, 2  ;;  %4261 = vmatpush3.bf16.msra.mxu0 %v4372_v0  ;;  %4328 = vset.pattern.permute.xlu1 %v4847_v4  ;;  %v4930_v8 = vld [vmem:[%s6882_s0 + $0x40] sm:$0xff]   ;;  %v4947_v11 = vld [vmem:[%s6882_s0 + $0x48] sm:$0xff]   ;;  %v4378_v12 = vld [vmem:[%s6884_s2 + $0x30] sm:$0xff]   ;;  %s4851_s28 = smov 64  }
  0x10   : > { %4262 = vmatprep.subr.bf16.mxu0 %v4373_v1  ;;  %s4916_s14 = scalar_lea.vmem %s6882_s0, %s3817_s9  ;;  %v4935_v9 = vld [vmem:[%s6882_s0] sm:$0xff]   ;;  %3976 = vmatprep.subr.bf16.mxu1 %v4930_v8  ;;  %v4958_v13 = vld [vmem:[%s6882_s0 + $0x8] sm:$0xff]   ;;  %v4965_v14 = vld [vmem:[%s6882_s0 + $0x50] sm:$0xff]   ;;  %s4852_s29 = smov 32  }
  0x11   : > { %v4380_v6 = vld [vmem:[%s4916_s14] sm:$0xff]   ;;  %3977 = vmatpush3.bf16.xpose.msra.mxu1 %v4935_v9  ;;  %1746 = vrot.lane.b32.xlu0 %v4930_v8, %s4848_s27  ;;  %v4379_v15 = vld [vmem:[%s6884_s2 + $0x38] sm:$0xff]   ;;  %v4975_v16 = vld [vmem:[%s6882_s0 + $0x10] sm:$0xff]  }
  0x12   : > { %4276 = vmatprep.mubr.bf16.mxu0 %v4380_v6  ;;  %1730 = vrot.lane.b32.xlu1 %v4935_v9, %s4848_s27  ;;  %v4986_v17 = vld [vmem:[%s6882_s0 + $0x58] sm:$0xff]   ;;  %v4381_v19 = vld [vmem:[%s4916_s14 + $0x8] sm:$0xff]   ;;  %v4382_v20 = vld [vmem:[%s4916_s14 + $0x10] sm:$0xff]  }
  0x13   : > { %4263 = vmatpush3.bf16.msra.mxu0 %v4373_v1  ;;  %3978 = vmatprep.subr.bf16.mxu1 %v4947_v11  ;;  %v4991_v18 = vld [vmem:[%s6882_s0 + $0x18] sm:$0xff]   ;;  %v549_v21 = vld [vmem:[%s6885_s3] sm:$0x3]  ;;  %v5021_v24 = vld [vmem:[%s6882_s0 + $0x68] sm:$0xff]  }
  0x14   : > { %4264 = vmatprep.subr.bf16.mxu0 %v4374_v2  ;;  %v5006_v22 = vld [vmem:[%s6882_s0 + $0x60] sm:$0xff]   ;;  %3992 = vmatprep.mubr.bf16.mxu1 %v549_v21  ;;  %v4383_v25 = vld [vmem:[%s4916_s14 + $0x18] sm:$0xff]   ;;  %v5027_v26 = vld [vmem:[%s6882_s0 + $0x28] sm:$0xff]  }
  0x15   : > { %1748 = vrot.lane.b32.xlu0 %v4947_v11, %s4848_s27  ;;  %v5012_v23 = vld [vmem:[%s6882_s0 + $0x20] sm:$0xff]   ;;  %v5038_v28 = vld [vmem:[%s6882_s0 + $0x70] sm:$0xff]   ;;  %v5053_v30 = vld [vmem:[%s6882_s0 + $0x78] sm:$0xff]  }
  0x16   : > { %1732 = vrot.lane.b32.xlu1 %v4958_v13, %s4848_s27  ;;  %v4384_v27 = vld [vmem:[%s4916_s14 + $0x20] sm:$0xff]   ;;  %v5044_v29 = vld [vmem:[%s6882_s0 + $0x30] sm:$0xff]   ;;  %v4385_v31 = vld [vmem:[%s4916_s14 + $0x28] sm:$0xff]  }
  0x17   : > { %4265 = vmatpush3.bf16.msra.mxu0 %v4374_v2  ;;  %v5059_v32 = vld [vmem:[%s6882_s0 + $0x38] sm:$0xff]   ;;  %v4388_v33 = vld [vmem:[%s4916_s14 + $0x30] sm:$0xff]  }
  0x18   : > { %4266 = vmatprep.subr.bf16.mxu0 %v4375_v5  ;;  %v4389_v34 = vld [vmem:[%s4916_s14 + $0x38] sm:$0xff]   ;;  %s3811_s14 = sshll.u32 %s3806_s25, 4 }
  0x19   : > { %3979 = vmatpush3.bf16.xpose.msra.mxu1 %v4958_v13  ;;  %1750 = vrot.lane.b32.xlu0 %v4965_v14, %s4848_s27  ;;  %p273_p3 = scmp.lt.s32.totalorder %s3811_s14, 31 }
  0x1a   : > { %3980 = vmatprep.subr.bf16.mxu1 %v4965_v14  ;;  %1734 = vrot.lane.b32.xlu1 %v4975_v16, %s4848_s27 }
  0x1b   : > { %4267 = vmatpush3.bf16.msra.mxu0 %v4375_v5  ;;  %s7435_s14 = smov (!%p273_p3, %s3811_s14), 31 }
  0x1c   : > { %4268 = vmatprep.subr.bf16.mxu0 %v4376_v7  ;;  %s3815_s23 = sshll.u32 %s7435_s14, 2 }
  0x1d   : > { %1752 = vrot.lane.b32.xlu0 %v4986_v17, %s4848_s27  ;;  %s283_s8 = scalar_lea.vmem %s6889_s7, %s3815_s23 }
  0x1e   : > { %1736 = vrot.lane.b32.xlu1 %v4991_v18, %s4848_s27 }
  0x1f   : > { %4269 = vmatpush3.bf16.msra.mxu0 %v4376_v7 }
  0x20   : > { %4270 = vmatprep.subr.bf16.mxu0 %v4377_v10 }
  0x21   : > { %3981 = vmatpush3.bf16.xpose.msra.mxu1 %v4975_v16  ;;  %1754 = vrot.lane.b32.xlu0 %v5006_v22, %s4848_s27 }
  0x22   : > { %3982 = vmatprep.subr.bf16.mxu1 %v4986_v17  ;;  %1738 = vrot.lane.b32.xlu1 %v5012_v23, %s4848_s27 }
  0x23   : > { %4271 = vmatpush3.bf16.msra.mxu0 %v4377_v10 }
  0x24   : > { %4272 = vmatprep.subr.bf16.mxu0 %v4378_v12 }
  0x25   : > { %1756 = vrot.lane.b32.xlu0 %v5021_v24, %s4848_s27 }
  0x26   : > { %1740 = vrot.lane.b32.xlu1 %v5027_v26, %s4848_s27 }
  0x27   : > { %4273 = vmatpush3.bf16.msra.mxu0 %v4378_v12  ;;  %v4849_v12 = vmov 1  }
  0x28   : > { %4274 = vmatprep.subr.bf16.mxu0 %v4379_v15 }
  0x29   : > { %3983 = vmatpush3.bf16.xpose.msra.mxu1 %v4991_v18  ;;  %1758 = vrot.lane.b32.xlu0 %v5038_v28, %s4848_s27 }
  0x2a   : > { %3984 = vmatprep.subr.bf16.mxu1 %v5006_v22  ;;  %1742 = vrot.lane.b32.xlu1 %v5044_v29, %s4848_s27 }
  0x2b   : > { %4275 = vmatpush3.bf16.msra.mxu0 %v4379_v15 }
  0x2d   : > { %1760 = vrot.lane.b32.xlu0 %v5053_v30, %s4848_s27 }
  0x2e   : > { %4277 = vmatmul.mubr.bf16.vlgmr.msra.gmra.mrb[0].mxu0 %v4381_v19  ;;  %1744 = vrot.lane.b32.xlu1 %v5059_v32, %s4848_s27  ;;  %s3896_s27 = sshll.u32 %s7435_s14, 3 }
  0x2f   : > { %4280 = vmatprep.mubr.bf16.mxu0 %v4382_v20  ;;  %s5246_s22 = scalar_lea.vmem %s6883_s1, %s3896_s27 }
  0x31   : > { %3985 = vmatpush3.bf16.xpose.msra.mxu1 %v5012_v23 }
  0x32   : > { %3986 = vmatprep.subr.bf16.mxu1 %v5021_v24 }
  0x36   : > { %4281 = vmatmul.mubr.bf16.gmra.mrb[4].mxu0 %v4383_v25 }
  0x37   : > { %4284 = vmatprep.mubr.bf16.mxu0 %v4384_v27 }
  0x39   : > { %3987 = vmatpush3.bf16.xpose.msra.mxu1 %v5027_v26 }
  0x3a   : > { %3988 = vmatprep.subr.bf16.mxu1 %v5038_v28 }
  0x3e   : > { %4285 = vmatmul.mubr.bf16.gmra.mrb[8].mxu0 %v4385_v31 }
  0x3f   : > { %4288 = vmatprep.mubr.bf16.mxu0 %v4388_v33 }
  0x41   : > { %3989 = vmatpush3.bf16.xpose.msra.mxu1 %v5044_v29 }
  0x42   : > { %3990 = vmatprep.subr.bf16.mxu1 %v5053_v30 }
  0x46   : > { %4289 = vmatmul.mubr.bf16.gmra.mrb[12].mxu0 %v4389_v34 }
  0x49   : > { %3991 = vmatpush3.bf16.xpose.msra.mxu1 %v5059_v32 }
  0x50   : > { %3993 = vmatmul.mubr.bf16.vlgmr.msra.gmra.mrb[0].mxu1 %v549_v21 }
  0x83   : > { %v1747_v35 = vpop.permute.xlu0 %1746 }
  0x84   : > { %v1731_v36 = vpop.permute.xlu1 %1730  ;;  %v1787_v38 = vsel %vm1095_vm0, %v1747_v35, 1065369472 }
  0x85   : > { %v1763_v37 = vsel %vm1095_vm0, %v1731_v36, 1065369472  ;;  %4058 = vmatprep.subr.bf16.mxu1 %v1787_v38  ;;  %v815_v38 = vlaneseq }
  0x86   : > { %4059 = vmatpush3.bf16.msra.mxu1 %v1763_v37 }
  0x87   : > { %v1749_v39 = vpop.permute.xlu0 %1748 }
  0x88   : > { %v1733_v40 = vpop.permute.xlu1 %1732  ;;  %v1790_v41 = vsel %vm1095_vm0, %v1749_v39, 1065369472  ;;  %v5151_v39 = vshrl.u32 %v815_v38, 7 }
  0x89   : > { %v1766_v42 = vsel %vm1095_vm0, %v1733_v40, 1065369472  ;;  %4060 = vmatprep.subr.bf16.mxu1 %v1790_v41 }
  0x8a   : > { %4061 = vmatpush3.bf16.msra.mxu1 %v1766_v42  ;;  %v2117_v40 = vsub.s32 2, %v5151_v39  ;;  %v2782_v41 = vsub.s32 3, %v5151_v39 }
  0x8b   : > { %v1751_v43 = vpop.permute.xlu0 %1750 }
  0x8c   : > { %v1735_v44 = vpop.permute.xlu1 %1734  ;;  %v1793_v46 = vsel %vm1095_vm0, %v1751_v43, 1065369472 }
  0x8d   : > { %v1769_v45 = vsel %vm1095_vm0, %v1735_v44, 1065369472  ;;  %4062 = vmatprep.subr.bf16.mxu1 %v1793_v46 }
  0x8e   : > { %4063 = vmatpush3.bf16.msra.mxu1 %v1769_v45 }
  0x8f   : > { %v1753_v47 = vpop.permute.xlu0 %1752 }
  0x90   : > { %v1737_v48 = vpop.permute.xlu1 %1736  ;;  %v1796_v50 = vsel %vm1095_vm0, %v1753_v47, 1065369472 }
  0x91   : > { %v1772_v49 = vsel %vm1095_vm0, %v1737_v48, 1065369472  ;;  %4064 = vmatprep.subr.bf16.mxu1 %v1796_v50  ;;  %v6891_v50 = vmov 2  }
  0x92   : > { %4065 = vmatpush3.bf16.msra.mxu1 %v1772_v49 }
  0x93   : > { %v1755_v51 = vpop.permute.xlu0 %1754 }
  0x94   : > { %v1739_v52 = vpop.permute.xlu1 %1738  ;;  %v1799_v53 = vsel %vm1095_vm0, %v1755_v51, 1065369472 }
  0x95   : > { %v1775_v54 = vsel %vm1095_vm0, %v1739_v52, 1065369472  ;;  %4066 = vmatprep.subr.bf16.mxu1 %v1799_v53 }
  0x96   : > { %4067 = vmatpush3.bf16.msra.mxu1 %v1775_v54 }
  0x97   : > { %v1757_v55 = vpop.permute.xlu0 %1756 }
  0x98   : > { %v1741_v56 = vpop.permute.xlu1 %1740  ;;  %v1802_v57 = vsel %vm1095_vm0, %v1757_v55, 1065369472 }
  0x99   : > { %v1778_v58 = vsel %vm1095_vm0, %v1741_v56, 1065369472  ;;  %4068 = vmatprep.subr.bf16.mxu1 %v1802_v57 }
  0x9a   : > { %4069 = vmatpush3.bf16.msra.mxu1 %v1778_v58 }
  0x9b   : > { %v1759_v59 = vpop.permute.xlu0 %1758 }
  0x9c   : > { %v1743_v60 = vpop.permute.xlu1 %1742  ;;  %v1805_v61 = vsel %vm1095_vm0, %v1759_v59, 1065369472 }
  0x9d   : > { %v1781_v62 = vsel %vm1095_vm0, %v1743_v60, 1065369472  ;;  %4070 = vmatprep.subr.bf16.mxu1 %v1805_v61  ;;  %v1452_v60 = vsub.s32 1, %v5151_v39 }
  0x9e   : > { %4071 = vmatpush3.bf16.msra.mxu1 %v1781_v62  ;;  %v690_v62 = vld [vmem:[%s5246_s22 + $0x18] sm:$0xff] }
  0x9f   : > { %v1761_v63 = vpop.permute.xlu0 %1760  ;;  %v5254_v38 = vunpack.c.h.bf16 %v690_v62 }
  0xa0   : > { %v1745_v0 = vpop.permute.xlu1 %1744  ;;  %v1808_v2 = vsel %vm1095_vm0, %v1761_v63, 1065369472 }
  0xa1   : > { %v1784_v1 = vsel %vm1095_vm0, %v1745_v0, 1065369472  ;;  %4072 = vmatprep.subr.bf16.mxu1 %v1808_v2  ;;  %7111 = vst [vmem:[#allocation25_spill] sm:$0xff] %v5254_v38 }
  0xa2   : > { %4073 = vmatpush3.bf16.msra.mxu1 %v1784_v1 }
 0x101   : > { %v5090_v5 = vpop.f32.mrb[0].mxu0 }
 0x102   : > { %7088 = vst [vmem:[#allocation2_spill] sm:$0xff] %v5090_v5  ;;  %2725 = vperm.xlu0 %4330, %v5090_v5   ;;  %747 = vperm.xlu1 %4328, %v5090_v5   ;;  %v5094_v6 = vpop.f32.mrb[1].mxu0 }
 0x103   : > { %7089 = vst [vmem:[#allocation3_spill] sm:$0xff] %v5094_v6  ;;  %v5096_v7 = vpop.f32.mrb[2].mxu0 }
 0x104   : > { %7090 = vst [vmem:[#allocation4_spill] sm:$0xff] %v5096_v7  ;;  %v5098_v10 = vpop.f32.mrb[3].mxu0 }
 0x105   : > { %7091 = vst [vmem:[#allocation5_spill] sm:$0xff] %v5098_v10 }
 0x106   : > { %4331 = vset.pattern.permute.xlu0 %v4847_v4  ;;  %4329 = vset.pattern.permute.xlu1 %v4849_v12 }
 0x107   : > { %1395 = vperm.xlu1 %4329, %v5090_v5   ;;  %737 = vperm.xlu0 %4331, %v5094_v6  }
 0x109   : > { %v5104_v15 = vpop.f32.mrb[4].mxu0 }
 0x10a   : > { %7092 = vst [vmem:[#allocation6_spill] sm:$0xff] %v5104_v15  ;;  %v5106_v19 = vpop.f32.mrb[5].mxu0 }
 0x10b   : > { %7093 = vst [vmem:[#allocation7_spill] sm:$0xff] %v5106_v19  ;;  %4333 = vset.pattern.permute.xlu1 %v6890_v3  ;;  %4332 = vset.pattern.permute.xlu0 %v4849_v12  ;;  %v5110_v20 = vpop.f32.mrb[6].mxu0 }
 0x10c   : > { %7094 = vst [vmem:[#allocation8_spill] sm:$0xff] %v5110_v20  ;;  %2717 = vperm.xlu1 %4333, %v5094_v6   ;;  %1387 = vperm.xlu0 %4332, %v5094_v6   ;;  %v5114_v21 = vpop.f32.mrb[7].mxu0 }
 0x10d   : > { %7095 = vst [vmem:[#allocation9_spill] sm:$0xff] %v5114_v21 }
 0x110   : > { %4334 = vset.pattern.permute.xlu1 %v4847_v4  ;;  %1399 = vperm.xlu0 %4332, %v5096_v7  }
 0x111   : > { %752 = vperm.xlu1 %4334, %v5096_v7   ;;  %v5119_v25 = vpop.f32.mrb[8].mxu0 }
 0x112   : > { %7096 = vst [vmem:[#allocation10_spill] sm:$0xff] %v5119_v25  ;;  %v5121_v27 = vpop.f32.mrb[9].mxu0 }
 0x113   : > { %7097 = vst [vmem:[#allocation11_spill] sm:$0xff] %v5121_v27  ;;  %v5123_v31 = vpop.f32.mrb[10].mxu0 }
 0x114   : > { %7098 = vst [vmem:[#allocation12_spill] sm:$0xff] %v5123_v31  ;;  %4336 = vset.pattern.permute.xlu0 %v4847_v4  ;;  %v5126_v33 = vpop.f32.mrb[11].mxu0 }
 0x115   : > { %7099 = vst [vmem:[#allocation13_spill] sm:$0xff] %v5126_v33  ;;  %4335 = vset.pattern.permute.xlu1 %v6890_v3  ;;  %742 = vperm.xlu0 %4336, %v5098_v10  }
 0x116   : > { %2729 = vperm.xlu1 %4335, %v5096_v7  }
 0x119   : > { %767 = vperm.xlu0 %4336, %v5104_v15   ;;  %v5132_v34 = vpop.f32.mrb[12].mxu0 }
 0x11a   : > { %7100 = vst [vmem:[#allocation14_spill] sm:$0xff] %v5132_v34  ;;  %4337 = vset.pattern.permute.xlu1 %v4849_v12  ;;  %v5135_v35 = vpop.f32.mrb[13].mxu0 }
 0x11b   : > { %7101 = vst [vmem:[#allocation15_spill] sm:$0xff] %v5135_v35  ;;  %1391 = vperm.xlu1 %4337, %v5098_v10   ;;  %v5138_v36 = vpop.f32.mrb[14].mxu0 }
 0x11c   : > { %7102 = vst [vmem:[#allocation16_spill] sm:$0xff] %v5138_v36  ;;  %v5140_v37 = vpop.f32.mrb[15].mxu0 }
 0x11d   : > { %7103 = vst [vmem:[#allocation17_spill] sm:$0xff] %v5140_v37  ;;  %4339 = vset.pattern.permute.xlu0 %v4849_v12 }
 0x11e   : > { %1411 = vperm.xlu0 %4339, %v5104_v15  }
 0x11f   : > { %4338 = vset.pattern.permute.xlu1 %v6890_v3 }
 0x120   : > { %2721 = vperm.xlu1 %4338, %v5098_v10  }
 0x122   : > { %4340 = vset.pattern.permute.xlu0 %v6890_v3 }
 0x123   : > { %2741 = vperm.xlu0 %4340, %v5104_v15   ;;  %v5161_v42 = vpop.f32.mrb[0].mxu1 }
 0x124   : > { %4341 = vset.pattern.permute.xlu1 %v4847_v4  ;;  %v5165_v43 = vrot.slane %v5161_v42, %v2117_v40  ;;  %v5168_v44 = vrot.slane %v5161_v42, %v2782_v41  ;;  %v5170_v45 = vpop.f32.mrb[1].mxu1 }
 0x125   : > { %757 = vperm.xlu1 %4341, %v5106_v19   ;;  %v5173_v46 = vrot.slane %v5170_v45, %v2117_v40  ;;  %v5176_v47 = vrot.slane %v5170_v45, %v2782_v41  ;;  %v684_v48 = vpop.f32.mrb[2].mxu1  ;;  %v5257_v40 = vrot.slane %v5161_v42, %v1452_v60  ;;  %v5260_v41 = vrot.slane %v5170_v45, %v1452_v60 }
 0x126   : > { %7104 = vst [vmem:[#allocation18_spill] sm:$0xff] %v5165_v43  ;;  %7105 = vst [vmem:[#allocation19_spill] sm:$0xff] %v5168_v44  ;;  %v685_v49 = vpop.f32.mrb[3].mxu1 }
 0x127   : > { %2733 = vperm.xlu0 %4340, %v5106_v19   ;;  %7106 = vst [vmem:[#allocation20_spill] sm:$0xff] %v5173_v46  ;;  %7107 = vst [vmem:[#allocation21_spill] sm:$0xff] %v5176_v47 }
 0x129   : > { %4342 = vset.pattern.permute.xlu1 %v4849_v12 }
 0x12a   : > { %1403 = vperm.xlu1 %4342, %v5106_v19  }
 0x12b   : > { %4346 = vset.pattern.permute.xlu0 %v4847_v4 }
 0x12c   : > { %762 = vperm.xlu0 %4346, %v5114_v21  }
 0x12e   : > { %4343 = vset.pattern.permute.xlu1 %v4847_v4 }
 0x12f   : > { %772 = vperm.xlu1 %4343, %v5110_v20  }
 0x130   : > { %787 = vperm.xlu0 %4346, %v5119_v25  }
 0x133   : > { %4344 = vset.pattern.permute.xlu1 %v4849_v12 }
 0x134   : > { %1415 = vperm.xlu1 %4344, %v5110_v20   ;;  %4349 = vset.pattern.permute.xlu0 %v4849_v12 }
 0x135   : > { %1427 = vperm.xlu0 %4349, %v5119_v25  }
 0x138   : > { %4345 = vset.pattern.permute.xlu1 %v6890_v3 }
 0x139   : > { %2745 = vperm.xlu1 %4345, %v5110_v20   ;;  %4350 = vset.pattern.permute.xlu0 %v6890_v3 }
 0x13a   : > { %2757 = vperm.xlu0 %4350, %v5119_v25  }
 0x13d   : > { %4347 = vset.pattern.permute.xlu1 %v4849_v12 }
 0x13e   : > { %1407 = vperm.xlu1 %4347, %v5114_v21   ;;  %2749 = vperm.xlu0 %4350, %v5121_v27  }
 0x142   : > { %4348 = vset.pattern.permute.xlu1 %v6890_v3  ;;  %4356 = vset.pattern.permute.xlu0 %v4847_v4 }
 0x143   : > { %2737 = vperm.xlu1 %4348, %v5114_v21   ;;  %782 = vperm.xlu0 %4356, %v5126_v33  }
 0x147   : > { %4351 = vset.pattern.permute.xlu1 %v4847_v4  ;;  %807 = vperm.xlu0 %4356, %v5132_v34  }
 0x148   : > { %777 = vperm.xlu1 %4351, %v5121_v27  }
 0x14b   : > { %4359 = vset.pattern.permute.xlu0 %v4849_v12 }
 0x14c   : > { %4352 = vset.pattern.permute.xlu1 %v4849_v12  ;;  %1443 = vperm.xlu0 %4359, %v5132_v34  }
 0x14d   : > { %1419 = vperm.xlu1 %4352, %v5121_v27  }
 0x150   : > { %4365 = vset.pattern.permute.xlu0 %v4847_v4 }
 0x151   : > { %4353 = vset.pattern.permute.xlu1 %v4847_v4  ;;  %802 = vperm.xlu0 %4365, %v5140_v37  }
 0x152   : > { %792 = vperm.xlu1 %4353, %v5123_v31  }
 0x155   : > { %4367 = vset.pattern.permute.xlu0 %v6891_v50 }
 0x156   : > { %4354 = vset.pattern.permute.xlu1 %v4849_v12 }
 0x157   : > { %1431 = vperm.xlu1 %4354, %v5123_v31  }
 0x15b   : > { %4355 = vset.pattern.permute.xlu1 %v6890_v3 }
 0x15c   : > { %2761 = vperm.xlu1 %4355, %v5123_v31  }
 0x160   : > { %4357 = vset.pattern.permute.xlu1 %v4849_v12 }
 0x161   : > { %1423 = vperm.xlu1 %4357, %v5126_v33  }
 0x165   : > { %4358 = vset.pattern.permute.xlu1 %v6890_v3 }
 0x166   : > { %2753 = vperm.xlu1 %4358, %v5126_v33  }
 0x16a   : > { %4360 = vset.pattern.permute.xlu1 %v4847_v4 }
 0x16b   : > { %797 = vperm.xlu1 %4360, %v5135_v35  }
 0x16f   : > { %4361 = vset.pattern.permute.xlu1 %v4849_v12 }
 0x170   : > { %1435 = vperm.xlu1 %4361, %v5135_v35  }
 0x174   : > { %4362 = vset.pattern.permute.xlu1 %v6890_v3 }
 0x175   : > { %2765 = vperm.xlu1 %4362, %v5135_v35  }
 0x179   : > { %4363 = vset.pattern.permute.xlu1 %v4847_v4  ;;  %v817_v4 = vsub.s32 0, %v5151_v39 }
 0x17a   : > { %812 = vperm.xlu1 %4363, %v5138_v36  }
 0x17b   : > { %v5236_v57 = vrot.slane %v5161_v42, %v817_v4  ;;  %v5239_v58 = vrot.slane %v5170_v45, %v817_v4 }
 0x17e   : > { %4364 = vset.pattern.permute.xlu1 %v4849_v12  ;;  %v5252_v12 = vunpack.c.l.bf16 %v690_v62 }
 0x17f   : > { %1447 = vperm.xlu1 %4364, %v5138_v36  }
 0x180   : > { %7110 = vst [vmem:[#allocation24_spill] sm:$0xff] %v5252_v12 }
 0x181   : > { %v5223_v51 = vpop.permute.xlu0 %2725  ;;  %v748_v52 = vpop.permute.xlu1 %747 }
 0x182   : > { %7108 = vst [vmem:[#allocation22_spill] sm:$0xff] %v5223_v51  ;;  %v827_v39 = vadd.f32 %v5236_v57, %v748_v52  ;;  %v828_v48 = vadd.f32 %v5239_v58, %v748_v52  ;;  %v688_v51 = vld [vmem:[%s5246_s22 + $0x8] sm:$0xff] }
 0x183   : > { %1439 = vperm.xlu1 %4364, %v5140_v37   ;;  %v5277_v44 = vunpack.c.l.bf16 %v688_v51 }
 0x184   : > { %v859_v52 = vmul.f32 0.2, %v827_v39  ;;  %v860_v43 = vmul.f32 0.2, %v828_v48 }
 0x185   : > { %7115 = vst [vmem:[#allocation29_spill] sm:$0xff] %v5277_v44 }
 0x186   : > { %v1396_v53 = vpop.permute.xlu1 %1395  ;;  %v738_v54 = vpop.permute.xlu0 %737 }
 0x187   : > { %4366 = vset.pattern.permute.xlu1 %v6890_v3  ;;  %v824_v34 = vadd.f32 %v5239_v58, %v738_v54 }
 0x189   : > { %v856_v21 = vmul.f32 0.2, %v824_v34 }
 0x18b   : > { %v5232_v55 = vpop.permute.xlu1 %2717  ;;  %v1388_v56 = vpop.permute.xlu0 %1387 }
 0x18c   : > { %7109 = vst [vmem:[#allocation23_spill] sm:$0xff] %v5232_v55  ;;  %v823_v55 = vadd.f32 %v5236_v57, %v738_v54  ;;  %v1459_v7 = vadd.f32 %v5260_v41, %v1388_v56 }
 0x18f   : > { %v5241_v59 = vpop.permute.xlu0 %1399 }
 0x190   : > { %v753_v61 = vpop.permute.xlu1 %752 }
 0x191   : > { %v829_v63 = vadd.f32 %v5236_v57, %v753_v61  ;;  %v830_v0 = vadd.f32 %v5239_v58, %v753_v61 }
 0x193   : > { %v861_v1 = vmul.f32 0.2, %v829_v63  ;;  %v862_v2 = vmul.f32 0.2, %v830_v0 }
 0x194   : > { %v743_v49 = vpop.permute.xlu0 %742 }
 0x195   : > { %v825_v4 = vadd.f32 %v5236_v57, %v743_v49  ;;  %v826_v61 = vadd.f32 %v5239_v58, %v743_v49  ;;  %v5266_v3 = vpop.permute.xlu1 %2729  ;;  %v893_v50 = vmax.f32 %v829_v63, %v861_v1  ;;  %v894_v62 = vmax.f32 %v830_v0, %v862_v2  ;;  %v689_v2 = vld [vmem:[%s5246_s22 + $0x10] sm:$0xff] }
 0x196   : > { %7112 = vst [vmem:[#allocation26_spill] sm:$0xff] %v5266_v3  ;;  %v5279_v49 = vunpack.c.h.bf16 %v688_v51  ;;  %v1462_v63 = vadd.f32 %v5257_v40, %v1396_v53  ;;  %v1463_v0 = vadd.f32 %v5260_v41, %v1396_v53  ;;  %v5294_v53 = vunpack.c.l.bf16 %v689_v2 }
 0x197   : > { %v857_v42 = vmul.f32 0.2, %v825_v4  ;;  %v858_v46 = vmul.f32 0.2, %v826_v61  ;;  %v5270_v45 = vadd.f32 %v893_v50, %v5252_v12  ;;  %v5273_v60 = vadd.f32 %v894_v62, %v5254_v38 }
 0x198   : > { %v5275_v47 = vpop.permute.xlu0 %767  ;;  %7116 = vst [vmem:[#allocation30_spill] sm:$0xff] %v5279_v49  ;;  %7119 = vst [vmem:[#allocation33_spill] sm:$0xff] %v5294_v53  ;;  %v5296_v33 = vunpack.c.h.bf16 %v689_v2 }
 0x199   : > { %7113 = vst [vmem:[#allocation27_spill] sm:$0xff] %v5270_v45  ;;  %7114 = vst [vmem:[#allocation28_spill] sm:$0xff] %v5273_v60  ;;  %v960_v1 = vmax.f32 %v5270_v45, %v5273_v60  ;;  %v889_v50 = vmax.f32 %v825_v4, %v857_v42  ;;  %v890_v62 = vmax.f32 %v826_v61, %v858_v46  ;;  %v1494_v4 = vmul.f32 0.2, %v1462_v63 }
 0x19a   : > { %v1392_v3 = vpop.permute.xlu1 %1391  ;;  %7120 = vst [vmem:[#allocation34_spill] sm:$0xff] %v5296_v33  ;;  %v1495_v42 = vmul.f32 0.2, %v1463_v0  ;;  %v891_v46 = vmax.f32 %v827_v39, %v859_v52  ;;  %v892_v61 = vmax.f32 %v828_v48, %v860_v43 }
 0x19b   : > { %961 = vmax.xlane.f32.xlu0 %v960_v1  ;;  %v5289_v51 = vadd.f32 %v889_v50, %v5277_v44  ;;  %v5292_v31 = vadd.f32 %v890_v62, %v5279_v49  ;;  %v855_v1 = vmul.f32 0.2, %v823_v55  ;;  %v1458_v50 = vadd.f32 %v5257_v40, %v1388_v56  ;;  %v687_v62 = vld [vmem:[%s5246_s22] sm:$0xff] }
 0x19c   : > { %v5308_v2 = vadd.f32 %v891_v46, %v5294_v53  ;;  %v5311_v60 = vadd.f32 %v892_v61, %v5296_v33  ;;  %v1526_v43 = vmax.f32 %v1462_v63, %v1494_v4  ;;  %v1527_v39 = vmax.f32 %v1463_v0, %v1495_v42 }
 0x19d   : > { %7117 = vst [vmem:[#allocation31_spill] sm:$0xff] %v5289_v51  ;;  %7118 = vst [vmem:[#allocation32_spill] sm:$0xff] %v5292_v31  ;;  %v5298_v20 = vpop.permute.xlu0 %1411  ;;  %v954_v54 = vmax.f32 %v5289_v51, %v5292_v31  ;;  %v5315_v52 = vunpack.c.l.bf16 %v687_v62  ;;  %v1490_v6 = vmul.f32 0.2, %v1458_v50  ;;  %v5317_v31 = vunpack.c.h.bf16 %v687_v62  ;;  %v693_v62 = vld [vmem:[%s5246_s22 + $0x30] sm:$0xff] }
 0x19e   : > { %7122 = vst [vmem:[#allocation36_spill] sm:$0xff] %v5308_v2  ;;  %7123 = vst [vmem:[#allocation37_spill] sm:$0xff] %v5311_v60  ;;  %v888_v56 = vmax.f32 %v824_v34, %v856_v21  ;;  %v1464_v46 = vadd.f32 %v5257_v40, %v5241_v59  ;;  %v1465_v61 = vadd.f32 %v5260_v41, %v5241_v59 }
 0x19f   : > { %v5303_v45 = vpop.permute.xlu1 %2721  ;;  %955 = vmax.xlane.f32.xlu0 %v954_v54  ;;  %7125 = vst [vmem:[#allocation39_spill] sm:$0xff] %v5315_v52  ;;  %7126 = vst [vmem:[#allocation40_spill] sm:$0xff] %v5317_v31  ;;  %v1491_v54 = vmul.f32 0.2, %v1459_v7  ;;  %v957_v0 = vmax.f32 %v5308_v2, %v5311_v60  ;;  %v5328_v4 = vadd.f32 %v1526_v43, %v5294_v53  ;;  %v694_v60 = vld [vmem:[%s5246_s22 + $0x38] sm:$0xff] }
 0x1a0   : > { %7121 = vst [vmem:[#allocation35_spill] sm:$0xff] %v5303_v45  ;;  %v887_v45 = vmax.f32 %v823_v55, %v855_v1  ;;  %v5331_v42 = vadd.f32 %v1527_v39, %v5296_v33  ;;  %v5339_v55 = vadd.f32 %v888_v56, %v5317_v31  ;;  %v1522_v59 = vmax.f32 %v1458_v50, %v1490_v6  ;;  %v692_v1 = vld [vmem:[%s5246_s22 + $0x28] sm:$0xff] }
 0x1a1   : > { %7127 = vst [vmem:[#allocation41_spill] sm:$0xff] %v5328_v4  ;;  %v1497_v2 = vmul.f32 0.2, %v1465_v61  ;;  %v1460_v43 = vadd.f32 %v5257_v40, %v1392_v3  ;;  %v1523_v53 = vmax.f32 %v1459_v7, %v1491_v54  ;;  %v1461_v39 = vadd.f32 %v5260_v41, %v1392_v3 }
 0x1a2   : > { %v5313_v48 = vpop.permute.xlu0 %2741  ;;  %7128 = vst [vmem:[#allocation42_spill] sm:$0xff] %v5331_v42  ;;  %v5336_v34 = vadd.f32 %v887_v45, %v5315_v52  ;;  %7131 = vst [vmem:[#allocation45_spill] sm:$0xff] %v5339_v55  ;;  %v1592_v45 = vmax.f32 %v5328_v4, %v5331_v42  ;;  %v836_v6 = vadd.f32 %v5239_v58, %v5275_v47  ;;  %v5354_v50 = vunpack.c.l.bf16 %v692_v1 }
 0x1a3   : > { %7124 = vst [vmem:[#allocation38_spill] sm:$0xff] %v5313_v48  ;;  %v1496_v48 = vmul.f32 0.2, %v1464_v46  ;;  %v5356_v56 = vunpack.c.l.bf16 %v693_v62  ;;  %v5358_v33 = vunpack.c.h.bf16 %v693_v62  ;;  %v5363_v54 = vadd.f32 %v1522_v59, %v5315_v52 }
 0x1a4   : > { %v5323_v63 = vpop.permute.xlu1 %757  ;;  %7130 = vst [vmem:[#allocation44_spill] sm:$0xff] %v5336_v34  ;;  %7132 = vst [vmem:[#allocation46_spill] sm:$0xff] %v5354_v50  ;;  %v951_v3 = vmax.f32 %v5336_v34, %v5339_v55  ;;  %v5365_v51 = vunpack.c.l.bf16 %v694_v60  ;;  %v5367_v4 = vunpack.c.h.bf16 %v692_v1  ;;  %v1492_v42 = vmul.f32 0.2, %v1460_v43 }
 0x1a5   : > { %7133 = vst [vmem:[#allocation47_spill] sm:$0xff] %v5356_v56  ;;  %7134 = vst [vmem:[#allocation48_spill] sm:$0xff] %v5358_v33  ;;  %v1528_v36 = vmax.f32 %v1464_v46, %v1496_v48  ;;  %v1529_v35 = vmax.f32 %v1465_v61, %v1497_v2  ;;  %v1493_v62 = vmul.f32 0.2, %v1461_v39  ;;  %v868_v55 = vmul.f32 0.2, %v836_v6 }
 0x1a6   : > { %v5333_v21 = vpop.permute.xlu0 %2733  ;;  %7135 = vst [vmem:[#allocation49_spill] sm:$0xff] %v5363_v54  ;;  %7136 = vst [vmem:[#allocation50_spill] sm:$0xff] %v5365_v51  ;;  %v5376_v59 = vadd.f32 %v5257_v40, %v5298_v20  ;;  %v5380_v1 = vadd.f32 %v5260_v41, %v5298_v20 }
 0x1a7   : > { %7129 = vst [vmem:[#allocation43_spill] sm:$0xff] %v5333_v21  ;;  %958 = vmax.xlane.f32.xlu1 %v957_v0  ;;  %v835_v0 = vadd.f32 %v5236_v57, %v5275_v47  ;;  %7137 = vst [vmem:[#allocation51_spill] sm:$0xff] %v5367_v4  ;;  %v5370_v47 = vadd.f32 %v1523_v53, %v5317_v31  ;;  %v5382_v53 = vunpack.c.h.bf16 %v694_v60 }
 0x1a8   : > { %v5391_v34 = vadd.f32 %v1528_v36, %v5252_v12  ;;  %v5394_v20 = vadd.f32 %v1529_v35, %v5254_v38  ;;  %v1524_v60 = vmax.f32 %v1460_v43, %v1492_v42  ;;  %v1525_v37 = vmax.f32 %v1461_v39, %v1493_v62 }
 0x1a9   : > { %v5348_v21 = vpop.permute.xlu1 %1403  ;;  %7138 = vst [vmem:[#allocation52_spill] sm:$0xff] %v5370_v47  ;;  %v867_v25 = vmul.f32 0.2, %v835_v0  ;;  %7139 = vst [vmem:[#allocation53_spill] sm:$0xff] %v5382_v53  ;;  %v1502_v10 = vmul.f32 0.2, %v5376_v59  ;;  %v831_v42 = vadd.f32 %v5236_v57, %v5323_v63 }
 0x1ab   : > { %v763_v7 = vpop.permute.xlu0 %762  ;;  %1593 = vmax.xlane.f32.xlu1 %v1592_v45  ;;  %v899_v5 = vmax.f32 %v835_v0, %v867_v25  ;;  %v1595_v25 = vmax.f32 %v5391_v34, %v5394_v20 }
 0x1ac   : > { %v833_v45 = vadd.f32 %v5236_v57, %v763_v7  ;;  %v834_v27 = vadd.f32 %v5239_v58, %v763_v7  ;;  %v1586_v7 = vmax.f32 %v5363_v54, %v5370_v47 }
 0x1ad   : > { %v5421_v39 = vadd.f32 %v899_v5, %v5356_v56  ;;  %v863_v5 = vmul.f32 0.2, %v831_v42 }
 0x1ae   : > { %v773_v52 = vpop.permute.xlu1 %772  ;;  %v865_v48 = vmul.f32 0.2, %v833_v45  ;;  %v866_v2 = vmul.f32 0.2, %v834_v27 }
 0x1af   : > { %v837_v46 = vadd.f32 %v5236_v57, %v773_v52  ;;  %v838_v61 = vadd.f32 %v5239_v58, %v773_v52  ;;  %v5386_v31 = vpop.permute.xlu0 %787  ;;  %952 = vmax.xlane.f32.xlu1 %v951_v3  ;;  %v1503_v52 = vmul.f32 0.2, %v5380_v1  ;;  %v1122_v3 = vsel %vm1095_vm0, %v4930_v8, 1065369472 }
 0x1b0   : > { %7140 = vst [vmem:[#allocation54_spill] sm:$0xff] %v5386_v31  ;;  %v900_v31 = vmax.f32 %v836_v6, %v868_v55  ;;  %v897_v54 = vmax.f32 %v833_v45, %v865_v48  ;;  %v898_v35 = vmax.f32 %v834_v27, %v866_v2  ;;  %v5407_v55 = vadd.f32 %v1524_v60, %v5277_v44  ;;  %v691_v45 = vld [vmem:[%s5246_s22 + $0x20] sm:$0xff] }
 0x1b1   : > { %v869_v15 = vmul.f32 0.2, %v837_v46  ;;  %v870_v19 = vmul.f32 0.2, %v838_v61  ;;  %3994 = vmatprep.subr.bf16.mxu0 %v1122_v3  ;;  %v832_v8 = vadd.f32 %v5239_v58, %v5323_v63  ;;  %v5418_v27 = vadd.f32 %v1525_v37, %v5279_v49 }
 0x1b2   : > { %v5424_v0 = vadd.f32 %v900_v31, %v5358_v33  ;;  %v1534_v6 = vmax.f32 %v5376_v59, %v1502_v10  ;;  %v5430_v62 = vadd.f32 %v897_v54, %v5354_v50  ;;  %v1535_v37 = vmax.f32 %v5380_v1, %v1503_v52 }
 0x1b3   : > { %v1416_v47 = vpop.permute.xlu1 %1415  ;;  %1587 = vmax.xlane.f32.xlu1 %v1586_v7  ;;  %v901_v36 = vmax.f32 %v837_v46, %v869_v15  ;;  %v902_v12 = vmax.f32 %v838_v61, %v870_v19  ;;  %v1466_v31 = vadd.f32 %v5257_v40, %v5348_v21  ;;  %v1098_v10 = vsel %vm1095_vm0, %v4935_v9, 1065369472 }
 0x1b4   : > { %v5402_v43 = vpop.permute.xlu0 %1427  ;;  %v1125_v59 = vsel %vm1095_vm0, %v4947_v11, 1065369472  ;;  %v864_v54 = vmul.f32 0.2, %v832_v8  ;;  %v1467_v2 = vadd.f32 %v5260_v41, %v5348_v21  ;;  %v1589_v1 = vmax.f32 %v5407_v55, %v5418_v27  ;;  %3995 = vmatpush3.bf16.msra.mxu0 %v1098_v10 }
 0x1b5   : > { %v5412_v15 = vadd.f32 %v901_v36, %v5365_v51  ;;  %v5415_v19 = vadd.f32 %v902_v12, %v5382_v53  ;;  %v5433_v12 = vadd.f32 %v898_v35, %v5367_v4  ;;  %v1472_v61 = vadd.f32 %v5257_v40, %v1416_v47  ;;  %3996 = vmatprep.subr.bf16.mxu0 %v1125_v59 }
 0x1b6   : > { %v1473_v7 = vadd.f32 %v5260_v41, %v1416_v47  ;;  %v969_v11 = vmax.f32 %v5421_v39, %v5424_v0  ;;  %v5457_v60 = vunpack.c.l.bf16 %v691_v45  ;;  %v5459_v21 = vunpack.c.h.bf16 %v691_v45 }
 0x1b7   : > { %1596 = vmax.xlane.f32.xlu1 %v1595_v25  ;;  %v972_v63 = vmax.f32 %v5412_v15, %v5415_v19  ;;  %v966_v9 = vmax.f32 %v5430_v62, %v5433_v12  ;;  %v1498_v52 = vmul.f32 0.2, %v1466_v31  ;;  %v5462_v3 = vadd.f32 %v1534_v6, %v5356_v56 }
 0x1b8   : > { %v5439_v48 = vpop.permute.xlu1 %2745  ;;  %7143 = vst [vmem:[#allocation57_spill] sm:$0xff] %v5457_v60  ;;  %7144 = vst [vmem:[#allocation58_spill] sm:$0xff] %v5459_v21  ;;  %v5465_v36 = vadd.f32 %v1535_v37, %v5358_v33  ;;  %v895_v47 = vmax.f32 %v831_v42, %v863_v5  ;;  %v1499_v35 = vmul.f32 0.2, %v1467_v2  ;;  %v1101_v10 = vsel %vm1095_vm0, %v4958_v13, 1065369472 }
 0x1b9   : > { %7141 = vst [vmem:[#allocation55_spill] sm:$0xff] %v5439_v48  ;;  %v5447_v46 = vpop.permute.xlu0 %2757  ;;  %973 = vmax.xlane.f32.xlu0 %v972_v63  ;;  %v896_v63 = vmax.f32 %v832_v8, %v864_v54  ;;  %v1128_v45 = vsel %vm1095_vm0, %v4965_v14, 1065369472  ;;  %v1505_v59 = vmul.f32 0.2, %v1473_v7  ;;  %3997 = vmatpush3.bf16.msra.mxu0 %v1101_v10  ;;  %v1530_v5 = vmax.f32 %v1466_v31, %v1498_v52 }
 0x1ba   : > { %7142 = vst [vmem:[#allocation56_spill] sm:$0xff] %v5447_v46  ;;  %3998 = vmatprep.subr.bf16.mxu0 %v1128_v45  ;;  %v1104_v42 = vsel %vm1095_vm0, %v4975_v16, 1065369472  ;;  %v1604_v13 = vmax.f32 %v5462_v3, %v5465_v36  ;;  %v5480_v8 = vadd.f32 %v895_v47, %v5457_v60  ;;  %v1531_v54 = vmax.f32 %v1467_v2, %v1499_v35 }
 0x1bb   : > { %1590 = vmax.xlane.f32.xlu1 %v1589_v1  ;;  %v1504_v1 = vmul.f32 0.2, %v1472_v61  ;;  %v5483_v14 = vadd.f32 %v896_v63, %v5459_v21  ;;  %v1537_v10 = vmax.f32 %v1473_v7, %v1505_v59  ;;  %v1107_v47 = vsel %vm1095_vm0, %v4991_v18, 1065369472 }
 0x1bc   : > { %v5494_v2 = vadd.f32 %v1530_v5, %v5457_v60  ;;  %v1110_v59 = vsel %vm1095_vm0, %v5012_v23, 1065369472  ;;  %v1137_v5 = vsel %vm1095_vm0, %v5021_v24, 1065369472 }
 0x1bd   : > { %v1408_v25 = vpop.permute.xlu1 %1407  ;;  %967 = vmax.xlane.f32.xlu0 %v966_v9  ;;  %v5471_v48 = vpop.permute.xlu0 %2749  ;;  %v1131_v9 = vsel %vm1095_vm0, %v4986_v17, 1065369472  ;;  %3999 = vmatpush3.bf16.msra.mxu0 %v1104_v42  ;;  %v963_v31 = vmax.f32 %v5480_v8, %v5483_v14  ;;  %v5497_v17 = vadd.f32 %v1531_v54, %v5459_v21  ;;  %v5505_v52 = vadd.f32 %v1537_v10, %v5382_v53 }
 0x1be   : > { %7145 = vst [vmem:[#allocation59_spill] sm:$0xff] %v5471_v48  ;;  %v1468_v6 = vadd.f32 %v5257_v40, %v1408_v25  ;;  %v1469_v37 = vadd.f32 %v5260_v41, %v1408_v25  ;;  %4000 = vmatprep.subr.bf16.mxu0 %v1131_v9  ;;  %v1113_v10 = vsel %vm1095_vm0, %v5027_v26, 1065369472 }
 0x1bf   : > { %970 = vmax.xlane.f32.xlu1 %v969_v11  ;;  %v1536_v11 = vmax.f32 %v1472_v61, %v1504_v1  ;;  %v1134_v61 = vsel %vm1095_vm0, %v5006_v22, 1065369472  ;;  %v1598_v54 = vmax.f32 %v5494_v2, %v5497_v17 }
 0x1c0   : > { %v1500_v16 = vmul.f32 0.2, %v1468_v6  ;;  %v1501_v45 = vmul.f32 0.2, %v1469_v37 }
 0x1c1   : > { %v5502_v7 = vadd.f32 %v1536_v11, %v5365_v51  ;;  %4001 = vmatpush3.bf16.msra.mxu0 %v1107_v47  ;;  %v696_v11 = vld [vmem:[%s5246_s22 + $0x48] sm:$0xff] }
 0x1c2   : > { %v5487_v25 = vpop.permute.xlu1 %2737  ;;  %v783_v46 = vpop.permute.xlu0 %782  ;;  %v1532_v63 = vmax.f32 %v1468_v6, %v1500_v16  ;;  %v1533_v1 = vmax.f32 %v1469_v37, %v1501_v45  ;;  %4002 = vmatprep.subr.bf16.mxu0 %v1134_v61  ;;  %v695_v37 = vld [vmem:[%s5246_s22 + $0x40] sm:$0xff]  ;;  %v5540_v26 = vunpack.c.l.bf16 %v696_v11  ;;  %v5542_v51 = vunpack.c.h.bf16 %v696_v11 }
 0x1c3   : > { %7146 = vst [vmem:[#allocation60_spill] sm:$0xff] %v5487_v25  ;;  %1605 = vmax.xlane.f32.xlu1 %v1604_v13  ;;  %v5508_v18 = vadd.f32 %v5236_v57, %v783_v46  ;;  %v842_v22 = vadd.f32 %v5239_v58, %v783_v46  ;;  %v1607_v23 = vmax.f32 %v5502_v7, %v5505_v52 }
 0x1c4   : > { %v5522_v46 = vadd.f32 %v1532_v63, %v5354_v50  ;;  %v5530_v47 = vadd.f32 %v1533_v1, %v5367_v4  ;;  %7149 = vst [vmem:[#allocation63_spill] sm:$0xff] %v5540_v26  ;;  %7150 = vst [vmem:[#allocation64_spill] sm:$0xff] %v5542_v51 }
 0x1c5   : > { %4003 = vmatpush3.bf16.msra.mxu0 %v1110_v59  ;;  %v873_v24 = vmul.f32 0.2, %v5508_v18  ;;  %v874_v16 = vmul.f32 0.2, %v842_v22 }
 0x1c6   : > { %4004 = vmatprep.subr.bf16.mxu0 %v1137_v5  ;;  %v5536_v5 = vunpack.c.l.bf16 %v695_v37 }
 0x1c7   : > { %v778_v35 = vpop.permute.xlu1 %777  ;;  %964 = vmax.xlane.f32.xlu1 %v963_v31  ;;  %v1140_v31 = vsel %vm1095_vm0, %v5038_v28, 1065369472  ;;  %v1116_v28 = vsel %vm1095_vm0, %v5044_v29, 1065369472 }
 0x1c8   : > { %v839_v42 = vadd.f32 %v5236_v57, %v778_v35  ;;  %v840_v13 = vadd.f32 %v5239_v58, %v778_v35  ;;  %7147 = vst [vmem:[#allocation61_spill] sm:$0xff] %v5536_v5 }
 0x1c9   : > { %4005 = vmatpush3.bf16.msra.mxu0 %v1113_v10 }
 0x1ca   : > { %v871_v9 = vmul.f32 0.2, %v839_v42  ;;  %v872_v6 = vmul.f32 0.2, %v840_v13  ;;  %4006 = vmatprep.subr.bf16.mxu0 %v1140_v31  ;;  %v698_v31 = vld [vmem:[%s5246_s22 + $0x58] sm:$0xff] }
 0x1cb   : > { %1599 = vmax.xlane.f32.xlu1 %v1598_v54  ;;  %v5538_v54 = vunpack.c.h.bf16 %v695_v37 }
 0x1cc   : > { %v1420_v45 = vpop.permute.xlu1 %1419  ;;  %v903_v63 = vmax.f32 %v839_v42, %v871_v9  ;;  %v904_v59 = vmax.f32 %v840_v13, %v872_v6  ;;  %v1601_v42 = vmax.f32 %v5522_v46, %v5530_v47  ;;  %v905_v13 = vmax.f32 %v5508_v18, %v873_v24 }
 0x1cd   : > { %v1474_v61 = vadd.f32 %v5257_v40, %v1420_v45  ;;  %v1475_v35 = vadd.f32 %v5260_v41, %v1420_v45  ;;  %7148 = vst [vmem:[#allocation62_spill] sm:$0xff] %v5538_v54  ;;  %v906_v9 = vmax.f32 %v842_v22, %v874_v16  ;;  %v1143_v6 = vsel %vm1095_vm0, %v5053_v30, 1065369472  ;;  %4007 = vmatpush3.bf16.msra.mxu0 %v1116_v28 }
 0x1ce   : > { %v5555_v11 = vadd.f32 %v904_v59, %v5538_v54  ;;  %4008 = vmatprep.subr.bf16.mxu0 %v1143_v6  ;;  %v5568_v16 = vunpack.c.l.bf16 %v698_v31  ;;  %v5577_v59 = vadd.f32 %v905_v13, %v5540_v26 }
 0x1cf   : > { %v1506_v53 = vmul.f32 0.2, %v1474_v61  ;;  %v1507_v1 = vmul.f32 0.2, %v1475_v35  ;;  %1608 = vmax.xlane.f32.xlu1 %v1607_v23  ;;  %v5552_v23 = vadd.f32 %v903_v63, %v5536_v5 }
 0x1d0   : > { %7151 = vst [vmem:[#allocation65_spill] sm:$0xff] %v5568_v16 }
 0x1d1   : > { %v793_v37 = vpop.permute.xlu1 %792  ;;  %v1538_v10 = vmax.f32 %v1474_v61, %v1506_v53  ;;  %v1539_v45 = vmax.f32 %v1475_v35, %v1507_v1  ;;  %v1119_v53 = vsel %vm1095_vm0, %v5059_v32, 1065369472  ;;  %v5570_v61 = vunpack.c.h.bf16 %v698_v31 }
 0x1d2   : > { %v845_v29 = vadd.f32 %v5236_v57, %v793_v37  ;;  %v846_v48 = vadd.f32 %v5239_v58, %v793_v37  ;;  %v975_v63 = vmax.f32 %v5552_v23, %v5555_v11  ;;  %v5580_v1 = vadd.f32 %v906_v9, %v5542_v51  ;;  %4009 = vmatpush3.bf16.msra.mxu0 %v1119_v53 }
 0x1d3   : > { %1602 = vmax.xlane.f32.xlu1 %v1601_v42  ;;  %v5561_v18 = vadd.f32 %v1538_v10, %v5536_v5  ;;  %v5564_v30 = vadd.f32 %v1539_v45, %v5538_v54  ;;  %7152 = vst [vmem:[#allocation66_spill] sm:$0xff] %v5570_v61 }
 0x1d4   : > { %v877_v22 = vmul.f32 0.2, %v845_v29  ;;  %v878_v24 = vmul.f32 0.2, %v846_v48  ;;  %v978_v6 = vmax.f32 %v5577_v59, %v5580_v1 }
 0x1d5   : > { %v1610_v35 = vmax.f32 %v5561_v18, %v5564_v30 }
 0x1d6   : > { %v1432_v28 = vpop.permute.xlu1 %1431  ;;  %v909_v32 = vmax.f32 %v845_v29, %v877_v22  ;;  %v910_v42 = vmax.f32 %v846_v48, %v878_v24 }
 0x1d7   : > { %1611 = vmax.xlane.f32.xlu0 %v1610_v35  ;;  %976 = vmax.xlane.f32.xlu1 %v975_v63  ;;  %v1480_v50 = vadd.f32 %v5257_v40, %v1432_v28 }
 0x1d8   : > { %v5585_v37 = vadd.f32 %v909_v32, %v5568_v16  ;;  %v5588_v10 = vadd.f32 %v910_v42, %v5570_v61  ;;  %v7157_v42 = vld [vmem:[#allocation5_spill] sm:$0xff] }
 0x1d9   : > { %v1512_v60 = vmul.f32 0.2, %v1480_v50 }
 0x1da   : > { %7153 = vst [vmem:[#allocation67_spill] sm:$0xff] %v5585_v37  ;;  %7154 = vst [vmem:[#allocation68_spill] sm:$0xff] %v5588_v10  ;;  %v984_v9 = vmax.f32 %v5585_v37, %v5588_v10 }
 0x1db   : > { %v5590_v13 = vpop.permute.xlu1 %2761  ;;  %979 = vmax.xlane.f32.xlu0 %v978_v6  ;;  %v7158_v6 = vld [vmem:[#allocation2_spill] sm:$0xff] }
 0x1dc   : > { %7155 = vst [vmem:[#allocation69_spill] sm:$0xff] %v5590_v13 }
 0x1df   : > { %985 = vmax.xlane.f32.xlu0 %v984_v9  ;;  %v7159_v9 = vld [vmem:[#allocation17_spill] sm:$0xff] }
 0x1e0   : > { %v1424_v48 = vpop.permute.xlu1 %1423 }
 0x1e1   : > { %v1476_v45 = vadd.f32 %v5257_v40, %v1424_v48  ;;  %v1477_v31 = vadd.f32 %v5260_v41, %v1424_v48  ;;  %v7160_v48 = vld [vmem:[#allocation7_spill] sm:$0xff] }
 0x1e3   : > { %v1508_v29 = vmul.f32 0.2, %v1476_v45  ;;  %v1509_v53 = vmul.f32 0.2, %v1477_v31 }
 0x1e5   : > { %v1540_v22 = vmax.f32 %v1476_v45, %v1508_v29  ;;  %v1541_v24 = vmax.f32 %v1477_v31, %v1509_v53  ;;  %v7161_v45 = vmov 2   ;;  %v7162_v31 = vld [vmem:[#allocation6_spill] sm:$0xff]  ;;  %v7163_v29 = vld [vmem:[#allocation11_spill] sm:$0xff] }
 0x1e6   : > { %v7164_v53 = vld [vmem:[#allocation10_spill] sm:$0xff] }
 0x1e7   : > { %v5597_v35 = vadd.f32 %v1540_v22, %v5540_v26  ;;  %v5600_v63 = vadd.f32 %v1541_v24, %v5542_v51  ;;  %v5612_v22 = vpop.permute.xlu1 %2753  ;;  %v7166_v24 = vld [vmem:[#allocation15_spill] sm:$0xff] }
 0x1e8   : > { %7165 = vst [vmem:[#allocation5_spill] sm:$0xff] %v5612_v22 }
 0x1e9   : > { %7156 = vst [vmem:[#allocation70_spill] sm:$0xff] %v5600_v63  ;;  %v1613_v32 = vmax.f32 %v5597_v35, %v5600_v63 }
 0x1eb   : > { %1614 = vmax.xlane.f32.xlu1 %v1613_v32  ;;  %v7167_v32 = vld [vmem:[#allocation54_spill] sm:$0xff]  ;;  %v5624_v22 = vpop.permute.xlu1 %797 }
 0x1ef   : > { %v1436_v33 = vpop.permute.xlu1 %1435 }
 0x1f5   : > { %2056 = vperm.xlu0 %4367, %v7157_v42   ;;  %v843_v42 = vadd.f32 %v5236_v57, %v7167_v32 }
 0x1f9   : > { %2060 = vperm.xlu0 %4367, %v7158_v6   ;;  %v844_v6 = vadd.f32 %v5239_v58, %v7167_v32 }
 0x1fb   : > { %v876_v13 = vmul.f32 0.2, %v844_v6 }
 0x1fc   : > { %2769 = vperm.xlu1 %4366, %v7159_v9  }
 0x1fd   : > { %2068 = vperm.xlu0 %4367, %v7160_v48   ;;  %v808_v48 = vpop.permute.xlu0 %807  ;;  %v908_v4 = vmax.f32 %v844_v6, %v876_v13 }
 0x200   : > { %4368 = vset.pattern.permute.xlu1 %v7161_v45  ;;  %v1478_v45 = vadd.f32 %v5257_v40, %v5402_v43 }
 0x201   : > { %2076 = vperm.xlu0 %4367, %v7162_v31   ;;  %v1479_v31 = vadd.f32 %v5260_v41, %v5402_v43  ;;  %v1444_v54 = vpop.permute.xlu0 %1443  ;;  %v1481_v43 = vadd.f32 %v5260_v41, %v1432_v28 }
 0x202   : > { %v1510_v5 = vmul.f32 0.2, %v1478_v45 }
 0x203   : > { %v1511_v51 = vmul.f32 0.2, %v1479_v31  ;;  %v1513_v49 = vmul.f32 0.2, %v1481_v43 }
 0x204   : > { %v1542_v56 = vmax.f32 %v1478_v45, %v1510_v5  ;;  %v5647_v45 = vpop.permute.xlu1 %2765 }
 0x205   : > { %2084 = vperm.xlu0 %4367, %v7163_v29   ;;  %v7168_v29 = vld [vmem:[#allocation16_spill] sm:$0xff]  ;;  %v1543_v38 = vmax.f32 %v1479_v31, %v1511_v51  ;;  %v803_v21 = vpop.permute.xlu0 %802  ;;  %v1544_v51 = vmax.f32 %v1480_v50, %v1512_v60  ;;  %v1545_v28 = vmax.f32 %v1481_v43, %v1513_v49  ;;  %7175 = vst [vmem:[#allocation15_spill] sm:$0xff] %v5647_v45 }
 0x206   : > { %v850_v13 = vadd.f32 %v5239_v58, %v803_v21  ;;  %v851_v43 = vadd.f32 %v5236_v57, %v808_v48 }
 0x207   : > { %v5660_v49 = vadd.f32 %v1545_v28, %v5570_v61 }
 0x208   : > { %v882_v31 = vmul.f32 0.2, %v850_v13  ;;  %v5662_v50 = vpop.permute.xlu1 %812 }
 0x209   : > { %2092 = vperm.xlu0 %4367, %v7164_v53   ;;  %v875_v53 = vmul.f32 0.2, %v843_v42  ;;  %7177 = vst [vmem:[#allocation16_spill] sm:$0xff] %v5660_v49 }
 0x20a   : > { %v914_v61 = vmax.f32 %v850_v13, %v882_v31 }
 0x20b   : > { %v907_v25 = vmax.f32 %v843_v42, %v875_v53  ;;  %v849_v42 = vadd.f32 %v5236_v57, %v803_v21  ;;  %v700_v21 = vld [vmem:[%s5246_s22 + $0x68] sm:$0xff] }
 0x20c   : > { %v5664_v60 = vunpack.c.l.bf16 %v700_v21 }
 0x20d   : > { %2100 = vperm.xlu0 %4367, %v7166_v24   ;;  %v697_v24 = vld [vmem:[%s5246_s22 + $0x50] sm:$0xff] }
 0x20e   : > { %v5627_v26 = vunpack.c.l.bf16 %v697_v24  ;;  %v5629_v32 = vunpack.c.h.bf16 %v697_v24  ;;  %v1483_v24 = vadd.f32 %v5260_v41, %v1436_v33 }
 0x210   : > { %7169 = vst [vmem:[#allocation2_spill] sm:$0xff] %v5627_v26  ;;  %7170 = vst [vmem:[#allocation17_spill] sm:$0xff] %v5629_v32  ;;  %v5634_v44 = vadd.f32 %v907_v25, %v5627_v26  ;;  %v5637_v10 = vadd.f32 %v908_v4, %v5629_v32  ;;  %v5642_v6 = vadd.f32 %v1542_v56, %v5627_v26  ;;  %v881_v4 = vmul.f32 0.2, %v849_v42 }
 0x211   : > { %2112 = vperm.xlu0 %4367, %v7168_v29   ;;  %v5645_v5 = vadd.f32 %v1543_v38, %v5629_v32  ;;  %v1482_v56 = vadd.f32 %v5257_v40, %v1436_v33  ;;  %v5657_v38 = vadd.f32 %v1544_v51, %v5568_v16  ;;  %v5668_v32 = vunpack.c.h.bf16 %v700_v21 }
 0x212   : > { %7171 = vst [vmem:[#allocation7_spill] sm:$0xff] %v5634_v44  ;;  %7172 = vst [vmem:[#allocation6_spill] sm:$0xff] %v5637_v10  ;;  %v981_v25 = vmax.f32 %v5634_v44, %v5637_v10  ;;  %v913_v33 = vmax.f32 %v849_v42, %v881_v4  ;;  %v1515_v51 = vmul.f32 0.2, %v1483_v24  ;;  %v883_v16 = vmul.f32 0.2, %v851_v43  ;;  %v5676_v44 = vpop.permute.xlu1 %1447 }
 0x213   : > { %7173 = vst [vmem:[#allocation11_spill] sm:$0xff] %v5642_v6  ;;  %7174 = vst [vmem:[#allocation10_spill] sm:$0xff] %v5645_v5  ;;  %v1616_v53 = vmax.f32 %v5642_v6, %v5645_v5  ;;  %v1514_v26 = vmul.f32 0.2, %v1482_v56  ;;  %v1619_v28 = vmax.f32 %v5657_v38, %v5660_v49  ;;  %v1487_v5 = vadd.f32 %v5260_v41, %v1444_v54  ;;  %v699_v6 = vld [vmem:[%s5246_s22 + $0x60] sm:$0xff]  ;;  %v701_v10 = vld [vmem:[%s5246_s22 + $0x70] sm:$0xff] }
 0x214   : > { %7176 = vst [vmem:[#allocation54_spill] sm:$0xff] %v5657_v38  ;;  %7178 = vst [vmem:[#allocation71_spill] sm:$0xff] %v5676_v44  ;;  %v5682_v42 = vadd.f32 %v914_v61, %v5668_v32  ;;  %v1547_v21 = vmax.f32 %v1483_v24, %v1515_v51  ;;  %v5684_v13 = vunpack.c.l.bf16 %v699_v6  ;;  %v5686_v31 = vunpack.c.h.bf16 %v699_v6 }
 0x215   : > { %v1546_v4 = vmax.f32 %v1482_v56, %v1514_v26  ;;  %v915_v38 = vmax.f32 %v851_v43, %v883_v16  ;;  %v1519_v44 = vmul.f32 0.2, %v1487_v5 }
 0x216   : > { %7180 = vst [vmem:[#allocation73_spill] sm:$0xff] %v5682_v42  ;;  %v5698_v26 = vadd.f32 %v1547_v21, %v5686_v31  ;;  %v5700_v6 = vpop.permute.xlu1 %1439  ;;  %v7189_v21 = vld [vmem:[#allocation31_spill] sm:$0xff] }
 0x217   : > { %v5695_v61 = vadd.f32 %v1546_v4, %v5684_v13  ;;  %v1551_v24 = vmax.f32 %v1487_v5, %v1519_v44  ;;  %v7191_v44 = vld [vmem:[#allocation3_spill] sm:$0xff] }
 0x218   : > { %7184 = vst [vmem:[#allocation77_spill] sm:$0xff] %v5698_v26 }
 0x219   : > { %7183 = vst [vmem:[#allocation76_spill] sm:$0xff] %v5695_v61  ;;  %v1622_v16 = vmax.f32 %v5695_v61, %v5698_v26  ;;  %v7190_v26 = vld [vmem:[#allocation32_spill] sm:$0xff] }
 0x220   : > { %982 = vmax.xlane.f32.xlu1 %v981_v25  ;;  %v852_v25 = vadd.f32 %v5239_v58, %v808_v48  ;;  %v5679_v48 = vadd.f32 %v913_v33, %v5664_v60 }
 0x222   : > { %v884_v45 = vmul.f32 0.2, %v852_v25  ;;  %7179 = vst [vmem:[#allocation72_spill] sm:$0xff] %v5679_v48  ;;  %v990_v33 = vmax.f32 %v5679_v48, %v5682_v42  ;;  %v7197_v48 = vld [vmem:[#allocation27_spill] sm:$0xff] }
 0x224   : > { %1617 = vmax.xlane.f32.xlu1 %v1616_v53  ;;  %v1486_v53 = vadd.f32 %v5257_v40, %v1444_v54  ;;  %v5690_v54 = vunpack.c.h.bf16 %v701_v10  ;;  %v916_v37 = vmax.f32 %v852_v25, %v884_v45 }
 0x226   : > { %v1518_v49 = vmul.f32 0.2, %v1486_v53  ;;  %7182 = vst [vmem:[#allocation75_spill] sm:$0xff] %v5690_v54 }
 0x228   : > { %1620 = vmax.xlane.f32.xlu1 %v1619_v28  ;;  %v5688_v28 = vunpack.c.l.bf16 %v701_v10  ;;  %v962_v63 = vpop.xlane.xlu0 %961  ;;  %v5708_v10 = vadd.f32 %v916_v37, %v5690_v54  ;;  %v1550_v45 = vmax.f32 %v1486_v53, %v1518_v49  ;;  %v7192_v53 = vld [vmem:[#allocation37_spill] sm:$0xff] }
 0x22a   : > { %7181 = vst [vmem:[#allocation74_spill] sm:$0xff] %v5688_v28  ;;  %v5703_v56 = vadd.f32 %v915_v38, %v5688_v28  ;;  %7186 = vst [vmem:[#allocation79_spill] sm:$0xff] %v5708_v10  ;;  %v5713_v4 = vadd.f32 %v1550_v45, %v5688_v28  ;;  %v5716_v38 = vadd.f32 %v1551_v24, %v5690_v54  ;;  %v7193_v24 = vld [vmem:[#allocation28_spill] sm:$0xff] }
 0x22b   : > { %v1006_v54 = vsub.f32 %v7193_v24, %v962_v63 }
 0x22c   : > { %7185 = vst [vmem:[#allocation78_spill] sm:$0xff] %v5703_v56  ;;  %v956_v43 = vpop.xlane.xlu0 %955  ;;  %v993_v51 = vmax.f32 %v5703_v56, %v5708_v10  ;;  %7187 = vst [vmem:[#allocation80_spill] sm:$0xff] %v5713_v4  ;;  %v1628_v5 = vmax.f32 %v5713_v4, %v5716_v38  ;;  %v7194_v10 = vld [vmem:[#allocation44_spill] sm:$0xff]  ;;  %v7195_v56 = vld [vmem:[#allocation45_spill] sm:$0xff] }
 0x22d   : > { %7188 = vst [vmem:[#allocation81_spill] sm:$0xff] %v5716_v38  ;;  %v1002_v61 = vsub.f32 %v7190_v26, %v956_v43  ;;  %v1005_v38 = vsub.f32 %v7197_v48, %v962_v63  ;;  %v7199_v4 = vld [vmem:[#allocation9_spill] sm:$0xff]  ;;  %v7202_v48 = vld [vmem:[#allocation8_spill] sm:$0xff] }
 0x22f   : > { %v1037_v45 = vmul.f32 1.442695, %v1002_v61  ;;  %v7198_v61 = vld [vmem:[#allocation36_spill] sm:$0xff] }
 0x230   : > { %991 = vmax.xlane.f32.xlu0 %v990_v33  ;;  %v1001_v33 = vsub.f32 %v7189_v21, %v956_v43  ;;  %v7196_v43 = vld [vmem:[#allocation4_spill] sm:$0xff] }
 0x232   : > { %v1035_v49 = vmul.f32 1.442695, %v1001_v33 }
 0x234   : > { %v959_v25 = vpop.xlane.xlu1 %958  ;;  %1623 = vmax.xlane.f32.xlu0 %v1622_v16  ;;  %4406 = vpow2.f32 %v1035_v49  ;;  %v1043_v49 = vmul.f32 1.442695, %v1005_v38 }
 0x235   : > { %v1004_v16 = vsub.f32 %v7192_v53, %v959_v25  ;;  %4408 = vpow2.f32 %v1037_v45  ;;  %v1045_v53 = vmul.f32 1.442695, %v1006_v54 }
 0x238   : > { %v5720_v37 = vpop.xlane.xlu1 %1593  ;;  %994 = vmax.xlane.f32.xlu0 %v993_v51  ;;  %v1041_v51 = vmul.f32 1.442695, %v1004_v16 }
 0x239   : > { %2052 = vperm.xlu1 %4368, %v7191_v44  }
 0x23c   : > { %1629 = vmax.xlane.f32.xlu0 %v1628_v5  ;;  %v953_v28 = vpop.xlane.xlu1 %952  ;;  %v1003_v5 = vsub.f32 %v7198_v61, %v959_v25 }
 0x23d   : > { %v999_v21 = vsub.f32 %v7194_v10, %v953_v28  ;;  %v1000_v26 = vsub.f32 %v7195_v56, %v953_v28  ;;  %2064 = vperm.xlu1 %4368, %v7196_v43   ;;  %v7200_v10 = vld [vmem:[#allocation49_spill] sm:$0xff]  ;;  %v7201_v28 = vld [vmem:[#allocation52_spill] sm:$0xff] }
 0x23f   : > { %v1031_v44 = vmul.f32 1.442695, %v999_v21  ;;  %v1033_v42 = vmul.f32 1.442695, %v1000_v26  ;;  %v1039_v21 = vmul.f32 1.442695, %v1003_v5 }
 0x240   : > { %v1588_v33 = vpop.xlane.xlu1 %1587 }
 0x241   : > { %4410 = vpow2.f32 %v1031_v44  ;;  %2072 = vperm.xlu1 %4368, %v7199_v4   ;;  %v1634_v24 = vsub.f32 %v7200_v10, %v1588_v33  ;;  %v1635_v56 = vsub.f32 %v7201_v28, %v1588_v33  ;;  %v7204_v44 = vld [vmem:[#allocation13_spill] sm:$0xff] }
 0x242   : > { %4412 = vpow2.f32 %v1033_v42  ;;  %v7203_v42 = vld [vmem:[#allocation42_spill] sm:$0xff] }
 0x243   : > { %4414 = vpow2.f32 %v1041_v51  ;;  %v1666_v54 = vmul.f32 1.442695, %v1634_v24  ;;  %v1668_v25 = vmul.f32 1.442695, %v1635_v56  ;;  %v1639_v4 = vsub.f32 %v7203_v42, %v5720_v37  ;;  %v4407_v51 = vpop.eup %4406 }
 0x244   : > { %v1597_v16 = vpop.xlane.xlu1 %1596  ;;  %4416 = vpow2.f32 %v1045_v53  ;;  %v4409_v33 = vpop.eup %4408 }
 0x245   : > { %v1641_v63 = vsub.f32 %v5394_v20, %v1597_v16  ;;  %2080 = vperm.xlu1 %4368, %v7202_v48   ;;  %4418 = vpow2.f32 %v1043_v49  ;;  %v1676_v10 = vmul.f32 1.442695, %v1639_v4  ;;  %v7206_v48 = vld [vmem:[#allocation41_spill] sm:$0xff] }
 0x246   : > { %v5737_v45 = vpop.xlane.xlu0 %973  ;;  %4420 = vpow2.f32 %v1039_v21  ;;  %v1640_v21 = vsub.f32 %v5391_v34, %v1597_v16 }
 0x247   : > { %v1680_v26 = vmul.f32 1.442695, %v1641_v63  ;;  %4422 = vpow2.f32 %v1666_v54 }
 0x248   : > { %v1591_v43 = vpop.xlane.xlu1 %1590  ;;  %4424 = vpow2.f32 %v1668_v25  ;;  %v1678_v34 = vmul.f32 1.442695, %v1640_v21 }
 0x249   : > { %v1636_v38 = vsub.f32 %v5407_v55, %v1591_v43  ;;  %2088 = vperm.xlu1 %4368, %v7204_v44   ;;  %v1637_v20 = vsub.f32 %v5418_v27, %v1591_v43  ;;  %4426 = vpow2.f32 %v1680_v26  ;;  %v7205_v55 = vld [vmem:[#allocation12_spill] sm:$0xff]  ;;  %v1638_v27 = vsub.f32 %v7206_v48, %v5720_v37  ;;  %v4822_v37 = vld [vmem:[%s6882_s0 + $0x40] sm:$0xff]  }
 0x24a   : > { %v968_v28 = vpop.xlane.xlu0 %967 }
 0x24b   : > { %v4411_v53 = vpop.eup %4410  ;;  %v1670_v61 = vmul.f32 1.442695, %v1636_v38  ;;  %v1672_v24 = vmul.f32 1.442695, %v1637_v20  ;;  %v1009_v42 = vsub.f32 %v5430_v62, %v968_v28  ;;  %v1010_v4 = vsub.f32 %v5433_v12, %v968_v28 }
 0x24c   : > { %v4413_v5 = vpop.eup %4412  ;;  %v5744_v56 = vpop.xlane.xlu1 %970  ;;  %v1145_v63 = vpack.c.bf16 %v4407_v51, %v4411_v53  ;;  %v1674_v51 = vmul.f32 1.442695, %v1638_v27 }
 0x24d   : > { %v4415_v49 = vpop.eup %4414  ;;  %4428 = vpow2.f32 %v1670_v61  ;;  %2096 = vperm.xlu1 %4368, %v7205_v55   ;;  %v1146_v54 = vpack.c.bf16 %v4409_v33, %v4413_v5  ;;  %v1051_v12 = vmul.f32 1.442695, %v1009_v42  ;;  %v1012_v38 = vsub.f32 %v5424_v0, %v5744_v56 }
 0x24e   : > { %4430 = vpow2.f32 %v1672_v24  ;;  %v4417_v25 = vpop.eup %4416  ;;  %v1053_v33 = vmul.f32 1.442695, %v1010_v4  ;;  %v1011_v27 = vsub.f32 %v5421_v39, %v5744_v56 }
 0x24f   : > { %4432 = vpow2.f32 %v1676_v10  ;;  %1193 = vmatprep.mubr.bf16.mxu0 %v1146_v54  ;;  %v1148_v26 = vpack.c.bf16 %v4417_v25, %v4415_v49  ;;  %v4419_v16 = vpop.eup %4418  ;;  %v7207_v10 = vld [vmem:[#allocation14_spill] sm:$0xff]  ;;  %v1057_v49 = vmul.f32 1.442695, %v1012_v38  ;;  %v7208_v54 = vmov 3  }
 0x250   : > { %v5752_v43 = vpop.xlane.xlu1 %1605  ;;  %1194 = vmatmul.mubr.bf16.vlgmr.msra.gmra.mrb[16].mxu0 %v1145_v63  ;;  %v4421_v62 = vpop.eup %4420  ;;  %4434 = vpow2.f32 %v1678_v34  ;;  %v1055_v39 = vmul.f32 1.442695, %v1011_v27 }
 0x251   : > { %2104 = vperm.xlu1 %4368, %v7159_v9   ;;  %1201 = vmatprep.mubr.bf16.mxu0 %v1148_v26  ;;  %v4423_v44 = vpop.eup %4422  ;;  %v1014_v9 = vsub.f32 %v5415_v19, %v5737_v45  ;;  %4436 = vpow2.f32 %v1674_v51  ;;  %v1147_v0 = vpack.c.bf16 %v4419_v16, %v4421_v62  ;;  %v1013_v19 = vsub.f32 %v5412_v15, %v5737_v45 }
 0x252   : > { %2411 = vrot.lane.b32.xlu0 %v4822_v37, %s4851_s28  ;;  %v4425_v53 = vpop.eup %4424  ;;  %4438 = vpow2.f32 %v1051_v12 }
 0x253   : > { %v4427_v24 = vpop.eup %4426  ;;  %4440 = vpow2.f32 %v1053_v33  ;;  %v1061_v48 = vmul.f32 1.442695, %v1014_v9  ;;  %v1059_v26 = vmul.f32 1.442695, %v1013_v19  ;;  %v7210_v33 = vld [vmem:[#allocation19_spill] sm:$0xff] }
 0x254   : > { %v965_v20 = vpop.xlane.xlu1 %964 }
 0x255   : > { %v1007_v61 = vsub.f32 %v5480_v8, %v965_v20  ;;  %v1008_v5 = vsub.f32 %v5483_v14, %v965_v20  ;;  %2108 = vperm.xlu1 %4368, %v7207_v10  }
 0x256   : > { %3076 = vrot.lane.b32.xlu0 %v4822_v37, %s4852_s29 }
 0x257   : > { %v4429_v28 = vpop.eup %4428  ;;  %v1047_v21 = vmul.f32 1.442695, %v1007_v61  ;;  %v1049_v55 = vmul.f32 1.442695, %v1008_v5  ;;  %v1646_v5 = vsub.f32 %v5462_v3, %v5752_v43 }
 0x258   : > { %v4431_v63 = vpop.eup %4430  ;;  %v1600_v8 = vpop.xlane.xlu1 %1599  ;;  %v1810_v14 = vpack.c.bf16 %v4429_v28, %v4423_v44  ;;  %1202 = vmatmul.mubr.bf16.gmra.mrb[20].mxu0 %v1147_v0  ;;  %v7209_v44 = vld [vmem:[#allocation23_spill] sm:$0xff] }
 0x259   : > { %4442 = vpow2.f32 %v1047_v21  ;;  %4369 = vset.pattern.permute.xlu1 %v7208_v54  ;;  %v1811_v25 = vpack.c.bf16 %v4431_v63, %v4425_v53  ;;  %v4433_v42 = vpop.eup %4432  ;;  %v1642_v4 = vsub.f32 %v5494_v2, %v1600_v8  ;;  %v1643_v15 = vsub.f32 %v5497_v17, %v1600_v8 }
 0x25a   : > { %4444 = vpow2.f32 %v1049_v55  ;;  %2773 = vperm.xlu1 %4369, %v7207_v10   ;;  %v1813_v45 = vpack.c.bf16 %v4427_v24, %v4433_v42  ;;  %v4435_v51 = vpop.eup %4434  ;;  %v1647_v17 = vsub.f32 %v5465_v36, %v5752_v43  ;;  %v2788_v20 = vadd.f32 %v7210_v33, %v7209_v44 }
 0x25b   : > { %4446 = vpow2.f32 %v1057_v49  ;;  %1858 = vmatprep.mubr.bf16.mxu1 %v1811_v25  ;;  %v1682_v16 = vmul.f32 1.442695, %v1642_v4  ;;  %v1684_v2 = vmul.f32 1.442695, %v1643_v15  ;;  %v4437_v37 = vpop.eup %4436  ;;  %v1690_v8 = vmul.f32 1.442695, %v1646_v5 }
 0x25c   : > { %1859 = vmatmul.mubr.bf16.vlgmr.msra.gmra.mrb[4].mxu1 %v1810_v14  ;;  %v1609_v34 = vpop.xlane.xlu1 %1608  ;;  %4448 = vpow2.f32 %v1061_v48  ;;  %v4439_v38 = vpop.eup %4438  ;;  %v1812_v36 = vpack.c.bf16 %v4435_v51, %v4437_v37  ;;  %v1692_v21 = vmul.f32 1.442695, %v1647_v17  ;;  %v2820_v63 = vmul.f32 0.2, %v2788_v20 }
 0x25d   : > { %1866 = vmatprep.mubr.bf16.mxu1 %v1813_v45  ;;  %v1649_v56 = vsub.f32 %v5505_v52, %v1609_v34  ;;  %4450 = vpow2.f32 %v1059_v26  ;;  %v4441_v9 = vpop.eup %4440  ;;  %v1648_v24 = vsub.f32 %v5502_v7, %v1609_v34  ;;  %v847_v51 = vadd.f32 %v5236_v57, %v5624_v22 }
 0x25e   : > { %2777 = vperm.xlu1 %4369, %v7168_v29   ;;  %4452 = vpow2.f32 %v1055_v39  ;;  %v7211_v29 = vld [vmem:[#allocation21_spill] sm:$0xff]  ;;  %v2852_v45 = vmax.f32 %v2788_v20, %v2820_v63 }
 0x25f   : > { %v1696_v62 = vmul.f32 1.442695, %v1649_v56  ;;  %v2789_v61 = vadd.f32 %v7211_v29, %v7209_v44  ;;  %4454 = vpow2.f32 %v1682_v16  ;;  %v1694_v48 = vmul.f32 1.442695, %v1648_v24 }
 0x260   : > { %v1603_v12 = vpop.xlane.xlu1 %1602  ;;  %4456 = vpow2.f32 %v1684_v2 }
 0x261   : > { %v1644_v53 = vsub.f32 %v5522_v46, %v1603_v12  ;;  %v1645_v52 = vsub.f32 %v5530_v47, %v1603_v12  ;;  %4458 = vpow2.f32 %v1696_v62  ;;  %v2821_v19 = vmul.f32 0.2, %v2789_v61  ;;  %v7212_v62 = vld [vmem:[#allocation39_spill] sm:$0xff] }
 0x262   : > { %v5799_v12 = vadd.f32 %v2852_v45, %v7212_v62 }
 0x263   : > { %v4443_v10 = vpop.eup %4442  ;;  %v1686_v0 = vmul.f32 1.442695, %v1644_v53  ;;  %v1688_v28 = vmul.f32 1.442695, %v1645_v52  ;;  %v2853_v26 = vmax.f32 %v2789_v61, %v2821_v19  ;;  %v879_v53 = vmul.f32 0.2, %v847_v51 }
 0x264   : > { %v4445_v49 = vpop.eup %4444  ;;  %1867 = vmatmul.mubr.bf16.gmra.mrb[8].mxu1 %v1812_v36  ;;  %v5788_v46 = vpop.xlane.xlu0 %1611  ;;  %v1149_v43 = vpack.c.bf16 %v4439_v38, %v4443_v10  ;;  %v7213_v38 = vld [vmem:[#allocation40_spill] sm:$0xff]  ;;  %v854_v19 = vadd.f32 %v5239_v58, %v5662_v50 }
 0x265   : > { %v977_v47 = vpop.xlane.xlu1 %976  ;;  %v4447_v55 = vpop.eup %4446  ;;  %4460 = vpow2.f32 %v1686_v0  ;;  %v1150_v14 = vpack.c.bf16 %v4441_v9, %v4445_v49  ;;  %v5802_v44 = vadd.f32 %v2853_v26, %v7213_v38  ;;  %v911_v0 = vmax.f32 %v847_v51, %v879_v53 }
 0x266   : > { %v1015_v3 = vsub.f32 %v5552_v23, %v977_v47  ;;  %4462 = vpow2.f32 %v1688_v28  ;;  %v4449_v7 = vpop.eup %4448  ;;  %v1016_v27 = vsub.f32 %v5555_v11, %v977_v47  ;;  %v1485_v28 = vadd.f32 %v5260_v41, %v5700_v6 }
 0x267   : > { %4464 = vpow2.f32 %v1692_v21  ;;  %1209 = vmatprep.mubr.bf16.mxu0 %v1150_v14  ;;  %v1152_v42 = vpack.c.bf16 %v4449_v7, %v4447_v55  ;;  %v4451_v23 = vpop.eup %4450  ;;  %v2916_v10 = vmax.f32 %v5799_v12, %v5802_v44  ;;  %v1650_v49 = vsub.f32 %v5561_v18, %v5788_v46 }
 0x268   : > { %v1063_v54 = vmul.f32 1.442695, %v1015_v3  ;;  %v980_v25 = vpop.xlane.xlu0 %979  ;;  %1210 = vmatmul.mubr.bf16.gmra.mrb[24].mxu0 %v1149_v43  ;;  %4466 = vpow2.f32 %v1690_v8  ;;  %v4453_v34 = vpop.eup %4452  ;;  %v1065_v39 = vmul.f32 1.442695, %v1016_v27  ;;  %v853_v55 = vadd.f32 %v5236_v57, %v5662_v50 }
 0x269   : > { %v1017_v4 = vsub.f32 %v5577_v59, %v980_v25  ;;  %v1018_v15 = vsub.f32 %v5580_v1, %v980_v25  ;;  %1217 = vmatprep.mubr.bf16.mxu0 %v1152_v42  ;;  %4468 = vpow2.f32 %v1694_v48  ;;  %v4455_v16 = vpop.eup %4454  ;;  %v848_v59 = vadd.f32 %v5239_v58, %v5624_v22  ;;  %v7214_v42 = vld [vmem:[#allocation70_spill] sm:$0xff] }
 0x26a   : > { %4470 = vpow2.f32 %v1063_v54  ;;  %v4457_v2 = vpop.eup %4456  ;;  %v1151_v17 = vpack.c.bf16 %v4451_v23, %v4453_v34  ;;  %v1484_v22 = vadd.f32 %v5257_v40, %v5700_v6  ;;  %v1651_v63 = vsub.f32 %v5564_v30, %v5788_v46  ;;  %v7215_v23 = vld [vmem:[#allocation71_spill] sm:$0xff] }
 0x26b   : > { %v1067_v56 = vmul.f32 1.442695, %v1017_v4  ;;  %v1069_v11 = vmul.f32 1.442695, %v1018_v15  ;;  %v4459_v1 = vpop.eup %4458  ;;  %v880_v9 = vmul.f32 0.2, %v848_v59  ;;  %v5819_v48 = vadd.f32 %v911_v0, %v5684_v13 }
 0x26c   : > { %v1516_v6 = vmul.f32 0.2, %v1484_v22  ;;  %v1517_v14 = vmul.f32 0.2, %v1485_v28  ;;  %v1698_v18 = vmul.f32 1.442695, %v1650_v49  ;;  %v1488_v45 = vadd.f32 %v5257_v40, %v7215_v23 }
 0x26d   : > { %4472 = vpow2.f32 %v1067_v56  ;;  %v912_v47 = vmax.f32 %v848_v59, %v880_v9  ;;  %v885_v27 = vmul.f32 0.2, %v853_v55  ;;  %v1700_v54 = vmul.f32 1.442695, %v1651_v63 }
 0x26e   : > { %4474 = vpow2.f32 %v1069_v11  ;;  %v886_v15 = vmul.f32 0.2, %v854_v19  ;;  %v1489_v26 = vadd.f32 %v5260_v41, %v7215_v23  ;;  %v1548_v34 = vmax.f32 %v1484_v22, %v1516_v6 }
 0x26f   : > { %v4461_v37 = vpop.eup %4460  ;;  %4476 = vpow2.f32 %v1065_v39  ;;  %v5822_v46 = vadd.f32 %v912_v47, %v5686_v31  ;;  %v702_v39 = vld [vmem:[%s5246_s22 + $0x78] sm:$0xff]  ;;  %v1549_v56 = vmax.f32 %v1485_v28, %v1517_v14  ;;  %v1520_v59 = vmul.f32 0.2, %v1488_v45  ;;  %v986_v47 = vpop.xlane.xlu0 %985 }
 0x270   : > { %v4463_v20 = vpop.eup %4462  ;;  %v1814_v52 = vpack.c.bf16 %v4461_v37, %v4455_v16  ;;  %1218 = vmatmul.mubr.bf16.gmra.mrb[28].mxu0 %v1151_v17  ;;  %4478 = vpow2.f32 %v1698_v18  ;;  %v5833_v51 = vunpack.c.h.bf16 %v702_v39  ;;  %v918_v40 = vmax.f32 %v854_v19, %v886_v15  ;;  %v7217_v18 = vld [vmem:[#allocation20_spill] sm:$0xff] }
 0x271   : > { %v1815_v61 = vpack.c.bf16 %v4463_v20, %v4457_v2  ;;  %v4465_v5 = vpop.eup %4464  ;;  %4480 = vpow2.f32 %v1700_v54  ;;  %v917_v2 = vmax.f32 %v853_v55, %v885_v27  ;;  %v987_v41 = vmax.f32 %v5819_v48, %v5822_v46  ;;  %v5862_v55 = vld [vmem:[%s6882_s0] sm:$0xff]   ;;  %v7219_v15 = vld [vmem:[#allocation68_spill] sm:$0xff] }
 0x272   : > { %v1817_v36 = vpack.c.bf16 %v4459_v1, %v4465_v5  ;;  %v4467_v24 = vpop.eup %4466  ;;  %v1521_v1 = vmul.f32 0.2, %v1489_v26  ;;  %v5838_v37 = vadd.f32 %v1548_v34, %v5664_v60  ;;  %v5841_v17 = vadd.f32 %v1549_v56, %v5668_v32  ;;  %v7222_v34 = vld [vmem:[#allocation34_spill] sm:$0xff] }
 0x273   : > { %1874 = vmatprep.mubr.bf16.mxu1 %v1815_v61  ;;  %v4469_v21 = vpop.eup %4468  ;;  %v1552_v53 = vmax.f32 %v1488_v45, %v1520_v59  ;;  %v5849_v61 = vadd.f32 %v918_v40, %v5833_v51  ;;  %v1022_v23 = vsub.f32 %v7219_v15, %v986_v47  ;;  %v7220_v45 = vld [vmem:[#allocation33_spill] sm:$0xff] }
 0x274   : > { %1875 = vmatmul.mubr.bf16.gmra.mrb[12].mxu1 %v1814_v52  ;;  %v4471_v3 = vpop.eup %4470  ;;  %v1816_v4 = vpack.c.bf16 %v4469_v21, %v4467_v24  ;;  %v1553_v52 = vmax.f32 %v1489_v26, %v1521_v1  ;;  %v1625_v9 = vmax.f32 %v5838_v37, %v5841_v17 }
 0x275   : > { %1882 = vmatprep.mubr.bf16.mxu1 %v1817_v36  ;;  %2917 = vmax.xlane.f32.xlu0 %v2916_v10  ;;  %v1077_v1 = vmul.f32 1.442695, %v1022_v23 }
 0x276   : > { %v5857_v0 = vadd.f32 %v1553_v52, %v5833_v51 }
 0x277   : > { %v4473_v43 = vpop.eup %4472 }
 0x278   : > { %v4475_v8 = vpop.eup %4474  ;;  %v1615_v7 = vpop.xlane.xlu1 %1614  ;;  %v1153_v30 = vpack.c.bf16 %v4473_v43, %v4471_v3  ;;  %v4824_v43 = vld [vmem:[%s6882_s0 + $0x8] sm:$0xff]  }
 0x279   : > { %v4477_v57 = vpop.eup %4476  ;;  %v1652_v25 = vsub.f32 %v5597_v35, %v1615_v7  ;;  %v1653_v58 = vsub.f32 %v7214_v42, %v1615_v7  ;;  %v5831_v35 = vunpack.c.l.bf16 %v702_v39  ;;  %v2057_v3 = vpop.permute.xlu0 %2056 }
 0x27a   : > { %v1154_v50 = vpack.c.bf16 %v4475_v8, %v4477_v57  ;;  %v4479_v5 = vpop.eup %4478  ;;  %v7216_v8 = vld [vmem:[#allocation18_spill] sm:$0xff] }
 0x27b   : > { %v1702_v11 = vmul.f32 1.442695, %v1652_v25  ;;  %v1704_v16 = vmul.f32 1.442695, %v1653_v58  ;;  %v5844_v20 = vadd.f32 %v917_v2, %v5831_v35  ;;  %v4481_v22 = vpop.eup %4480  ;;  %v5854_v24 = vadd.f32 %v1552_v53, %v5831_v35  ;;  %v7218_v58 = vld [vmem:[#allocation67_spill] sm:$0xff] }
 0x27c   : > { %1225 = vmatprep.mubr.bf16.mxu0 %v1154_v50  ;;  %1883 = vmatmul.mubr.bf16.gmra.mrb[16].mxu1 %v1816_v4  ;;  %v1021_v50 = vsub.f32 %v7218_v58, %v986_v47  ;;  %v5882_v4 = vpop.permute.xlu1 %2769  ;;  %v7224_v2 = vld [vmem:[#allocation7_spill] sm:$0xff]  ;;  %v7228_v47 = vld [vmem:[#allocation54_spill] sm:$0xff] }
 0x27d   : > { %1226 = vmatmul.mubr.bf16.gmra.mrb[32].mxu0 %v1153_v30  ;;  %4482 = vpow2.f32 %v1702_v11  ;;  %v996_v10 = vmax.f32 %v5844_v20, %v5849_v61  ;;  %v1631_v63 = vmax.f32 %v5854_v24, %v5857_v0  ;;  %v2061_v19 = vpop.permute.xlu0 %2060 }
 0x27e   : > { %4484 = vpow2.f32 %v1704_v16  ;;  %v2127_v14 = vadd.f32 %v7216_v8, %v2061_v19  ;;  %v2128_v7 = vadd.f32 %v7217_v18, %v2061_v19  ;;  %v1075_v56 = vmul.f32 1.442695, %v1021_v50 }
 0x280   : > { %v2159_v27 = vmul.f32 0.2, %v2127_v14  ;;  %v2160_v54 = vmul.f32 0.2, %v2128_v7  ;;  %4486 = vpow2.f32 %v1075_v56 }
 0x281   : > { %v5873_v6 = vpop.permute.xlu0 %2068 }
 0x282   : > { %988 = vmax.xlane.f32.xlu1 %v987_v41  ;;  %v2191_v25 = vmax.f32 %v2127_v14, %v2159_v27  ;;  %v2192_v42 = vmax.f32 %v2128_v7, %v2160_v54  ;;  %v7225_v41 = vld [vmem:[#allocation6_spill] sm:$0xff]  ;;  %v2125_v14 = vadd.f32 %v7216_v8, %v2057_v3  ;;  %v2126_v7 = vadd.f32 %v7217_v18, %v2057_v3 }
 0x284   : > { %v5886_v26 = vadd.f32 %v2191_v25, %v7220_v45  ;;  %v5889_v39 = vadd.f32 %v2192_v42, %v7222_v34 }
 0x285   : > { %v5877_v57 = vpop.permute.xlu0 %2076 }
 0x286   : > { %1626 = vmax.xlane.f32.xlu1 %v1625_v9  ;;  %7221 = vst [vmem:[#allocation31_spill] sm:$0xff] %v5886_v26  ;;  %7223 = vst [vmem:[#allocation32_spill] sm:$0xff] %v5889_v39  ;;  %v2257_v9 = vmax.f32 %v5886_v26, %v5889_v39  ;;  %v7262_v26 = vld [vmem:[#allocation43_spill] sm:$0xff] }
 0x287   : > { %v4483_v36 = vpop.eup %4482 }
 0x288   : > { %v4485_v28 = vpop.eup %4484  ;;  %v1818_v21 = vpack.c.bf16 %v4483_v36, %v4479_v5  ;;  %v7226_v36 = vld [vmem:[#allocation11_spill] sm:$0xff] }
 0x289   : > { %v1819_v49 = vpack.c.bf16 %v4485_v28, %v4481_v22  ;;  %v5879_v30 = vpop.permute.xlu0 %2084  ;;  %v7227_v28 = vld [vmem:[#allocation10_spill] sm:$0xff] }
 0x28a   : > { %997 = vmax.xlane.f32.xlu1 %v996_v10  ;;  %v4487_v56 = vpop.eup %4486 }
 0x28b   : > { %3060 = vrot.lane.b32.xlu0 %v5862_v55, %s4852_s29  ;;  %1890 = vmatprep.mubr.bf16.mxu1 %v1819_v49 }
 0x28c   : > { %1891 = vmatmul.mubr.bf16.gmra.mrb[20].mxu1 %v1818_v21 }
 0x28d   : > { %v5891_v11 = vpop.permute.xlu0 %2092 }
 0x28e   : > { %1632 = vmax.xlane.f32.xlu1 %v1631_v63 }
 0x28f   : > { %2397 = vrot.lane.b32.xlu0 %v4824_v43, %s4851_s28 }
 0x291   : > { %v5897_v22 = vpop.permute.xlu0 %2100 }
 0x293   : > { %3062 = vrot.lane.b32.xlu0 %v4824_v43, %s4852_s29  ;;  %v7229_v43 = vld [vmem:[#allocation16_spill] sm:$0xff] }
 0x295   : > { %v5905_v42 = vpop.permute.xlu0 %2112 }
 0x2ad   : > { %v983_v16 = vpop.xlane.xlu1 %982 }
 0x2ae   : > { %v1019_v40 = vsub.f32 %v7224_v2, %v983_v16  ;;  %v1020_v59 = vsub.f32 %v7225_v41, %v983_v16  ;;  %v2157_v16 = vmul.f32 0.2, %v2125_v14 }
 0x2b0   : > { %v1071_v53 = vmul.f32 1.442695, %v1019_v40  ;;  %v1073_v52 = vmul.f32 1.442695, %v1020_v59  ;;  %v2158_v40 = vmul.f32 0.2, %v2126_v7 }
 0x2b1   : > { %v1618_v5 = vpop.xlane.xlu1 %1617 }
 0x2b2   : > { %4488 = vpow2.f32 %v1071_v53  ;;  %2258 = vmax.xlane.f32.xlu0 %v2257_v9  ;;  %v1654_v10 = vsub.f32 %v7226_v36, %v1618_v5  ;;  %v1655_v49 = vsub.f32 %v7227_v28, %v1618_v5  ;;  %v2190_v28 = vmax.f32 %v2126_v7, %v2158_v40 }
 0x2b3   : > { %4490 = vpow2.f32 %v1073_v52 }
 0x2b4   : > { %4492 = vpow2.f32 %v1077_v1  ;;  %v1706_v27 = vmul.f32 1.442695, %v1654_v10  ;;  %v1708_v58 = vmul.f32 1.442695, %v1655_v49  ;;  %v2189_v10 = vmax.f32 %v2125_v14, %v2157_v16 }
 0x2b5   : > { %v1621_v21 = vpop.xlane.xlu1 %1620 }
 0x2b6   : > { %v1656_v63 = vsub.f32 %v7228_v47, %v1621_v21  ;;  %v1657_v19 = vsub.f32 %v7229_v43, %v1621_v21 }
 0x2b8   : > { %v1710_v54 = vmul.f32 1.442695, %v1656_v63  ;;  %v1712_v25 = vmul.f32 1.442695, %v1657_v19  ;;  %v7231_v19 = vld [vmem:[#allocation29_spill] sm:$0xff] }
 0x2b9   : > { %v2053_v50 = vpop.permute.xlu1 %2052 }
 0x2ba   : > { %4494 = vpow2.f32 %v1710_v54  ;;  %v2123_v15 = vadd.f32 %v7216_v8, %v2053_v50  ;;  %v2124_v23 = vadd.f32 %v7217_v18, %v2053_v50  ;;  %v7233_v54 = vld [vmem:[#allocation30_spill] sm:$0xff] }
 0x2bb   : > { %4496 = vpow2.f32 %v1712_v25  ;;  %v5925_v14 = vadd.f32 %v2190_v28, %v7233_v54 }
 0x2bc   : > { %v4489_v2 = vpop.eup %4488  ;;  %4498 = vpow2.f32 %v1706_v27  ;;  %v2155_v41 = vmul.f32 0.2, %v2123_v15  ;;  %v2156_v3 = vmul.f32 0.2, %v2124_v23  ;;  %v5922_v27 = vadd.f32 %v2189_v10, %v7231_v19 }
 0x2bd   : > { %v4491_v59 = vpop.eup %4490  ;;  %4500 = vpow2.f32 %v1708_v58  ;;  %v5909_v1 = vpop.xlane.xlu0 %991  ;;  %v1155_v5 = vpack.c.bf16 %v4487_v56, %v4489_v2 }
 0x2be   : > { %v4493_v53 = vpop.eup %4492  ;;  %v2187_v52 = vmax.f32 %v2123_v15, %v2155_v41  ;;  %v2188_v9 = vmax.f32 %v2124_v23, %v2156_v3  ;;  %7232 = vst [vmem:[#allocation37_spill] sm:$0xff] %v5922_v27  ;;  %v4825_v15 = vld [vmem:[%s6882_s0 + $0x10] sm:$0xff]   ;;  %v2254_v23 = vmax.f32 %v5922_v27, %v5925_v14  ;;  %v7234_v3 = vld [vmem:[#allocation22_spill] sm:$0xff] }
 0x2bf   : > { %v1156_v36 = vpack.c.bf16 %v4493_v53, %v4491_v59  ;;  %v2792_v59 = vadd.f32 %v7210_v33, %v7234_v3  ;;  %v2793_v53 = vadd.f32 %v7211_v29, %v7234_v3 }
 0x2c0   : > { %v5912_v49 = vadd.f32 %v2187_v52, %v7212_v62  ;;  %v5915_v21 = vadd.f32 %v2188_v9, %v7213_v38 }
 0x2c1   : > { %1233 = vmatprep.mubr.bf16.mxu0 %v1156_v36  ;;  %v5917_v47 = vpop.xlane.xlu0 %1623  ;;  %v2824_v52 = vmul.f32 0.2, %v2792_v59  ;;  %v2825_v9 = vmul.f32 0.2, %v2793_v53 }
 0x2c2   : > { %7230 = vst [vmem:[#allocation3_spill] sm:$0xff] %v5912_v49  ;;  %1234 = vmatmul.mubr.bf16.gmra.mrb[36].mxu0 %v1155_v5  ;;  %v2251_v43 = vmax.f32 %v5912_v49, %v5915_v21  ;;  %v5943_v5 = vpop.permute.xlu1 %2064 }
 0x2c3   : > { %v2856_v36 = vmax.f32 %v2792_v59, %v2824_v52  ;;  %v2857_v10 = vmax.f32 %v2793_v53, %v2825_v9  ;;  %v4826_v52 = vld [vmem:[%s6882_s0 + $0x18] sm:$0xff]  }
 0x2c4   : > { %v4495_v63 = vpop.eup %4494  ;;  %2252 = vmax.xlane.f32.xlu1 %v2251_v43 }
 0x2c5   : > { %v4497_v7 = vpop.eup %4496  ;;  %v5927_v62 = vpop.xlane.xlu0 %994  ;;  %v5953_v43 = vadd.f32 %v2857_v10, %v7222_v34 }
 0x2c6   : > { %v4499_v25 = vpop.eup %4498  ;;  %v5947_v28 = vpop.permute.xlu1 %2072 }
 0x2c7   : > { %v4501_v38 = vpop.eup %4500  ;;  %v1820_v58 = vpack.c.bf16 %v4495_v63, %v4499_v25  ;;  %v5950_v63 = vadd.f32 %v2856_v36, %v7220_v45  ;;  %7236 = vst [vmem:[#allocation44_spill] sm:$0xff] %v5953_v43  ;;  %v7239_v36 = vld [vmem:[#allocation72_spill] sm:$0xff] }
 0x2c8   : > { %v1821_v50 = vpack.c.bf16 %v4497_v7, %v4501_v38  ;;  %2399 = vrot.lane.b32.xlu0 %v4825_v15, %s4851_s28  ;;  %2255 = vmax.xlane.f32.xlu1 %v2254_v23  ;;  %v7237_v38 = vld [vmem:[#allocation35_spill] sm:$0xff]  ;;  %v1025_v10 = vsub.f32 %v7239_v36, %v5909_v1  ;;  %v2131_v36 = vadd.f32 %v7216_v8, %v5873_v6 }
 0x2c9   : > { %v5935_v56 = vpop.xlane.xlu0 %1629  ;;  %7235 = vst [vmem:[#allocation28_spill] sm:$0xff] %v5950_v63  ;;  %v2922_v7 = vmax.f32 %v5950_v63, %v5953_v43 }
 0x2ca   : > { %1898 = vmatprep.mubr.bf16.mxu1 %v1821_v50  ;;  %v5957_v25 = vpop.permute.xlu1 %2080 }
 0x2cb   : > { %1899 = vmatmul.mubr.bf16.gmra.mrb[24].mxu1 %v1820_v58  ;;  %v2790_v58 = vadd.f32 %v7210_v33, %v7237_v38 }
 0x2cd   : > { %v2412_v16 = vpop.permute.xlu0 %2411  ;;  %v2822_v23 = vmul.f32 0.2, %v2790_v58 }
 0x2ce   : > { %v2452_v2 = vsel %vm1095_vm0, %v2412_v16, 1065369472  ;;  %v5963_v50 = vpop.permute.xlu1 %2088 }
 0x2cf   : > { %4122 = vmatprep.subr.bf16.mxu0 %v2452_v2  ;;  %v2854_v34 = vmax.f32 %v2790_v58, %v2822_v23  ;;  %v7241_v58 = vld [vmem:[#allocation76_spill] sm:$0xff] }
 0x2d1   : > { %v3077_v40 = vpop.permute.xlu0 %3076 }
 0x2d2   : > { %v3117_v41 = vsel %vm1095_vm0, %v3077_v40, 1065369472  ;;  %v5965_v16 = vpop.permute.xlu1 %2096 }
 0x2d3   : > { %4186 = vmatprep.subr.bf16.mxu1 %v3117_v41  ;;  %v5970_v41 = vadd.f32 %v2854_v34, %v7231_v19 }
 0x2d5   : > { %7238 = vst [vmem:[#allocation45_spill] sm:$0xff] %v5970_v41 }
 0x2d6   : > { %v5967_v40 = vpop.permute.xlu1 %2104 }
 0x2d9   : > { %2395 = vrot.lane.b32.xlu1 %v5862_v55, %s4851_s28  ;;  %v2791_v55 = vadd.f32 %v7211_v29, %v7237_v38 }
 0x2da   : > { %v5978_v53 = vpop.permute.xlu1 %2108 }
 0x2db   : > { %v2823_v45 = vmul.f32 0.2, %v2791_v55 }
 0x2dd   : > { %v2855_v2 = vmax.f32 %v2791_v55, %v2823_v45  ;;  %v1658_v55 = vsub.f32 %v7241_v58, %v5917_v47  ;;  %v1083_v45 = vmul.f32 1.442695, %v1025_v10  ;;  %v2132_v10 = vadd.f32 %v7217_v18, %v5873_v6 }
 0x2de   : > { %v5986_v19 = vpop.permute.xlu1 %2773 }
 0x2df   : > { %v5973_v3 = vadd.f32 %v2855_v2, %v7233_v54  ;;  %v7242_v2 = vld [vmem:[#allocation77_spill] sm:$0xff]  ;;  %4502 = vpow2.f32 %v1083_v45  ;;  %v2164_v45 = vmul.f32 0.2, %v2132_v10 }
 0x2e1   : > { %v2919_v59 = vmax.f32 %v5970_v41, %v5973_v3  ;;  %v2796_v41 = vadd.f32 %v7210_v33, %v7262_v26 }
 0x2e2   : > { %v5996_v23 = vpop.permute.xlu1 %2777 }
 0x2e7   : > { %2923 = vmax.xlane.f32.xlu0 %v2922_v7  ;;  %v7240_v7 = vld [vmem:[#allocation73_spill] sm:$0xff] }
 0x2e8   : > { %v1026_v38 = vsub.f32 %v7240_v7, %v5909_v1 }
 0x2ea   : > { %v1085_v34 = vmul.f32 1.442695, %v1026_v38 }
 0x2ec   : > { %4504 = vpow2.f32 %v1085_v34 }
 0x2fd   : > { %3064 = vrot.lane.b32.xlu0 %v4825_v15, %s4852_s29  ;;  %2920 = vmax.xlane.f32.xlu1 %v2919_v59  ;;  %v1659_v59 = vsub.f32 %v7242_v2, %v5917_v47  ;;  %v7243_v47 = vld [vmem:[#allocation78_spill] sm:$0xff]  ;;  %v7244_v2 = vld [vmem:[#allocation79_spill] sm:$0xff] }
 0x2fe   : > { %v1027_v7 = vsub.f32 %v7243_v47, %v5927_v62 }
 0x300   : > { %v1087_v34 = vmul.f32 1.442695, %v1027_v7  ;;  %v2196_v7 = vmax.f32 %v2132_v10, %v2164_v45 }
 0x301   : > { %2401 = vrot.lane.b32.xlu0 %v4826_v52, %s4851_s28 }
 0x302   : > { %v5984_v9 = vpop.xlane.xlu0 %2917 }
 0x305   : > { %3066 = vrot.lane.b32.xlu0 %v4826_v52, %s4852_s29  ;;  %v1714_v52 = vmul.f32 1.442695, %v1658_v55  ;;  %v1716_v55 = vmul.f32 1.442695, %v1659_v59 }
 0x306   : > { %v3061_v54 = vpop.permute.xlu0 %3060 }
 0x307   : > { %v3093_v15 = vsel %vm1095_vm0, %v3061_v54, 1065369472  ;;  %v4827_v54 = vld [vmem:[%s6882_s0 + $0x48] sm:$0xff]   ;;  %4506 = vpow2.f32 %v1714_v52 }
 0x308   : > { %4187 = vmatpush3.bf16.msra.mxu1 %v3093_v15 }
 0x30e   : > { %2413 = vrot.lane.b32.xlu1 %v4827_v54, %s4851_s28 }
 0x30f   : > { %v989_v63 = vpop.xlane.xlu1 %988 }
 0x310   : > { %v1023_v1 = vsub.f32 %v5819_v48, %v989_v63  ;;  %v1024_v15 = vsub.f32 %v5822_v46, %v989_v63  ;;  %v1028_v48 = vsub.f32 %v7244_v2, %v5927_v62  ;;  %v2163_v63 = vmul.f32 0.2, %v2131_v36  ;;  %v7246_v62 = vld [vmem:[#allocation81_spill] sm:$0xff] }
 0x312   : > { %v1079_v38 = vmul.f32 1.442695, %v1023_v1  ;;  %v1081_v58 = vmul.f32 1.442695, %v1024_v15  ;;  %3078 = vrot.lane.b32.xlu1 %v4827_v54, %s4852_s29  ;;  %v7245_v1 = vld [vmem:[#allocation80_spill] sm:$0xff]  ;;  %v2195_v54 = vmax.f32 %v2131_v36, %v2163_v63 }
 0x313   : > { %v1627_v43 = vpop.xlane.xlu1 %1626  ;;  %v1662_v15 = vsub.f32 %v7245_v1, %v5935_v56  ;;  %v1089_v47 = vmul.f32 1.442695, %v1028_v48  ;;  %v4503_v48 = vpop.eup %4502 }
 0x314   : > { %4508 = vpow2.f32 %v1079_v38  ;;  %v1660_v46 = vsub.f32 %v5838_v37, %v1627_v43  ;;  %v1661_v6 = vsub.f32 %v5841_v17, %v1627_v43  ;;  %v1663_v38 = vsub.f32 %v7246_v62, %v5935_v56  ;;  %v6024_v37 = vld [vmem:[%s6882_s0 + $0x50] sm:$0xff]   ;;  %v4505_v1 = vpop.eup %4504 }
 0x315   : > { %4510 = vpow2.f32 %v1081_v58  ;;  %v1722_v58 = vmul.f32 1.442695, %v1662_v15 }
 0x316   : > { %v1718_v52 = vmul.f32 1.442695, %v1660_v46  ;;  %v1720_v59 = vmul.f32 1.442695, %v1661_v6  ;;  %4512 = vpow2.f32 %v1716_v55  ;;  %2415 = vrot.lane.b32.xlu1 %v6024_v37, %s4851_s28  ;;  %v1724_v46 = vmul.f32 1.442695, %v1663_v38 }
 0x317   : > { %v998_v2 = vpop.xlane.xlu1 %997 }
 0x318   : > { %4514 = vpow2.f32 %v1718_v52  ;;  %v1029_v17 = vsub.f32 %v5844_v20, %v998_v2  ;;  %v1030_v43 = vsub.f32 %v5849_v61, %v998_v2  ;;  %v4507_v20 = vpop.eup %4506  ;;  %v7247_v61 = vld [vmem:[#allocation57_spill] sm:$0xff] }
 0x319   : > { %4516 = vpow2.f32 %v1720_v59  ;;  %v6033_v36 = vadd.f32 %v2195_v54, %v7247_v61 }
 0x31a   : > { %4518 = vpow2.f32 %v1087_v34  ;;  %v1091_v56 = vmul.f32 1.442695, %v1029_v17  ;;  %v1093_v55 = vmul.f32 1.442695, %v1030_v43  ;;  %v7249_v34 = vld [vmem:[#allocation58_spill] sm:$0xff] }
 0x31b   : > { %4520 = vpow2.f32 %v1089_v47  ;;  %v1633_v6 = vpop.xlane.xlu1 %1632  ;;  %7248 = vst [vmem:[#allocation4_spill] sm:$0xff] %v6033_v36  ;;  %v6036_v15 = vadd.f32 %v2196_v7, %v7249_v34 }
 0x31c   : > { %4522 = vpow2.f32 %v1091_v56  ;;  %v1664_v52 = vsub.f32 %v5854_v24, %v1633_v6  ;;  %v1665_v62 = vsub.f32 %v5857_v0, %v1633_v6 }
 0x31d   : > { %4524 = vpow2.f32 %v1093_v55  ;;  %7250 = vst [vmem:[#allocation27_spill] sm:$0xff] %v6036_v15  ;;  %v2263_v2 = vmax.f32 %v6033_v36, %v6036_v15 }
 0x31e   : > { %v4509_v10 = vpop.eup %4508  ;;  %4526 = vpow2.f32 %v1722_v58  ;;  %v1726_v63 = vmul.f32 1.442695, %v1664_v52  ;;  %v1728_v45 = vmul.f32 1.442695, %v1665_v62 }
 0x31f   : > { %v4511_v59 = vpop.eup %4510  ;;  %4528 = vpow2.f32 %v1724_v46  ;;  %v1157_v47 = vpack.c.bf16 %v4503_v48, %v4509_v10 }
 0x320   : > { %4530 = vpow2.f32 %v1726_v63  ;;  %v1158_v38 = vpack.c.bf16 %v4505_v1, %v4511_v59  ;;  %v4513_v24 = vpop.eup %4512 }
 0x321   : > { %4532 = vpow2.f32 %v1728_v45 }
 0x322   : > { %v4515_v0 = vpop.eup %4514  ;;  %1241 = vmatprep.mubr.bf16.mxu0 %v1158_v38  ;;  %v2130_v38 = vadd.f32 %v7217_v18, %v5943_v5 }
 0x323   : > { %v4517_v17 = vpop.eup %4516  ;;  %1242 = vmatmul.mubr.bf16.gmra.mrb[40].mxu0 %v1157_v47  ;;  %v1822_v43 = vpack.c.bf16 %v4515_v0, %v4507_v20  ;;  %v4010_v58 = vpop.f32.mrb[16].mxu0  ;;  %v2129_v47 = vadd.f32 %v7216_v8, %v5943_v5 }
 0x324   : > { %v4519_v54 = vpop.eup %4518  ;;  %2264 = vmax.xlane.f32.xlu0 %v2263_v2  ;;  %v1823_v7 = vpack.c.bf16 %v4517_v17, %v4513_v24  ;;  %v4011_v55 = vpop.f32.mrb[17].mxu0 }
 0x325   : > { %v4521_v56 = vpop.eup %4520  ;;  %v6040_v48 = vadd.f32 %v4011_v55, %v4010_v58  ;;  %v4013_v6 = vpop.f32.mrb[18].mxu0  ;;  %v2162_v58 = vmul.f32 0.2, %v2130_v38 }
 0x326   : > { %v4523_v46 = vpop.eup %4522  ;;  %1906 = vmatprep.mubr.bf16.mxu1 %v1823_v7  ;;  %v4014_v52 = vpop.f32.mrb[19].mxu0 }
 0x327   : > { %7251 = vst [vmem:[#allocation36_spill] sm:$0xff] %v6040_v48  ;;  %v4525_v1 = vpop.eup %4524  ;;  %1907 = vmatmul.mubr.bf16.gmra.mrb[28].mxu1 %v1822_v43  ;;  %v1159_v62 = vpack.c.bf16 %v4523_v46, %v4519_v54  ;;  %v6042_v63 = vadd.f32 %v4014_v52, %v4013_v6  ;;  %v2161_v54 = vmul.f32 0.2, %v2129_v47 }
 0x328   : > { %v4527_v10 = vpop.eup %4526  ;;  %v1160_v45 = vpack.c.bf16 %v4525_v1, %v4521_v56 }
 0x329   : > { %v4529_v20 = vpop.eup %4528 }
 0x32a   : > { %v4531_v59 = vpop.eup %4530  ;;  %1249 = vmatprep.mubr.bf16.mxu0 %v1160_v45 }
 0x32b   : > { %v4533_v24 = vpop.eup %4532  ;;  %1250 = vmatmul.mubr.bf16.gmra.mrb[44].mxu0 %v1159_v62  ;;  %v1824_v0 = vpack.c.bf16 %v4531_v59, %v4527_v10  ;;  %v4016_v2 = vpop.f32.mrb[20].mxu0  ;;  %v2193_v62 = vmax.f32 %v2129_v47, %v2161_v54  ;;  %v2194_v10 = vmax.f32 %v2130_v38, %v2162_v58  ;;  %v7254_v59 = vld [vmem:[#allocation24_spill] sm:$0xff]  ;;  %v6067_v47 = vld [vmem:[%s6882_s0 + $0x20] sm:$0xff]  }
 0x32c   : > { %v1825_v17 = vpack.c.bf16 %v4533_v24, %v4529_v20  ;;  %v4017_v43 = vpop.f32.mrb[21].mxu0 }
 0x32d   : > { %v6048_v7 = vadd.f32 %v4017_v43, %v4016_v2  ;;  %v4019_v56 = vpop.f32.mrb[22].mxu0  ;;  %v6057_v24 = vadd.f32 %v2193_v62, %v7254_v59  ;;  %v7256_v2 = vld [vmem:[#allocation25_spill] sm:$0xff] }
 0x32e   : > { %1914 = vmatprep.mubr.bf16.mxu1 %v1825_v17  ;;  %v4020_v55 = vpop.f32.mrb[23].mxu0  ;;  %v6060_v43 = vadd.f32 %v2194_v10, %v7256_v2 }
 0x32f   : > { %7252 = vst [vmem:[#allocation9_spill] sm:$0xff] %v6048_v7  ;;  %v4074_v46 = vpop.f32.mrb[4].mxu1  ;;  %1915 = vmatmul.mubr.bf16.gmra.mrb[32].mxu1 %v1824_v0  ;;  %v6050_v6 = vadd.f32 %v4020_v55, %v4019_v56  ;;  %7255 = vst [vmem:[#allocation52_spill] sm:$0xff] %v6057_v24 }
 0x330   : > { %v4075_v1 = vpop.f32.mrb[5].mxu1  ;;  %7257 = vst [vmem:[#allocation8_spill] sm:$0xff] %v6060_v43  ;;  %v2260_v38 = vmax.f32 %v6057_v24, %v6060_v43 }
 0x331   : > { %7253 = vst [vmem:[#allocation49_spill] sm:$0xff] %v6050_v6  ;;  %v6052_v5 = vadd.f32 %v4075_v1, %v4074_v46  ;;  %v4077_v52 = vpop.f32.mrb[6].mxu1 }
 0x332   : > { %v4078_v45 = vpop.f32.mrb[7].mxu1 }
 0x333   : > { %v6054_v20 = vadd.f32 %v4078_v45, %v4077_v52 }
 0x337   : > { %v4080_v17 = vpop.f32.mrb[8].mxu1 }
 0x338   : > { %v4081_v36 = vpop.f32.mrb[9].mxu1 }
 0x339   : > { %v6062_v0 = vadd.f32 %v4081_v36, %v4080_v17  ;;  %v4083_v56 = vpop.f32.mrb[10].mxu1 }
 0x33a   : > { %v4084_v55 = vpop.f32.mrb[11].mxu1  ;;  %2403 = vrot.lane.b32.xlu0 %v6067_v47, %s4851_s28  ;;  %2261 = vmax.xlane.f32.xlu1 %v2260_v38 }
 0x33b   : > { %v6073_v54 = vadd.f32 %v4084_v55, %v4083_v56  ;;  %v4022_v58 = vpop.f32.mrb[24].mxu0  ;;  %v2797_v56 = vadd.f32 %v7211_v29, %v7262_v26 }
 0x33c   : > { %v4023_v46 = vpop.f32.mrb[25].mxu0 }
 0x33d   : > { %7258 = vst [vmem:[#allocation42_spill] sm:$0xff] %v6073_v54  ;;  %v6075_v36 = vadd.f32 %v4023_v46, %v4022_v58  ;;  %v4025_v1 = vpop.f32.mrb[26].mxu0 }
 0x33e   : > { %v4026_v52 = vpop.f32.mrb[27].mxu0 }
 0x33f   : > { %7259 = vst [vmem:[#allocation13_spill] sm:$0xff] %v6075_v36  ;;  %v6077_v62 = vadd.f32 %v4026_v52, %v4025_v1  ;;  %v2829_v36 = vmul.f32 0.2, %v2797_v56 }
 0x341   : > { %7260 = vst [vmem:[#allocation12_spill] sm:$0xff] %v6077_v62  ;;  %v2828_v62 = vmul.f32 0.2, %v2796_v41 }
 0x343   : > { %v4028_v10 = vpop.f32.mrb[28].mxu0 }
 0x344   : > { %v4029_v45 = vpop.f32.mrb[29].mxu0 }
 0x345   : > { %v6079_v17 = vadd.f32 %v4029_v45, %v4028_v10  ;;  %v4031_v15 = vpop.f32.mrb[30].mxu0  ;;  %v2860_v45 = vmax.f32 %v2796_v41, %v2828_v62 }
 0x346   : > { %v4032_v55 = vpop.f32.mrb[31].mxu0 }
 0x347   : > { %7261 = vst [vmem:[#allocation41_spill] sm:$0xff] %v6079_v17  ;;  %v4086_v38 = vpop.f32.mrb[12].mxu1  ;;  %v6085_v24 = vadd.f32 %v4032_v55, %v4031_v15  ;;  %v2861_v17 = vmax.f32 %v2797_v56, %v2829_v36 }
 0x348   : > { %v4087_v58 = vpop.f32.mrb[13].mxu1 }
 0x349   : > { %7263 = vst [vmem:[#allocation14_spill] sm:$0xff] %v6085_v24  ;;  %v6087_v46 = vadd.f32 %v4087_v58, %v4086_v38  ;;  %v4089_v1 = vpop.f32.mrb[14].mxu1  ;;  %v6105_v41 = vadd.f32 %v2861_v17, %v7249_v34  ;;  %v7274_v17 = vld [vmem:[#allocation26_spill] sm:$0xff] }
 0x34a   : > { %v4090_v52 = vpop.f32.mrb[15].mxu1 }
 0x34b   : > { %7264 = vst [vmem:[#allocation23_spill] sm:$0xff] %v6087_v46  ;;  %v6089_v10 = vadd.f32 %v4090_v52, %v4089_v1  ;;  %3080 = vrot.lane.b32.xlu1 %v6024_v37, %s4852_s29  ;;  %v6102_v37 = vadd.f32 %v2860_v45, %v7247_v61  ;;  %7271 = vst [vmem:[#allocation18_spill] sm:$0xff] %v6105_v41 }
 0x34d   : > { %7265 = vst [vmem:[#allocation19_spill] sm:$0xff] %v6089_v10  ;;  %7270 = vst [vmem:[#allocation71_spill] sm:$0xff] %v6102_v37  ;;  %v7290_v10 = vld [vmem:[#allocation51_spill] sm:$0xff] }
 0x34f   : > { %v4092_v39 = vpop.f32.mrb[16].mxu1 }
 0x350   : > { %v4034_v26 = vpop.f32.mrb[32].mxu0  ;;  %v4093_v49 = vpop.f32.mrb[17].mxu1 }
 0x351   : > { %v4035_v43 = vpop.f32.mrb[33].mxu0  ;;  %v6093_v15 = vadd.f32 %v4093_v49, %v4092_v39  ;;  %v4095_v55 = vpop.f32.mrb[18].mxu1 }
 0x352   : > { %v6095_v38 = vadd.f32 %v4035_v43, %v4034_v26  ;;  %v4037_v58 = vpop.f32.mrb[34].mxu0  ;;  %v4096_v24 = vpop.f32.mrb[19].mxu1  ;;  %v2928_v43 = vmax.f32 %v6102_v37, %v6105_v41 }
 0x353   : > { %7266 = vst [vmem:[#allocation21_spill] sm:$0xff] %v6093_v15  ;;  %v4038_v46 = vpop.f32.mrb[35].mxu0  ;;  %v6097_v27 = vadd.f32 %v4096_v24, %v4095_v55  ;;  %v6099_v1 = vpop.xlane.xlu1 %2252 }
 0x354   : > { %7267 = vst [vmem:[#allocation39_spill] sm:$0xff] %v6095_v38  ;;  %7269 = vst [vmem:[#allocation70_spill] sm:$0xff] %v6099_v1  ;;  %v6107_v36 = vadd.f32 %v4038_v46, %v4037_v58  ;;  %v2300_v39 = vsub.f32 %v5915_v21, %v6099_v1  ;;  %v2794_v21 = vadd.f32 %v7210_v33, %v7274_v17 }
 0x355   : > { %7268 = vst [vmem:[#allocation40_spill] sm:$0xff] %v6097_v27  ;;  %v2795_v46 = vadd.f32 %v7211_v29, %v7274_v17  ;;  %v7288_v27 = vld [vmem:[#allocation46_spill] sm:$0xff] }
 0x356   : > { %7272 = vst [vmem:[#allocation20_spill] sm:$0xff] %v6107_v36  ;;  %v2333_v24 = vmul.f32 1.442695, %v2300_v39 }
 0x357   : > { %v6111_v49 = vpop.xlane.xlu1 %2255  ;;  %v2827_v58 = vmul.f32 0.2, %v2795_v46 }
 0x358   : > { %7273 = vst [vmem:[#allocation67_spill] sm:$0xff] %v6111_v49  ;;  %v2302_v62 = vsub.f32 %v5925_v14, %v6111_v49  ;;  %4534 = vpow2.f32 %v2333_v24  ;;  %v2826_v14 = vmul.f32 0.2, %v2794_v21 }
 0x359   : > { %2929 = vmax.xlane.f32.xlu0 %v2928_v43 }
 0x35a   : > { %v2337_v61 = vmul.f32 1.442695, %v2302_v62 }
 0x35b   : > { %v2396_v56 = vpop.permute.xlu1 %2395 }
 0x35c   : > { %v2428_v34 = vsel %vm1095_vm0, %v2396_v56, 1065369472  ;;  %4536 = vpow2.f32 %v2337_v61  ;;  %v2858_v61 = vmax.f32 %v2794_v21, %v2826_v14  ;;  %v2859_v56 = vmax.f32 %v2795_v46, %v2827_v58  ;;  %v4830_v21 = vld [vmem:[%s6882_s0 + $0x28] sm:$0xff]   ;;  %v2398_v46 = vpop.permute.xlu0 %2397  ;;  %v6155_v58 = vld [vmem:[%s6882_s0 + $0x60] sm:$0xff]  }
 0x35d   : > { %4123 = vmatpush3.bf16.msra.mxu0 %v2428_v34  ;;  %v2965_v14 = vsub.f32 %v5802_v44, %v5984_v9  ;;  %v7280_v44 = vld [vmem:[#allocation47_spill] sm:$0xff] }
 0x35e   : > { %v6127_v36 = vadd.f32 %v2858_v61, %v7254_v59  ;;  %v6130_v17 = vadd.f32 %v2859_v56, %v7256_v2  ;;  %v4831_v59 = vld [vmem:[%s6882_s0 + $0x58] sm:$0xff]   ;;  %v2135_v2 = vadd.f32 %v7216_v8, %v5877_v57 }
 0x35f   : > { %v4098_v52 = vpop.f32.mrb[20].mxu1 }
 0x360   : > { %v4099_v45 = vpop.f32.mrb[21].mxu1  ;;  %7277 = vst [vmem:[#allocation34_spill] sm:$0xff] %v6127_v36  ;;  %7278 = vst [vmem:[#allocation7_spill] sm:$0xff] %v6130_v17  ;;  %v3063_v61 = vpop.permute.xlu0 %3062 }
 0x361   : > { %v6122_v26 = vadd.f32 %v4099_v45, %v4098_v52  ;;  %v4101_v55 = vpop.f32.mrb[22].mxu1  ;;  %v2925_v52 = vmax.f32 %v6127_v36, %v6130_v17  ;;  %v2167_v45 = vmul.f32 0.2, %v2135_v2 }
 0x362   : > { %v4102_v39 = vpop.f32.mrb[23].mxu1  ;;  %v4535_v24 = vpop.eup %4534 }
 0x363   : > { %7275 = vst [vmem:[#allocation68_spill] sm:$0xff] %v6122_v26  ;;  %v6124_v43 = vadd.f32 %v4102_v39, %v4101_v55  ;;  %v2199_v39 = vmax.f32 %v2135_v2, %v2167_v45  ;;  %v2431_v2 = vsel %vm1095_vm0, %v2398_v46, 1065369472 }
 0x365   : > { %7276 = vst [vmem:[#allocation33_spill] sm:$0xff] %v6124_v43 }
 0x366   : > { %v4537_v62 = vpop.eup %4536 }
 0x367   : > { %v2476_v34 = vpack.c.bf16 %v4537_v62, %v4535_v24 }
 0x369   : > { %2523 = vmatprep.mubr.bf16.mxu0 %v2476_v34 }
 0x36f   : > { %3068 = vrot.lane.b32.xlu0 %v6067_v47, %s4852_s29  ;;  %2926 = vmax.xlane.f32.xlu1 %v2925_v52  ;;  %v2136_v47 = vadd.f32 %v7217_v18, %v5877_v57  ;;  %v2998_v57 = vmul.f32 1.442695, %v2965_v14 }
 0x371   : > { %v2168_v55 = vmul.f32 0.2, %v2136_v47  ;;  %4538 = vpow2.f32 %v2998_v57 }
 0x373   : > { %2405 = vrot.lane.b32.xlu0 %v4830_v21, %s4851_s28  ;;  %v2200_v24 = vmax.f32 %v2136_v47, %v2168_v55  ;;  %v6171_v47 = vpop.xlane.xlu0 %2258 }
 0x374   : > { %7283 = vst [vmem:[#allocation10_spill] sm:$0xff] %v6171_v47 }
 0x377   : > { %3070 = vrot.lane.b32.xlu0 %v4830_v21, %s4852_s29  ;;  %v6164_v21 = vadd.f32 %v2199_v39, %v7280_v44  ;;  %v3096_v39 = vsel %vm1095_vm0, %v3063_v61, 1065369472  ;;  %v2400_v57 = vpop.permute.xlu0 %2399 }
 0x380   : > { %2417 = vrot.lane.b32.xlu1 %v4831_v59, %s4851_s28 }
 0x384   : > { %3082 = vrot.lane.b32.xlu1 %v4831_v59, %s4852_s29  ;;  %v7281_v59 = vld [vmem:[#allocation48_spill] sm:$0xff] }
 0x385   : > { %v6167_v43 = vadd.f32 %v2200_v24, %v7281_v59 }
 0x387   : > { %7282 = vst [vmem:[#allocation11_spill] sm:$0xff] %v6167_v43 }
 0x388   : > { %2419 = vrot.lane.b32.xlu1 %v6155_v58, %s4851_s28 }
 0x38a   : > { %v6159_v62 = vpop.xlane.xlu1 %2920 }
 0x38b   : > { %7279 = vst [vmem:[#allocation6_spill] sm:$0xff] %v6159_v62  ;;  %v2967_v56 = vsub.f32 %v5973_v3, %v6159_v62  ;;  %v2269_v3 = vmax.f32 %v6164_v21, %v6167_v43  ;;  %v7310_v62 = vld [vmem:[#allocation64_spill] sm:$0xff] }
 0x38d   : > { %v3002_v34 = vmul.f32 1.442695, %v2967_v56 }
 0x38e   : > { %v2414_v52 = vpop.permute.xlu1 %2413 }
 0x38f   : > { %v2455_v26 = vsel %vm1095_vm0, %v2414_v52, 1065369472  ;;  %4540 = vpow2.f32 %v3002_v34 }
 0x390   : > { %4124 = vmatprep.subr.bf16.mxu0 %v2455_v26  ;;  %v2434_v26 = vsel %vm1095_vm0, %v2400_v57, 1065369472  ;;  %4542 = vrcp.f32 %v6040_v48 }
 0x391   : > { %4125 = vmatpush3.bf16.msra.mxu0 %v2431_v2  ;;  %4544 = vrcp.f32 %v6042_v63 }
 0x392   : > { %v3079_v45 = vpop.permute.xlu1 %3078 }
 0x393   : > { %v3120_v14 = vsel %vm1095_vm0, %v3079_v45, 1065369472  ;;  %v4539_v45 = vpop.eup %4538 }
 0x394   : > { %4188 = vmatprep.subr.bf16.mxu1 %v3120_v14 }
 0x395   : > { %v4040_v55 = vpop.f32.mrb[36].mxu0  ;;  %4189 = vmatpush3.bf16.msra.mxu1 %v3096_v39 }
 0x396   : > { %v4041_v24 = vpop.f32.mrb[37].mxu0  ;;  %2270 = vmax.xlane.f32.xlu0 %v2269_v3  ;;  %v2416_v52 = vpop.permute.xlu1 %2415  ;;  %v2133_v3 = vadd.f32 %v7216_v8, %v5947_v28 }
 0x397   : > { %v6177_v56 = vadd.f32 %v4041_v24, %v4040_v55  ;;  %v4043_v46 = vpop.f32.mrb[38].mxu0  ;;  %v2458_v38 = vsel %vm1095_vm0, %v2416_v52, 1065369472  ;;  %v2134_v55 = vadd.f32 %v7217_v18, %v5947_v28  ;;  %v4833_v28 = vld [vmem:[%s6882_s0 + $0x30] sm:$0xff]  }
 0x398   : > { %v4044_v34 = vpop.f32.mrb[39].mxu0  ;;  %4126 = vmatprep.subr.bf16.mxu0 %v2458_v38  ;;  %v2165_v57 = vmul.f32 0.2, %v2133_v3 }
 0x399   : > { %7284 = vst [vmem:[#allocation54_spill] sm:$0xff] %v6177_v56  ;;  %v6180_v2 = vadd.f32 %v4044_v34, %v4043_v46  ;;  %4127 = vmatpush3.bf16.msra.mxu0 %v2434_v26  ;;  %v4541_v61 = vpop.eup %4540  ;;  %v2166_v56 = vmul.f32 0.2, %v2134_v55 }
 0x39a   : > { %v3141_v14 = vpack.c.bf16 %v4541_v61, %v4539_v45  ;;  %v2197_v26 = vmax.f32 %v2133_v3, %v2165_v57  ;;  %v4853_v61 = vmov 32  }
 0x39b   : > { %7285 = vst [vmem:[#allocation16_spill] sm:$0xff] %v6180_v2  ;;  %v2198_v2 = vmax.f32 %v2134_v55, %v2166_v56  ;;  %4370 = vset.pattern.permute.xlu0 %v4853_v61  ;;  %4371 = vset.pattern.permute.xlu1 %v4853_v61  ;;  %v7292_v56 = vld [vmem:[#allocation38_spill] sm:$0xff] }
 0x39c   : > { %3188 = vmatprep.mubr.bf16.mxu1 %v3141_v14  ;;  %v6192_v15 = vadd.f32 %v2197_v26, %v7288_v27  ;;  %v2800_v3 = vadd.f32 %v7210_v33, %v7292_v56 }
 0x39d   : > { %v6195_v37 = vadd.f32 %v2198_v2, %v7290_v10  ;;  %v2801_v2 = vadd.f32 %v7211_v29, %v7292_v56 }
 0x39e   : > { %v4104_v39 = vpop.f32.mrb[24].mxu1  ;;  %7289 = vst [vmem:[#allocation22_spill] sm:$0xff] %v6192_v15  ;;  %v2832_v55 = vmul.f32 0.2, %v2800_v3 }
 0x39f   : > { %v4105_v24 = vpop.f32.mrb[25].mxu1  ;;  %7291 = vst [vmem:[#allocation35_spill] sm:$0xff] %v6195_v37  ;;  %v2266_v45 = vmax.f32 %v6192_v15, %v6195_v37  ;;  %v2833_v14 = vmul.f32 0.2, %v2801_v2 }
 0x3a0   : > { %v6187_v46 = vadd.f32 %v4105_v24, %v4104_v39  ;;  %v4107_v34 = vpop.f32.mrb[26].mxu1  ;;  %v2864_v39 = vmax.f32 %v2800_v3, %v2832_v55 }
 0x3a1   : > { %v4108_v52 = vpop.f32.mrb[27].mxu1  ;;  %v2865_v24 = vmax.f32 %v2801_v2, %v2833_v14 }
 0x3a2   : > { %7286 = vst [vmem:[#allocation29_spill] sm:$0xff] %v6187_v46  ;;  %v6189_v38 = vadd.f32 %v4108_v52, %v4107_v34  ;;  %v6210_v57 = vadd.f32 %v2864_v39, %v7280_v44  ;;  %v6215_v52 = vpop.xlane.xlu0 %2923  ;;  %v7297_v44 = vld [vmem:[#allocation60_spill] sm:$0xff] }
 0x3a3   : > { %v6213_v34 = vadd.f32 %v2865_v24, %v7281_v59  ;;  %7295 = vst [vmem:[#allocation76_spill] sm:$0xff] %v6215_v52  ;;  %v2798_v59 = vadd.f32 %v7210_v33, %v7297_v44  ;;  %v2799_v2 = vadd.f32 %v7211_v29, %v7297_v44 }
 0x3a4   : > { %7287 = vst [vmem:[#allocation30_spill] sm:$0xff] %v6189_v38  ;;  %7293 = vst [vmem:[#allocation72_spill] sm:$0xff] %v6210_v57 }
 0x3a5   : > { %7294 = vst [vmem:[#allocation73_spill] sm:$0xff] %v6213_v34  ;;  %v2830_v55 = vmul.f32 0.2, %v2798_v59  ;;  %v2831_v14 = vmul.f32 0.2, %v2799_v2 }
 0x3a6   : > { %v3065_v61 = vpop.permute.xlu0 %3064 }
 0x3a7   : > { %v3099_v56 = vsel %vm1095_vm0, %v3065_v61, 1065369472  ;;  %v2862_v39 = vmax.f32 %v2798_v59, %v2830_v55  ;;  %v2863_v24 = vmax.f32 %v2799_v2, %v2831_v14  ;;  %v7301_v55 = vld [vmem:[#allocation59_spill] sm:$0xff] }
 0x3a8   : > { %v2804_v14 = vadd.f32 %v7210_v33, %v7301_v55 }
 0x3a9   : > { %v6231_v61 = vadd.f32 %v2863_v24, %v7290_v10  ;;  %v2141_v10 = vadd.f32 %v7216_v8, %v5963_v50 }
 0x3aa   : > { %v2402_v24 = vpop.permute.xlu0 %2401 }
 0x3ab   : > { %7299 = vst [vmem:[#allocation79_spill] sm:$0xff] %v6231_v61 }
 0x3ac   : > { %2407 = vrot.lane.b32.xlu0 %v4833_v28, %s4851_s28  ;;  %2267 = vmax.xlane.f32.xlu1 %v2266_v45  ;;  %v2934_v45 = vmax.f32 %v6210_v57, %v6213_v34  ;;  %v2143_v34 = vadd.f32 %v7216_v8, %v5891_v11 }
 0x3bd   : > { %3084 = vrot.lane.b32.xlu1 %v6155_v58, %s4852_s29 }
 0x3c7   : > { %v6217_v26 = vpop.xlane.xlu1 %2261 }
 0x3c8   : > { %7296 = vst [vmem:[#allocation77_spill] sm:$0xff] %v6217_v26 }
 0x3cb   : > { %2935 = vmax.xlane.f32.xlu0 %v2934_v45  ;;  %v3081_v58 = vpop.permute.xlu1 %3080  ;;  %v6228_v45 = vadd.f32 %v2862_v39, %v7288_v27  ;;  %v4835_v27 = vld [vmem:[%s6882_s0 + $0x68] sm:$0xff]   ;;  %v2805_v39 = vadd.f32 %v7211_v29, %v7301_v55  ;;  %v2836_v55 = vmul.f32 0.2, %v2804_v14 }
 0x3cc   : > { %v3123_v3 = vsel %vm1095_vm0, %v3081_v58, 1065369472  ;;  %v4834_v58 = vld [vmem:[%s6882_s0 + $0x38] sm:$0xff]  }
 0x3cd   : > { %4190 = vmatprep.subr.bf16.mxu1 %v3123_v3  ;;  %7298 = vst [vmem:[#allocation78_spill] sm:$0xff] %v6228_v45  ;;  %v2868_v17 = vmax.f32 %v2804_v14, %v2836_v55 }
 0x3ce   : > { %4191 = vmatpush3.bf16.msra.mxu1 %v3099_v56  ;;  %v2931_v56 = vmax.f32 %v6228_v45, %v6231_v61  ;;  %v7306_v61 = vld [vmem:[#allocation56_spill] sm:$0xff] }
 0x3cf   : > { %v2809_v36 = vadd.f32 %v7211_v29, %v7306_v61 }
 0x3e1   : > { %3072 = vrot.lane.b32.xlu0 %v4833_v28, %s4852_s29  ;;  %2932 = vmax.xlane.f32.xlu1 %v2931_v56  ;;  %v2142_v28 = vadd.f32 %v7217_v18, %v5963_v50 }
 0x3e3   : > { %v2174_v38 = vmul.f32 0.2, %v2142_v28 }
 0x3e5   : > { %2409 = vrot.lane.b32.xlu0 %v4834_v58, %s4851_s28  ;;  %v2206_v45 = vmax.f32 %v2142_v28, %v2174_v38 }
 0x3e7   : > { %v6287_v47 = vadd.f32 %v2206_v45, %v7310_v62 }
 0x3e9   : > { %3074 = vrot.lane.b32.xlu0 %v4834_v58, %s4852_s29  ;;  %v2173_v58 = vmul.f32 0.2, %v2141_v10 }
 0x3f2   : > { %2421 = vrot.lane.b32.xlu1 %v4835_v27, %s4851_s28 }
 0x3f6   : > { %v4046_v3 = vpop.f32.mrb[40].mxu0  ;;  %3086 = vrot.lane.b32.xlu1 %v4835_v27, %s4852_s29  ;;  %v6261_v27 = vld [vmem:[%s6882_s0 + $0x70] sm:$0xff]  }
 0x3f7   : > { %v4047_v44 = vpop.f32.mrb[41].mxu0 }
 0x3f8   : > { %v6250_v59 = vadd.f32 %v4047_v44, %v4046_v3  ;;  %v4049_v2 = vpop.f32.mrb[42].mxu0 }
 0x3f9   : > { %v4050_v56 = vpop.f32.mrb[43].mxu0 }
 0x3fa   : > { %7300 = vst [vmem:[#allocation80_spill] sm:$0xff] %v6250_v59  ;;  %v6256_v46 = vadd.f32 %v4050_v56, %v4049_v2  ;;  %v4110_v50 = vpop.f32.mrb[28].mxu1  ;;  %2423 = vrot.lane.b32.xlu1 %v6261_v27, %s4851_s28  ;;  %v2837_v59 = vmul.f32 0.2, %v2805_v39  ;;  %v2144_v56 = vadd.f32 %v7217_v18, %v5891_v11 }
 0x3fb   : > { %v4111_v57 = vpop.f32.mrb[29].mxu1 }
 0x3fc   : > { %7302 = vst [vmem:[#allocation81_spill] sm:$0xff] %v6256_v46  ;;  %v6265_v3 = vadd.f32 %v4111_v57, %v4110_v50  ;;  %v4113_v44 = vpop.f32.mrb[30].mxu1  ;;  %v2205_v46 = vmax.f32 %v2141_v10, %v2173_v58  ;;  %v6273_v15 = vpop.xlane.xlu1 %2926  ;;  %v2808_v57 = vadd.f32 %v7210_v33, %v7306_v61  ;;  %v2869_v11 = vmax.f32 %v2805_v39, %v2837_v59 }
 0x3fd   : > { %v4114_v2 = vpop.f32.mrb[31].mxu1  ;;  %7305 = vst [vmem:[#allocation24_spill] sm:$0xff] %v6273_v15  ;;  %v3067_v50 = vpop.permute.xlu0 %3066  ;;  %v2175_v10 = vmul.f32 0.2, %v2143_v34  ;;  %v2176_v28 = vmul.f32 0.2, %v2144_v56  ;;  %v2147_v39 = vadd.f32 %v7216_v8, %v5897_v22 }
 0x3fe   : > { %7303 = vst [vmem:[#allocation57_spill] sm:$0xff] %v6265_v3  ;;  %v6271_v43 = vadd.f32 %v4114_v2, %v4113_v44  ;;  %v4052_v41 = vpop.f32.mrb[44].mxu0  ;;  %v2840_v1 = vmul.f32 0.2, %v2808_v57  ;;  %v2437_v59 = vsel %vm1095_vm0, %v2402_v24, 1065369472 }
 0x3ff   : > { %v4053_v3 = vpop.f32.mrb[45].mxu0  ;;  %v2207_v24 = vmax.f32 %v2143_v34, %v2175_v10  ;;  %v2179_v34 = vmul.f32 0.2, %v2147_v39 }
 0x400   : > { %7304 = vst [vmem:[#allocation58_spill] sm:$0xff] %v6271_v43  ;;  %v6279_v37 = vadd.f32 %v4053_v3, %v4052_v41  ;;  %v4055_v52 = vpop.f32.mrb[46].mxu0  ;;  %v2418_v44 = vpop.permute.xlu1 %2417  ;;  %v7309_v43 = vld [vmem:[#allocation63_spill] sm:$0xff]  ;;  %v2841_v3 = vmul.f32 0.2, %v2809_v36  ;;  %v2872_v26 = vmax.f32 %v2808_v57, %v2840_v1  ;;  %v7317_v57 = vld [vmem:[#allocation2_spill] sm:$0xff] }
 0x401   : > { %v4056_v38 = vpop.f32.mrb[47].mxu0  ;;  %v6284_v15 = vadd.f32 %v2205_v46, %v7309_v43  ;;  %v2461_v41 = vsel %vm1095_vm0, %v2418_v44, 1065369472  ;;  %v2148_v46 = vadd.f32 %v7217_v18, %v5897_v22  ;;  %v6297_v55 = vpop.xlane.xlu0 %2264  ;;  %v7314_v44 = vld [vmem:[#allocation62_spill] sm:$0xff] }
 0x402   : > { %7307 = vst [vmem:[#allocation25_spill] sm:$0xff] %v6279_v37  ;;  %v6281_v58 = vadd.f32 %v4056_v38, %v4055_v52  ;;  %v4116_v2 = vpop.f32.mrb[32].mxu1  ;;  %4128 = vmatprep.subr.bf16.mxu0 %v2461_v41  ;;  %7312 = vst [vmem:[#allocation47_spill] sm:$0xff] %v6297_v55  ;;  %v7313_v38 = vld [vmem:[#allocation61_spill] sm:$0xff]  ;;  %v6303_v37 = vadd.f32 %v2869_v11, %v7314_v44  ;;  %v2873_v55 = vmax.f32 %v2809_v36, %v2841_v3 }
 0x403   : > { %v4117_v61 = vpop.f32.mrb[33].mxu1  ;;  %4129 = vmatpush3.bf16.msra.mxu0 %v2437_v59  ;;  %v7316_v59 = vld [vmem:[#allocation15_spill] sm:$0xff]  ;;  %v3102_v11 = vsel %vm1095_vm0, %v3067_v50, 1065369472  ;;  %v6319_v3 = vadd.f32 %v2207_v24, %v7317_v57  ;;  %v2137_v24 = vadd.f32 %v7216_v8, %v5957_v25 }
 0x404   : > { %7308 = vst [vmem:[#allocation43_spill] sm:$0xff] %v6281_v58  ;;  %v6291_v14 = vadd.f32 %v4117_v61, %v4116_v2  ;;  %v4119_v52 = vpop.f32.mrb[34].mxu1  ;;  %v6300_v58 = vadd.f32 %v2868_v17, %v7313_v38  ;;  %v2208_v2 = vmax.f32 %v2144_v56, %v2176_v28  ;;  %v3083_v41 = vpop.permute.xlu1 %3082  ;;  %v2812_v49 = vadd.f32 %v7210_v33, %v7316_v59 }
 0x405   : > { %v4120_v45 = vpop.f32.mrb[35].mxu1  ;;  %v3126_v22 = vsel %vm1095_vm0, %v3083_v41, 1065369472  ;;  %v2813_v17 = vadd.f32 %v7211_v29, %v7316_v59  ;;  %v2180_v56 = vmul.f32 0.2, %v2148_v46  ;;  %v2404_v10 = vpop.permute.xlu0 %2403 }
 0x406   : > { %7311 = vst [vmem:[#allocation26_spill] sm:$0xff] %v6291_v14  ;;  %v6305_v61 = vadd.f32 %v4120_v45, %v4119_v52  ;;  %v2278_v14 = vmax.f32 %v6284_v15, %v6287_v47  ;;  %4192 = vmatprep.subr.bf16.mxu1 %v3126_v22  ;;  %v2440_v28 = vsel %vm1095_vm0, %v2404_v10, 1065369472  ;;  %v2940_v36 = vmax.f32 %v6300_v58, %v6303_v37  ;;  %v7318_v52 = vld [vmem:[#allocation17_spill] sm:$0xff] }
 0x407   : > { %4193 = vmatpush3.bf16.msra.mxu1 %v3102_v11  ;;  %v6322_v45 = vadd.f32 %v2208_v2, %v7318_v52  ;;  %v2844_v41 = vmul.f32 0.2, %v2812_v49  ;;  %v6326_v22 = vadd.f32 %v2872_v26, %v7317_v57  ;;  %v6329_v59 = vadd.f32 %v2873_v55, %v7318_v52 }
 0x408   : > { %7315 = vst [vmem:[#allocation48_spill] sm:$0xff] %v6305_v61  ;;  %2279 = vmax.xlane.f32.xlu0 %v2278_v14  ;;  %v2420_v1 = vpop.permute.xlu1 %2419  ;;  %v2845_v14 = vmul.f32 0.2, %v2813_v17  ;;  %v2211_v11 = vmax.f32 %v2147_v39, %v2179_v34  ;;  %v2212_v10 = vmax.f32 %v2148_v46, %v2180_v56  ;;  %v2138_v2 = vadd.f32 %v7217_v18, %v5957_v25 }
 0x409   : > { %v2464_v50 = vsel %vm1095_vm0, %v2420_v1, 1065369472  ;;  %7319 = vst [vmem:[#allocation46_spill] sm:$0xff] %v6326_v22  ;;  %7320 = vst [vmem:[#allocation51_spill] sm:$0xff] %v6329_v59  ;;  %v2151_v1 = vadd.f32 %v7216_v8, %v5978_v53  ;;  %v2281_v26 = vmax.f32 %v6319_v3, %v6322_v45  ;;  %v2876_v55 = vmax.f32 %v2812_v49, %v2844_v41 }
 0x40a   : > { %4130 = vmatprep.subr.bf16.mxu0 %v2464_v50  ;;  %v2877_v57 = vmax.f32 %v2813_v17, %v2845_v14  ;;  %v2946_v39 = vmax.f32 %v6326_v22, %v6329_v59  ;;  %v2169_v46 = vmul.f32 0.2, %v2137_v24  ;;  %v2170_v34 = vmul.f32 0.2, %v2138_v2 }
 0x40b   : > { %4131 = vmatpush3.bf16.msra.mxu0 %v2440_v28  ;;  %v6344_v25 = vadd.f32 %v2211_v11, %v5684_v13  ;;  %v6347_v56 = vadd.f32 %v2212_v10, %v5686_v31  ;;  %v2183_v28 = vmul.f32 0.2, %v2151_v1  ;;  %v2817_v49 = vadd.f32 %v7211_v29, %v5986_v19 }
 0x40c   : > { %2941 = vmax.xlane.f32.xlu0 %v2940_v36  ;;  %v2152_v36 = vadd.f32 %v7217_v18, %v5978_v53  ;;  %v2816_v53 = vadd.f32 %v7210_v33, %v5986_v19  ;;  %v6354_v17 = vadd.f32 %v2876_v55, %v5684_v13  ;;  %v2201_v50 = vmax.f32 %v2137_v24, %v2169_v46  ;;  %v7323_v13 = vld [vmem:[#allocation53_spill] sm:$0xff]  ;;  %v7324_v46 = vld [vmem:[#allocation74_spill] sm:$0xff] }
 0x40d   : > { %v2202_v41 = vmax.f32 %v2138_v2, %v2170_v34  ;;  %v2287_v14 = vmax.f32 %v6344_v25, %v6347_v56  ;;  %v6359_v11 = vadd.f32 %v2877_v57, %v5686_v31  ;;  %v2215_v10 = vmax.f32 %v2151_v1, %v2183_v28  ;;  %v7326_v31 = vld [vmem:[#allocation75_spill] sm:$0xff] }
 0x40e   : > { %v2184_v52 = vmul.f32 0.2, %v2152_v36  ;;  %v2848_v61 = vmul.f32 0.2, %v2816_v53  ;;  %v2849_v59 = vmul.f32 0.2, %v2817_v49 }
 0x40f   : > { %7321 = vst [vmem:[#allocation38_spill] sm:$0xff] %v6359_v11  ;;  %v2952_v19 = vmax.f32 %v6354_v17, %v6359_v11  ;;  %v6367_v24 = vadd.f32 %v2202_v41, %v7323_v13  ;;  %v6370_v34 = vadd.f32 %v2215_v10, %v7324_v46 }
 0x410   : > { %2282 = vmax.xlane.f32.xlu0 %v2281_v26  ;;  %v2216_v26 = vmax.f32 %v2152_v36, %v2184_v52  ;;  %v2880_v2 = vmax.f32 %v2816_v53, %v2848_v61  ;;  %v2881_v55 = vmax.f32 %v2817_v49, %v2849_v59  ;;  %v4543_v59 = vpop.eup %4542  ;;  %v6390_v53 = vpop.xlane.xlu0 %2929 }
 0x411   : > { %7325 = vst [vmem:[#allocation60_spill] sm:$0xff] %v6370_v34 }
 0x412   : > { %v6373_v1 = vadd.f32 %v2216_v26, %v7326_v31  ;;  %v6380_v28 = vadd.f32 %v2880_v2, %v7324_v46  ;;  %v6383_v52 = vadd.f32 %v2881_v55, %v7326_v31  ;;  %v7330_v26 = vld [vmem:[#allocation55_spill] sm:$0xff] }
 0x414   : > { %2947 = vmax.xlane.f32.xlu0 %v2946_v39  ;;  %v7322_v39 = vld [vmem:[#allocation50_spill] sm:$0xff]  ;;  %7327 = vst [vmem:[#allocation59_spill] sm:$0xff] %v6373_v1  ;;  %v2293_v57 = vmax.f32 %v6370_v34, %v6373_v1  ;;  %7328 = vst [vmem:[#allocation56_spill] sm:$0xff] %v6380_v28  ;;  %v2958_v61 = vmax.f32 %v6380_v28, %v6383_v52 }
 0x415   : > { %v6364_v22 = vadd.f32 %v2201_v50, %v7322_v39  ;;  %7329 = vst [vmem:[#allocation63_spill] sm:$0xff] %v6383_v52  ;;  %v3069_v50 = vpop.permute.xlu0 %3068 }
 0x416   : > { %v3105_v41 = vsel %vm1095_vm0, %v3069_v50, 1065369472 }
 0x417   : > { %v2272_v36 = vmax.f32 %v6364_v22, %v6367_v24 }
 0x418   : > { %2288 = vmax.xlane.f32.xlu0 %v2287_v14 }
 0x419   : > { %v2406_v50 = vpop.permute.xlu0 %2405 }
 0x41c   : > { %2953 = vmax.xlane.f32.xlu0 %v2952_v19  ;;  %v2802_v19 = vadd.f32 %v7210_v33, %v7330_v26 }
 0x41e   : > { %2273 = vmax.xlane.f32.xlu1 %v2272_v36  ;;  %v2834_v2 = vmul.f32 0.2, %v2802_v19 }
 0x420   : > { %2294 = vmax.xlane.f32.xlu0 %v2293_v57  ;;  %v2866_v46 = vmax.f32 %v2802_v19, %v2834_v2 }
 0x422   : > { %v6401_v36 = vadd.f32 %v2866_v46, %v7322_v39  ;;  %v3071_v39 = vpop.permute.xlu0 %3070  ;;  %v2140_v46 = vadd.f32 %v7217_v18, %v5879_v30 }
 0x423   : > { %v3108_v2 = vsel %vm1095_vm0, %v3071_v39, 1065369472 }
 0x424   : > { %2959 = vmax.xlane.f32.xlu0 %v2958_v61 }
 0x42f   : > { %3088 = vrot.lane.b32.xlu1 %v6261_v27, %s4852_s29  ;;  %v2803_v27 = vadd.f32 %v7211_v29, %v7330_v26  ;;  %v6417_v26 = vpop.xlane.xlu0 %2270 }
 0x431   : > { %v2835_v55 = vmul.f32 0.2, %v2803_v27 }
 0x433   : > { %v2867_v31 = vmax.f32 %v2803_v27, %v2835_v55  ;;  %v2139_v55 = vadd.f32 %v7216_v8, %v5879_v30 }
 0x435   : > { %v6404_v57 = vadd.f32 %v2867_v31, %v7323_v13  ;;  %v2408_v31 = vpop.permute.xlu0 %2407 }
 0x437   : > { %v2937_v61 = vmax.f32 %v6401_v36, %v6404_v57 }
 0x439   : > { %v6392_v49 = vpop.xlane.xlu1 %2267 }
 0x43a   : > { %1276 = vperm.xlu0 %4370, %v4543_v59   ;;  %v4837_v59 = vld [vmem:[%s6882_s0 + $0x78] sm:$0xff]  }
 0x43d   : > { %v3085_v14 = vpop.permute.xlu1 %3084 }
 0x43e   : > { %v3129_v10 = vsel %vm1095_vm0, %v3085_v14, 1065369472 }
 0x43f   : > { %4194 = vmatprep.subr.bf16.mxu1 %v3129_v10  ;;  %v2443_v10 = vsel %vm1095_vm0, %v2406_v50, 1065369472 }
 0x440   : > { %4195 = vmatpush3.bf16.msra.mxu1 %v3105_v41 }
 0x453   : > { %2938 = vmax.xlane.f32.xlu1 %v2937_v61  ;;  %v2446_v61 = vsel %vm1095_vm0, %v2408_v31, 1065369472  ;;  %v2146_v31 = vadd.f32 %v7217_v18, %v5965_v16 }
 0x464   : > { %2425 = vrot.lane.b32.xlu1 %v4837_v59, %s4851_s28 }
 0x468   : > { %3090 = vrot.lane.b32.xlu1 %v4837_v59, %s4852_s29 }
 0x46e   : > { %v6413_v41 = vpop.xlane.xlu1 %2932 }
 0x472   : > { %v2422_v14 = vpop.permute.xlu1 %2421 }
 0x473   : > { %v2467_v13 = vsel %vm1095_vm0, %v2422_v14, 1065369472  ;;  %v7331_v14 = vld [vmem:[#allocation5_spill] sm:$0xff] }
 0x474   : > { %4132 = vmatprep.subr.bf16.mxu0 %v2467_v13  ;;  %v2806_v13 = vadd.f32 %v7210_v33, %v7331_v14  ;;  %v2807_v39 = vadd.f32 %v7211_v29, %v7331_v14 }
 0x475   : > { %4133 = vmatpush3.bf16.msra.mxu0 %v2443_v10  ;;  %v2171_v10 = vmul.f32 0.2, %v2139_v55 }
 0x476   : > { %v3087_v19 = vpop.permute.xlu1 %3086  ;;  %v2839_v48 = vmul.f32 0.2, %v2807_v39 }
 0x477   : > { %v3132_v27 = vsel %vm1095_vm0, %v3087_v19, 1065369472  ;;  %v2172_v19 = vmul.f32 0.2, %v2140_v46  ;;  %v2203_v30 = vmax.f32 %v2139_v55, %v2171_v10  ;;  %v2178_v10 = vmul.f32 0.2, %v2146_v31 }
 0x478   : > { %4196 = vmatprep.subr.bf16.mxu1 %v3132_v27  ;;  %v2838_v27 = vmul.f32 0.2, %v2806_v13  ;;  %v2871_v1 = vmax.f32 %v2807_v39, %v2839_v48 }
 0x479   : > { %4197 = vmatpush3.bf16.msra.mxu1 %v3108_v2  ;;  %v2204_v52 = vmax.f32 %v2140_v46, %v2172_v19  ;;  %v2145_v2 = vadd.f32 %v7216_v8, %v5965_v16 }
 0x47a   : > { %v2424_v59 = vpop.permute.xlu1 %2423  ;;  %v2870_v14 = vmax.f32 %v2806_v13, %v2838_v27  ;;  %v2210_v13 = vmax.f32 %v2146_v31, %v2178_v10  ;;  %v2814_v27 = vadd.f32 %v7210_v33, %v5882_v4  ;;  %v2154_v10 = vadd.f32 %v7217_v18, %v5905_v42 }
 0x47b   : > { %v2470_v50 = vsel %vm1095_vm0, %v2424_v59, 1065369472  ;;  %v7332_v59 = vld [vmem:[#allocation69_spill] sm:$0xff]  ;;  %v6443_v55 = vadd.f32 %v2204_v52, %v7314_v44  ;;  %v2177_v46 = vmul.f32 0.2, %v2145_v2  ;;  %v2150_v44 = vadd.f32 %v7217_v18, %v5967_v40 }
 0x47c   : > { %4134 = vmatprep.subr.bf16.mxu0 %v2470_v50  ;;  %v2810_v50 = vadd.f32 %v7210_v33, %v7332_v59  ;;  %v2811_v28 = vadd.f32 %v7211_v29, %v7332_v59  ;;  %v6448_v11 = vadd.f32 %v2870_v14, %v7309_v43  ;;  %v6451_v59 = vadd.f32 %v2871_v1, %v7310_v62  ;;  %v7334_v14 = vld [vmem:[#allocation66_spill] sm:$0xff] }
 0x47d   : > { %4135 = vmatpush3.bf16.msra.mxu0 %v2446_v61  ;;  %v6440_v61 = vadd.f32 %v2203_v30, %v7313_v38  ;;  %v2209_v48 = vmax.f32 %v2145_v2, %v2177_v46  ;;  %v2149_v38 = vadd.f32 %v7216_v8, %v5967_v40  ;;  %v2815_v43 = vadd.f32 %v7211_v29, %v5882_v4  ;;  %v7333_v2 = vld [vmem:[#allocation65_spill] sm:$0xff] }
 0x47e   : > { %v2842_v19 = vmul.f32 0.2, %v2810_v50  ;;  %v2843_v34 = vmul.f32 0.2, %v2811_v28  ;;  %v2943_v62 = vmax.f32 %v6448_v11, %v6451_v59  ;;  %v2182_v30 = vmul.f32 0.2, %v2150_v44 }
 0x47f   : > { %v2275_v16 = vmax.f32 %v6440_v61, %v6443_v55  ;;  %v2181_v1 = vmul.f32 0.2, %v2149_v38  ;;  %v6464_v31 = vadd.f32 %v2209_v48, %v7333_v2  ;;  %v6467_v46 = vadd.f32 %v2210_v13, %v7334_v14 }
 0x480   : > { %v2874_v52 = vmax.f32 %v2810_v50, %v2842_v19  ;;  %v2875_v39 = vmax.f32 %v2811_v28, %v2843_v34  ;;  %v2846_v28 = vmul.f32 0.2, %v2814_v27  ;;  %v2847_v4 = vmul.f32 0.2, %v2815_v43 }
 0x481   : > { %v2153_v50 = vadd.f32 %v7216_v8, %v5905_v42  ;;  %v2213_v19 = vmax.f32 %v2149_v38, %v2181_v1  ;;  %v2284_v48 = vmax.f32 %v6464_v31, %v6467_v46  ;;  %v2819_v8 = vadd.f32 %v7211_v29, %v5996_v23 }
 0x482   : > { %v6470_v40 = vadd.f32 %v2874_v52, %v7333_v2  ;;  %v6473_v34 = vadd.f32 %v2875_v39, %v7334_v14  ;;  %v2878_v52 = vmax.f32 %v2814_v27, %v2846_v28  ;;  %v2879_v39 = vmax.f32 %v2815_v43, %v2847_v4 }
 0x483   : > { %v2186_v2 = vmul.f32 0.2, %v2154_v10  ;;  %v2818_v14 = vadd.f32 %v7210_v33, %v5996_v23  ;;  %v6488_v18 = vadd.f32 %v2213_v19, %v5664_v60  ;;  %v2851_v33 = vmul.f32 0.2, %v2819_v8 }
 0x484   : > { %v2949_v13 = vmax.f32 %v6470_v40, %v6473_v34  ;;  %v6497_v27 = vadd.f32 %v2879_v39, %v5668_v32 }
 0x485   : > { %v2218_v43 = vmax.f32 %v2154_v10, %v2186_v2  ;;  %v2850_v1 = vmul.f32 0.2, %v2818_v14  ;;  %v2883_v28 = vmax.f32 %v2819_v8, %v2851_v33 }
 0x487   : > { %v6515_v10 = vadd.f32 %v2883_v28, %v5833_v51  ;;  %v2964_v28 = vsub.f32 %v5799_v12, %v5984_v9  ;;  %v7346_v12 = vld [vmem:[#allocation7_spill] sm:$0xff] }
 0x48c   : > { %2276 = vmax.xlane.f32.xlu1 %v2275_v16  ;;  %v2214_v16 = vmax.f32 %v2150_v44, %v2182_v30  ;;  %v6494_v44 = vadd.f32 %v2878_v52, %v5664_v60  ;;  %v2882_v30 = vmax.f32 %v2818_v14, %v2850_v1  ;;  %v6507_v60 = vadd.f32 %v2218_v43, %v5833_v51  ;;  %v4545_v14 = vpop.eup %4544 }
 0x48e   : > { %v6491_v42 = vadd.f32 %v2214_v16, %v5668_v32  ;;  %v2955_v23 = vmax.f32 %v6494_v44, %v6497_v27  ;;  %v2311_v16 = vsub.f32 %v6164_v21, %v6417_v26 }
 0x490   : > { %2944 = vmax.xlane.f32.xlu1 %v2943_v62  ;;  %v2185_v62 = vmul.f32 0.2, %v2153_v50  ;;  %v2290_v29 = vmax.f32 %v6488_v18, %v6491_v42 }
 0x492   : > { %v2217_v38 = vmax.f32 %v2153_v50, %v2185_v62  ;;  %v6512_v50 = vadd.f32 %v2882_v30, %v5831_v35 }
 0x494   : > { %2285 = vmax.xlane.f32.xlu1 %v2284_v48  ;;  %v6504_v4 = vadd.f32 %v2217_v38, %v5831_v35  ;;  %v2961_v19 = vmax.f32 %v6512_v50, %v6515_v10  ;;  %v6521_v48 = vpop.xlane.xlu0 %2935 }
 0x496   : > { %v2296_v32 = vmax.f32 %v6504_v4, %v6507_v60 }
 0x498   : > { %2950 = vmax.xlane.f32.xlu1 %v2949_v13  ;;  %v2355_v13 = vmul.f32 1.442695, %v2311_v16  ;;  %v3073_v51 = vpop.permute.xlu0 %3072 }
 0x499   : > { %v3111_v62 = vsel %vm1095_vm0, %v3073_v51, 1065369472 }
 0x49a   : > { %4546 = vpow2.f32 %v2355_v13  ;;  %v7337_v13 = vld [vmem:[#allocation77_spill] sm:$0xff] }
 0x49c   : > { %2291 = vmax.xlane.f32.xlu1 %v2290_v29 }
 0x4a0   : > { %2956 = vmax.xlane.f32.xlu1 %v2955_v23 }
 0x4a4   : > { %2297 = vmax.xlane.f32.xlu1 %v2296_v32  ;;  %v6532_v8 = vpop.eup %4546  ;;  %v7335_v32 = vld [vmem:[#allocation67_spill] sm:$0xff] }
 0x4a8   : > { %2962 = vmax.xlane.f32.xlu1 %v2961_v19  ;;  %v7336_v19 = vld [vmem:[#allocation37_spill] sm:$0xff] }
 0x4a9   : > { %v2301_v16 = vsub.f32 %v7336_v19, %v7335_v32  ;;  %v7347_v32 = vld [vmem:[#allocation31_spill] sm:$0xff] }
 0x4ab   : > { %v6523_v52 = vpop.xlane.xlu1 %2273 }
 0x4ac   : > { %v2313_v35 = vsub.f32 %v6364_v22, %v6523_v52 }
 0x4ae   : > { %v2359_v39 = vmul.f32 1.442695, %v2313_v35  ;;  %v7338_v35 = vld [vmem:[#allocation8_spill] sm:$0xff] }
 0x4af   : > { %v3089_v2 = vpop.permute.xlu1 %3088  ;;  %v2306_v51 = vsub.f32 %v7338_v35, %v7337_v13 }
 0x4b0   : > { %4548 = vpow2.f32 %v2359_v39  ;;  %v3135_v21 = vsel %vm1095_vm0, %v3089_v2, 1065369472  ;;  %v7339_v39 = vld [vmem:[#allocation70_spill] sm:$0xff] }
 0x4b1   : > { %4198 = vmatprep.subr.bf16.mxu1 %v3135_v21  ;;  %4550 = vrcp.f32 %v6052_v5  ;;  %v2996_v21 = vmul.f32 1.442695, %v2964_v28  ;;  %v2345_v38 = vmul.f32 1.442695, %v2306_v51  ;;  %v7351_v51 = vld [vmem:[#allocation35_spill] sm:$0xff] }
 0x4b2   : > { %4199 = vmatpush3.bf16.msra.mxu1 %v3111_v62  ;;  %4552 = vrcp.f32 %v6054_v20  ;;  %v7340_v62 = vld [vmem:[#allocation3_spill] sm:$0xff] }
 0x4b3   : > { %4554 = vrcp.f32 %v6048_v7  ;;  %v2299_v2 = vsub.f32 %v7340_v62, %v7339_v39  ;;  %v7349_v39 = vld [vmem:[#allocation44_spill] sm:$0xff] }
 0x4b4   : > { %4556 = vrcp.f32 %v6050_v6  ;;  %v7345_v6 = vld [vmem:[#allocation24_spill] sm:$0xff] }
 0x4b5   : > { %4558 = vrcp.f32 %v6062_v0  ;;  %v2971_v9 = vsub.f32 %v7346_v12, %v7345_v6  ;;  %v2331_v7 = vmul.f32 1.442695, %v2299_v2 }
 0x4b6   : > { %4560 = vrcp.f32 %v6073_v54  ;;  %v7348_v54 = vld [vmem:[#allocation76_spill] sm:$0xff] }
 0x4b7   : > { %4562 = vpow2.f32 %v2996_v21  ;;  %v2969_v28 = vsub.f32 %v7349_v39, %v7348_v54 }
 0x4b9   : > { %1281 = vperm.xlu1 %4371, %v4545_v14   ;;  %v7341_v14 = vld [vmem:[#allocation10_spill] sm:$0xff]  ;;  %v3006_v21 = vmul.f32 1.442695, %v2969_v28 }
 0x4ba   : > { %v6534_v22 = vpop.eup %4548  ;;  %v2303_v19 = vsub.f32 %v7347_v32, %v7341_v14  ;;  %v7354_v32 = vld [vmem:[#allocation27_spill] sm:$0xff] }
 0x4bb   : > { %v4551_v43 = vpop.eup %4550 }
 0x4bc   : > { %v4553_v1 = vpop.eup %4552  ;;  %v2339_v12 = vmul.f32 1.442695, %v2303_v19 }
 0x4bd   : > { %1941 = vperm.xlu1 %4371, %v4551_v43   ;;  %v4555_v33 = vpop.eup %4554  ;;  %v7342_v43 = vld [vmem:[#allocation32_spill] sm:$0xff] }
 0x4be   : > { %v4557_v29 = vpop.eup %4556 }
 0x4bf   : > { %v4559_v23 = vpop.eup %4558 }
 0x4c0   : > { %v4561_v30 = vpop.eup %4560 }
 0x4c1   : > { %1946 = vperm.xlu1 %4371, %v4553_v1   ;;  %v2304_v1 = vsub.f32 %v7342_v43, %v7341_v14  ;;  %v7352_v14 = vld [vmem:[#allocation28_spill] sm:$0xff] }
 0x4c2   : > { %v2968_v2 = vsub.f32 %v7352_v14, %v7348_v54  ;;  %v2314_v14 = vsub.f32 %v6367_v24, %v6523_v52  ;;  %v7361_v52 = vld [vmem:[#allocation78_spill] sm:$0xff] }
 0x4c3   : > { %v2341_v35 = vmul.f32 1.442695, %v2304_v1  ;;  %v7353_v1 = vld [vmem:[#allocation47_spill] sm:$0xff] }
 0x4c4   : > { %v2308_v39 = vsub.f32 %v7354_v32, %v7353_v1 }
 0x4c5   : > { %1286 = vperm.xlu1 %4371, %v4555_v33   ;;  %v2335_v33 = vmul.f32 1.442695, %v2301_v16  ;;  %v7350_v16 = vld [vmem:[#allocation52_spill] sm:$0xff] }
 0x4c6   : > { %v2305_v43 = vsub.f32 %v7350_v16, %v7337_v13  ;;  %v2349_v54 = vmul.f32 1.442695, %v2308_v39 }
 0x4c7   : > { %4564 = vpow2.f32 %v2335_v33 }
 0x4c8   : > { %4566 = vpow2.f32 %v2345_v38  ;;  %v2343_v33 = vmul.f32 1.442695, %v2305_v43  ;;  %v7358_v43 = vld [vmem:[#allocation22_spill] sm:$0xff] }
 0x4c9   : > { %1291 = vperm.xlu1 %4371, %v4557_v29   ;;  %v7343_v29 = vld [vmem:[#allocation6_spill] sm:$0xff]  ;;  %4568 = vpow2.f32 %v2331_v7  ;;  %v3004_v7 = vmul.f32 1.442695, %v2968_v2  ;;  %v7359_v2 = vld [vmem:[#allocation4_spill] sm:$0xff] }
 0x4ca   : > { %4570 = vpow2.f32 %v2341_v35  ;;  %v7357_v35 = vld [vmem:[#allocation18_spill] sm:$0xff] }
 0x4cb   : > { %v2973_v28 = vsub.f32 %v7357_v35, %v6390_v53 }
 0x4cd   : > { %1951 = vperm.xlu1 %4371, %v4559_v23   ;;  %v7344_v23 = vld [vmem:[#allocation45_spill] sm:$0xff] }
 0x4d1   : > { %1956 = vperm.xlu1 %4371, %v4561_v30   ;;  %v2966_v30 = vsub.f32 %v7344_v23, %v7343_v29  ;;  %v3010_v29 = vmul.f32 1.442695, %v2971_v9  ;;  %v2310_v23 = vsub.f32 %v7351_v51, %v6392_v49  ;;  %v7356_v9 = vld [vmem:[#allocation79_spill] sm:$0xff]  ;;  %v2309_v51 = vsub.f32 %v7358_v43, %v6392_v49 }
 0x4d2   : > { %v2975_v16 = vsub.f32 %v7356_v9, %v6413_v41  ;;  %v7360_v49 = vld [vmem:[#allocation11_spill] sm:$0xff] }
 0x4d3   : > { %v3000_v62 = vmul.f32 1.442695, %v2966_v30  ;;  %v7355_v30 = vld [vmem:[#allocation34_spill] sm:$0xff]  ;;  %v2353_v38 = vmul.f32 1.442695, %v2310_v23 }
 0x4d4   : > { %v2970_v13 = vsub.f32 %v7355_v30, %v7345_v6  ;;  %v2410_v6 = vpop.permute.xlu0 %2409  ;;  %v3018_v23 = vmul.f32 1.442695, %v2975_v16  ;;  %v3014_v30 = vmul.f32 1.442695, %v2973_v28  ;;  %v2351_v24 = vmul.f32 1.442695, %v2309_v51 }
 0x4d5   : > { %4572 = vpow2.f32 %v3000_v62  ;;  %v2974_v16 = vsub.f32 %v7361_v52, %v6413_v41 }
 0x4d6   : > { %4574 = vpow2.f32 %v3010_v29  ;;  %v3008_v62 = vmul.f32 1.442695, %v2970_v13  ;;  %v4563_v29 = vpop.eup %4562  ;;  %v2312_v13 = vsub.f32 %v7360_v49, %v6417_v26 }
 0x4d7   : > { %4576 = vpow2.f32 %v2339_v12  ;;  %v4565_v12 = vpop.eup %4564 }
 0x4d8   : > { %4578 = vpow2.f32 %v3006_v21  ;;  %v2307_v21 = vsub.f32 %v7359_v2, %v7353_v1  ;;  %v2361_v1 = vmul.f32 1.442695, %v2314_v14  ;;  %v3075_v2 = vpop.permute.xlu0 %3074  ;;  %v2357_v41 = vmul.f32 1.442695, %v2312_v13 }
 0x4d9   : > { %4580 = vpow2.f32 %v2343_v33  ;;  %v4567_v33 = vpop.eup %4566  ;;  %v3114_v49 = vsel %vm1095_vm0, %v3075_v2, 1065369472 }
 0x4da   : > { %4582 = vpow2.f32 %v2353_v38  ;;  %v2449_v38 = vsel %vm1095_vm0, %v2410_v6, 1065369472  ;;  %v4569_v9 = vpop.eup %4568  ;;  %v2347_v26 = vmul.f32 1.442695, %v2307_v21  ;;  %v7362_v6 = vld [vmem:[#allocation71_spill] sm:$0xff] }
 0x4db   : > { %4584 = vpow2.f32 %v3004_v7  ;;  %v4571_v7 = vpop.eup %4570  ;;  %v2475_v28 = vpack.c.bf16 %v4565_v12, %v4569_v9  ;;  %v3016_v12 = vmul.f32 1.442695, %v2974_v16 }
 0x4dc   : > { %4586 = vpow2.f32 %v2349_v54  ;;  %v2478_v51 = vpack.c.bf16 %v4567_v33, %v4571_v7 }
 0x4dd   : > { %4588 = vpow2.f32 %v3008_v62 }
 0x4de   : > { %4590 = vpow2.f32 %v3018_v23  ;;  %v7363_v23 = vld [vmem:[#allocation73_spill] sm:$0xff] }
 0x4df   : > { %v4573_v43 = vpop.eup %4572  ;;  %4592 = vpow2.f32 %v3014_v30  ;;  %v2977_v14 = vsub.f32 %v7363_v23, %v6521_v48 }
 0x4e0   : > { %v6572_v19 = vpop.xlane.xlu1 %2938  ;;  %4594 = vpow2.f32 %v2351_v24 }
 0x4e1   : > { %v2979_v54 = vsub.f32 %v6404_v57, %v6572_v19  ;;  %4596 = vpow2.f32 %v2361_v1  ;;  %v3022_v52 = vmul.f32 1.442695, %v2977_v14  ;;  %v2978_v24 = vsub.f32 %v6401_v36, %v6572_v19 }
 0x4e2   : > { %4598 = vpow2.f32 %v2347_v26 }
 0x4e3   : > { %v3026_v21 = vmul.f32 1.442695, %v2979_v54  ;;  %4600 = vpow2.f32 %v2357_v41  ;;  %v3024_v26 = vmul.f32 1.442695, %v2978_v24 }
 0x4e4   : > { %v2426_v32 = vpop.permute.xlu1 %2425  ;;  %4602 = vpow2.f32 %v3016_v12 }
 0x4e5   : > { %v2473_v39 = vsel %vm1095_vm0, %v2426_v32, 1065369472  ;;  %v2972_v32 = vsub.f32 %v7362_v6, %v6390_v53  ;;  %4604 = vpow2.f32 %v3026_v21 }
 0x4e6   : > { %4136 = vmatprep.subr.bf16.mxu0 %v2473_v39  ;;  %v4575_v39 = vpop.eup %4574 }
 0x4e7   : > { %4137 = vmatpush3.bf16.msra.mxu0 %v2449_v38  ;;  %v4577_v57 = vpop.eup %4576  ;;  %v3140_v38 = vpack.c.bf16 %v4573_v43, %v4563_v29  ;;  %v3012_v30 = vmul.f32 1.442695, %v2972_v32  ;;  %v7364_v29 = vld [vmem:[#allocation72_spill] sm:$0xff] }
 0x4e8   : > { %v3091_v35 = vpop.permute.xlu1 %3090  ;;  %v4579_v53 = vpop.eup %4578  ;;  %v2976_v54 = vsub.f32 %v7364_v29, %v6521_v48 }
 0x4e9   : > { %v3138_v62 = vsel %vm1095_vm0, %v3091_v35, 1065369472  ;;  %v4581_v33 = vpop.eup %4580  ;;  %v3143_v13 = vpack.c.bf16 %v4575_v39, %v4579_v53  ;;  %4606 = vpow2.f32 %v3012_v30  ;;  %v2280_v30 = vpop.xlane.xlu0 %2279 }
 0x4ea   : > { %2524 = vmatmul.mubr.bf16.vlgmr.msra.gmra.mrb[48].mxu0 %v2475_v28  ;;  %4200 = vmatprep.subr.bf16.mxu1 %v3138_v62  ;;  %v4583_v9 = vpop.eup %4582  ;;  %v2477_v35 = vpack.c.bf16 %v4581_v33, %v4577_v57  ;;  %4608 = vpow2.f32 %v3022_v52  ;;  %v3020_v62 = vmul.f32 1.442695, %v2976_v54  ;;  %v2318_v24 = vsub.f32 %v6287_v47, %v2280_v30 }
 0x4eb   : > { %2531 = vmatprep.mubr.bf16.mxu0 %v2478_v51  ;;  %4201 = vmatpush3.bf16.msra.mxu1 %v3114_v49  ;;  %v4585_v7 = vpop.eup %4584  ;;  %4610 = vpow2.f32 %v3024_v26 }
 0x4ec   : > { %v4587_v16 = vpop.eup %4586  ;;  %4612 = vpow2.f32 %v3020_v62  ;;  %v2369_v54 = vmul.f32 1.442695, %v2318_v24  ;;  %v7366_v62 = vld [vmem:[#allocation46_spill] sm:$0xff] }
 0x4ed   : > { %v4589_v1 = vpop.eup %4588  ;;  %v2480_v28 = vpack.c.bf16 %v4583_v9, %v4587_v16  ;;  %v2942_v9 = vpop.xlane.xlu0 %2941 }
 0x4ee   : > { %3189 = vmatmul.mubr.bf16.vlgmr.msra.gmra.mrb[36].mxu1 %v3140_v38  ;;  %v4591_v43 = vpop.eup %4590  ;;  %v3142_v32 = vpack.c.bf16 %v4589_v1, %v4585_v7  ;;  %v7365_v38 = vpack.c.bf16 %v6534_v22, %v6532_v8  ;;  %v2317_v7 = vsub.f32 %v6284_v15, %v2280_v30  ;;  %v2980_v16 = vsub.f32 %v6300_v58, %v2942_v9 }
 0x4ef   : > { %3196 = vmatprep.mubr.bf16.mxu1 %v3143_v13  ;;  %v4593_v6 = vpop.eup %4592 }
 0x4f0   : > { %v4595_v2 = vpop.eup %4594  ;;  %v3145_v36 = vpack.c.bf16 %v4591_v43, %v4593_v6  ;;  %v2367_v29 = vmul.f32 1.442695, %v2317_v7 }
 0x4f1   : > { %v4597_v19 = vpop.eup %4596  ;;  %v2283_v52 = vpop.xlane.xlu0 %2282 }
 0x4f2   : > { %2532 = vmatmul.mubr.bf16.gmra.mrb[52].mxu0 %v2477_v35  ;;  %v4599_v51 = vpop.eup %4598  ;;  %v2981_v35 = vsub.f32 %v6303_v37, %v2942_v9  ;;  %v2319_v8 = vsub.f32 %v6319_v3, %v2283_v52  ;;  %v2320_v43 = vsub.f32 %v6322_v45, %v2283_v52  ;;  %4614 = vpow2.f32 %v2367_v29 }
 0x4f3   : > { %2539 = vmatprep.mubr.bf16.mxu0 %v2480_v28  ;;  %v4601_v39 = vpop.eup %4600  ;;  %v2479_v41 = vpack.c.bf16 %v4595_v2, %v4599_v51  ;;  %v3028_v28 = vmul.f32 1.442695, %v2980_v16  ;;  %4616 = vpow2.f32 %v2369_v54 }
 0x4f4   : > { %v4603_v23 = vpop.eup %4602  ;;  %v2482_v48 = vpack.c.bf16 %v4597_v19, %v4601_v39  ;;  %v3030_v22 = vmul.f32 1.442695, %v2981_v35  ;;  %v2371_v58 = vmul.f32 1.442695, %v2319_v8  ;;  %v2373_v2 = vmul.f32 1.442695, %v2320_v43 }
 0x4f5   : > { %v4605_v14 = vpop.eup %4604  ;;  %v2948_v1 = vpop.xlane.xlu0 %2947  ;;  %4618 = vpow2.f32 %v3028_v28 }
 0x4f6   : > { %3197 = vmatmul.mubr.bf16.gmra.mrb[40].mxu1 %v3142_v32  ;;  %v4607_v49 = vpop.eup %4606  ;;  %4620 = vpow2.f32 %v3030_v22 }
 0x4f7   : > { %3204 = vmatprep.mubr.bf16.mxu1 %v3145_v36  ;;  %v4609_v57 = vpop.eup %4608  ;;  %v3144_v12 = vpack.c.bf16 %v4603_v23, %v4607_v49  ;;  %v2984_v36 = vsub.f32 %v7366_v62, %v2948_v1 }
 0x4f8   : > { %v3147_v53 = vpack.c.bf16 %v4605_v14, %v4609_v57  ;;  %v4611_v21 = vpop.eup %4610 }
 0x4f9   : > { %v4613_v33 = vpop.eup %4612  ;;  %v2289_v47 = vpop.xlane.xlu0 %2288 }
 0x4fa   : > { %2540 = vmatmul.mubr.bf16.gmra.mrb[56].mxu0 %v2479_v41  ;;  %v3146_v13 = vpack.c.bf16 %v4611_v21, %v4613_v33  ;;  %v3036_v41 = vmul.f32 1.442695, %v2984_v36  ;;  %v2323_v23 = vsub.f32 %v6344_v25, %v2289_v47 }
 0x4fb   : > { %2547 = vmatprep.mubr.bf16.mxu0 %v2482_v48 }
 0x4fc   : > { %v2379_v33 = vmul.f32 1.442695, %v2323_v23 }
 0x4fd   : > { %v2954_v48 = vpop.xlane.xlu0 %2953 }
 0x4fe   : > { %3205 = vmatmul.mubr.bf16.gmra.mrb[44].mxu1 %v3144_v12  ;;  %v2324_v12 = vsub.f32 %v6347_v56, %v2289_v47  ;;  %v2988_v30 = vsub.f32 %v6354_v17, %v2954_v48 }
 0x4ff   : > { %3212 = vmatprep.mubr.bf16.mxu1 %v3147_v53 }
 0x500   : > { %v2381_v56 = vmul.f32 1.442695, %v2324_v12  ;;  %v3044_v17 = vmul.f32 1.442695, %v2988_v30 }
 0x501   : > { %v2295_v52 = vpop.xlane.xlu0 %2294 }
 0x502   : > { %2548 = vmatmul.mubr.bf16.gmra.mrb[60].mxu0 %v7365_v38 }
 0x505   : > { %v2960_v36 = vpop.xlane.xlu0 %2959 }
 0x506   : > { %3213 = vmatmul.mubr.bf16.gmra.mrb[48].mxu1 %v3146_v13 }
 0x519   : > { %v2277_v26 = vpop.xlane.xlu1 %2276 }
 0x51a   : > { %v2315_v6 = vsub.f32 %v6440_v61, %v2277_v26  ;;  %v2316_v15 = vsub.f32 %v6443_v55, %v2277_v26  ;;  %v7367_v61 = vld [vmem:[#allocation51_spill] sm:$0xff] }
 0x51b   : > { %v2985_v55 = vsub.f32 %v7367_v61, %v2948_v1  ;;  %v7368_v1 = vld [vmem:[#allocation38_spill] sm:$0xff] }
 0x51c   : > { %v2363_v37 = vmul.f32 1.442695, %v2315_v6  ;;  %v2365_v32 = vmul.f32 1.442695, %v2316_v15  ;;  %v2989_v29 = vsub.f32 %v7368_v1, %v2954_v48  ;;  %v7369_v6 = vld [vmem:[#allocation60_spill] sm:$0xff] }
 0x51d   : > { %v2945_v3 = vpop.xlane.xlu1 %2944  ;;  %v2327_v15 = vsub.f32 %v7369_v6, %v2295_v52 }
 0x51e   : > { %4622 = vpow2.f32 %v2363_v37  ;;  %v2982_v45 = vsub.f32 %v6448_v11, %v2945_v3  ;;  %v2983_v19 = vsub.f32 %v6451_v59, %v2945_v3  ;;  %v4615_v11 = vpop.eup %4614  ;;  %v3038_v59 = vmul.f32 1.442695, %v2985_v55 }
 0x51f   : > { %4624 = vpow2.f32 %v2365_v32  ;;  %v4617_v38 = vpop.eup %4616  ;;  %v3046_v32 = vmul.f32 1.442695, %v2989_v29 }
 0x520   : > { %4626 = vpow2.f32 %v2371_v58  ;;  %v3032_v51 = vmul.f32 1.442695, %v2982_v45  ;;  %v3034_v39 = vmul.f32 1.442695, %v2983_v19  ;;  %v4619_v13 = vpop.eup %4618 }
 0x521   : > { %4628 = vpow2.f32 %v2373_v2  ;;  %v2286_v14 = vpop.xlane.xlu1 %2285  ;;  %v7370_v2 = vld [vmem:[#allocation59_spill] sm:$0xff] }
 0x522   : > { %4630 = vpow2.f32 %v3032_v51  ;;  %v2321_v49 = vsub.f32 %v6464_v31, %v2286_v14  ;;  %v2322_v57 = vsub.f32 %v6467_v46, %v2286_v14  ;;  %v4621_v46 = vpop.eup %4620  ;;  %v2328_v62 = vsub.f32 %v7370_v2, %v2295_v52 }
 0x523   : > { %4632 = vpow2.f32 %v3034_v39  ;;  %v2387_v51 = vmul.f32 1.442695, %v2327_v15  ;;  %v7371_v39 = vld [vmem:[#allocation56_spill] sm:$0xff] }
 0x524   : > { %v2375_v53 = vmul.f32 1.442695, %v2321_v49  ;;  %v2377_v21 = vmul.f32 1.442695, %v2322_v57  ;;  %4634 = vpow2.f32 %v3036_v41  ;;  %v2992_v41 = vsub.f32 %v7371_v39, %v2960_v36  ;;  %v7372_v57 = vld [vmem:[#allocation63_spill] sm:$0xff] }
 0x525   : > { %v2951_v25 = vpop.xlane.xlu1 %2950  ;;  %v2389_v49 = vmul.f32 1.442695, %v2328_v62 }
 0x526   : > { %4636 = vpow2.f32 %v2375_v53  ;;  %v2986_v9 = vsub.f32 %v6470_v40, %v2951_v25  ;;  %v2987_v31 = vsub.f32 %v6473_v34, %v2951_v25  ;;  %v3052_v30 = vmul.f32 1.442695, %v2992_v41 }
 0x527   : > { %4638 = vpow2.f32 %v2377_v21 }
 0x528   : > { %v4623_v7 = vpop.eup %4622  ;;  %4640 = vpow2.f32 %v3038_v59  ;;  %v3040_v24 = vmul.f32 1.442695, %v2986_v9  ;;  %v3042_v16 = vmul.f32 1.442695, %v2987_v31 }
 0x529   : > { %v4625_v35 = vpop.eup %4624  ;;  %4642 = vpow2.f32 %v2379_v33  ;;  %v2292_v54 = vpop.xlane.xlu1 %2291  ;;  %v2483_v28 = vpack.c.bf16 %v4615_v11, %v4623_v7  ;;  %v2993_v11 = vsub.f32 %v7372_v57, %v2960_v36 }
 0x52a   : > { %v4627_v8 = vpop.eup %4626  ;;  %4644 = vpow2.f32 %v3040_v24  ;;  %v2325_v40 = vsub.f32 %v6488_v18, %v2292_v54  ;;  %v2326_v34 = vsub.f32 %v6491_v42, %v2292_v54  ;;  %v2484_v22 = vpack.c.bf16 %v4617_v38, %v4625_v35 }
 0x52b   : > { %v4629_v43 = vpop.eup %4628  ;;  %4646 = vpow2.f32 %v3042_v16  ;;  %v3054_v31 = vmul.f32 1.442695, %v2993_v11 }
 0x52c   : > { %v4631_v26 = vpop.eup %4630  ;;  %4648 = vpow2.f32 %v2381_v56  ;;  %v2383_v47 = vmul.f32 1.442695, %v2325_v40  ;;  %v2385_v58 = vmul.f32 1.442695, %v2326_v34  ;;  %2555 = vmatprep.mubr.bf16.mxu0 %v2484_v22 }
 0x52d   : > { %v4633_v37 = vpop.eup %4632  ;;  %4650 = vpow2.f32 %v3044_v17  ;;  %2556 = vmatmul.mubr.bf16.gmra.mrb[64].mxu0 %v2483_v28  ;;  %v2957_v18 = vpop.xlane.xlu1 %2956  ;;  %v3148_v3 = vpack.c.bf16 %v4631_v26, %v4619_v13 }
 0x52e   : > { %4652 = vpow2.f32 %v2383_v47  ;;  %v2990_v42 = vsub.f32 %v6494_v44, %v2957_v18  ;;  %v2991_v45 = vsub.f32 %v6497_v27, %v2957_v18  ;;  %v3149_v19 = vpack.c.bf16 %v4633_v37, %v4621_v46  ;;  %v4635_v61 = vpop.eup %4634 }
 0x52f   : > { %4654 = vpow2.f32 %v2385_v58 }
 0x530   : > { %v4637_v55 = vpop.eup %4636  ;;  %v3048_v23 = vmul.f32 1.442695, %v2990_v42  ;;  %v3050_v48 = vmul.f32 1.442695, %v2991_v45  ;;  %3220 = vmatprep.mubr.bf16.mxu1 %v3149_v19  ;;  %4656 = vpow2.f32 %v3046_v32 }
 0x531   : > { %v4639_v14 = vpop.eup %4638  ;;  %3221 = vmatmul.mubr.bf16.gmra.mrb[52].mxu1 %v3148_v3  ;;  %v2298_v59 = vpop.xlane.xlu1 %2297  ;;  %v2485_v44 = vpack.c.bf16 %v4637_v55, %v4627_v8 }
 0x532   : > { %v4641_v12 = vpop.eup %4640  ;;  %4658 = vpow2.f32 %v3048_v23  ;;  %v2329_v27 = vsub.f32 %v6504_v4, %v2298_v59  ;;  %v2330_v53 = vsub.f32 %v6507_v60, %v2298_v59  ;;  %v2486_v21 = vpack.c.bf16 %v4639_v14, %v4629_v43 }
 0x533   : > { %v4643_v38 = vpop.eup %4642  ;;  %4660 = vpow2.f32 %v3050_v48 }
 0x534   : > { %v4645_v33 = vpop.eup %4644  ;;  %4662 = vpow2.f32 %v2387_v51  ;;  %v2391_v25 = vmul.f32 1.442695, %v2329_v27  ;;  %v2393_v13 = vmul.f32 1.442695, %v2330_v53  ;;  %2563 = vmatprep.mubr.bf16.mxu0 %v2486_v21 }
 0x535   : > { %v4647_v9 = vpop.eup %4646  ;;  %4664 = vpow2.f32 %v2389_v49  ;;  %2564 = vmatmul.mubr.bf16.gmra.mrb[68].mxu0 %v2485_v44  ;;  %v2963_v46 = vpop.xlane.xlu1 %2962  ;;  %v3150_v52 = vpack.c.bf16 %v4645_v33, %v4635_v61 }
 0x536   : > { %v4649_v7 = vpop.eup %4648  ;;  %4666 = vpow2.f32 %v2391_v25  ;;  %v2994_v4 = vsub.f32 %v6512_v50, %v2963_v46  ;;  %v2995_v60 = vsub.f32 %v6515_v10, %v2963_v46  ;;  %v3151_v56 = vpack.c.bf16 %v4647_v9, %v4641_v12 }
 0x537   : > { %v4651_v24 = vpop.eup %4650  ;;  %4668 = vpow2.f32 %v2393_v13 }
 0x538   : > { %v4653_v16 = vpop.eup %4652  ;;  %4670 = vpow2.f32 %v3052_v30  ;;  %v3056_v35 = vmul.f32 1.442695, %v2994_v4  ;;  %v3058_v1 = vmul.f32 1.442695, %v2995_v60  ;;  %3228 = vmatprep.mubr.bf16.mxu1 %v3151_v56 }
 0x539   : > { %v4655_v29 = vpop.eup %4654  ;;  %4672 = vpow2.f32 %v3054_v31  ;;  %3229 = vmatmul.mubr.bf16.gmra.mrb[56].mxu1 %v3150_v52  ;;  %v2487_v17 = vpack.c.bf16 %v4653_v16, %v4643_v38 }
 0x53a   : > { %4674 = vpow2.f32 %v3056_v35  ;;  %v2488_v54 = vpack.c.bf16 %v4655_v29, %v4649_v7  ;;  %v4657_v28 = vpop.eup %4656 }
 0x53b   : > { %4676 = vpow2.f32 %v3058_v1  ;;  %v7373_v1 = vld [vmem:[#allocation13_spill] sm:$0xff] }
 0x53c   : > { %v4659_v8 = vpop.eup %4658  ;;  %2571 = vmatprep.mubr.bf16.mxu0 %v2488_v54 }
 0x53d   : > { %v4661_v50 = vpop.eup %4660  ;;  %2572 = vmatmul.mubr.bf16.gmra.mrb[72].mxu0 %v2487_v17  ;;  %v3152_v10 = vpack.c.bf16 %v4659_v8, %v4651_v24  ;;  %v7374_v8 = vld [vmem:[#allocation12_spill] sm:$0xff] }
 0x53e   : > { %v4663_v40 = vpop.eup %4662  ;;  %v3153_v34 = vpack.c.bf16 %v4661_v50, %v4657_v28 }
 0x53f   : > { %v4665_v22 = vpop.eup %4664 }
 0x540   : > { %v4667_v43 = vpop.eup %4666  ;;  %3236 = vmatprep.mubr.bf16.mxu1 %v3153_v34 }
 0x541   : > { %v4669_v26 = vpop.eup %4668  ;;  %3237 = vmatmul.mubr.bf16.gmra.mrb[60].mxu1 %v3152_v10  ;;  %v2489_v6 = vpack.c.bf16 %v4667_v43, %v4663_v40 }
 0x542   : > { %v4671_v15 = vpop.eup %4670  ;;  %v2490_v47 = vpack.c.bf16 %v4669_v26, %v4665_v22  ;;  %v7375_v22 = vld [vmem:[#allocation23_spill] sm:$0xff] }
 0x543   : > { %v4673_v58 = vpop.eup %4672 }
 0x544   : > { %v4675_v37 = vpop.eup %4674  ;;  %2579 = vmatprep.mubr.bf16.mxu0 %v2490_v47  ;;  %v7376_v47 = vld [vmem:[#allocation19_spill] sm:$0xff] }
 0x545   : > { %v4677_v32 = vpop.eup %4676  ;;  %2580 = vmatmul.mubr.bf16.gmra.mrb[76].mxu0 %v2489_v6  ;;  %v3154_v2 = vpack.c.bf16 %v4675_v37, %v4671_v15 }
 0x546   : > { %v3155_v62 = vpack.c.bf16 %v4677_v32, %v4673_v58 }
 0x548   : > { %3244 = vmatprep.mubr.bf16.mxu1 %v3155_v62  ;;  %v7377_v62 = vld [vmem:[#allocation41_spill] sm:$0xff] }
 0x549   : > { %3245 = vmatmul.mubr.bf16.gmra.mrb[64].mxu1 %v3154_v2 }
 0x5bd   : > { %v4138_v36 = vpop.f32.mrb[48].mxu0 }
 0x5be   : > { %v4139_v18 = vpop.f32.mrb[49].mxu0 }
 0x5bf   : > { %v6635_v3 = vadd.f32 %v4139_v18, %v4138_v36  ;;  %v4141_v42 = vpop.f32.mrb[50].mxu0 }
 0x5c0   : > { %v4142_v45 = vpop.f32.mrb[51].mxu0 }
 0x5c1   : > { %4678 = vrcp.f32 %v6635_v3  ;;  %v6638_v19 = vadd.f32 %v4142_v45, %v4141_v42  ;;  %v4202_v61 = vpop.f32.mrb[36].mxu1  ;;  %v7378_v42 = vld [vmem:[#allocation14_spill] sm:$0xff] }
 0x5c2   : > { %v4203_v55 = vpop.f32.mrb[37].mxu1 }
 0x5c3   : > { %4680 = vrcp.f32 %v6638_v19  ;;  %v6641_v51 = vadd.f32 %v4203_v55, %v4202_v61  ;;  %v4205_v39 = vpop.f32.mrb[38].mxu1  ;;  %v7379_v61 = vld [vmem:[#allocation21_spill] sm:$0xff] }
 0x5c4   : > { %v4206_v41 = vpop.f32.mrb[39].mxu1 }
 0x5c5   : > { %v6643_v23 = vadd.f32 %v4206_v41, %v4205_v39  ;;  %v4144_v48 = vpop.f32.mrb[52].mxu0  ;;  %v7380_v39 = vld [vmem:[#allocation40_spill] sm:$0xff] }
 0x5c6   : > { %v4145_v14 = vpop.f32.mrb[53].mxu0 }
 0x5c7   : > { %v6645_v49 = vadd.f32 %v4145_v14, %v4144_v48  ;;  %v4147_v57 = vpop.f32.mrb[54].mxu0 }
 0x5c8   : > { %v4148_v11 = vpop.f32.mrb[55].mxu0 }
 0x5c9   : > { %4682 = vrcp.f32 %v6645_v49  ;;  %v6648_v59 = vadd.f32 %v4148_v11, %v4147_v57  ;;  %v4208_v44 = vpop.f32.mrb[40].mxu1 }
 0x5ca   : > { %v4209_v12 = vpop.f32.mrb[41].mxu1 }
 0x5cb   : > { %v4679_v27 = vpop.eup %4678  ;;  %4684 = vrcp.f32 %v6648_v59  ;;  %v6651_v53 = vadd.f32 %v4209_v12, %v4208_v44  ;;  %v4211_v21 = vpop.f32.mrb[42].mxu1 }
 0x5cc   : > { %2606 = vperm.xlu0 %4370, %v4679_v27   ;;  %v4212_v38 = vpop.f32.mrb[43].mxu1  ;;  %4686 = vrcp.f32 %v6641_v51 }
 0x5cd   : > { %v4681_v33 = vpop.eup %4680  ;;  %v6654_v30 = vadd.f32 %v4212_v38, %v4211_v21  ;;  %v4150_v25 = vpop.f32.mrb[56].mxu0  ;;  %4688 = vrcp.f32 %v6643_v23  ;;  %v7381_v38 = vld [vmem:[#allocation39_spill] sm:$0xff] }
 0x5ce   : > { %v4151_v13 = vpop.f32.mrb[57].mxu0  ;;  %2611 = vperm.xlu1 %4371, %v4681_v33   ;;  %4690 = vrcp.f32 %v6651_v53 }
 0x5cf   : > { %v6657_v9 = vadd.f32 %v4151_v13, %v4150_v25  ;;  %v4153_v31 = vpop.f32.mrb[58].mxu0  ;;  %4692 = vrcp.f32 %v6654_v30  ;;  %v7382_v25 = vld [vmem:[#allocation20_spill] sm:$0xff] }
 0x5d0   : > { %v4154_v46 = vpop.f32.mrb[59].mxu0  ;;  %4694 = vrcp.f32 %v7373_v1 }
 0x5d1   : > { %v6660_v52 = vadd.f32 %v4154_v46, %v4153_v31  ;;  %v4214_v7 = vpop.f32.mrb[44].mxu1  ;;  %4696 = vrcp.f32 %v7374_v8  ;;  %v7383_v31 = vld [vmem:[#allocation68_spill] sm:$0xff]  ;;  %v4404_v46 = vld [vmem:[%s6888_s6] sm:$0xff]  }
 0x5d2   : > { %v4215_v4 = vpop.f32.mrb[45].mxu1  ;;  %4698 = vrcp.f32 %v7375_v22  ;;  %4292 = vmatprep.subr.bf16.mxu0 %v4404_v46 }
 0x5d3   : > { %v4683_v60 = vpop.eup %4682  ;;  %v6663_v56 = vadd.f32 %v4215_v4, %v4214_v7  ;;  %v4217_v24 = vpop.f32.mrb[46].mxu1  ;;  %4700 = vrcp.f32 %v7376_v47  ;;  %v4405_v7 = vld [vmem:[%s6888_s6 + $0x8] sm:$0xff]   ;;  %4293 = vmatpush3.bf16.msra.mxu0 %v4404_v46 }
 0x5d4   : > { %2616 = vperm.xlu0 %4370, %v4683_v60   ;;  %v4218_v16 = vpop.f32.mrb[47].mxu1  ;;  %4702 = vrcp.f32 %v7377_v62  ;;  %v7384_v60 = vld [vmem:[#allocation33_spill] sm:$0xff]  ;;  %4294 = vmatprep.subr.bf16.mxu0 %v4405_v7 }
 0x5d5   : > { %v4685_v35 = vpop.eup %4684  ;;  %v6666_v29 = vadd.f32 %v4218_v16, %v4217_v24  ;;  %v4156_v17 = vpop.f32.mrb[60].mxu0  ;;  %4704 = vrcp.f32 %v7378_v42  ;;  %v7385_v16 = vld [vmem:[#allocation54_spill] sm:$0xff] }
 0x5d6   : > { %v4157_v54 = vpop.f32.mrb[61].mxu0  ;;  %2621 = vperm.xlu1 %4371, %v4685_v35   ;;  %v4687_v28 = vpop.eup %4686  ;;  %4706 = vrcp.f32 %v7379_v61 }
 0x5d7   : > { %v6669_v50 = vadd.f32 %v4157_v54, %v4156_v17  ;;  %v4159_v10 = vpop.f32.mrb[62].mxu0  ;;  %v4689_v34 = vpop.eup %4688  ;;  %4708 = vrcp.f32 %v7380_v39  ;;  %v7386_v17 = vld [vmem:[#allocation16_spill] sm:$0xff]  ;;  %4295 = vmatpush3.bf16.msra.mxu0 %v4405_v7 }
 0x5d8   : > { %v4160_v40 = vpop.f32.mrb[63].mxu0  ;;  %3271 = vperm.xlu0 %4370, %v4687_v28   ;;  %v4691_v15 = vpop.eup %4690  ;;  %4710 = vrcp.f32 %v6657_v9 }
 0x5d9   : > { %v6672_v43 = vadd.f32 %v4160_v40, %v4159_v10  ;;  %v4220_v26 = vpop.f32.mrb[48].mxu1  ;;  %v4693_v2 = vpop.eup %4692  ;;  %4712 = vrcp.f32 %v6660_v52  ;;  %v7387_v10 = vld [vmem:[#allocation29_spill] sm:$0xff] }
 0x5da   : > { %v4221_v6 = vpop.f32.mrb[49].mxu1  ;;  %3276 = vperm.xlu1 %4371, %v4689_v34   ;;  %v4695_v18 = vpop.eup %4694  ;;  %4714 = vrcp.f32 %v6669_v50 }
 0x5db   : > { %v6675_v58 = vadd.f32 %v4221_v6, %v4220_v26  ;;  %v4223_v37 = vpop.f32.mrb[50].mxu1  ;;  %v4697_v45 = vpop.eup %4696  ;;  %4716 = vrcp.f32 %v6672_v43 }
 0x5dc   : > { %v4224_v32 = vpop.f32.mrb[51].mxu1  ;;  %3281 = vperm.xlu0 %4370, %v4691_v15   ;;  %v4699_v55 = vpop.eup %4698  ;;  %4718 = vrcp.f32 %v6663_v56  ;;  %v7388_v15 = vld [vmem:[#allocation30_spill] sm:$0xff] }
 0x5dd   : > { %v6678_v36 = vadd.f32 %v4224_v32, %v4223_v37  ;;  %v4701_v41 = vpop.eup %4700  ;;  %4720 = vrcp.f32 %v6666_v29 }
 0x5de   : > { %3286 = vperm.xlu1 %4371, %v4693_v2   ;;  %v4703_v48 = vpop.eup %4702  ;;  %4722 = vrcp.f32 %v6675_v58 }
 0x5df   : > { %v4705_v14 = vpop.eup %4704  ;;  %4724 = vrcp.f32 %v6678_v36 }
 0x5e0   : > { %1296 = vperm.xlu0 %4370, %v4695_v18   ;;  %v4707_v57 = vpop.eup %4706  ;;  %4726 = vrcp.f32 %v7381_v38 }
 0x5e1   : > { %v4709_v11 = vpop.eup %4708  ;;  %4728 = vrcp.f32 %v7382_v25 }
 0x5e2   : > { %1301 = vperm.xlu1 %4371, %v4697_v45   ;;  %v4711_v44 = vpop.eup %4710  ;;  %4730 = vrcp.f32 %v7383_v31 }
 0x5e3   : > { %v4713_v12 = vpop.eup %4712  ;;  %4732 = vrcp.f32 %v7384_v60 }
 0x5e4   : > { %1961 = vperm.xlu0 %4370, %v4699_v55   ;;  %v4715_v27 = vpop.eup %4714  ;;  %4734 = vrcp.f32 %v7385_v16 }
 0x5e5   : > { %v4717_v21 = vpop.eup %4716  ;;  %4736 = vrcp.f32 %v7386_v17 }
 0x5e6   : > { %1966 = vperm.xlu1 %4371, %v4701_v41   ;;  %v4719_v33 = vpop.eup %4718  ;;  %4738 = vrcp.f32 %v7387_v10 }
 0x5e7   : > { %v4721_v13 = vpop.eup %4720  ;;  %4740 = vrcp.f32 %v7388_v15 }
 0x5e8   : > { %1306 = vperm.xlu0 %4370, %v4703_v48   ;;  %v4723_v4 = vpop.eup %4722 }
 0x5e9   : > { %v4725_v24 = vpop.eup %4724 }
 0x5ea   : > { %1311 = vperm.xlu1 %4371, %v4705_v14   ;;  %v4727_v35 = vpop.eup %4726 }
 0x5eb   : > { %v4729_v28 = vpop.eup %4728 }
 0x5ec   : > { %1971 = vperm.xlu0 %4370, %v4707_v57   ;;  %v4731_v6 = vpop.eup %4730 }
 0x5ed   : > { %v4733_v18 = vpop.eup %4732 }
 0x5ee   : > { %1976 = vperm.xlu1 %4371, %v4709_v11   ;;  %v4735_v48 = vpop.eup %4734 }
 0x5f0   : > { %2626 = vperm.xlu0 %4370, %v4711_v44   ;;  %v4737_v44 = vpop.eup %4736 }
 0x5f2   : > { %2631 = vperm.xlu1 %4371, %v4713_v12  }
 0x5f4   : > { %2636 = vperm.xlu0 %4370, %v4715_v27  }
 0x5f6   : > { %2641 = vperm.xlu1 %4371, %v4717_v21  }
 0x5f8   : > { %3291 = vperm.xlu0 %4370, %v4719_v33   ;;  %v4739_v33 = vpop.eup %4738 }
 0x5fa   : > { %3296 = vperm.xlu1 %4371, %v4721_v13  }
 0x5fc   : > { %3301 = vperm.xlu0 %4370, %v4723_v4   ;;  %v4741_v4 = vpop.eup %4740 }
 0x5fe   : > { %3306 = vperm.xlu1 %4371, %v4725_v24  }
 0x600   : > { %v4162_v54 = vpop.f32.mrb[64].mxu0  ;;  %1316 = vperm.xlu0 %4370, %v4727_v35  }
 0x601   : > { %v4163_v40 = vpop.f32.mrb[65].mxu0 }
 0x602   : > { %v6704_v34 = vadd.f32 %v4163_v40, %v4162_v54  ;;  %v4165_v26 = vpop.f32.mrb[66].mxu0  ;;  %1321 = vperm.xlu1 %4371, %v4729_v28  }
 0x603   : > { %v4166_v37 = vpop.f32.mrb[67].mxu0 }
 0x604   : > { %v6707_v32 = vadd.f32 %v4166_v37, %v4165_v26  ;;  %v4226_v2 = vpop.f32.mrb[52].mxu1  ;;  %1981 = vperm.xlu0 %4370, %v4731_v6   ;;  %4742 = vrcp.f32 %v6704_v34 }
 0x605   : > { %v4227_v45 = vpop.f32.mrb[53].mxu1 }
 0x606   : > { %v6710_v55 = vadd.f32 %v4227_v45, %v4226_v2  ;;  %v4229_v41 = vpop.f32.mrb[54].mxu1  ;;  %1986 = vperm.xlu1 %4371, %v4733_v18   ;;  %4744 = vrcp.f32 %v6707_v32 }
 0x607   : > { %v4230_v14 = vpop.f32.mrb[55].mxu1 }
 0x608   : > { %v6713_v57 = vadd.f32 %v4230_v14, %v4229_v41  ;;  %v4168_v11 = vpop.f32.mrb[68].mxu0  ;;  %1326 = vperm.xlu0 %4370, %v4735_v48  }
 0x609   : > { %v4169_v12 = vpop.f32.mrb[69].mxu0 }
 0x60a   : > { %7389 = vst [vmem:[#allocation64_spill] sm:$0xff] %v6713_v57  ;;  %v6715_v27 = vadd.f32 %v4169_v12, %v4168_v11  ;;  %v4171_v21 = vpop.f32.mrb[70].mxu0  ;;  %1331 = vperm.xlu1 %4371, %v4737_v44  }
 0x60b   : > { %v4172_v13 = vpop.f32.mrb[71].mxu0 }
 0x60c   : > { %4746 = vrcp.f32 %v6715_v27  ;;  %v6718_v46 = vadd.f32 %v4172_v13, %v4171_v21  ;;  %v4232_v7 = vpop.f32.mrb[56].mxu1  ;;  %1991 = vperm.xlu0 %4370, %v4739_v33  }
 0x60d   : > { %v4233_v24 = vpop.f32.mrb[57].mxu1 }
 0x60e   : > { %7390 = vst [vmem:[#allocation61_spill] sm:$0xff] %v6718_v46  ;;  %4748 = vrcp.f32 %v6718_v46  ;;  %v6721_v35 = vadd.f32 %v4233_v24, %v4232_v7  ;;  %v4235_v54 = vpop.f32.mrb[58].mxu1  ;;  %1996 = vperm.xlu1 %4371, %v4741_v4   ;;  %v4743_v28 = vpop.eup %4742  ;;  %v7396_v7 = vld [vmem:[#allocation80_spill] sm:$0xff] }
 0x60f   : > { %v4236_v40 = vpop.f32.mrb[59].mxu1  ;;  %4750 = vrcp.f32 %v6710_v55 }
 0x610   : > { %7391 = vst [vmem:[#allocation62_spill] sm:$0xff] %v6721_v35  ;;  %v6724_v26 = vadd.f32 %v4236_v40, %v4235_v54  ;;  %v4174_v6 = vpop.f32.mrb[72].mxu0  ;;  %2646 = vperm.xlu0 %4370, %v4743_v28   ;;  %v4745_v37 = vpop.eup %4744  ;;  %4752 = vrcp.f32 %v6713_v57  ;;  %v7398_v40 = vld [vmem:[#allocation81_spill] sm:$0xff]  ;;  %v7410_v57 = vld [vmem:[#allocation42_spill] sm:$0xff] }
 0x611   : > { %v4175_v2 = vpop.f32.mrb[73].mxu0  ;;  %4754 = vrcp.f32 %v6721_v35 }
 0x612   : > { %7392 = vst [vmem:[#allocation15_spill] sm:$0xff] %v6724_v26  ;;  %v6727_v18 = vadd.f32 %v4175_v2, %v4174_v6  ;;  %v4177_v45 = vpop.f32.mrb[74].mxu0  ;;  %2651 = vperm.xlu1 %4371, %v4745_v37   ;;  %4756 = vrcp.f32 %v6724_v26 }
 0x613   : > { %v4178_v41 = vpop.f32.mrb[75].mxu0  ;;  %4758 = vrcp.f32 %v7396_v7 }
 0x614   : > { %7393 = vst [vmem:[#allocation2_spill] sm:$0xff] %v6727_v18  ;;  %v6730_v48 = vadd.f32 %v4178_v41, %v4177_v45  ;;  %v4238_v14 = vpop.f32.mrb[60].mxu1  ;;  %4760 = vrcp.f32 %v7398_v40  ;;  %v7400_v41 = vld [vmem:[#allocation57_spill] sm:$0xff] }
 0x615   : > { %v4239_v11 = vpop.f32.mrb[61].mxu1  ;;  %4762 = vrcp.f32 %v7400_v41  ;;  %v7404_v40 = vld [vmem:[#allocation25_spill] sm:$0xff] }
 0x616   : > { %7394 = vst [vmem:[#allocation17_spill] sm:$0xff] %v6730_v48  ;;  %v4747_v44 = vpop.eup %4746  ;;  %v6733_v12 = vadd.f32 %v4239_v11, %v4238_v14  ;;  %v4241_v21 = vpop.f32.mrb[62].mxu1 }
 0x617   : > { %2656 = vperm.xlu0 %4370, %v4747_v44   ;;  %v4242_v33 = vpop.f32.mrb[63].mxu1 }
 0x618   : > { %7395 = vst [vmem:[#allocation50_spill] sm:$0xff] %v6733_v12  ;;  %v4749_v13 = vpop.eup %4748  ;;  %v6736_v4 = vadd.f32 %v4242_v33, %v4241_v21  ;;  %v4180_v24 = vpop.f32.mrb[76].mxu0  ;;  %v7402_v33 = vld [vmem:[#allocation58_spill] sm:$0xff] }
 0x619   : > { %2661 = vperm.xlu1 %4371, %v4749_v13   ;;  %v4181_v54 = vpop.f32.mrb[77].mxu0  ;;  %v4751_v28 = vpop.eup %4750  ;;  %4764 = vrcp.f32 %v7402_v33 }
 0x61a   : > { %7397 = vst [vmem:[#allocation53_spill] sm:$0xff] %v6736_v4  ;;  %v6739_v6 = vadd.f32 %v4181_v54, %v4180_v24  ;;  %v4183_v37 = vpop.f32.mrb[78].mxu0  ;;  %v4753_v45 = vpop.eup %4752  ;;  %4766 = vrcp.f32 %v7404_v40 }
 0x61b   : > { %3311 = vperm.xlu0 %4370, %v4751_v28   ;;  %v4184_v2 = vpop.f32.mrb[79].mxu0  ;;  %v4755_v21 = vpop.eup %4754 }
 0x61c   : > { %7399 = vst [vmem:[#allocation74_spill] sm:$0xff] %v6739_v6  ;;  %v6742_v14 = vadd.f32 %v4184_v2, %v4183_v37  ;;  %v4244_v11 = vpop.f32.mrb[64].mxu1  ;;  %v4757_v54 = vpop.eup %4756  ;;  %v7406_v37 = vld [vmem:[#allocation43_spill] sm:$0xff] }
 0x61d   : > { %3316 = vperm.xlu1 %4371, %v4753_v45   ;;  %v4245_v44 = vpop.f32.mrb[65].mxu1  ;;  %v4759_v41 = vpop.eup %4758  ;;  %4768 = vrcp.f32 %v7406_v37  ;;  %v7407_v45 = vld [vmem:[#allocation26_spill] sm:$0xff] }
 0x61e   : > { %7401 = vst [vmem:[#allocation75_spill] sm:$0xff] %v6742_v14  ;;  %v6745_v13 = vadd.f32 %v4245_v44, %v4244_v11  ;;  %v4247_v7 = vpop.f32.mrb[66].mxu1  ;;  %v4761_v2 = vpop.eup %4760  ;;  %4770 = vrcp.f32 %v7407_v45  ;;  %v7408_v11 = vld [vmem:[#allocation48_spill] sm:$0xff] }
 0x61f   : > { %3321 = vperm.xlu0 %4370, %v4755_v21   ;;  %v4248_v24 = vpop.f32.mrb[67].mxu1  ;;  %v4763_v33 = vpop.eup %4762  ;;  %4772 = vrcp.f32 %v7408_v11 }
 0x620   : > { %7403 = vst [vmem:[#allocation55_spill] sm:$0xff] %v6745_v13  ;;  %v6748_v28 = vadd.f32 %v4248_v24, %v4247_v7  ;;  %4774 = vrcp.f32 %v6727_v18  ;;  %v1282_v21 = vpop.permute.xlu1 %1281 }
 0x621   : > { %3326 = vperm.xlu1 %4371, %v4757_v54   ;;  %4776 = vrcp.f32 %v6730_v48  ;;  %v7409_v48 = vld [vmem:[#allocation36_spill] sm:$0xff] }
 0x622   : > { %7405 = vst [vmem:[#allocation5_spill] sm:$0xff] %v6748_v28  ;;  %4778 = vrcp.f32 %v6739_v6 }
 0x623   : > { %1336 = vperm.xlu0 %4370, %v4759_v41   ;;  %v4765_v44 = vpop.eup %4764  ;;  %4780 = vrcp.f32 %v6742_v14 }
 0x624   : > { %v4767_v7 = vpop.eup %4766  ;;  %v1942_v54 = vpop.permute.xlu1 %1941  ;;  %4782 = vrcp.f32 %v6733_v12 }
 0x625   : > { %1341 = vperm.xlu1 %4371, %v4761_v2   ;;  %4784 = vrcp.f32 %v6736_v4 }
 0x626   : > { %4786 = vrcp.f32 %v6745_v13  ;;  %v1277_v13 = vpop.permute.xlu0 %1276 }
 0x627   : > { %2001 = vperm.xlu0 %4370, %v4763_v33   ;;  %v4769_v24 = vpop.eup %4768  ;;  %4788 = vrcp.f32 %v6748_v28  ;;  %v2019_v28 = vmul.f32 %v6052_v5, %v1942_v54  ;;  %v1354_v45 = vmul.f32 %v7409_v48, %v1277_v13  ;;  %v7411_v5 = vld [vmem:[#allocation9_spill] sm:$0xff] }
 0x628   : > { %v4771_v41 = vpop.eup %4770 }
 0x629   : > { %2006 = vperm.xlu1 %4371, %v4765_v44   ;;  %v4773_v2 = vpop.eup %4772  ;;  %v2035_v18 = vadd.f32 %v2019_v28, %v1354_v45 }
 0x62a   : > { %v4775_v33 = vpop.eup %4774 }
 0x62b   : > { %1346 = vperm.xlu0 %4370, %v4767_v7   ;;  %v4777_v44 = vpop.eup %4776  ;;  %v1947_v7 = vpop.permute.xlu1 %1946 }
 0x62c   : > { %v4779_v37 = vpop.eup %4778 }
 0x62d   : > { %1351 = vperm.xlu1 %4371, %v4769_v24   ;;  %v4781_v24 = vpop.eup %4780 }
 0x62f   : > { %2011 = vperm.xlu0 %4370, %v4771_v41   ;;  %v4783_v41 = vpop.eup %4782  ;;  %v1287_v14 = vpop.permute.xlu1 %1286 }
 0x630   : > { %v4785_v12 = vpop.eup %4784  ;;  %v1356_v54 = vmul.f32 %v7411_v5, %v1287_v14 }
 0x631   : > { %2016 = vperm.xlu1 %4371, %v4773_v2   ;;  %v4787_v2 = vpop.eup %4786 }
 0x632   : > { %v4789_v4 = vpop.eup %4788 }
 0x633   : > { %2666 = vperm.xlu0 %4370, %v4775_v33   ;;  %v1292_v33 = vpop.permute.xlu1 %1291 }
 0x635   : > { %2671 = vperm.xlu1 %4371, %v4777_v44  }
 0x637   : > { %2676 = vperm.xlu0 %4370, %v4779_v37   ;;  %v1952_v6 = vpop.permute.xlu1 %1951  ;;  %v2020_v37 = vmul.f32 %v6054_v20, %v1947_v7 }
 0x639   : > { %2681 = vperm.xlu1 %4371, %v4781_v24  }
 0x63b   : > { %3331 = vperm.xlu0 %4370, %v4783_v41   ;;  %v1957_v11 = vpop.permute.xlu1 %1956 }
 0x63c   : > { %v2022_v46 = vmul.f32 %v7410_v57, %v1957_v11 }
 0x63d   : > { %3336 = vperm.xlu1 %4371, %v4785_v12   ;;  %v1355_v12 = vmul.f32 %v6042_v63, %v1282_v21 }
 0x63f   : > { %3341 = vperm.xlu0 %4370, %v4787_v2   ;;  %v2036_v35 = vadd.f32 %v2020_v37, %v1355_v12 }
 0x641   : > { %3346 = vperm.xlu1 %4371, %v4789_v4   ;;  %v2021_v4 = vmul.f32 %v6062_v0, %v1952_v6  ;;  %v6777_v0 = vld [vmem:[%s6886_s4] ss:$0 sm:$0xff] }
 0x64b   : > { %v2607_v44 = vpop.permute.xlu0 %2606 }
 0x64c   : > { %v2684_v41 = vmul.f32 %v6635_v3, %v2607_v44  ;;  %v7412_v3 = vld [vmem:[#allocation49_spill] sm:$0xff] }
 0x64d   : > { %v2612_v40 = vpop.permute.xlu1 %2611  ;;  %v1357_v13 = vmul.f32 %v7412_v3, %v1292_v33 }
 0x64e   : > { %v2685_v26 = vmul.f32 %v6638_v19, %v2612_v40  ;;  %v2700_v20 = vadd.f32 %v2684_v41, %v2035_v18  ;;  %v2037_v40 = vadd.f32 %v2021_v4, %v1356_v54 }
 0x64f   : > { %v2038_v18 = vadd.f32 %v2022_v46, %v1357_v13 }
 0x650   : > { %v2701_v57 = vadd.f32 %v2685_v26, %v2036_v35 }
 0x653   : > { %v2617_v24 = vpop.permute.xlu0 %2616 }
 0x654   : > { %v2686_v7 = vmul.f32 %v6645_v49, %v2617_v24 }
 0x655   : > { %v2622_v2 = vpop.permute.xlu1 %2621 }
 0x656   : > { %v2687_v63 = vmul.f32 %v6648_v59, %v2622_v2 }
 0x657   : > { %v3272_v17 = vpop.permute.xlu0 %3271 }
 0x658   : > { %v3349_v48 = vmul.f32 %v6641_v51, %v3272_v17  ;;  %v6783_v51 = vld [vmem:[%s6887_s5] ss:$0 sm:$0xff]  ;;  %v2702_v17 = vadd.f32 %v2686_v7, %v2037_v40  ;;  %v2703_v11 = vadd.f32 %v2687_v63, %v2038_v18 }
 0x659   : > { %v3277_v19 = vpop.permute.xlu1 %3276 }
 0x65a   : > { %v3365_v6 = vadd.f32 %v3349_v48, %v2700_v20  ;;  %v3350_v14 = vmul.f32 %v6643_v23, %v3277_v19 }
 0x65b   : > { %v3282_v49 = vpop.permute.xlu0 %3281 }
 0x65c   : > { %v3388_v59 = vmul.f32 %v6777_v0, %v3365_v6  ;;  %v3366_v28 = vadd.f32 %v3350_v14, %v2701_v57  ;;  %v3351_v45 = vmul.f32 %v6651_v53, %v3282_v49 }
 0x65d   : > { %v3287_v21 = vpop.permute.xlu1 %3286 }
 0x65e   : > { %v3411_v35 = vadd.f32 %v6783_v51, %v3388_v59  ;;  %v3389_v26 = vmul.f32 %v6777_v0, %v3366_v28  ;;  %v3367_v23 = vadd.f32 %v3351_v45, %v2702_v17  ;;  %v3352_v46 = vmul.f32 %v6654_v30, %v3287_v21 }
 0x65f   : > { %v1297_v33 = vpop.permute.xlu0 %1296 }
 0x660   : > { %v3443_v44 = vmin.f32 %v3411_v35, 0.0  ;;  %v3412_v37 = vadd.f32 %v6783_v51, %v3389_v26  ;;  %v3390_v24 = vmul.f32 %v6777_v0, %v3367_v23  ;;  %v3368_v41 = vadd.f32 %v3352_v46, %v2703_v11 }
 0x661   : > { %v1302_v12 = vpop.permute.xlu1 %1301  ;;  %v1358_v21 = vmul.f32 %v7373_v1, %v1297_v33  ;;  %vm3427_vm1 = vcmp.gt.f32.partialorder %v3411_v35, 0.0 }
 0x662   : > { %v3459_v2 = vmul.f32 1.442695, %v3443_v44  ;;  %v3444_v4 = vmin.f32 %v3412_v37, 0.0  ;;  %v3413_v53 = vadd.f32 %v6783_v51, %v3390_v24  ;;  %v3391_v5 = vmul.f32 %v6777_v0, %v3368_v41 }
 0x663   : > { %v1962_v54 = vpop.permute.xlu0 %1961  ;;  %vm3428_vm2 = vcmp.gt.f32.partialorder %v3412_v37, 0.0 }
 0x664   : > { %4790 = vpow2.f32 %v3459_v2  ;;  %v3461_v20 = vmul.f32 1.442695, %v3444_v4  ;;  %v3445_v7 = vmin.f32 %v3413_v53, 0.0  ;;  %v3414_v30 = vadd.f32 %v6783_v51, %v3391_v5 }
 0x665   : > { %v1967_v48 = vpop.permute.xlu1 %1966  ;;  %v2023_v59 = vmul.f32 %v7375_v22, %v1962_v54  ;;  %vm3429_vm3 = vcmp.gt.f32.partialorder %v3413_v53, 0.0  ;;  %v1359_v22 = vmul.f32 %v7374_v8, %v1302_v12 }
 0x666   : > { %4792 = vpow2.f32 %v3461_v20  ;;  %v3463_v3 = vmul.f32 1.442695, %v3445_v7  ;;  %v3446_v13 = vmin.f32 %v3414_v30, 0.0  ;;  %v2024_v26 = vmul.f32 %v7376_v47, %v1967_v48 }
 0x667   : > { %v1307_v63 = vpop.permute.xlu0 %1306  ;;  %v2039_v5 = vadd.f32 %v2023_v59, %v1358_v21  ;;  %vm3430_vm4 = vcmp.gt.f32.partialorder %v3414_v30, 0.0 }
 0x668   : > { %4794 = vpow2.f32 %v3463_v3  ;;  %v3465_v19 = vmul.f32 1.442695, %v3446_v13  ;;  %v1360_v47 = vmul.f32 %v7377_v62, %v1307_v63 }
 0x669   : > { %v1312_v40 = vpop.permute.xlu1 %1311 }
 0x66a   : > { %4796 = vpow2.f32 %v3465_v19 }
 0x66b   : > { %v1972_v57 = vpop.permute.xlu0 %1971 }
 0x66c   : > { %v2025_v1 = vmul.f32 %v7379_v61, %v1972_v57  ;;  %v1361_v61 = vmul.f32 %v7378_v42, %v1312_v40 }
 0x66d   : > { %v1977_v6 = vpop.permute.xlu1 %1976 }
 0x66e   : > { %v4791_v14 = vpop.eup %4790  ;;  %v2041_v57 = vadd.f32 %v2025_v1, %v1360_v47 }
 0x66f   : > { %v2627_v18 = vpop.permute.xlu0 %2626  ;;  %v3852_v49 = vadd.f32 -1.0, %v4791_v14 }
 0x670   : > { %v4793_v17 = vpop.eup %4792  ;;  %v2688_v23 = vmul.f32 %v6657_v9, %v2627_v18  ;;  %v2040_v9 = vadd.f32 %v2024_v26, %v1359_v22 }
 0x671   : > { %v2632_v28 = vpop.permute.xlu1 %2631  ;;  %v3853_v45 = vadd.f32 -1.0, %v4793_v17  ;;  %v3507_v44 = vsel %vm3427_vm1, %v3411_v35, %v3852_v49  ;;  %v2026_v35 = vmul.f32 %v7380_v39, %v1977_v6 }
 0x672   : > { %v4795_v11 = vpop.eup %4794  ;;  %v2689_v33 = vmul.f32 %v6660_v52, %v2632_v28 }
 0x673   : > { %v2637_v46 = vpop.permute.xlu0 %2636  ;;  %v3508_v24 = vsel %vm3428_vm2, %v3412_v37, %v3853_v45  ;;  %v3854_v41 = vadd.f32 -1.0, %v4795_v11  ;;  %v2704_v37 = vadd.f32 %v2688_v23, %v2039_v5  ;;  %v2042_v39 = vadd.f32 %v2026_v35, %v1361_v61 }
 0x674   : > { %v3523_v2 = vpack.c.bf16 %v3508_v24, %v3507_v44  ;;  %v4797_v4 = vpop.eup %4796  ;;  %v2690_v8 = vmul.f32 %v6669_v50, %v2637_v46  ;;  %v2705_v14 = vadd.f32 %v2689_v33, %v2040_v9 }
 0x675   : > { %v2642_v54 = vpop.permute.xlu1 %2641  ;;  %v3855_v20 = vadd.f32 -1.0, %v4797_v4  ;;  %v3509_v48 = vsel %vm3429_vm3, %v3413_v53, %v3854_v41 }
 0x676   : > { %4296 = vmatprep.mubr.msk.bf16.mxu0 %vm1095_vm0, %v3523_v2  ;;  %v2691_v52 = vmul.f32 %v6672_v43, %v2642_v54 }
 0x677   : > { %v3292_v7 = vpop.permute.xlu0 %3291  ;;  %v3510_v3 = vsel %vm3430_vm4, %v3414_v30, %v3855_v20  ;;  %v2706_v30 = vadd.f32 %v2690_v8, %v2041_v57 }
 0x678   : > { %v3353_v12 = vmul.f32 %v6663_v56, %v3292_v7  ;;  %v3524_v13 = vpack.c.bf16 %v3510_v3, %v3509_v48  ;;  %v2707_v6 = vadd.f32 %v2691_v52, %v2042_v39 }
 0x679   : > { %v3297_v19 = vpop.permute.xlu1 %3296 }
 0x67a   : > { %v3369_v18 = vadd.f32 %v3353_v12, %v2704_v37  ;;  %v3354_v62 = vmul.f32 %v6666_v29, %v3297_v19  ;;  %4297 = vmatmul.mubr.msk.bf16.vlgmr.msra.gmra.mrb[80].mxu0 %vm1095_vm0, %v3524_v13 }
 0x67b   : > { %v3302_v53 = vpop.permute.xlu0 %3301 }
 0x67c   : > { %v3392_v50 = vmul.f32 %v6777_v0, %v3369_v18  ;;  %v3370_v63 = vadd.f32 %v3354_v62, %v2705_v14  ;;  %v3355_v56 = vmul.f32 %v6675_v58, %v3302_v53 }
 0x67d   : > { %v3307_v42 = vpop.permute.xlu1 %3306 }
 0x67e   : > { %v3415_v43 = vadd.f32 %v6783_v51, %v3392_v50  ;;  %v3393_v40 = vmul.f32 %v6777_v0, %v3370_v63  ;;  %v3371_v49 = vadd.f32 %v3355_v56, %v2706_v30  ;;  %v3356_v17 = vmul.f32 %v6678_v36, %v3307_v42 }
 0x67f   : > { %v1317_v29 = vpop.permute.xlu0 %1316 }
 0x680   : > { %v3447_v59 = vmin.f32 %v3415_v43, 0.0  ;;  %v3416_v28 = vadd.f32 %v6783_v51, %v3393_v40  ;;  %v3394_v45 = vmul.f32 %v6777_v0, %v3371_v49  ;;  %v3372_v11 = vadd.f32 %v3356_v17, %v2707_v6  ;;  %v7413_v17 = vld [vmem:[#allocation16_spill] sm:$0xff] }
 0x681   : > { %v1322_v21 = vpop.permute.xlu1 %1321  ;;  %vm3431_vm5 = vcmp.gt.f32.partialorder %v3415_v43, 0.0  ;;  %v1362_v62 = vmul.f32 %v7381_v38, %v1317_v29 }
 0x682   : > { %v3467_v26 = vmul.f32 1.442695, %v3447_v59  ;;  %v3448_v23 = vmin.f32 %v3416_v28, 0.0  ;;  %v3417_v58 = vadd.f32 %v6783_v51, %v3394_v45  ;;  %v3395_v46 = vmul.f32 %v6777_v0, %v3372_v11  ;;  %v7414_v59 = vld [vmem:[#allocation61_spill] sm:$0xff] }
 0x683   : > { %v1982_v44 = vpop.permute.xlu0 %1981  ;;  %vm3432_vm6 = vcmp.gt.f32.partialorder %v3416_v28, 0.0  ;;  %v1363_v50 = vmul.f32 %v7382_v25, %v1322_v21  ;;  %v7415_v21 = vld [vmem:[#allocation64_spill] sm:$0xff] }
 0x684   : > { %4798 = vpow2.f32 %v3467_v26  ;;  %v3469_v24 = vmul.f32 1.442695, %v3448_v23  ;;  %v3449_v41 = vmin.f32 %v3417_v58, 0.0  ;;  %v3418_v36 = vadd.f32 %v6783_v51, %v3395_v46 }
 0x685   : > { %v1987_v2 = vpop.permute.xlu1 %1986  ;;  %v2027_v19 = vmul.f32 %v7383_v31, %v1982_v44  ;;  %vm3433_vm7 = vcmp.gt.f32.partialorder %v3417_v58, 0.0  ;;  %v7416_v44 = vld [vmem:[#allocation62_spill] sm:$0xff] }
 0x686   : > { %4800 = vpow2.f32 %v3469_v24  ;;  %v3471_v4 = vmul.f32 1.442695, %v3449_v41  ;;  %v3450_v22 = vmin.f32 %v3418_v36, 0.0  ;;  %v2028_v14 = vmul.f32 %v7384_v60, %v1987_v2 }
 0x687   : > { %v1327_v5 = vpop.permute.xlu0 %1326  ;;  %vm3434_vm8 = vcmp.gt.f32.partialorder %v3418_v36, 0.0  ;;  %v2043_v6 = vadd.f32 %v2027_v19, %v1362_v62 }
 0x688   : > { %4802 = vpow2.f32 %v3471_v4  ;;  %v3473_v54 = vmul.f32 1.442695, %v3450_v22  ;;  %v2044_v42 = vadd.f32 %v2028_v14, %v1363_v50  ;;  %v1364_v38 = vmul.f32 %v7385_v16, %v1327_v5  ;;  %v7417_v4 = vld [vmem:[#allocation15_spill] sm:$0xff] }
 0x689   : > { %v1332_v20 = vpop.permute.xlu1 %1331 }
 0x68a   : > { %4804 = vpow2.f32 %v3473_v54  ;;  %v1365_v29 = vmul.f32 %v7413_v17, %v1332_v20 }
 0x68b   : > { %v1992_v1 = vpop.permute.xlu0 %1991 }
 0x68c   : > { %v2029_v31 = vmul.f32 %v7387_v10, %v1992_v1 }
 0x68d   : > { %v1997_v9 = vpop.permute.xlu1 %1996 }
 0x68e   : > { %v4799_v33 = vpop.eup %4798  ;;  %v2045_v45 = vadd.f32 %v2029_v31, %v1364_v38 }
 0x68f   : > { %v3856_v47 = vadd.f32 -1.0, %v4799_v33  ;;  %v2647_v48 = vpop.permute.xlu0 %2646 }
 0x690   : > { %v4801_v35 = vpop.eup %4800  ;;  %v2692_v39 = vmul.f32 %v6704_v34, %v2647_v48 }
 0x691   : > { %v3857_v37 = vadd.f32 -1.0, %v4801_v35  ;;  %v3511_v3 = vsel %vm3431_vm5, %v3415_v43, %v3856_v47  ;;  %v2652_v61 = vpop.permute.xlu1 %2651  ;;  %v2030_v43 = vmul.f32 %v7388_v15, %v1997_v9 }
 0x692   : > { %v4803_v7 = vpop.eup %4802  ;;  %v2693_v60 = vmul.f32 %v6707_v32, %v2652_v61  ;;  %v2708_v34 = vadd.f32 %v2692_v39, %v2043_v6 }
 0x693   : > { %v3512_v8 = vsel %vm3432_vm6, %v3416_v28, %v3857_v37  ;;  %v3858_v12 = vadd.f32 -1.0, %v4803_v7  ;;  %v2046_v26 = vadd.f32 %v2030_v43, %v1365_v29 }
 0x694   : > { %v4805_v13 = vpop.eup %4804  ;;  %v3525_v52 = vpack.c.bf16 %v3512_v8, %v3511_v3  ;;  %v2709_v32 = vadd.f32 %v2693_v60, %v2044_v42  ;;  %v7419_v42 = vld [vmem:[#allocation58_spill] sm:$0xff] }
 0x695   : > { %v3859_v57 = vadd.f32 -1.0, %v4805_v13  ;;  %v3513_v53 = vsel %vm3433_vm7, %v3417_v58, %v3858_v12 }
 0x696   : > { %v2657_v18 = vpop.permute.xlu0 %2656  ;;  %4300 = vmatprep.mubr.msk.bf16.mxu0 %vm1095_vm0, %v3525_v52 }
 0x697   : > { %v3514_v30 = vsel %vm3434_vm8, %v3418_v36, %v3859_v57  ;;  %v2694_v49 = vmul.f32 %v6715_v27, %v2657_v18 }
 0x698   : > { %v2662_v63 = vpop.permute.xlu1 %2661  ;;  %v3526_v56 = vpack.c.bf16 %v3514_v30, %v3513_v53 }
 0x699   : > { %v2695_v28 = vmul.f32 %v7414_v59, %v2662_v63  ;;  %v2710_v58 = vadd.f32 %v2694_v49, %v2045_v45  ;;  %v7418_v63 = vld [vmem:[#allocation57_spill] sm:$0xff] }
 0x69a   : > { %v3312_v40 = vpop.permute.xlu0 %3311  ;;  %4301 = vmatmul.mubr.msk.bf16.gmra.mrb[84].mxu0 %vm1095_vm0, %v3526_v56  ;;  %v7421_v59 = vld [vmem:[#allocation81_spill] sm:$0xff] }
 0x69b   : > { %v3357_v25 = vmul.f32 %v6710_v55, %v3312_v40  ;;  %v2711_v24 = vadd.f32 %v2695_v28, %v2046_v26  ;;  %v7420_v40 = vld [vmem:[#allocation80_spill] sm:$0xff] }
 0x69c   : > { %v3317_v10 = vpop.permute.xlu1 %3316 }
 0x69d   : > { %v3373_v11 = vadd.f32 %v3357_v25, %v2708_v34  ;;  %v3358_v15 = vmul.f32 %v7415_v21, %v3317_v10  ;;  %v7422_v10 = vld [vmem:[#allocation2_spill] sm:$0xff] }
 0x69e   : > { %v3322_v23 = vpop.permute.xlu0 %3321 }
 0x69f   : > { %v3396_v16 = vmul.f32 %v6777_v0, %v3373_v11  ;;  %v3374_v46 = vadd.f32 %v3358_v15, %v2709_v32  ;;  %v3359_v27 = vmul.f32 %v7416_v44, %v3322_v23  ;;  %v7423_v23 = vld [vmem:[#allocation26_spill] sm:$0xff]  ;;  %v7425_v44 = vld [vmem:[#allocation25_spill] sm:$0xff] }
 0x6a0   : > { %v3327_v55 = vpop.permute.xlu1 %3326 }
 0x6a1   : > { %v3419_v41 = vadd.f32 %v6783_v51, %v3396_v16  ;;  %v3397_v36 = vmul.f32 %v6777_v0, %v3374_v46  ;;  %v3375_v2 = vadd.f32 %v3359_v27, %v2710_v58  ;;  %v3360_v22 = vmul.f32 %v7417_v4, %v3327_v55  ;;  %v7424_v16 = vld [vmem:[#allocation17_spill] sm:$0xff] }
 0x6a2   : > { %v1337_v5 = vpop.permute.xlu0 %1336 }
 0x6a3   : > { %v3451_v54 = vmin.f32 %v3419_v41, 0.0  ;;  %v3420_v20 = vadd.f32 %v6783_v51, %v3397_v36  ;;  %v3398_v1 = vmul.f32 %v6777_v0, %v3375_v2  ;;  %v3376_v33 = vadd.f32 %v3360_v22, %v2711_v24  ;;  %v7426_v24 = vld [vmem:[#allocation48_spill] sm:$0xff]  ;;  %v7427_v22 = vld [vmem:[#allocation74_spill] sm:$0xff] }
 0x6a4   : > { %v1342_v9 = vpop.permute.xlu1 %1341  ;;  %vm3435_vm9 = vcmp.gt.f32.partialorder %v3419_v41, 0.0  ;;  %v1366_v38 = vmul.f32 %v7420_v40, %v1337_v5 }
 0x6a5   : > { %v3475_v47 = vmul.f32 1.442695, %v3451_v54  ;;  %v3452_v35 = vmin.f32 %v3420_v20, 0.0  ;;  %v3421_v37 = vadd.f32 %v6783_v51, %v3398_v1  ;;  %v3399_v7 = vmul.f32 %v6777_v0, %v3376_v33  ;;  %v7428_v54 = vld [vmem:[#allocation50_spill] sm:$0xff]  ;;  %v7429_v33 = vld [vmem:[#allocation43_spill] sm:$0xff] }
 0x6a6   : > { %v2002_v48 = vpop.permute.xlu0 %2001  ;;  %vm3436_vm10 = vcmp.gt.f32.partialorder %v3420_v20, 0.0  ;;  %v1367_v28 = vmul.f32 %v7421_v59, %v1342_v9 }
 0x6a7   : > { %4806 = vpow2.f32 %v3475_v47  ;;  %v3477_v3 = vmul.f32 1.442695, %v3452_v35  ;;  %v3453_v8 = vmin.f32 %v3421_v37, 0.0  ;;  %v3422_v12 = vadd.f32 %v6783_v51, %v3399_v7  ;;  %v7430_v47 = vld [vmem:[#allocation75_spill] sm:$0xff] }
 0x6a8   : > { %v2007_v13 = vpop.permute.xlu1 %2006  ;;  %v2031_v56 = vmul.f32 %v7418_v63, %v2002_v48  ;;  %vm3437_vm11 = vcmp.gt.f32.partialorder %v3421_v37, 0.0  ;;  %v7433_v63 = vld [vmem:[#allocation5_spill] sm:$0xff] }
 0x6a9   : > { %4808 = vpow2.f32 %v3477_v3  ;;  %v3479_v61 = vmul.f32 1.442695, %v3453_v8  ;;  %v3454_v52 = vmin.f32 %v3422_v12, 0.0  ;;  %v2032_v43 = vmul.f32 %v7419_v42, %v2007_v13  ;;  %v7431_v13 = vld [vmem:[#allocation53_spill] sm:$0xff] }
 0x6aa   : > { %v1347_v19 = vpop.permute.xlu0 %1346  ;;  %v2047_v11 = vadd.f32 %v2031_v56, %v1366_v38  ;;  %vm3438_vm12 = vcmp.gt.f32.partialorder %v3422_v12, 0.0 }
 0x6ab   : > { %4810 = vpow2.f32 %v3479_v61  ;;  %v3481_v57 = vmul.f32 1.442695, %v3454_v52  ;;  %v2048_v26 = vadd.f32 %v2032_v43, %v1367_v28  ;;  %v1368_v27 = vmul.f32 %v7425_v44, %v1347_v19 }
 0x6ac   : > { %v1352_v14 = vpop.permute.xlu1 %1351 }
 0x6ad   : > { %4812 = vpow2.f32 %v3481_v57  ;;  %v1369_v9 = vmul.f32 %v7429_v33, %v1352_v14 }
 0x6ae   : > { %v2012_v18 = vpop.permute.xlu0 %2011 }
 0x6af   : > { %v2033_v58 = vmul.f32 %v7423_v23, %v2012_v18  ;;  %v7432_v18 = vld [vmem:[#allocation55_spill] sm:$0xff] }
 0x6b0   : > { %v2017_v62 = vpop.permute.xlu1 %2016 }
 0x6b1   : > { %v4807_v39 = vpop.eup %4806  ;;  %v2034_v55 = vmul.f32 %v7426_v24, %v2017_v62  ;;  %v2049_v48 = vadd.f32 %v2033_v58, %v1368_v27 }
 0x6b2   : > { %v2667_v53 = vpop.permute.xlu0 %2666  ;;  %v3860_v30 = vadd.f32 -1.0, %v4807_v39 }
 0x6b3   : > { %v4809_v50 = vpop.eup %4808  ;;  %v2696_v45 = vmul.f32 %v7422_v10, %v2667_v53 }
 0x6b4   : > { %v2672_v6 = vpop.permute.xlu1 %2671  ;;  %v3861_v31 = vadd.f32 -1.0, %v4809_v50  ;;  %v3515_v49 = vsel %vm3435_vm9, %v3419_v41, %v3860_v30 }
 0x6b5   : > { %v4811_v60 = vpop.eup %4810  ;;  %v2697_v46 = vmul.f32 %v7424_v16, %v2672_v6  ;;  %v2712_v4 = vadd.f32 %v2696_v45, %v2047_v11 }
 0x6b6   : > { %v2677_v34 = vpop.permute.xlu0 %2676  ;;  %v3516_v25 = vsel %vm3436_vm10, %v3420_v20, %v3861_v31  ;;  %v3862_v17 = vadd.f32 -1.0, %v4811_v60 }
 0x6b7   : > { %v4813_v29 = vpop.eup %4812  ;;  %v3527_v32 = vpack.c.bf16 %v3516_v25, %v3515_v49  ;;  %v2698_v5 = vmul.f32 %v7427_v22, %v2677_v34  ;;  %v2713_v3 = vadd.f32 %v2697_v46, %v2048_v26 }
 0x6b8   : > { %v2682_v21 = vpop.permute.xlu1 %2681  ;;  %v3863_v15 = vadd.f32 -1.0, %v4813_v29  ;;  %v3517_v36 = vsel %vm3437_vm11, %v3421_v37, %v3862_v17  ;;  %v2050_v37 = vadd.f32 %v2034_v55, %v1369_v9 }
 0x6b9   : > { %4304 = vmatprep.mubr.msk.bf16.mxu0 %vm1095_vm0, %v3527_v32  ;;  %v2699_v35 = vmul.f32 %v7430_v47, %v2682_v21  ;;  %v2714_v52 = vadd.f32 %v2698_v5, %v2049_v48 }
 0x6ba   : > { %v3332_v41 = vpop.permute.xlu0 %3331  ;;  %v3518_v2 = vsel %vm3438_vm12, %v3422_v12, %v3863_v15 }
 0x6bb   : > { %v3361_v20 = vmul.f32 %v7428_v54, %v3332_v41  ;;  %v3528_v1 = vpack.c.bf16 %v3518_v2, %v3517_v36  ;;  %v2715_v39 = vadd.f32 %v2699_v35, %v2050_v37 }
 0x6bc   : > { %v3337_v7 = vpop.permute.xlu1 %3336 }
 0x6bd   : > { %v3377_v8 = vadd.f32 %v3361_v20, %v2712_v4  ;;  %v3362_v61 = vmul.f32 %v7431_v13, %v3337_v7  ;;  %4305 = vmatmul.mubr.msk.bf16.gmra.mrb[88].mxu0 %vm1095_vm0, %v3528_v1 }
 0x6be   : > { %v3342_v12 = vpop.permute.xlu0 %3341 }
 0x6bf   : > { %v3400_v19 = vmul.f32 %v6777_v0, %v3377_v8  ;;  %v3378_v57 = vadd.f32 %v3362_v61, %v2713_v3  ;;  %v3363_v62 = vmul.f32 %v7432_v18, %v3342_v12 }
 0x6c0   : > { %v3347_v14 = vpop.permute.xlu1 %3346 }
 0x6c1   : > { %v3423_v53 = vadd.f32 %v6783_v51, %v3400_v19  ;;  %v3401_v30 = vmul.f32 %v6777_v0, %v3378_v57  ;;  %v3379_v50 = vadd.f32 %v3363_v62, %v2714_v52  ;;  %v3364_v56 = vmul.f32 %v7433_v63, %v3347_v14 }
 0x6c3   : > { %v3455_v6 = vmin.f32 %v3423_v53, 0.0  ;;  %v3424_v31 = vadd.f32 %v6783_v51, %v3401_v30  ;;  %v3402_v60 = vmul.f32 %v6777_v0, %v3379_v50  ;;  %v3380_v42 = vadd.f32 %v3364_v56, %v2715_v39 }
 0x6c4   : > { %vm3439_vm13 = vcmp.gt.f32.partialorder %v3423_v53, 0.0 }
 0x6c5   : > { %v3483_v43 = vmul.f32 1.442695, %v3455_v6  ;;  %v3456_v40 = vmin.f32 %v3424_v31, 0.0  ;;  %v3425_v38 = vadd.f32 %v6783_v51, %v3402_v60  ;;  %v3403_v34 = vmul.f32 %v6777_v0, %v3380_v42 }
 0x6c6   : > { %vm3440_vm14 = vcmp.gt.f32.partialorder %v3424_v31, 0.0 }
 0x6c7   : > { %4814 = vpow2.f32 %v3483_v43  ;;  %v3485_v49 = vmul.f32 1.442695, %v3456_v40  ;;  %v3457_v25 = vmin.f32 %v3425_v38, 0.0  ;;  %v3426_v17 = vadd.f32 %v6783_v51, %v3403_v34 }
 0x6c8   : > { %vm3441_vm15 = vcmp.gt.f32.partialorder %v3425_v38, 0.0 }
 0x6c9   : > { %4816 = vpow2.f32 %v3485_v49  ;;  %v3487_v29 = vmul.f32 1.442695, %v3457_v25  ;;  %v3458_v59 = vmin.f32 %v3426_v17, 0.0  ;;  %vm3442_vm1 = vcmp.gt.f32.partialorder %v3426_v17, 0.0 }
 0x6cb   : > { %4818 = vpow2.f32 %v3487_v29  ;;  %v3489_v28 = vmul.f32 1.442695, %v3458_v59 }
 0x6cd   : > { %4820 = vpow2.f32 %v3489_v28 }
 0x6d1   : > { %v4815_v10 = vpop.eup %4814 }
 0x6d2   : > { %v3864_v45 = vadd.f32 -1.0, %v4815_v10 }
 0x6d3   : > { %v4817_v32 = vpop.eup %4816 }
 0x6d4   : > { %v3865_v11 = vadd.f32 -1.0, %v4817_v32  ;;  %v3519_v0 = vsel %vm3439_vm13, %v3423_v53, %v3864_v45 }
 0x6d5   : > { %v4819_v21 = vpop.eup %4818 }
 0x6d6   : > { %v3520_v15 = vsel %vm3440_vm14, %v3424_v31, %v3865_v11  ;;  %v3866_v26 = vadd.f32 -1.0, %v4819_v21 }
 0x6d7   : > { %v4821_v23 = vpop.eup %4820  ;;  %v3529_v58 = vpack.c.bf16 %v3520_v15, %v3519_v0 }
 0x6d8   : > { %v3867_v51 = vadd.f32 -1.0, %v4821_v23  ;;  %v3521_v16 = vsel %vm3441_vm15, %v3425_v38, %v3866_v26 }
 0x6d9   : > { %4308 = vmatprep.mubr.msk.bf16.mxu0 %vm1095_vm0, %v3529_v58 }
 0x6da   : > { %v3522_v46 = vsel %vm3442_vm1, %v3426_v17, %v3867_v51 }
 0x6db   : > { %v3530_v44 = vpack.c.bf16 %v3522_v46, %v3521_v16 }
 0x6dd   : > { %4309 = vmatmul.mubr.msk.bf16.gmra.mrb[92].mxu0 %vm1095_vm0, %v3530_v44 }
 0x74d   : > { %v4298_v27 = vpop.f32.mrb[80].mxu0 }
 0x74e   : > { %v3605_v24 = vpop.f32.mrb[81].mxu0 }
 0x74f   : > { %v4299_v55 = vpop.f32.mrb[82].mxu0 }
 0x750   : > { %v3921_v41 = vpack.c.bf16 %v4299_v55, %v4298_v27  ;;  %v3608_v36 = vpop.f32.mrb[83].mxu0 }
 0x751   : > { %v3916_v2 = vpack.c.bf16 %v3608_v36, %v3605_v24 }
 0x752   : > { %3953 = vst [vmem:[%s283_s8 + $0x8] sm:$0xff] %v3921_v41  }
 0x753   : > { %3917 = vst [vmem:[%s283_s8] sm:$0xff] %v3916_v2  }
 0x76d   : > { %v4302_v4 = vpop.f32.mrb[84].mxu0 }
 0x76e   : > { %v3621_v22 = vpop.f32.mrb[85].mxu0 }
 0x76f   : > { %v4303_v5 = vpop.f32.mrb[86].mxu0 }
 0x770   : > { %v3931_v54 = vpack.c.bf16 %v4303_v5, %v4302_v4  ;;  %v3624_v20 = vpop.f32.mrb[87].mxu0 }
 0x771   : > { %v3926_v1 = vpack.c.bf16 %v3624_v20, %v3621_v22 }
 0x772   : > { %3955 = vst [vmem:[%s283_s8 + $0x18] sm:$0xff] %v3931_v54  }
 0x773   : > { %3954 = vst [vmem:[%s283_s8 + $0x10] sm:$0xff] %v3926_v1  }
 0x790   : > { %v4306_v33 = vpop.f32.mrb[88].mxu0 }
 0x791   : > { %v3637_v9 = vpop.f32.mrb[89].mxu0 }
 0x792   : > { %v4307_v47 = vpop.f32.mrb[90].mxu0 }
 0x793   : > { %v3941_v35 = vpack.c.bf16 %v4307_v47, %v4306_v33  ;;  %v3640_v7 = vpop.f32.mrb[91].mxu0 }
 0x794   : > { %v3936_v48 = vpack.c.bf16 %v3640_v7, %v3637_v9 }
 0x795   : > { %3957 = vst [vmem:[%s283_s8 + $0x28] sm:$0xff] %v3941_v35  }
 0x796   : > { %3956 = vst [vmem:[%s283_s8 + $0x20] sm:$0xff] %v3936_v48  }
 0x7b0   : > { %v4310_v3 = vpop.f32.mrb[92].mxu0 }
 0x7b1   : > { %v3653_v8 = vpop.f32.mrb[93].mxu0 }
 0x7b2   : > { %v4311_v13 = vpop.f32.mrb[94].mxu0 }
 0x7b3   : > { %v3951_v61 = vpack.c.bf16 %v4311_v13, %v4310_v3  ;;  %v3656_v37 = vpop.f32.mrb[95].mxu0 }
 0x7b4   : > { %v3946_v12 = vpack.c.bf16 %v3656_v37, %v3653_v8 }
 0x7b5   : > { %3959 = vst [vmem:[%s283_s8 + $0x38] sm:$0xff] %v3951_v61  }
 0x7b6   : > { %3958 = vst [vmem:[%s283_s8 + $0x30] sm:$0xff] %v3946_v12  }
 0x7b7 PF: > { %s17_s24 = sadd.s32 1, %s4844_s24  }
 0x7b8   : > { %p14_p4 = scmp.ge.s32.totalorder %s17_s24, 4  }
 0x7ba   :  { %16 = sbr.rel (!%p14_p4) target bundleno = 1 (0x1), region = 79 }

// kernel: _device_forward_linkpred.7
= control target key start
LH: loop header
LB: loop body
LE: loop exit
PB: predicated region body
PF: predicated region fallthrough
CT: control target
= control target key end

     0   :  { %s5397_s21 = smov 0   ;;  %s7590_s0 = inlined_call_operand.vmem [shape: bf16[256,128], index: 0, kind: input, shape index: {}]   ;;  %s7591_s1 = inlined_call_operand.vmem [shape: bf16[256,256], index: 1, kind: input, shape index: {}]   ;;  %s7592_s2 = inlined_call_operand.vmem [shape: bf16[128,4], index: 2, kind: input, shape index: {}]   ;;  %s7593_s3 = inlined_call_operand.vmem [shape: bf16[4,128], index: 3, kind: input, shape index: {}]   ;;  %s7594_s4 = inlined_call_operand.vmem [shape: f32[1,32], index: 4, kind: input, shape index: {}]   ;;  %s7595_s5 = inlined_call_operand.vmem [shape: f32[1,32], index: 5, kind: input, shape index: {}]   ;;  %s7596_s6 = inlined_call_operand.vmem [shape: bf16[32,16], index: 6, kind: input, shape index: {}]   ;;  %s7597_s7 = inlined_call_operand.vmem [shape: f32[1,16], index: 7, kind: input, shape index: {}]   ;;  %s7598_s8 = inlined_call_operand.vmem [shape: bf16[16,8], index: 8, kind: input, shape index: {}]   ;;  %s7599_s9 = inlined_call_operand.vmem [shape: f32[1,8], index: 9, kind: input, shape index: {}]   ;;  %s7600_s10 = inlined_call_operand.vmem [shape: f32[1,8], index: 10, kind: input, shape index: {}]   ;;  %s7601_s11 = inlined_call_operand.vmem [shape: f32[1,8], index: 11, kind: input, shape index: {}]   ;;  %s7602_s12 = inlined_call_operand.vmem [shape: f32[256,128], index: 12, kind: output, shape index: {}]  }
   0x1 LB: > { %s4268_s22 = sadd.s32 4294967295, %s5321_s21   ;;  %p4272_p0 = scmp.ge.s32.totalorder %s5321_s21, 1  ;;  %s5321_s21 = sphi %s5397_s21, %s22_s21  }
   0x2   : > { %p364_p1 = scmp.lt.s32.totalorder %s5321_s21, 3 }
   0x4   : > { %p365_p2 = pnand %p4272_p0, %p364_p1 }
   0x6   : > { %368 = sbr.rel (%p365_p2) target bundleno = 2339 (0x923), region = 68 }
   0xd   : > { %v4816_v0 = vld [vmem:[%s7592_s2] sm:$0xff]   ;;  %s4278_s25 = sshll.u32 %s4268_s22, 7  ;;  %v4817_v1 = vld [vmem:[%s7592_s2 + $0x8] sm:$0xff]   ;;  %v4818_v2 = vld [vmem:[%s7592_s2 + $0x10] sm:$0xff]   ;;  %v5323_v3 = vmov 0   ;;  %v5325_v34 = vmov 1  }
   0xe   : > { %s455_s28 = sshra.s32 %s4278_s25, 3  ;;  %4681 = vmatprep.subr.bf16.mxu0 %v4816_v0  ;;  %4772 = vset.pattern.permute.xlu0 %v5323_v3  ;;  %v4819_v4 = vld [vmem:[%s7592_s2 + $0x18] sm:$0xff]   ;;  %v4820_v6 = vld [vmem:[%s7592_s2 + $0x20] sm:$0xff]   ;;  %v4821_v9 = vld [vmem:[%s7592_s2 + $0x28] sm:$0xff]   ;;  %vm1230_vm0 = vcmask 261120   ;;  %s5328_s25 = smov 64  }
   0xf   : > { %s4279_s29 = sshll.u32 %s455_s28, 2  ;;  %4682 = vmatpush3.bf16.msra.mxu0 %v4816_v0  ;;  %v5432_v7 = vld [vmem:[%s7590_s0 + $0x40] sm:$0xff]   ;;  %v5449_v10 = vld [vmem:[%s7590_s0 + $0x48] sm:$0xff]   ;;  %v4822_v11 = vld [vmem:[%s7592_s2 + $0x30] sm:$0xff]   ;;  %4776 = vset.pattern.permute.xlu1 %v5325_v34  ;;  %s5329_s26 = smov 32  }
  0x10   : > { %4683 = vmatprep.subr.bf16.mxu0 %v4817_v1  ;;  %s5419_s16 = scalar_lea.vmem %s7590_s0, %s4279_s29  ;;  %v5437_v8 = vld [vmem:[%s7590_s0] sm:$0xff]   ;;  %4388 = vmatprep.subr.bf16.mxu1 %v5432_v7  ;;  %s5324_s29 = smov 96   ;;  %v5460_v12 = vld [vmem:[%s7590_s0 + $0x8] sm:$0xff]   ;;  %v5467_v13 = vld [vmem:[%s7590_s0 + $0x50] sm:$0xff]  }
  0x11   : > { %v4824_v5 = vld [vmem:[%s5419_s16] sm:$0xff]   ;;  %4389 = vmatpush3.bf16.xpose.msra.mxu1 %v5437_v8  ;;  %1881 = vrot.lane.b32.xlu0 %v5432_v7, %s5324_s29  ;;  %v4823_v14 = vld [vmem:[%s7592_s2 + $0x38] sm:$0xff]   ;;  %v5477_v15 = vld [vmem:[%s7590_s0 + $0x10] sm:$0xff]   ;;  %s5331_s15 = smov 16  }
  0x12   : > { %4697 = vmatprep.mubr.bf16.mxu0 %v4824_v5  ;;  %1865 = vrot.lane.b32.xlu1 %v5437_v8, %s5324_s29  ;;  %v5488_v16 = vld [vmem:[%s7590_s0 + $0x58] sm:$0xff]   ;;  %v4825_v18 = vld [vmem:[%s5419_s16 + $0x8] sm:$0xff]   ;;  %v4826_v19 = vld [vmem:[%s5419_s16 + $0x10] sm:$0xff]  }
  0x13   : > { %4684 = vmatpush3.bf16.msra.mxu0 %v4817_v1  ;;  %4390 = vmatprep.subr.bf16.mxu1 %v5449_v10  ;;  %v5493_v17 = vld [vmem:[%s7590_s0 + $0x18] sm:$0xff]   ;;  %v5504_v20 = vld [vmem:[%s7590_s0 + $0x60] sm:$0xff]   ;;  %v5523_v23 = vld [vmem:[%s7590_s0 + $0x68] sm:$0xff]  }
  0x14   : > { %4685 = vmatprep.subr.bf16.mxu0 %v4818_v2  ;;  %v684_v21 = vld [vmem:[%s7593_s3] sm:$0x3]  ;;  %v4827_v24 = vld [vmem:[%s5419_s16 + $0x18] sm:$0xff]   ;;  %v5529_v25 = vld [vmem:[%s7590_s0 + $0x28] sm:$0xff]  }
  0x15   : > { %1883 = vrot.lane.b32.xlu0 %v5449_v10, %s5324_s29  ;;  %4404 = vmatprep.mubr.bf16.mxu1 %v684_v21  ;;  %v5514_v22 = vld [vmem:[%s7590_s0 + $0x20] sm:$0xff]   ;;  %v5540_v27 = vld [vmem:[%s7590_s0 + $0x70] sm:$0xff]   ;;  %v5555_v29 = vld [vmem:[%s7590_s0 + $0x78] sm:$0xff]  }
  0x16   : > { %1867 = vrot.lane.b32.xlu1 %v5460_v12, %s5324_s29  ;;  %v4828_v26 = vld [vmem:[%s5419_s16 + $0x20] sm:$0xff]   ;;  %v5546_v28 = vld [vmem:[%s7590_s0 + $0x30] sm:$0xff]   ;;  %v4829_v30 = vld [vmem:[%s5419_s16 + $0x28] sm:$0xff]  }
  0x17   : > { %4686 = vmatpush3.bf16.msra.mxu0 %v4818_v2  ;;  %v5561_v31 = vld [vmem:[%s7590_s0 + $0x38] sm:$0xff]   ;;  %v4832_v32 = vld [vmem:[%s5419_s16 + $0x30] sm:$0xff]  }
  0x18   : > { %4687 = vmatprep.subr.bf16.mxu0 %v4819_v4  ;;  %v4833_v33 = vld [vmem:[%s5419_s16 + $0x38] sm:$0xff]   ;;  %s4273_s16 = sshll.u32 %s4268_s22, 4 }
  0x19   : > { %4391 = vmatpush3.bf16.xpose.msra.mxu1 %v5460_v12  ;;  %1885 = vrot.lane.b32.xlu0 %v5467_v13, %s5324_s29  ;;  %p408_p3 = scmp.lt.s32.totalorder %s4273_s16, 31 }
  0x1a   : > { %4392 = vmatprep.subr.bf16.mxu1 %v5467_v13  ;;  %1869 = vrot.lane.b32.xlu1 %v5477_v15, %s5324_s29 }
  0x1b   : > { %4688 = vmatpush3.bf16.msra.mxu0 %v4819_v4  ;;  %s8148_s16 = smov (!%p408_p3, %s4273_s16), 31 }
  0x1c   : > { %4689 = vmatprep.subr.bf16.mxu0 %v4820_v6  ;;  %s4371_s22 = sshll.u32 %s8148_s16, 3 }
  0x1d   : > { %1887 = vrot.lane.b32.xlu0 %v5488_v16, %s5324_s29  ;;  %s5751_s20 = scalar_lea.vmem %s7591_s1, %s4371_s22 }
  0x1e   : > { %1871 = vrot.lane.b32.xlu1 %v5493_v17, %s5324_s29 }
  0x1f   : > { %4690 = vmatpush3.bf16.msra.mxu0 %v4820_v6 }
  0x20   : > { %4691 = vmatprep.subr.bf16.mxu0 %v4821_v9 }
  0x21   : > { %4393 = vmatpush3.bf16.xpose.msra.mxu1 %v5477_v15  ;;  %1889 = vrot.lane.b32.xlu0 %v5504_v20, %s5324_s29 }
  0x22   : > { %4394 = vmatprep.subr.bf16.mxu1 %v5488_v16  ;;  %1873 = vrot.lane.b32.xlu1 %v5514_v22, %s5324_s29 }
  0x23   : > { %4692 = vmatpush3.bf16.msra.mxu0 %v4821_v9 }
  0x24   : > { %4693 = vmatprep.subr.bf16.mxu0 %v4822_v11 }
  0x25   : > { %1891 = vrot.lane.b32.xlu0 %v5523_v23, %s5324_s29 }
  0x26   : > { %1875 = vrot.lane.b32.xlu1 %v5529_v25, %s5324_s29 }
  0x27   : > { %4694 = vmatpush3.bf16.msra.mxu0 %v4822_v11  ;;  %v7603_v11 = vmov 3  }
  0x28   : > { %4695 = vmatprep.subr.bf16.mxu0 %v4823_v14 }
  0x29   : > { %4395 = vmatpush3.bf16.xpose.msra.mxu1 %v5493_v17  ;;  %1893 = vrot.lane.b32.xlu0 %v5540_v27, %s5324_s29 }
  0x2a   : > { %4396 = vmatprep.subr.bf16.mxu1 %v5504_v20  ;;  %1877 = vrot.lane.b32.xlu1 %v5546_v28, %s5324_s29 }
  0x2b   : > { %4696 = vmatpush3.bf16.msra.mxu0 %v4823_v14 }
  0x2d   : > { %1895 = vrot.lane.b32.xlu0 %v5555_v29, %s5324_s29 }
  0x2e   : > { %4698 = vmatmul.mubr.bf16.vlgmr.msra.gmra.mrb[0].mxu0 %v4825_v18  ;;  %1879 = vrot.lane.b32.xlu1 %v5561_v31, %s5324_s29  ;;  %s7521_s29 = scalar_lea.vmem %s7602_s12, %s4371_s22 }
  0x2f   : > { %4701 = vmatprep.mubr.bf16.mxu0 %v4826_v19 }
  0x31   : > { %4397 = vmatpush3.bf16.xpose.msra.mxu1 %v5514_v22 }
  0x32   : > { %4398 = vmatprep.subr.bf16.mxu1 %v5523_v23 }
  0x36   : > { %4702 = vmatmul.mubr.bf16.gmra.mrb[4].mxu0 %v4827_v24 }
  0x37   : > { %4705 = vmatprep.mubr.bf16.mxu0 %v4828_v26 }
  0x39   : > { %4399 = vmatpush3.bf16.xpose.msra.mxu1 %v5529_v25 }
  0x3a   : > { %4400 = vmatprep.subr.bf16.mxu1 %v5540_v27 }
  0x3e   : > { %4706 = vmatmul.mubr.bf16.gmra.mrb[8].mxu0 %v4829_v30 }
  0x3f   : > { %4709 = vmatprep.mubr.bf16.mxu0 %v4832_v32 }
  0x41   : > { %4401 = vmatpush3.bf16.xpose.msra.mxu1 %v5546_v28 }
  0x42   : > { %4402 = vmatprep.subr.bf16.mxu1 %v5555_v29 }
  0x46   : > { %4710 = vmatmul.mubr.bf16.gmra.mrb[12].mxu0 %v4833_v33 }
  0x49   : > { %4403 = vmatpush3.bf16.xpose.msra.mxu1 %v5561_v31 }
  0x50   : > { %4405 = vmatmul.mubr.bf16.vlgmr.msra.gmra.mrb[0].mxu1 %v684_v21 }
  0x83   : > { %v1882_v35 = vpop.permute.xlu0 %1881 }
  0x84   : > { %v1866_v36 = vpop.permute.xlu1 %1865  ;;  %v1922_v38 = vsel %vm1230_vm0, %v1882_v35, 1065369472 }
  0x85   : > { %v1898_v37 = vsel %vm1230_vm0, %v1866_v36, 1065369472  ;;  %4470 = vmatprep.subr.bf16.mxu1 %v1922_v38  ;;  %v950_v38 = vlaneseq }
  0x86   : > { %4471 = vmatpush3.bf16.msra.mxu1 %v1898_v37 }
  0x87   : > { %v1884_v39 = vpop.permute.xlu0 %1883 }
  0x88   : > { %v1868_v40 = vpop.permute.xlu1 %1867  ;;  %v1925_v41 = vsel %vm1230_vm0, %v1884_v39, 1065369472  ;;  %v5655_v39 = vshrl.u32 %v950_v38, 7 }
  0x89   : > { %v1901_v42 = vsel %vm1230_vm0, %v1868_v40, 1065369472  ;;  %4472 = vmatprep.subr.bf16.mxu1 %v1925_v41 }
  0x8a   : > { %4473 = vmatpush3.bf16.msra.mxu1 %v1901_v42  ;;  %v2252_v40 = vsub.s32 2, %v5655_v39  ;;  %v2917_v41 = vsub.s32 3, %v5655_v39 }
  0x8b   : > { %v1886_v43 = vpop.permute.xlu0 %1885 }
  0x8c   : > { %v1870_v44 = vpop.permute.xlu1 %1869  ;;  %v1928_v46 = vsel %vm1230_vm0, %v1886_v43, 1065369472 }
  0x8d   : > { %v1904_v45 = vsel %vm1230_vm0, %v1870_v44, 1065369472  ;;  %4474 = vmatprep.subr.bf16.mxu1 %v1928_v46 }
  0x8e   : > { %4475 = vmatpush3.bf16.msra.mxu1 %v1904_v45 }
  0x8f   : > { %v1888_v47 = vpop.permute.xlu0 %1887 }
  0x90   : > { %v1872_v48 = vpop.permute.xlu1 %1871  ;;  %v1931_v50 = vsel %vm1230_vm0, %v1888_v47, 1065369472 }
  0x91   : > { %v1907_v49 = vsel %vm1230_vm0, %v1872_v48, 1065369472  ;;  %4476 = vmatprep.subr.bf16.mxu1 %v1931_v50  ;;  %v7604_v50 = vmov 2  }
  0x92   : > { %4477 = vmatpush3.bf16.msra.mxu1 %v1907_v49 }
  0x93   : > { %v1890_v51 = vpop.permute.xlu0 %1889 }
  0x94   : > { %v1874_v52 = vpop.permute.xlu1 %1873  ;;  %v1934_v53 = vsel %vm1230_vm0, %v1890_v51, 1065369472 }
  0x95   : > { %v1910_v54 = vsel %vm1230_vm0, %v1874_v52, 1065369472  ;;  %4478 = vmatprep.subr.bf16.mxu1 %v1934_v53 }
  0x96   : > { %4479 = vmatpush3.bf16.msra.mxu1 %v1910_v54 }
  0x97   : > { %v1892_v55 = vpop.permute.xlu0 %1891 }
  0x98   : > { %v1876_v56 = vpop.permute.xlu1 %1875  ;;  %v1937_v57 = vsel %vm1230_vm0, %v1892_v55, 1065369472 }
  0x99   : > { %v1913_v58 = vsel %vm1230_vm0, %v1876_v56, 1065369472  ;;  %4480 = vmatprep.subr.bf16.mxu1 %v1937_v57 }
  0x9a   : > { %4481 = vmatpush3.bf16.msra.mxu1 %v1913_v58  ;;  %v825_v58 = vld [vmem:[%s5751_s20 + $0x18] sm:$0xff] }
  0x9b   : > { %v1894_v59 = vpop.permute.xlu0 %1893 }
  0x9c   : > { %v1878_v60 = vpop.permute.xlu1 %1877  ;;  %v1940_v61 = vsel %vm1230_vm0, %v1894_v59, 1065369472 }
  0x9d   : > { %v1916_v62 = vsel %vm1230_vm0, %v1878_v60, 1065369472  ;;  %4482 = vmatprep.subr.bf16.mxu1 %v1940_v61 }
  0x9e   : > { %4483 = vmatpush3.bf16.msra.mxu1 %v1916_v62 }
  0x9f   : > { %v1896_v63 = vpop.permute.xlu0 %1895 }
  0xa0   : > { %v1880_v0 = vpop.permute.xlu1 %1879  ;;  %v1943_v2 = vsel %vm1230_vm0, %v1896_v63, 1065369472  ;;  %v5756_v63 = vunpack.c.l.bf16 %v825_v58 }
  0xa1   : > { %v1919_v1 = vsel %vm1230_vm0, %v1880_v0, 1065369472  ;;  %4484 = vmatprep.subr.bf16.mxu1 %v1943_v2  ;;  %v5758_v0 = vunpack.c.h.bf16 %v825_v58 }
  0xa2   : > { %4485 = vmatpush3.bf16.msra.mxu1 %v1919_v1  ;;  %7824 = vst [vmem:[#allocation24_spill] sm:$0xff] %v5756_v63 }
  0xa3   : > { %7825 = vst [vmem:[#allocation25_spill] sm:$0xff] %v5758_v0 }
 0x101   : > { %v5593_v4 = vpop.f32.mrb[0].mxu0 }
 0x102   : > { %7802 = vst [vmem:[#allocation2_spill] sm:$0xff] %v5593_v4  ;;  %882 = vperm.xlu0 %4772, %v5593_v4   ;;  %v5596_v5 = vpop.f32.mrb[1].mxu0 }
 0x103   : > { %7803 = vst [vmem:[#allocation3_spill] sm:$0xff] %v5596_v5  ;;  %1522 = vperm.xlu1 %4776, %v5596_v5   ;;  %v5599_v6 = vpop.f32.mrb[2].mxu0 }
 0x104   : > { %7804 = vst [vmem:[#allocation4_spill] sm:$0xff] %v5599_v6  ;;  %v5601_v9 = vpop.f32.mrb[3].mxu0 }
 0x105   : > { %7805 = vst [vmem:[#allocation5_spill] sm:$0xff] %v5601_v9 }
 0x106   : > { %4773 = vset.pattern.permute.xlu0 %v5325_v34 }
 0x107   : > { %1530 = vperm.xlu0 %4773, %v5593_v4   ;;  %4777 = vset.pattern.permute.xlu1 %v7603_v11 }
 0x108   : > { %2852 = vperm.xlu1 %4777, %v5596_v5  }
 0x109   : > { %v5607_v14 = vpop.f32.mrb[4].mxu0 }
 0x10a   : > { %7806 = vst [vmem:[#allocation6_spill] sm:$0xff] %v5607_v14  ;;  %v5609_v18 = vpop.f32.mrb[5].mxu0 }
 0x10b   : > { %7807 = vst [vmem:[#allocation7_spill] sm:$0xff] %v5609_v18  ;;  %4774 = vset.pattern.permute.xlu0 %v7603_v11  ;;  %v5612_v19 = vpop.f32.mrb[6].mxu0 }
 0x10c   : > { %7808 = vst [vmem:[#allocation8_spill] sm:$0xff] %v5612_v19  ;;  %2860 = vperm.xlu0 %4774, %v5593_v4   ;;  %4778 = vset.pattern.permute.xlu1 %v5323_v3  ;;  %v5616_v21 = vpop.f32.mrb[7].mxu0 }
 0x10d   : > { %7809 = vst [vmem:[#allocation9_spill] sm:$0xff] %v5616_v21  ;;  %887 = vperm.xlu1 %4778, %v5599_v6  }
 0x110   : > { %4775 = vset.pattern.permute.xlu0 %v5323_v3 }
 0x111   : > { %872 = vperm.xlu0 %4775, %v5596_v5   ;;  %4779 = vset.pattern.permute.xlu1 %v5325_v34  ;;  %v5622_v24 = vpop.f32.mrb[8].mxu0 }
 0x112   : > { %7810 = vst [vmem:[#allocation10_spill] sm:$0xff] %v5622_v24  ;;  %1534 = vperm.xlu1 %4779, %v5599_v6   ;;  %v5625_v26 = vpop.f32.mrb[9].mxu0 }
 0x113   : > { %7811 = vst [vmem:[#allocation11_spill] sm:$0xff] %v5625_v26  ;;  %v5627_v30 = vpop.f32.mrb[10].mxu0 }
 0x114   : > { %7812 = vst [vmem:[#allocation12_spill] sm:$0xff] %v5627_v30  ;;  %v5629_v32 = vpop.f32.mrb[11].mxu0 }
 0x115   : > { %7813 = vst [vmem:[#allocation13_spill] sm:$0xff] %v5629_v32  ;;  %877 = vperm.xlu0 %4775, %v5601_v9  }
 0x116   : > { %4780 = vset.pattern.permute.xlu1 %v7603_v11 }
 0x117   : > { %2864 = vperm.xlu1 %4780, %v5599_v6  }
 0x119   : > { %902 = vperm.xlu0 %4775, %v5607_v14   ;;  %v5635_v33 = vpop.f32.mrb[12].mxu0 }
 0x11a   : > { %7814 = vst [vmem:[#allocation14_spill] sm:$0xff] %v5635_v33  ;;  %v5637_v35 = vpop.f32.mrb[13].mxu0 }
 0x11b   : > { %7815 = vst [vmem:[#allocation15_spill] sm:$0xff] %v5637_v35  ;;  %4781 = vset.pattern.permute.xlu1 %v5325_v34  ;;  %v5640_v36 = vpop.f32.mrb[14].mxu0 }
 0x11c   : > { %7816 = vst [vmem:[#allocation16_spill] sm:$0xff] %v5640_v36  ;;  %1526 = vperm.xlu1 %4781, %v5601_v9   ;;  %v5643_v37 = vpop.f32.mrb[15].mxu0 }
 0x11d   : > { %7817 = vst [vmem:[#allocation17_spill] sm:$0xff] %v5643_v37  ;;  %4783 = vset.pattern.permute.xlu0 %v5325_v34 }
 0x11e   : > { %1546 = vperm.xlu0 %4783, %v5607_v14  }
 0x120   : > { %4782 = vset.pattern.permute.xlu1 %v7603_v11 }
 0x121   : > { %2856 = vperm.xlu1 %4782, %v5601_v9  }
 0x122   : > { %4784 = vset.pattern.permute.xlu0 %v7603_v11 }
 0x123   : > { %2876 = vperm.xlu0 %4784, %v5607_v14   ;;  %v5663_v42 = vpop.f32.mrb[0].mxu1 }
 0x124   : > { %v5668_v43 = vrot.slane %v5663_v42, %v2252_v40  ;;  %v5670_v44 = vpop.f32.mrb[1].mxu1  ;;  %v5673_v45 = vrot.slane %v5663_v42, %v2917_v41 }
 0x125   : > { %4785 = vset.pattern.permute.xlu1 %v5323_v3  ;;  %v5676_v46 = vrot.slane %v5670_v44, %v2252_v40  ;;  %v819_v47 = vpop.f32.mrb[2].mxu1  ;;  %v5679_v48 = vrot.slane %v5670_v44, %v2917_v41  ;;  %v1587_v41 = vsub.s32 1, %v5655_v39 }
 0x126   : > { %892 = vperm.xlu1 %4785, %v5609_v18   ;;  %7818 = vst [vmem:[#allocation18_spill] sm:$0xff] %v5668_v43  ;;  %7819 = vst [vmem:[#allocation19_spill] sm:$0xff] %v5673_v45  ;;  %v820_v49 = vpop.f32.mrb[3].mxu1 }
 0x127   : > { %2868 = vperm.xlu0 %4784, %v5609_v18   ;;  %7820 = vst [vmem:[#allocation20_spill] sm:$0xff] %v5676_v46  ;;  %7821 = vst [vmem:[#allocation21_spill] sm:$0xff] %v5679_v48 }
 0x12a   : > { %4786 = vset.pattern.permute.xlu1 %v5325_v34 }
 0x12b   : > { %4790 = vset.pattern.permute.xlu0 %v5323_v3  ;;  %1538 = vperm.xlu1 %4786, %v5609_v18  }
 0x12c   : > { %897 = vperm.xlu0 %4790, %v5616_v21  }
 0x12f   : > { %4787 = vset.pattern.permute.xlu1 %v5323_v3 }
 0x130   : > { %907 = vperm.xlu1 %4787, %v5612_v19   ;;  %922 = vperm.xlu0 %4790, %v5622_v24  }
 0x134   : > { %4788 = vset.pattern.permute.xlu1 %v5325_v34  ;;  %4793 = vset.pattern.permute.xlu0 %v5325_v34 }
 0x135   : > { %1550 = vperm.xlu1 %4788, %v5612_v19   ;;  %1562 = vperm.xlu0 %4793, %v5622_v24  }
 0x139   : > { %4789 = vset.pattern.permute.xlu1 %v7603_v11  ;;  %4794 = vset.pattern.permute.xlu0 %v7603_v11 }
 0x13a   : > { %2880 = vperm.xlu1 %4789, %v5612_v19   ;;  %2892 = vperm.xlu0 %4794, %v5622_v24  }
 0x13e   : > { %4791 = vset.pattern.permute.xlu1 %v5325_v34  ;;  %2884 = vperm.xlu0 %4794, %v5625_v26  }
 0x13f   : > { %1542 = vperm.xlu1 %4791, %v5616_v21  }
 0x142   : > { %4800 = vset.pattern.permute.xlu0 %v5323_v3 }
 0x143   : > { %4792 = vset.pattern.permute.xlu1 %v7603_v11  ;;  %917 = vperm.xlu0 %4800, %v5629_v32  }
 0x144   : > { %2872 = vperm.xlu1 %4792, %v5616_v21  }
 0x147   : > { %942 = vperm.xlu0 %4800, %v5635_v33  }
 0x148   : > { %4795 = vset.pattern.permute.xlu1 %v5323_v3 }
 0x149   : > { %912 = vperm.xlu1 %4795, %v5625_v26  }
 0x14b   : > { %4803 = vset.pattern.permute.xlu0 %v5325_v34 }
 0x14c   : > { %1578 = vperm.xlu0 %4803, %v5635_v33  }
 0x14d   : > { %4796 = vset.pattern.permute.xlu1 %v5325_v34 }
 0x14e   : > { %1554 = vperm.xlu1 %4796, %v5625_v26  }
 0x150   : > { %4809 = vset.pattern.permute.xlu0 %v5323_v3 }
 0x151   : > { %937 = vperm.xlu0 %4809, %v5643_v37  }
 0x152   : > { %4797 = vset.pattern.permute.xlu1 %v5323_v3 }
 0x153   : > { %927 = vperm.xlu1 %4797, %v5627_v30  }
 0x155   : > { %4811 = vset.pattern.permute.xlu0 %v7604_v50 }
 0x157   : > { %4798 = vset.pattern.permute.xlu1 %v5325_v34 }
 0x158   : > { %1566 = vperm.xlu1 %4798, %v5627_v30  }
 0x15c   : > { %4799 = vset.pattern.permute.xlu1 %v7603_v11 }
 0x15d   : > { %2896 = vperm.xlu1 %4799, %v5627_v30  }
 0x161   : > { %4801 = vset.pattern.permute.xlu1 %v5325_v34 }
 0x162   : > { %1558 = vperm.xlu1 %4801, %v5629_v32  }
 0x166   : > { %4802 = vset.pattern.permute.xlu1 %v7603_v11 }
 0x167   : > { %2888 = vperm.xlu1 %4802, %v5629_v32  }
 0x16b   : > { %4804 = vset.pattern.permute.xlu1 %v5323_v3 }
 0x16c   : > { %932 = vperm.xlu1 %4804, %v5637_v35  }
 0x170   : > { %4805 = vset.pattern.permute.xlu1 %v5325_v34 }
 0x171   : > { %1570 = vperm.xlu1 %4805, %v5637_v35  }
 0x175   : > { %4806 = vset.pattern.permute.xlu1 %v7603_v11 }
 0x176   : > { %2900 = vperm.xlu1 %4806, %v5637_v35  }
 0x17a   : > { %4807 = vset.pattern.permute.xlu1 %v5323_v3  ;;  %v952_v3 = vsub.s32 0, %v5655_v39 }
 0x17b   : > { %947 = vperm.xlu1 %4807, %v5640_v36  }
 0x17c   : > { %v5742_v55 = vrot.slane %v5670_v44, %v952_v3 }
 0x17f   : > { %4808 = vset.pattern.permute.xlu1 %v5325_v34  ;;  %v5739_v34 = vrot.slane %v5663_v42, %v952_v3 }
 0x180   : > { %1582 = vperm.xlu1 %4808, %v5640_v36  }
 0x181   : > { %v883_v51 = vpop.permute.xlu0 %882 }
 0x182   : > { %v5728_v52 = vpop.permute.xlu1 %1522 }
 0x184   : > { %1574 = vperm.xlu1 %4808, %v5643_v37  }
 0x186   : > { %v1531_v53 = vpop.permute.xlu0 %1530 }
 0x187   : > { %v5734_v54 = vpop.permute.xlu1 %2852 }
 0x188   : > { %7822 = vst [vmem:[#allocation22_spill] sm:$0xff] %v5734_v54  ;;  %4810 = vset.pattern.permute.xlu1 %v7603_v11  ;;  %v824_v54 = vld [vmem:[%s5751_s20 + $0x10] sm:$0xff] }
 0x189   : > { %v5799_v32 = vunpack.c.l.bf16 %v824_v54 }
 0x18b   : > { %v5744_v56 = vpop.permute.xlu0 %2860  ;;  %7833 = vst [vmem:[#allocation33_spill] sm:$0xff] %v5799_v32 }
 0x18c   : > { %7823 = vst [vmem:[#allocation23_spill] sm:$0xff] %v5744_v56  ;;  %v888_v57 = vpop.permute.xlu1 %887 }
 0x18d   : > { %v964_v59 = vadd.f32 %v5739_v34, %v888_v57  ;;  %v965_v60 = vadd.f32 %v5742_v55, %v888_v57  ;;  %v962_v57 = vadd.f32 %v5739_v34, %v883_v51 }
 0x18f   : > { %v996_v61 = vmul.f32 0.2, %v964_v59  ;;  %v997_v62 = vmul.f32 0.2, %v965_v60  ;;  %v994_v43 = vmul.f32 0.2, %v962_v57 }
 0x190   : > { %v873_v1 = vpop.permute.xlu0 %872 }
 0x191   : > { %v1535_v2 = vpop.permute.xlu1 %1534  ;;  %v1028_v38 = vmax.f32 %v964_v59, %v996_v61  ;;  %v1029_v40 = vmax.f32 %v965_v60, %v997_v62  ;;  %v823_v59 = vld [vmem:[%s5751_s20 + $0x8] sm:$0xff]  ;;  %v963_v60 = vadd.f32 %v5742_v55, %v883_v51  ;;  %v5777_v61 = vrot.slane %v5663_v42, %v1587_v41 }
 0x192   : > { %v5780_v62 = vrot.slane %v5670_v44, %v1587_v41  ;;  %v5786_v46 = vunpack.c.h.bf16 %v823_v59  ;;  %v1026_v19 = vmax.f32 %v962_v57, %v994_v43 }
 0x193   : > { %v5762_v47 = vadd.f32 %v1028_v38, %v5756_v63  ;;  %v5765_v49 = vadd.f32 %v1029_v40, %v5758_v0  ;;  %v1597_v51 = vadd.f32 %v5777_v61, %v1531_v53  ;;  %v995_v48 = vmul.f32 0.2, %v963_v60 }
 0x194   : > { %v878_v3 = vpop.permute.xlu0 %877  ;;  %7830 = vst [vmem:[#allocation30_spill] sm:$0xff] %v5786_v46  ;;  %v1594_v21 = vadd.f32 %v5780_v62, %v5728_v52  ;;  %v5814_v43 = vadd.f32 %v1026_v19, %v5799_v32 }
 0x195   : > { %7826 = vst [vmem:[#allocation26_spill] sm:$0xff] %v5762_v47  ;;  %7827 = vst [vmem:[#allocation27_spill] sm:$0xff] %v5765_v49  ;;  %v960_v11 = vadd.f32 %v5739_v34, %v878_v3  ;;  %v961_v58 = vadd.f32 %v5742_v55, %v878_v3  ;;  %v1095_v50 = vmax.f32 %v5762_v47, %v5765_v49  ;;  %v5784_v3 = vunpack.c.l.bf16 %v823_v59 }
 0x196   : > { %v5774_v39 = vpop.permute.xlu1 %2864  ;;  %v1629_v33 = vmul.f32 0.2, %v1597_v51  ;;  %7836 = vst [vmem:[#allocation36_spill] sm:$0xff] %v5814_v43 }
 0x197   : > { %7828 = vst [vmem:[#allocation28_spill] sm:$0xff] %v5774_v39  ;;  %v992_v38 = vmul.f32 0.2, %v960_v11  ;;  %v993_v40 = vmul.f32 0.2, %v961_v58  ;;  %1096 = vmax.xlane.f32.xlu0 %v1095_v50  ;;  %7829 = vst [vmem:[#allocation29_spill] sm:$0xff] %v5784_v3  ;;  %v1598_v39 = vadd.f32 %v5780_v62, %v1531_v53  ;;  %v958_v53 = vadd.f32 %v5739_v34, %v873_v1 }
 0x198   : > { %v5782_v56 = vpop.permute.xlu0 %902 }
 0x199   : > { %v1024_v42 = vmax.f32 %v960_v11, %v992_v38  ;;  %v1025_v45 = vmax.f32 %v961_v58, %v993_v40  ;;  %v1630_v30 = vmul.f32 0.2, %v1598_v39  ;;  %v959_v11 = vadd.f32 %v5742_v55, %v873_v1 }
 0x19a   : > { %v5803_v58 = vunpack.c.h.bf16 %v824_v54  ;;  %v1027_v38 = vmax.f32 %v963_v60, %v995_v48  ;;  %v1661_v1 = vmax.f32 %v1597_v51, %v1629_v33  ;;  %v990_v57 = vmul.f32 0.2, %v958_v53  ;;  %v822_v33 = vld [vmem:[%s5751_s20] sm:$0xff] }
 0x19b   : > { %v1527_v44 = vpop.permute.xlu1 %1526  ;;  %v5792_v41 = vadd.f32 %v1024_v42, %v5784_v3  ;;  %v5795_v50 = vadd.f32 %v1025_v45, %v5786_v46  ;;  %v1593_v45 = vadd.f32 %v5777_v61, %v5728_v52  ;;  %v1662_v54 = vmax.f32 %v1598_v39, %v1630_v30 }
 0x19c   : > { %7834 = vst [vmem:[#allocation34_spill] sm:$0xff] %v5803_v58  ;;  %v991_v48 = vmul.f32 0.2, %v959_v11  ;;  %v1599_v60 = vadd.f32 %v5777_v61, %v1535_v2  ;;  %v5820_v6 = vadd.f32 %v1027_v38, %v5803_v58  ;;  %v1626_v52 = vmul.f32 0.2, %v1594_v21 }
 0x19d   : > { %7831 = vst [vmem:[#allocation31_spill] sm:$0xff] %v5792_v41  ;;  %7832 = vst [vmem:[#allocation32_spill] sm:$0xff] %v5795_v50  ;;  %v5797_v59 = vpop.permute.xlu0 %1546  ;;  %v1089_v40 = vmax.f32 %v5792_v41, %v5795_v50  ;;  %v1625_v49 = vmul.f32 0.2, %v1593_v45  ;;  %v5826_v19 = vadd.f32 %v1661_v1, %v5799_v32  ;;  %v5829_v30 = vadd.f32 %v1662_v54, %v5803_v58  ;;  %v828_v41 = vld [vmem:[%s5751_s20 + $0x30] sm:$0xff] }
 0x19e   : > { %7838 = vst [vmem:[#allocation38_spill] sm:$0xff] %v5820_v6  ;;  %v1631_v39 = vmul.f32 0.2, %v1599_v60  ;;  %v1092_v38 = vmax.f32 %v5814_v43, %v5820_v6  ;;  %v5836_v50 = vunpack.c.l.bf16 %v822_v33  ;;  %v5838_v1 = vunpack.c.h.bf16 %v822_v33  ;;  %v827_v33 = vld [vmem:[%s5751_s20 + $0x28] sm:$0xff] }
 0x19f   : > { %1090 = vmax.xlane.f32.xlu0 %v1089_v40  ;;  %7839 = vst [vmem:[#allocation39_spill] sm:$0xff] %v5826_v19  ;;  %7840 = vst [vmem:[#allocation40_spill] sm:$0xff] %v5829_v30  ;;  %v1022_v40 = vmax.f32 %v958_v53, %v990_v57  ;;  %v5841_v32 = vadd.f32 %v5777_v61, %v1527_v44  ;;  %v1727_v54 = vmax.f32 %v5826_v19, %v5829_v30 }
 0x1a0   : > { %v5809_v42 = vpop.permute.xlu1 %2856  ;;  %7842 = vst [vmem:[#allocation42_spill] sm:$0xff] %v5836_v50  ;;  %7843 = vst [vmem:[#allocation43_spill] sm:$0xff] %v5838_v1  ;;  %v1657_v58 = vmax.f32 %v1593_v45, %v1625_v49  ;;  %v5847_v43 = vadd.f32 %v5780_v62, %v1527_v44  ;;  %v5866_v19 = vunpack.c.h.bf16 %v828_v41  ;;  %v5873_v30 = vunpack.c.l.bf16 %v827_v33 }
 0x1a1   : > { %7835 = vst [vmem:[#allocation35_spill] sm:$0xff] %v5809_v42  ;;  %v1600_v42 = vadd.f32 %v5780_v62, %v1535_v2  ;;  %v1023_v2 = vmax.f32 %v959_v11, %v991_v48  ;;  %v5852_v11 = vadd.f32 %v1022_v40, %v5836_v50  ;;  %v1663_v48 = vmax.f32 %v1599_v60, %v1631_v39 }
 0x1a2   : > { %v5817_v47 = vpop.permute.xlu0 %2876  ;;  %v5864_v40 = vunpack.c.l.bf16 %v828_v41  ;;  %7847 = vst [vmem:[#allocation47_spill] sm:$0xff] %v5866_v19  ;;  %v1627_v60 = vmul.f32 0.2, %v5841_v32  ;;  %v5870_v39 = vadd.f32 %v1657_v58, %v5836_v50  ;;  %7848 = vst [vmem:[#allocation48_spill] sm:$0xff] %v5873_v30 }
 0x1a3   : > { %7837 = vst [vmem:[#allocation37_spill] sm:$0xff] %v5817_v47  ;;  %v1632_v47 = vmul.f32 0.2, %v1600_v42  ;;  %7844 = vst [vmem:[#allocation44_spill] sm:$0xff] %v5852_v11  ;;  %v5855_v57 = vadd.f32 %v1023_v2, %v5838_v1  ;;  %v829_v2 = vld [vmem:[%s5751_s20 + $0x38] sm:$0xff]  ;;  %v5884_v41 = vadd.f32 %v1663_v48, %v5756_v63  ;;  %v1605_v48 = vadd.f32 %v5777_v61, %v5797_v59 }
 0x1a4   : > { %7846 = vst [vmem:[#allocation46_spill] sm:$0xff] %v5864_v40  ;;  %v1606_v63 = vadd.f32 %v5780_v62, %v5797_v59 }
 0x1a5   : > { %v5823_v5 = vpop.permute.xlu1 %892  ;;  %7845 = vst [vmem:[#allocation45_spill] sm:$0xff] %v5855_v57  ;;  %v1664_v44 = vmax.f32 %v1600_v42, %v1632_v47  ;;  %v1628_v47 = vmul.f32 0.2, %v5847_v43  ;;  %v1086_v42 = vmax.f32 %v5852_v11, %v5855_v57  ;;  %v1659_v11 = vmax.f32 %v5841_v32, %v1627_v60 }
 0x1a6   : > { %v5832_v51 = vpop.permute.xlu0 %2868  ;;  %v1257_v60 = vsel %vm1230_vm0, %v5432_v7, 1065369472  ;;  %v1637_v9 = vmul.f32 0.2, %v1605_v48 }
 0x1a7   : > { %7841 = vst [vmem:[#allocation41_spill] sm:$0xff] %v5832_v51  ;;  %v1658_v51 = vmax.f32 %v1594_v21, %v1626_v52  ;;  %v971_v21 = vadd.f32 %v5742_v55, %v5782_v56  ;;  %4406 = vmatprep.subr.bf16.mxu0 %v1257_v60 }
 0x1a8   : > { %1093 = vmax.xlane.f32.xlu1 %v1092_v38  ;;  %v970_v38 = vadd.f32 %v5739_v34, %v5782_v56  ;;  %v5875_v56 = vunpack.c.h.bf16 %v827_v33  ;;  %v5889_v33 = vadd.f32 %v1664_v44, %v5758_v0 }
 0x1a9   : > { %v1003_v6 = vmul.f32 0.2, %v971_v21 }
 0x1aa   : > { %v5849_v53 = vpop.permute.xlu1 %1538  ;;  %7849 = vst [vmem:[#allocation49_spill] sm:$0xff] %v5875_v56 }
 0x1ab   : > { %v898_v49 = vpop.permute.xlu0 %897  ;;  %v1035_v18 = vmax.f32 %v971_v21, %v1003_v6  ;;  %v967_v6 = vadd.f32 %v5742_v55, %v5823_v5 }
 0x1ac   : > { %v968_v45 = vadd.f32 %v5739_v34, %v898_v49  ;;  %v969_v52 = vadd.f32 %v5742_v55, %v898_v49  ;;  %1728 = vmax.xlane.f32.xlu1 %v1727_v54  ;;  %v5881_v54 = vadd.f32 %v1658_v51, %v5838_v1  ;;  %v1002_v49 = vmul.f32 0.2, %v970_v38 }
 0x1ad   : > { %v5893_v51 = vunpack.c.l.bf16 %v829_v2  ;;  %v5899_v1 = vunpack.c.h.bf16 %v829_v2 }
 0x1ae   : > { %7850 = vst [vmem:[#allocation50_spill] sm:$0xff] %v5881_v54  ;;  %v1000_v58 = vmul.f32 0.2, %v968_v45  ;;  %v1001_v35 = vmul.f32 0.2, %v969_v52  ;;  %v1034_v14 = vmax.f32 %v970_v38, %v1002_v49  ;;  %v826_v49 = vld [vmem:[%s5751_s20 + $0x20] sm:$0xff] }
 0x1af   : > { %v908_v50 = vpop.permute.xlu1 %907  ;;  %v5886_v36 = vpop.permute.xlu0 %922  ;;  %7852 = vst [vmem:[#allocation52_spill] sm:$0xff] %v5893_v51  ;;  %7853 = vst [vmem:[#allocation53_spill] sm:$0xff] %v5899_v1  ;;  %v1233_v38 = vsel %vm1230_vm0, %v5437_v8, 1065369472 }
 0x1b0   : > { %7851 = vst [vmem:[#allocation51_spill] sm:$0xff] %v5886_v36  ;;  %v972_v24 = vadd.f32 %v5739_v34, %v908_v50  ;;  %v973_v57 = vadd.f32 %v5742_v55, %v908_v50  ;;  %1087 = vmax.xlane.f32.xlu1 %v1086_v42  ;;  %v1721_v36 = vmax.f32 %v5870_v39, %v5881_v54  ;;  %v1638_v54 = vmul.f32 0.2, %v1606_v63 }
 0x1b1   : > { %v1660_v50 = vmax.f32 %v5847_v43, %v1628_v47  ;;  %v1730_v42 = vmax.f32 %v5884_v41, %v5889_v33  ;;  %v1032_v26 = vmax.f32 %v968_v45, %v1000_v58  ;;  %v1033_v32 = vmax.f32 %v969_v52, %v1001_v35  ;;  %4407 = vmatpush3.bf16.msra.mxu0 %v1233_v38 }
 0x1b2   : > { %v1004_v44 = vmul.f32 0.2, %v972_v24  ;;  %v1005_v0 = vmul.f32 0.2, %v973_v57  ;;  %v966_v43 = vadd.f32 %v5739_v34, %v5823_v5  ;;  %v5914_v47 = vadd.f32 %v1659_v11, %v5784_v3 }
 0x1b3   : > { %v5925_v7 = vadd.f32 %v1660_v50, %v5786_v46  ;;  %v5936_v11 = vadd.f32 %v1032_v26, %v5873_v30  ;;  %v1670_v52 = vmax.f32 %v1606_v63, %v1638_v54  ;;  %v1260_v58 = vsel %vm1230_vm0, %v5449_v10, 1065369472 }
 0x1b4   : > { %v1551_v37 = vpop.permute.xlu1 %1550  ;;  %v5907_v4 = vpop.permute.xlu0 %1562  ;;  %1722 = vmax.xlane.f32.xlu1 %v1721_v36  ;;  %v1036_v59 = vmax.f32 %v972_v24, %v1004_v44  ;;  %v1037_v2 = vmax.f32 %v973_v57, %v1005_v0  ;;  %v5928_v36 = vadd.f32 %v1034_v14, %v5864_v40  ;;  %v5931_v0 = vadd.f32 %v1035_v18, %v5866_v19 }
 0x1b5   : > { %v5939_v57 = vadd.f32 %v1033_v32, %v5875_v56  ;;  %v998_v21 = vmul.f32 0.2, %v966_v43  ;;  %v1669_v18 = vmax.f32 %v1605_v48, %v1637_v9  ;;  %v999_v26 = vmul.f32 0.2, %v967_v6  ;;  %4408 = vmatprep.subr.bf16.mxu0 %v1260_v58 }
 0x1b6   : > { %v5919_v24 = vadd.f32 %v1036_v59, %v5893_v51  ;;  %v5922_v35 = vadd.f32 %v1037_v2, %v5899_v1  ;;  %v1601_v44 = vadd.f32 %v5777_v61, %v5849_v53  ;;  %v1602_v50 = vadd.f32 %v5780_v62, %v5849_v53 }
 0x1b7   : > { %v1724_v8 = vmax.f32 %v5914_v47, %v5925_v7  ;;  %v1608_v9 = vadd.f32 %v5780_v62, %v1551_v37  ;;  %v1101_v10 = vmax.f32 %v5936_v11, %v5939_v57  ;;  %v5960_v63 = vunpack.c.l.bf16 %v826_v49 }
 0x1b8   : > { %1731 = vmax.xlane.f32.xlu1 %v1730_v42  ;;  %v1107_v5 = vmax.f32 %v5919_v24, %v5922_v35  ;;  %v1607_v42 = vadd.f32 %v5777_v61, %v1551_v37  ;;  %v5962_v54 = vunpack.c.h.bf16 %v826_v49  ;;  %v5965_v48 = vadd.f32 %v1669_v18, %v5864_v40 }
 0x1b9   : > { %v5943_v45 = vpop.permute.xlu1 %2880  ;;  %v5945_v14 = vpop.permute.xlu0 %2892  ;;  %7856 = vst [vmem:[#allocation56_spill] sm:$0xff] %v5960_v63  ;;  %v5968_v53 = vadd.f32 %v1670_v52, %v5866_v19  ;;  %v1030_v59 = vmax.f32 %v966_v43, %v998_v21  ;;  %v1236_v2 = vsel %vm1230_vm0, %v5460_v12, 1065369472  ;;  %v1633_v37 = vmul.f32 0.2, %v1601_v44 }
 0x1ba   : > { %7854 = vst [vmem:[#allocation54_spill] sm:$0xff] %v5943_v45  ;;  %7855 = vst [vmem:[#allocation55_spill] sm:$0xff] %v5945_v14  ;;  %1108 = vmax.xlane.f32.xlu0 %v1107_v5  ;;  %v1634_v32 = vmul.f32 0.2, %v1602_v50  ;;  %v1104_v5 = vmax.f32 %v5928_v36, %v5931_v0  ;;  %v1031_v38 = vmax.f32 %v967_v6, %v999_v26  ;;  %v1639_v49 = vmul.f32 0.2, %v1607_v42 }
 0x1bb   : > { %7857 = vst [vmem:[#allocation57_spill] sm:$0xff] %v5962_v54  ;;  %v1640_v58 = vmul.f32 0.2, %v1608_v9  ;;  %4409 = vmatpush3.bf16.msra.mxu0 %v1236_v2  ;;  %v1263_v43 = vsel %vm1230_vm0, %v5467_v13, 1065369472  ;;  %v1739_v52 = vmax.f32 %v5965_v48, %v5968_v53  ;;  %v5985_v6 = vadd.f32 %v1030_v59, %v5960_v63 }
 0x1bc   : > { %1725 = vmax.xlane.f32.xlu1 %v1724_v8  ;;  %v1239_v12 = vsel %vm1230_vm0, %v5477_v15, 1065369472  ;;  %4410 = vmatprep.subr.bf16.mxu0 %v1263_v43  ;;  %v5988_v26 = vadd.f32 %v1031_v38, %v5962_v54  ;;  %v1666_v2 = vmax.f32 %v1602_v50, %v1634_v32  ;;  %v1266_v13 = vsel %vm1230_vm0, %v5488_v16, 1065369472 }
 0x1bd   : > { %v5974_v8 = vpop.permute.xlu0 %2884  ;;  %v1671_v15 = vmax.f32 %v1607_v42, %v1639_v49  ;;  %v1672_v45 = vmax.f32 %v1608_v9, %v1640_v58  ;;  %v1242_v59 = vsel %vm1230_vm0, %v5493_v17, 1065369472  ;;  %v1245_v49 = vsel %vm1230_vm0, %v5514_v22, 1065369472 }
 0x1be   : > { %v1543_v60 = vpop.permute.xlu1 %1542  ;;  %1102 = vmax.xlane.f32.xlu0 %v1101_v10  ;;  %7858 = vst [vmem:[#allocation58_spill] sm:$0xff] %v5974_v8  ;;  %v1665_v10 = vmax.f32 %v1601_v44, %v1633_v37  ;;  %v1269_v44 = vsel %vm1230_vm0, %v5504_v20, 1065369472  ;;  %v1098_v50 = vmax.f32 %v5985_v6, %v5988_v26  ;;  %v6004_v42 = vadd.f32 %v1666_v2, %v5962_v54 }
 0x1bf   : > { %v1603_v18 = vadd.f32 %v5777_v61, %v1543_v60  ;;  %v1604_v21 = vadd.f32 %v5780_v62, %v1543_v60  ;;  %4411 = vmatpush3.bf16.msra.mxu0 %v1239_v12  ;;  %v6007_v9 = vadd.f32 %v1671_v15, %v5893_v51  ;;  %v6010_v37 = vadd.f32 %v1672_v45, %v5899_v1  ;;  %v831_v15 = vld [vmem:[%s5751_s20 + $0x48] sm:$0xff] }
 0x1c0   : > { %1105 = vmax.xlane.f32.xlu1 %v1104_v5  ;;  %4412 = vmatprep.subr.bf16.mxu0 %v1266_v13  ;;  %v6001_v16 = vadd.f32 %v1665_v10, %v5960_v63  ;;  %v830_v13 = vld [vmem:[%s5751_s20 + $0x40] sm:$0xff]  ;;  %v6048_v1 = vunpack.c.l.bf16 %v831_v15  ;;  %v6050_v51 = vunpack.c.h.bf16 %v831_v15 }
 0x1c1   : > { %v1635_v60 = vmul.f32 0.2, %v1603_v18  ;;  %v1636_v43 = vmul.f32 0.2, %v1604_v21  ;;  %v1742_v22 = vmax.f32 %v6007_v9, %v6010_v37 }
 0x1c2   : > { %v918_v14 = vpop.permute.xlu0 %917  ;;  %7862 = vst [vmem:[#allocation62_spill] sm:$0xff] %v6048_v1  ;;  %7863 = vst [vmem:[#allocation63_spill] sm:$0xff] %v6050_v51 }
 0x1c3   : > { %v5992_v5 = vpop.permute.xlu1 %2872  ;;  %4413 = vmatpush3.bf16.msra.mxu0 %v1242_v59  ;;  %v6013_v17 = vadd.f32 %v5739_v34, %v918_v14  ;;  %v6016_v20 = vadd.f32 %v5742_v55, %v918_v14  ;;  %v1667_v38 = vmax.f32 %v1603_v18, %v1635_v60  ;;  %v1668_v12 = vmax.f32 %v1604_v21, %v1636_v43 }
 0x1c4   : > { %7859 = vst [vmem:[#allocation59_spill] sm:$0xff] %v5992_v5  ;;  %1740 = vmax.xlane.f32.xlu1 %v1739_v52  ;;  %4414 = vmatprep.subr.bf16.mxu0 %v1269_v44  ;;  %v1272_v52 = vsel %vm1230_vm0, %v5523_v23, 1065369472  ;;  %v1733_v14 = vmax.f32 %v6001_v16, %v6004_v42  ;;  %v1248_v21 = vsel %vm1230_vm0, %v5529_v25, 1065369472  ;;  %v6046_v25 = vunpack.c.h.bf16 %v830_v13 }
 0x1c5   : > { %v1008_v18 = vmul.f32 0.2, %v6013_v17  ;;  %v1009_v23 = vmul.f32 0.2, %v6016_v20  ;;  %v6035_v59 = vadd.f32 %v1667_v38, %v5873_v30  ;;  %v6038_v43 = vadd.f32 %v1668_v12, %v5875_v56 }
 0x1c6   : > { %v1275_v44 = vsel %vm1230_vm0, %v5540_v27, 1065369472  ;;  %7861 = vst [vmem:[#allocation61_spill] sm:$0xff] %v6046_v25  ;;  %v1251_v27 = vsel %vm1230_vm0, %v5546_v28, 1065369472  ;;  %v833_v28 = vld [vmem:[%s5751_s20 + $0x58] sm:$0xff] }
 0x1c7   : > { %4415 = vmatpush3.bf16.msra.mxu0 %v1245_v49 }
 0x1c8   : > { %v913_v32 = vpop.permute.xlu1 %912  ;;  %1099 = vmax.xlane.f32.xlu1 %v1098_v50  ;;  %4416 = vmatprep.subr.bf16.mxu0 %v1272_v52 }
 0x1c9   : > { %v974_v58 = vadd.f32 %v5739_v34, %v913_v32  ;;  %v975_v45 = vadd.f32 %v5742_v55, %v913_v32 }
 0x1cb   : > { %v1006_v10 = vmul.f32 0.2, %v974_v58  ;;  %v1007_v2 = vmul.f32 0.2, %v975_v45  ;;  %4417 = vmatpush3.bf16.msra.mxu0 %v1248_v21 }
 0x1cc   : > { %1734 = vmax.xlane.f32.xlu1 %v1733_v14  ;;  %v6044_v14 = vunpack.c.l.bf16 %v830_v13  ;;  %4418 = vmatprep.subr.bf16.mxu0 %v1275_v44 }
 0x1cd   : > { %v1555_v60 = vpop.permute.xlu1 %1554  ;;  %v1038_v49 = vmax.f32 %v974_v58, %v1006_v10  ;;  %v1039_v52 = vmax.f32 %v975_v45, %v1007_v2  ;;  %v1736_v58 = vmax.f32 %v6035_v59, %v6038_v43  ;;  %v1040_v45 = vmax.f32 %v6013_v17, %v1008_v18 }
 0x1ce   : > { %v1609_v50 = vadd.f32 %v5777_v61, %v1555_v60  ;;  %v1610_v32 = vadd.f32 %v5780_v62, %v1555_v60  ;;  %7860 = vst [vmem:[#allocation60_spill] sm:$0xff] %v6044_v14  ;;  %v1041_v10 = vmax.f32 %v6016_v20, %v1009_v23  ;;  %v1278_v2 = vsel %vm1230_vm0, %v5555_v29, 1065369472 }
 0x1cf   : > { %v6064_v15 = vadd.f32 %v1039_v52, %v6046_v25  ;;  %4419 = vmatpush3.bf16.msra.mxu0 %v1251_v27  ;;  %v1254_v20 = vsel %vm1230_vm0, %v5561_v31, 1065369472 }
 0x1d0   : > { %v1641_v38 = vmul.f32 0.2, %v1609_v50  ;;  %v1642_v12 = vmul.f32 0.2, %v1610_v32  ;;  %1743 = vmax.xlane.f32.xlu1 %v1742_v22  ;;  %v6061_v22 = vadd.f32 %v1038_v49, %v6044_v14  ;;  %4420 = vmatprep.subr.bf16.mxu0 %v1278_v2 }
 0x1d2   : > { %v928_v13 = vpop.permute.xlu1 %927  ;;  %v1673_v21 = vmax.f32 %v1609_v50, %v1641_v38  ;;  %v1674_v60 = vmax.f32 %v1610_v32, %v1642_v12  ;;  %v6077_v50 = vunpack.c.l.bf16 %v833_v28  ;;  %v6079_v32 = vunpack.c.h.bf16 %v833_v28 }
 0x1d3   : > { %v980_v44 = vadd.f32 %v5739_v34, %v928_v13  ;;  %v981_v8 = vadd.f32 %v5742_v55, %v928_v13  ;;  %v1110_v52 = vmax.f32 %v6061_v22, %v6064_v15  ;;  %v6086_v38 = vadd.f32 %v1040_v45, %v6048_v1  ;;  %4421 = vmatpush3.bf16.msra.mxu0 %v1254_v20 }
 0x1d4   : > { %1737 = vmax.xlane.f32.xlu1 %v1736_v58  ;;  %v6070_v17 = vadd.f32 %v1673_v21, %v6044_v14  ;;  %v6073_v29 = vadd.f32 %v1674_v60, %v6046_v25  ;;  %7864 = vst [vmem:[#allocation64_spill] sm:$0xff] %v6077_v50  ;;  %7865 = vst [vmem:[#allocation65_spill] sm:$0xff] %v6079_v32  ;;  %v6089_v12 = vadd.f32 %v1041_v10, %v6050_v51 }
 0x1d5   : > { %v1012_v18 = vmul.f32 0.2, %v980_v44  ;;  %v1013_v23 = vmul.f32 0.2, %v981_v8 }
 0x1d6   : > { %v1745_v49 = vmax.f32 %v6070_v17, %v6073_v29  ;;  %v1113_v2 = vmax.f32 %v6086_v38, %v6089_v12 }
 0x1d7   : > { %v1567_v27 = vpop.permute.xlu1 %1566  ;;  %v1044_v31 = vmax.f32 %v980_v44, %v1012_v18  ;;  %v1045_v58 = vmax.f32 %v981_v8, %v1013_v23 }
 0x1d8   : > { %1746 = vmax.xlane.f32.xlu0 %v1745_v49  ;;  %1111 = vmax.xlane.f32.xlu1 %v1110_v52  ;;  %v1615_v30 = vadd.f32 %v5777_v61, %v1567_v27 }
 0x1d9   : > { %v6094_v13 = vadd.f32 %v1044_v31, %v6077_v50  ;;  %v6097_v21 = vadd.f32 %v1045_v58, %v6079_v32  ;;  %v7870_v58 = vld [vmem:[#allocation5_spill] sm:$0xff] }
 0x1da   : > { %v1647_v46 = vmul.f32 0.2, %v1615_v30 }
 0x1db   : > { %7866 = vst [vmem:[#allocation66_spill] sm:$0xff] %v6094_v13  ;;  %7867 = vst [vmem:[#allocation67_spill] sm:$0xff] %v6097_v21  ;;  %v1119_v10 = vmax.f32 %v6094_v13, %v6097_v21 }
 0x1dc   : > { %v6099_v45 = vpop.permute.xlu1 %2896  ;;  %1114 = vmax.xlane.f32.xlu0 %v1113_v2  ;;  %v7871_v2 = vld [vmem:[#allocation2_spill] sm:$0xff] }
 0x1dd   : > { %7868 = vst [vmem:[#allocation68_spill] sm:$0xff] %v6099_v45 }
 0x1e0   : > { %1120 = vmax.xlane.f32.xlu0 %v1119_v10  ;;  %v7872_v10 = vld [vmem:[#allocation17_spill] sm:$0xff] }
 0x1e1   : > { %v1559_v8 = vpop.permute.xlu1 %1558 }
 0x1e2   : > { %v1611_v60 = vadd.f32 %v5777_v61, %v1559_v8  ;;  %v1612_v28 = vadd.f32 %v5780_v62, %v1559_v8  ;;  %v7873_v8 = vld [vmem:[#allocation7_spill] sm:$0xff] }
 0x1e4   : > { %v1643_v44 = vmul.f32 0.2, %v1611_v60  ;;  %v1644_v20 = vmul.f32 0.2, %v1612_v28 }
 0x1e6   : > { %v1675_v18 = vmax.f32 %v1611_v60, %v1643_v44  ;;  %v1676_v23 = vmax.f32 %v1612_v28, %v1644_v20  ;;  %v7874_v60 = vmov 2   ;;  %v7875_v28 = vld [vmem:[#allocation6_spill] sm:$0xff]  ;;  %v7876_v44 = vld [vmem:[#allocation11_spill] sm:$0xff] }
 0x1e7   : > { %v7877_v20 = vld [vmem:[#allocation10_spill] sm:$0xff] }
 0x1e8   : > { %v6106_v49 = vadd.f32 %v1675_v18, %v6048_v1  ;;  %v6109_v52 = vadd.f32 %v1676_v23, %v6050_v51  ;;  %v6121_v18 = vpop.permute.xlu1 %2888  ;;  %v7879_v23 = vld [vmem:[#allocation15_spill] sm:$0xff] }
 0x1e9   : > { %7878 = vst [vmem:[#allocation5_spill] sm:$0xff] %v6121_v18 }
 0x1ea   : > { %7869 = vst [vmem:[#allocation69_spill] sm:$0xff] %v6109_v52  ;;  %v1748_v31 = vmax.f32 %v6106_v49, %v6109_v52 }
 0x1ec   : > { %1749 = vmax.xlane.f32.xlu1 %v1748_v31  ;;  %v7880_v31 = vld [vmem:[#allocation51_spill] sm:$0xff]  ;;  %v6133_v18 = vpop.permute.xlu1 %932 }
 0x1f0   : > { %v1571_v19 = vpop.permute.xlu1 %1570 }
 0x1f6   : > { %2191 = vperm.xlu0 %4811, %v7870_v58   ;;  %v978_v58 = vadd.f32 %v5739_v34, %v7880_v31 }
 0x1fa   : > { %2195 = vperm.xlu0 %4811, %v7871_v2   ;;  %v979_v2 = vadd.f32 %v5742_v55, %v7880_v31 }
 0x1fc   : > { %v1011_v45 = vmul.f32 0.2, %v979_v2 }
 0x1fd   : > { %2904 = vperm.xlu1 %4810, %v7872_v10  }
 0x1fe   : > { %2203 = vperm.xlu0 %4811, %v7873_v8   ;;  %v943_v8 = vpop.permute.xlu0 %942  ;;  %v1043_v56 = vmax.f32 %v979_v2, %v1011_v45 }
 0x201   : > { %4812 = vset.pattern.permute.xlu1 %v7874_v60  ;;  %v1613_v60 = vadd.f32 %v5777_v61, %v5907_v4 }
 0x202   : > { %2211 = vperm.xlu0 %4811, %v7875_v28   ;;  %v1614_v28 = vadd.f32 %v5780_v62, %v5907_v4  ;;  %v1579_v25 = vpop.permute.xlu0 %1578  ;;  %v1616_v4 = vadd.f32 %v5780_v62, %v1567_v27 }
 0x203   : > { %v1645_v14 = vmul.f32 0.2, %v1613_v60 }
 0x204   : > { %v1646_v51 = vmul.f32 0.2, %v1614_v28  ;;  %v1648_v3 = vmul.f32 0.2, %v1616_v4 }
 0x205   : > { %v1677_v40 = vmax.f32 %v1613_v60, %v1645_v14  ;;  %v6156_v60 = vpop.permute.xlu1 %2900 }
 0x206   : > { %2219 = vperm.xlu0 %4811, %v7876_v44   ;;  %v7881_v44 = vld [vmem:[#allocation16_spill] sm:$0xff]  ;;  %v1678_v54 = vmax.f32 %v1614_v28, %v1646_v51  ;;  %v938_v63 = vpop.permute.xlu0 %937  ;;  %v1679_v51 = vmax.f32 %v1615_v30, %v1647_v46  ;;  %v1680_v27 = vmax.f32 %v1616_v4, %v1648_v3  ;;  %7888 = vst [vmem:[#allocation15_spill] sm:$0xff] %v6156_v60 }
 0x207   : > { %v985_v45 = vadd.f32 %v5742_v55, %v938_v63  ;;  %v986_v4 = vadd.f32 %v5739_v34, %v943_v8 }
 0x208   : > { %v6169_v46 = vadd.f32 %v1680_v27, %v6079_v32 }
 0x209   : > { %v1017_v28 = vmul.f32 0.2, %v985_v45  ;;  %v6171_v3 = vpop.permute.xlu1 %947 }
 0x20a   : > { %2227 = vperm.xlu0 %4811, %v7877_v20   ;;  %v1010_v20 = vmul.f32 0.2, %v978_v58  ;;  %7890 = vst [vmem:[#allocation16_spill] sm:$0xff] %v6169_v46 }
 0x20b   : > { %v1049_v32 = vmax.f32 %v985_v45, %v1017_v28 }
 0x20c   : > { %v1042_v5 = vmax.f32 %v978_v58, %v1010_v20  ;;  %v984_v58 = vadd.f32 %v5739_v34, %v938_v63  ;;  %v835_v63 = vld [vmem:[%s5751_s20 + $0x68] sm:$0xff] }
 0x20d   : > { %v6173_v30 = vunpack.c.l.bf16 %v835_v63 }
 0x20e   : > { %2235 = vperm.xlu0 %4811, %v7879_v23   ;;  %v832_v23 = vld [vmem:[%s5751_s20 + $0x50] sm:$0xff] }
 0x20f   : > { %v6136_v1 = vunpack.c.l.bf16 %v832_v23  ;;  %v6138_v31 = vunpack.c.h.bf16 %v832_v23  ;;  %v1618_v23 = vadd.f32 %v5780_v62, %v1571_v19 }
 0x211   : > { %7882 = vst [vmem:[#allocation2_spill] sm:$0xff] %v6136_v1  ;;  %7883 = vst [vmem:[#allocation17_spill] sm:$0xff] %v6138_v31  ;;  %v6143_v21 = vadd.f32 %v1042_v5, %v6136_v1  ;;  %v6146_v13 = vadd.f32 %v1043_v56, %v6138_v31  ;;  %v6151_v2 = vadd.f32 %v1677_v40, %v6136_v1  ;;  %v1016_v56 = vmul.f32 0.2, %v984_v58 }
 0x212   : > { %2247 = vperm.xlu0 %4811, %v7881_v44   ;;  %v6154_v14 = vadd.f32 %v1678_v54, %v6138_v31  ;;  %v1617_v40 = vadd.f32 %v5777_v61, %v1571_v19  ;;  %v6166_v54 = vadd.f32 %v1679_v51, %v6077_v50  ;;  %v6177_v31 = vunpack.c.h.bf16 %v835_v63 }
 0x213   : > { %7884 = vst [vmem:[#allocation7_spill] sm:$0xff] %v6143_v21  ;;  %7885 = vst [vmem:[#allocation6_spill] sm:$0xff] %v6146_v13  ;;  %v1116_v5 = vmax.f32 %v6143_v21, %v6146_v13  ;;  %v1048_v19 = vmax.f32 %v984_v58, %v1016_v56  ;;  %v1650_v51 = vmul.f32 0.2, %v1618_v23  ;;  %v1018_v50 = vmul.f32 0.2, %v986_v4  ;;  %v6185_v21 = vpop.permute.xlu1 %1582 }
 0x214   : > { %7886 = vst [vmem:[#allocation11_spill] sm:$0xff] %v6151_v2  ;;  %7887 = vst [vmem:[#allocation10_spill] sm:$0xff] %v6154_v14  ;;  %v1751_v20 = vmax.f32 %v6151_v2, %v6154_v14  ;;  %v1649_v1 = vmul.f32 0.2, %v1617_v40  ;;  %v1754_v27 = vmax.f32 %v6166_v54, %v6169_v46  ;;  %v1622_v14 = vadd.f32 %v5780_v62, %v1579_v25  ;;  %v834_v2 = vld [vmem:[%s5751_s20 + $0x60] sm:$0xff]  ;;  %v836_v13 = vld [vmem:[%s5751_s20 + $0x70] sm:$0xff] }
 0x215   : > { %7889 = vst [vmem:[#allocation51_spill] sm:$0xff] %v6166_v54  ;;  %7891 = vst [vmem:[#allocation70_spill] sm:$0xff] %v6177_v31  ;;  %v6191_v58 = vadd.f32 %v1049_v32, %v6177_v31  ;;  %v1682_v63 = vmax.f32 %v1618_v23, %v1650_v51  ;;  %v6193_v45 = vunpack.c.l.bf16 %v834_v2  ;;  %v6195_v28 = vunpack.c.h.bf16 %v834_v2  ;;  %v7911_v31 = vld [vmem:[#allocation26_spill] sm:$0xff] }
 0x216   : > { %7892 = vst [vmem:[#allocation71_spill] sm:$0xff] %v6185_v21  ;;  %v1681_v56 = vmax.f32 %v1617_v40, %v1649_v1  ;;  %v1050_v54 = vmax.f32 %v986_v4, %v1018_v50  ;;  %v1654_v21 = vmul.f32 0.2, %v1622_v14 }
 0x217   : > { %7894 = vst [vmem:[#allocation73_spill] sm:$0xff] %v6191_v58  ;;  %v6207_v1 = vadd.f32 %v1682_v63, %v6195_v28  ;;  %v6209_v40 = vpop.permute.xlu1 %1574 }
 0x218   : > { %v6204_v32 = vadd.f32 %v1681_v56, %v6193_v45  ;;  %v1686_v4 = vmax.f32 %v1622_v14, %v1654_v21  ;;  %v7905_v21 = vld [vmem:[#allocation3_spill] sm:$0xff] }
 0x219   : > { %7898 = vst [vmem:[#allocation77_spill] sm:$0xff] %v6207_v1 }
 0x21a   : > { %7897 = vst [vmem:[#allocation76_spill] sm:$0xff] %v6204_v32  ;;  %v1757_v50 = vmax.f32 %v6204_v32, %v6207_v1  ;;  %v7904_v1 = vld [vmem:[#allocation32_spill] sm:$0xff] }
 0x221   : > { %1117 = vmax.xlane.f32.xlu1 %v1116_v5  ;;  %v987_v5 = vadd.f32 %v5742_v55, %v943_v8  ;;  %v6188_v8 = vadd.f32 %v1048_v19, %v6173_v30 }
 0x223   : > { %v1019_v60 = vmul.f32 0.2, %v987_v5  ;;  %7893 = vst [vmem:[#allocation72_spill] sm:$0xff] %v6188_v8  ;;  %v1125_v19 = vmax.f32 %v6188_v8, %v6191_v58 }
 0x224   : > { %v1097_v2 = vpop.xlane.xlu0 %1096 }
 0x225   : > { %1752 = vmax.xlane.f32.xlu1 %v1751_v20  ;;  %v1621_v20 = vadd.f32 %v5777_v61, %v1579_v25  ;;  %v6199_v25 = vunpack.c.h.bf16 %v836_v13  ;;  %v1051_v52 = vmax.f32 %v987_v5, %v1019_v60 }
 0x227   : > { %v1653_v46 = vmul.f32 0.2, %v1621_v20  ;;  %7896 = vst [vmem:[#allocation75_spill] sm:$0xff] %v6199_v25 }
 0x229   : > { %1755 = vmax.xlane.f32.xlu1 %v1754_v27  ;;  %v6197_v27 = vunpack.c.l.bf16 %v836_v13  ;;  %v6217_v13 = vadd.f32 %v1051_v52, %v6199_v25  ;;  %v1685_v60 = vmax.f32 %v1621_v20, %v1653_v46  ;;  %v7906_v20 = vld [vmem:[#allocation38_spill] sm:$0xff] }
 0x22b   : > { %7895 = vst [vmem:[#allocation74_spill] sm:$0xff] %v6197_v27  ;;  %v6212_v23 = vadd.f32 %v1050_v54, %v6197_v27  ;;  %7900 = vst [vmem:[#allocation79_spill] sm:$0xff] %v6217_v13  ;;  %v6222_v63 = vadd.f32 %v1685_v60, %v6197_v27  ;;  %v6225_v54 = vadd.f32 %v1686_v4, %v6199_v25  ;;  %v7907_v4 = vld [vmem:[#allocation27_spill] sm:$0xff] }
 0x22c   : > { %v1091_v5 = vpop.xlane.xlu0 %1090  ;;  %v1141_v25 = vsub.f32 %v7907_v4, %v1097_v2 }
 0x22d   : > { %7899 = vst [vmem:[#allocation78_spill] sm:$0xff] %v6212_v23  ;;  %v1128_v56 = vmax.f32 %v6212_v23, %v6217_v13  ;;  %7901 = vst [vmem:[#allocation80_spill] sm:$0xff] %v6222_v63  ;;  %v1137_v32 = vsub.f32 %v7904_v1, %v1091_v5  ;;  %v1763_v14 = vmax.f32 %v6222_v63, %v6225_v54  ;;  %v7908_v13 = vld [vmem:[#allocation44_spill] sm:$0xff]  ;;  %v7909_v23 = vld [vmem:[#allocation45_spill] sm:$0xff] }
 0x22e   : > { %7902 = vst [vmem:[#allocation81_spill] sm:$0xff] %v6225_v54  ;;  %v1140_v54 = vsub.f32 %v7911_v31, %v1097_v2  ;;  %v7913_v63 = vld [vmem:[#allocation9_spill] sm:$0xff]  ;;  %v7915_v2 = vld [vmem:[#allocation8_spill] sm:$0xff] }
 0x22f   : > { %v1172_v60 = vmul.f32 1.442695, %v1137_v32  ;;  %v7912_v32 = vld [vmem:[#allocation36_spill] sm:$0xff] }
 0x231   : > { %1126 = vmax.xlane.f32.xlu0 %v1125_v19  ;;  %v7903_v19 = vld [vmem:[#allocation31_spill] sm:$0xff] }
 0x232   : > { %v1136_v58 = vsub.f32 %v7903_v19, %v1091_v5  ;;  %v7910_v5 = vld [vmem:[#allocation4_spill] sm:$0xff] }
 0x234   : > { %v1170_v46 = vmul.f32 1.442695, %v1136_v58 }
 0x235   : > { %v1094_v51 = vpop.xlane.xlu1 %1093  ;;  %1758 = vmax.xlane.f32.xlu0 %v1757_v50 }
 0x236   : > { %v1139_v50 = vsub.f32 %v7906_v20, %v1094_v51  ;;  %4851 = vpow2.f32 %v1170_v46  ;;  %v1180_v20 = vmul.f32 1.442695, %v1141_v25  ;;  %v1178_v46 = vmul.f32 1.442695, %v1140_v54 }
 0x237   : > { %4853 = vpow2.f32 %v1172_v60 }
 0x239   : > { %v6229_v52 = vpop.xlane.xlu1 %1728  ;;  %1129 = vmax.xlane.f32.xlu0 %v1128_v56  ;;  %v1176_v56 = vmul.f32 1.442695, %v1139_v50 }
 0x23a   : > { %2187 = vperm.xlu1 %4812, %v7905_v21  }
 0x23d   : > { %1764 = vmax.xlane.f32.xlu0 %v1763_v14  ;;  %v1088_v27 = vpop.xlane.xlu1 %1087  ;;  %v1138_v14 = vsub.f32 %v7912_v32, %v1094_v51 }
 0x23e   : > { %v1134_v19 = vsub.f32 %v7908_v13, %v1088_v27  ;;  %v1135_v1 = vsub.f32 %v7909_v23, %v1088_v27  ;;  %2199 = vperm.xlu1 %4812, %v7910_v5   ;;  %v7914_v27 = vld [vmem:[#allocation50_spill] sm:$0xff]  ;;  %v7917_v5 = vld [vmem:[#allocation13_spill] sm:$0xff] }
 0x23f   : > { %v1174_v4 = vmul.f32 1.442695, %v1138_v14 }
 0x240   : > { %v1166_v21 = vmul.f32 1.442695, %v1134_v19  ;;  %v1168_v8 = vmul.f32 1.442695, %v1135_v1  ;;  %v4852_v1 = vpop.eup %4851 }
 0x241   : > { %v1723_v58 = vpop.xlane.xlu1 %1722 }
 0x242   : > { %4855 = vpow2.f32 %v1166_v21  ;;  %2207 = vperm.xlu1 %4812, %v7913_v63   ;;  %v1769_v13 = vsub.f32 %v5870_v39, %v1723_v58  ;;  %v1770_v23 = vsub.f32 %v7914_v27, %v1723_v58 }
 0x243   : > { %4857 = vpow2.f32 %v1168_v8  ;;  %v7916_v8 = vld [vmem:[#allocation40_spill] sm:$0xff] }
 0x244   : > { %4859 = vpow2.f32 %v1176_v56  ;;  %v1801_v25 = vmul.f32 1.442695, %v1769_v13  ;;  %v1803_v51 = vmul.f32 1.442695, %v1770_v23  ;;  %v1774_v63 = vsub.f32 %v7916_v8, %v6229_v52  ;;  %v4854_v56 = vpop.eup %4853 }
 0x245   : > { %v1732_v50 = vpop.xlane.xlu1 %1731  ;;  %4861 = vpow2.f32 %v1180_v20 }
 0x246   : > { %v1776_v31 = vsub.f32 %v5889_v33, %v1732_v50  ;;  %2215 = vperm.xlu1 %4812, %v7915_v2   ;;  %4863 = vpow2.f32 %v1178_v46  ;;  %v1811_v32 = vmul.f32 1.442695, %v1774_v63  ;;  %v1775_v46 = vsub.f32 %v5884_v41, %v1732_v50 }
 0x247   : > { %v6246_v60 = vpop.xlane.xlu0 %1108  ;;  %4865 = vpow2.f32 %v1174_v4 }
 0x248   : > { %v1815_v39 = vmul.f32 1.442695, %v1776_v31  ;;  %4867 = vpow2.f32 %v1801_v25  ;;  %v7919_v31 = vld [vmem:[#allocation39_spill] sm:$0xff]  ;;  %v1813_v41 = vmul.f32 1.442695, %v1775_v46 }
 0x249   : > { %v1726_v19 = vpop.xlane.xlu1 %1725  ;;  %4869 = vpow2.f32 %v1803_v51 }
 0x24a   : > { %v1771_v54 = vsub.f32 %v5914_v47, %v1726_v19  ;;  %2223 = vperm.xlu1 %4812, %v7917_v5   ;;  %v1772_v33 = vsub.f32 %v5925_v7, %v1726_v19  ;;  %4871 = vpow2.f32 %v1815_v39  ;;  %v7918_v47 = vld [vmem:[#allocation12_spill] sm:$0xff]  ;;  %v1773_v7 = vsub.f32 %v7919_v31, %v6229_v52  ;;  %v5299_v52 = vld [vmem:[%s7590_s0 + $0x40] sm:$0xff]  }
 0x24b   : > { %v1103_v13 = vpop.xlane.xlu0 %1102 }
 0x24c   : > { %v4856_v21 = vpop.eup %4855  ;;  %v1805_v58 = vmul.f32 1.442695, %v1771_v54  ;;  %v1807_v14 = vmul.f32 1.442695, %v1772_v33  ;;  %v1144_v51 = vsub.f32 %v5936_v11, %v1103_v13  ;;  %v1145_v8 = vsub.f32 %v5939_v57, %v1103_v13 }
 0x24d   : > { %v4858_v20 = vpop.eup %4857  ;;  %v6253_v27 = vpop.xlane.xlu1 %1105  ;;  %v1280_v4 = vpack.c.bf16 %v4852_v1, %v4856_v21  ;;  %v1809_v19 = vmul.f32 1.442695, %v1773_v7  ;;  %v7921_v7 = vmov 3  }
 0x24e   : > { %v4860_v23 = vpop.eup %4859  ;;  %4873 = vpow2.f32 %v1805_v58  ;;  %2231 = vperm.xlu1 %4812, %v7918_v47   ;;  %v1281_v2 = vpack.c.bf16 %v4854_v56, %v4858_v20  ;;  %v1186_v57 = vmul.f32 1.442695, %v1144_v51  ;;  %v1147_v1 = vsub.f32 %v5931_v0, %v6253_v27  ;;  %v7920_v20 = vld [vmem:[#allocation14_spill] sm:$0xff] }
 0x24f   : > { %4875 = vpow2.f32 %v1807_v14  ;;  %v4862_v25 = vpop.eup %4861  ;;  %v1188_v5 = vmul.f32 1.442695, %v1145_v8  ;;  %v1146_v31 = vsub.f32 %v5928_v36, %v6253_v27 }
 0x250   : > { %4877 = vpow2.f32 %v1811_v32  ;;  %1328 = vmatprep.mubr.bf16.mxu0 %v1281_v2  ;;  %v1283_v63 = vpack.c.bf16 %v4862_v25, %v4860_v23  ;;  %v4864_v50 = vpop.eup %4863  ;;  %v1192_v13 = vmul.f32 1.442695, %v1147_v1  ;;  %v7922_v1 = vld [vmem:[#allocation22_spill] sm:$0xff] }
 0x251   : > { %v6261_v39 = vpop.xlane.xlu1 %1740  ;;  %1329 = vmatmul.mubr.bf16.vlgmr.msra.gmra.mrb[16].mxu0 %v1280_v4  ;;  %v4866_v11 = vpop.eup %4865  ;;  %4879 = vpow2.f32 %v1813_v41  ;;  %v1190_v36 = vmul.f32 1.442695, %v1146_v31 }
 0x252   : > { %2239 = vperm.xlu1 %4812, %v7872_v10   ;;  %1336 = vmatprep.mubr.bf16.mxu0 %v1283_v63  ;;  %v4868_v54 = vpop.eup %4867  ;;  %v1149_v10 = vsub.f32 %v5922_v35, %v6246_v60  ;;  %4881 = vpow2.f32 %v1809_v19  ;;  %v1282_v0 = vpack.c.bf16 %v4864_v50, %v4866_v11  ;;  %v1148_v35 = vsub.f32 %v5919_v24, %v6246_v60 }
 0x253   : > { %2546 = vrot.lane.b32.xlu0 %v5299_v52, %s5328_s25  ;;  %v4870_v33 = vpop.eup %4869  ;;  %4883 = vpow2.f32 %v1186_v57 }
 0x254   : > { %v4872_v32 = vpop.eup %4871  ;;  %4885 = vpow2.f32 %v1188_v5  ;;  %v1196_v4 = vmul.f32 1.442695, %v1149_v10  ;;  %v1194_v8 = vmul.f32 1.442695, %v1148_v35 }
 0x255   : > { %v1100_v56 = vpop.xlane.xlu1 %1099 }
 0x256   : > { %v1142_v21 = vsub.f32 %v5985_v6, %v1100_v56  ;;  %v1143_v58 = vsub.f32 %v5988_v26, %v1100_v56  ;;  %2243 = vperm.xlu1 %4812, %v7920_v20  }
 0x257   : > { %3211 = vrot.lane.b32.xlu0 %v5299_v52, %s5329_s26 }
 0x258   : > { %v4874_v14 = vpop.eup %4873  ;;  %v1182_v23 = vmul.f32 1.442695, %v1142_v21  ;;  %v1184_v46 = vmul.f32 1.442695, %v1143_v58  ;;  %v1781_v21 = vsub.f32 %v5965_v48, %v6261_v39 }
 0x259   : > { %v4876_v47 = vpop.eup %4875  ;;  %v1735_v6 = vpop.xlane.xlu1 %1734  ;;  %v1945_v26 = vpack.c.bf16 %v4874_v14, %v4868_v54  ;;  %1337 = vmatmul.mubr.bf16.gmra.mrb[20].mxu0 %v1282_v0  ;;  %v7923_v54 = vld [vmem:[#allocation19_spill] sm:$0xff] }
 0x25a   : > { %4887 = vpow2.f32 %v1182_v23  ;;  %4813 = vset.pattern.permute.xlu1 %v7921_v7  ;;  %v1946_v2 = vpack.c.bf16 %v4876_v47, %v4870_v33  ;;  %v4878_v25 = vpop.eup %4877  ;;  %v1777_v51 = vsub.f32 %v6001_v16, %v1735_v6  ;;  %v1778_v24 = vsub.f32 %v6004_v42, %v1735_v6 }
 0x25b   : > { %4889 = vpow2.f32 %v1184_v46  ;;  %2908 = vperm.xlu1 %4813, %v7920_v20   ;;  %v1948_v60 = vpack.c.bf16 %v4872_v32, %v4878_v25  ;;  %v4880_v50 = vpop.eup %4879  ;;  %v1782_v42 = vsub.f32 %v5968_v53, %v6261_v39  ;;  %v2923_v5 = vadd.f32 %v7923_v54, %v7922_v1 }
 0x25c   : > { %4891 = vpow2.f32 %v1192_v13  ;;  %1993 = vmatprep.mubr.bf16.mxu1 %v1946_v2  ;;  %v1817_v41 = vmul.f32 1.442695, %v1777_v51  ;;  %v1819_v16 = vmul.f32 1.442695, %v1778_v24  ;;  %v4882_v19 = vpop.eup %4881  ;;  %v1825_v35 = vmul.f32 1.442695, %v1781_v21 }
 0x25d   : > { %1994 = vmatmul.mubr.bf16.vlgmr.msra.gmra.mrb[4].mxu1 %v1945_v26  ;;  %v1744_v63 = vpop.xlane.xlu1 %1743  ;;  %4893 = vpow2.f32 %v1196_v4  ;;  %v4884_v57 = vpop.eup %4883  ;;  %v1947_v53 = vpack.c.bf16 %v4880_v50, %v4882_v19  ;;  %v1827_v13 = vmul.f32 1.442695, %v1782_v42  ;;  %v2955_v46 = vmul.f32 0.2, %v2923_v5  ;;  %v7925_v42 = vld [vmem:[#allocation42_spill] sm:$0xff] }
 0x25e   : > { %2001 = vmatprep.mubr.bf16.mxu1 %v1948_v60  ;;  %v1784_v27 = vsub.f32 %v6010_v37, %v1744_v63  ;;  %4895 = vpow2.f32 %v1194_v8  ;;  %v4886_v33 = vpop.eup %4885  ;;  %v1783_v20 = vsub.f32 %v6007_v9, %v1744_v63 }
 0x25f   : > { %2912 = vperm.xlu1 %4813, %v7881_v44   ;;  %4897 = vpow2.f32 %v1190_v36  ;;  %v7924_v44 = vld [vmem:[#allocation21_spill] sm:$0xff]  ;;  %v2987_v24 = vmax.f32 %v2923_v5, %v2955_v46 }
 0x260   : > { %v1831_v52 = vmul.f32 1.442695, %v1784_v27  ;;  %v2924_v10 = vadd.f32 %v7924_v44, %v7922_v1  ;;  %4899 = vpow2.f32 %v1817_v41  ;;  %v1829_v26 = vmul.f32 1.442695, %v1783_v20 }
 0x261   : > { %v1738_v11 = vpop.xlane.xlu1 %1737  ;;  %4901 = vpow2.f32 %v1819_v16  ;;  %v982_v41 = vadd.f32 %v5739_v34, %v6133_v18 }
 0x262   : > { %v1779_v56 = vsub.f32 %v6035_v59, %v1738_v11  ;;  %v1780_v37 = vsub.f32 %v6038_v43, %v1738_v11  ;;  %4903 = vpow2.f32 %v1831_v52  ;;  %v2956_v47 = vmul.f32 0.2, %v2924_v10  ;;  %v7926_v11 = vld [vmem:[#allocation43_spill] sm:$0xff] }
 0x263   : > { %v6308_v52 = vadd.f32 %v2987_v24, %v7925_v42  ;;  %v1014_v5 = vmul.f32 0.2, %v982_v41 }
 0x264   : > { %v4888_v58 = vpop.eup %4887  ;;  %v1821_v32 = vmul.f32 1.442695, %v1779_v56  ;;  %v1823_v0 = vmul.f32 1.442695, %v1780_v37  ;;  %v2988_v60 = vmax.f32 %v2924_v10, %v2956_v47 }
 0x265   : > { %v4890_v14 = vpop.eup %4889  ;;  %2002 = vmatmul.mubr.bf16.gmra.mrb[8].mxu1 %v1947_v53  ;;  %v6297_v59 = vpop.xlane.xlu0 %1746  ;;  %v1284_v39 = vpack.c.bf16 %v4884_v57, %v4888_v58  ;;  %v1046_v20 = vmax.f32 %v982_v41, %v1014_v5 }
 0x266   : > { %v1112_v43 = vpop.xlane.xlu1 %1111  ;;  %v4892_v23 = vpop.eup %4891  ;;  %4905 = vpow2.f32 %v1821_v32  ;;  %v1285_v6 = vpack.c.bf16 %v4886_v33, %v4890_v14  ;;  %v6311_v57 = vadd.f32 %v2988_v60, %v7926_v11  ;;  %v1620_v32 = vadd.f32 %v5780_v62, %v6209_v40 }
 0x267   : > { %v1150_v48 = vsub.f32 %v6061_v22, %v1112_v43  ;;  %4907 = vpow2.f32 %v1823_v0  ;;  %v4894_v9 = vpop.eup %4893  ;;  %v1151_v4 = vsub.f32 %v6064_v15, %v1112_v43  ;;  %v1785_v0 = vsub.f32 %v6070_v17, %v6297_v59 }
 0x268   : > { %4909 = vpow2.f32 %v1827_v13  ;;  %1344 = vmatprep.mubr.bf16.mxu0 %v1285_v6  ;;  %v1287_v2 = vpack.c.bf16 %v4894_v9, %v4892_v23  ;;  %v4896_v22 = vpop.eup %4895  ;;  %v3051_v53 = vmax.f32 %v6308_v52, %v6311_v57  ;;  %v988_v43 = vadd.f32 %v5739_v34, %v6171_v3 }
 0x269   : > { %v1198_v31 = vmul.f32 1.442695, %v1150_v48  ;;  %v1115_v7 = vpop.xlane.xlu0 %1114  ;;  %1345 = vmatmul.mubr.bf16.gmra.mrb[24].mxu0 %v1284_v39  ;;  %4911 = vpow2.f32 %v1825_v35  ;;  %v4898_v8 = vpop.eup %4897  ;;  %v1200_v63 = vmul.f32 1.442695, %v1151_v4  ;;  %v1786_v23 = vsub.f32 %v6073_v29, %v6297_v59 }
 0x26a   : > { %v1152_v25 = vsub.f32 %v6086_v38, %v1115_v7  ;;  %v1153_v51 = vsub.f32 %v6089_v12, %v1115_v7  ;;  %1352 = vmatprep.mubr.bf16.mxu0 %v1287_v2  ;;  %4913 = vpow2.f32 %v1829_v26  ;;  %v4900_v27 = vpop.eup %4899  ;;  %v983_v38 = vadd.f32 %v5742_v55, %v6133_v18  ;;  %v7927_v7 = vld [vmem:[#allocation69_spill] sm:$0xff] }
 0x26b   : > { %4915 = vpow2.f32 %v1198_v31  ;;  %v4902_v50 = vpop.eup %4901  ;;  %v1286_v19 = vpack.c.bf16 %v4896_v22, %v4898_v8  ;;  %v1619_v18 = vadd.f32 %v5777_v61, %v6209_v40  ;;  %v989_v39 = vadd.f32 %v5742_v55, %v6171_v3  ;;  %v837_v8 = vld [vmem:[%s5751_s20 + $0x78] sm:$0xff] }
 0x26c   : > { %v1202_v36 = vmul.f32 1.442695, %v1152_v25  ;;  %v1204_v15 = vmul.f32 1.442695, %v1153_v51  ;;  %v4904_v12 = vpop.eup %4903  ;;  %v1015_v37 = vmul.f32 0.2, %v983_v38  ;;  %v6328_v9 = vadd.f32 %v1046_v20, %v6193_v45 }
 0x26d   : > { %v1651_v40 = vmul.f32 0.2, %v1619_v18  ;;  %v1652_v35 = vmul.f32 0.2, %v1620_v32  ;;  %v1833_v17 = vmul.f32 1.442695, %v1785_v0 }
 0x26e   : > { %4917 = vpow2.f32 %v1202_v36  ;;  %v1047_v13 = vmax.f32 %v983_v38, %v1015_v37  ;;  %v1020_v26 = vmul.f32 0.2, %v988_v43  ;;  %v1835_v4 = vmul.f32 1.442695, %v1786_v23  ;;  %v7928_v51 = vld [vmem:[#allocation71_spill] sm:$0xff] }
 0x26f   : > { %4919 = vpow2.f32 %v1204_v15  ;;  %v1021_v25 = vmul.f32 0.2, %v989_v39  ;;  %v1623_v22 = vadd.f32 %v5777_v61, %v7928_v51  ;;  %v1624_v24 = vadd.f32 %v5780_v62, %v7928_v51 }
 0x270   : > { %v4906_v16 = vpop.eup %4905  ;;  %4921 = vpow2.f32 %v1200_v63  ;;  %v6331_v59 = vadd.f32 %v1047_v13, %v6195_v28  ;;  %v1683_v60 = vmax.f32 %v1619_v18, %v1651_v40  ;;  %v1684_v63 = vmax.f32 %v1620_v32, %v1652_v35  ;;  %v1121_v13 = vpop.xlane.xlu0 %1120 }
 0x271   : > { %v4908_v1 = vpop.eup %4907  ;;  %v1949_v56 = vpack.c.bf16 %v4906_v16, %v4900_v27  ;;  %1353 = vmatmul.mubr.bf16.gmra.mrb[28].mxu0 %v1286_v19  ;;  %4923 = vpow2.f32 %v1833_v17  ;;  %v6342_v27 = vunpack.c.h.bf16 %v837_v8  ;;  %v1052_v41 = vmax.f32 %v988_v43, %v1020_v26  ;;  %v7929_v16 = vld [vmem:[#allocation70_spill] sm:$0xff]  ;;  %v7931_v17 = vld [vmem:[#allocation20_spill] sm:$0xff] }
 0x272   : > { %v1950_v33 = vpack.c.bf16 %v4908_v1, %v4902_v50  ;;  %v4910_v10 = vpop.eup %4909  ;;  %4925 = vpow2.f32 %v1835_v4  ;;  %v1053_v61 = vmax.f32 %v989_v39, %v1021_v25  ;;  %v1122_v62 = vmax.f32 %v6328_v9, %v6331_v59  ;;  %v6371_v43 = vld [vmem:[%s7590_s0] sm:$0xff]   ;;  %v7933_v25 = vld [vmem:[#allocation67_spill] sm:$0xff] }
 0x273   : > { %v1952_v21 = vpack.c.bf16 %v4904_v12, %v4910_v10  ;;  %v4912_v58 = vpop.eup %4911  ;;  %v1655_v50 = vmul.f32 0.2, %v1623_v22  ;;  %v1656_v38 = vmul.f32 0.2, %v1624_v24  ;;  %v6347_v12 = vadd.f32 %v1683_v60, %v6173_v30  ;;  %v7936_v60 = vld [vmem:[#allocation34_spill] sm:$0xff] }
 0x274   : > { %2009 = vmatprep.mubr.bf16.mxu1 %v1950_v33  ;;  %v4914_v14 = vpop.eup %4913  ;;  %v6350_v19 = vadd.f32 %v1684_v63, %v7929_v16  ;;  %v6358_v33 = vadd.f32 %v1053_v61, %v6342_v27  ;;  %v1157_v51 = vsub.f32 %v7933_v25, %v1121_v13 }
 0x275   : > { %2010 = vmatmul.mubr.bf16.gmra.mrb[12].mxu1 %v1949_v56  ;;  %v4916_v46 = vpop.eup %4915  ;;  %v1951_v2 = vpack.c.bf16 %v4914_v14, %v4912_v58  ;;  %v1687_v5 = vmax.f32 %v1623_v22, %v1655_v50  ;;  %v1688_v56 = vmax.f32 %v1624_v24, %v1656_v38  ;;  %v7934_v22 = vld [vmem:[#allocation33_spill] sm:$0xff] }
 0x276   : > { %2017 = vmatprep.mubr.bf16.mxu1 %v1952_v21  ;;  %3052 = vmax.xlane.f32.xlu0 %v3051_v53  ;;  %v1760_v37 = vmax.f32 %v6347_v12, %v6350_v19  ;;  %v1212_v38 = vmul.f32 1.442695, %v1157_v51 }
 0x277   : > { %v6366_v20 = vadd.f32 %v1688_v56, %v6342_v27 }
 0x278   : > { %v4918_v48 = vpop.eup %4917 }
 0x279   : > { %v4920_v47 = vpop.eup %4919  ;;  %v1750_v6 = vpop.xlane.xlu1 %1749  ;;  %v1288_v29 = vpack.c.bf16 %v4918_v48, %v4916_v46  ;;  %v5301_v48 = vld [vmem:[%s7590_s0 + $0x8] sm:$0xff]  }
 0x27a   : > { %v4922_v34 = vpop.eup %4921  ;;  %v1787_v31 = vsub.f32 %v6106_v49, %v1750_v6  ;;  %v1788_v55 = vsub.f32 %v7927_v7, %v1750_v6  ;;  %v6340_v49 = vunpack.c.l.bf16 %v837_v8  ;;  %v2192_v46 = vpop.permute.xlu0 %2191 }
 0x27b   : > { %v1289_v3 = vpack.c.bf16 %v4920_v47, %v4922_v34  ;;  %v4924_v10 = vpop.eup %4923  ;;  %v7930_v47 = vld [vmem:[#allocation18_spill] sm:$0xff] }
 0x27c   : > { %v1837_v36 = vmul.f32 1.442695, %v1787_v31  ;;  %v1839_v15 = vmul.f32 1.442695, %v1788_v55  ;;  %v6353_v1 = vadd.f32 %v1052_v41, %v6340_v49  ;;  %v4926_v18 = vpop.eup %4925  ;;  %v6363_v58 = vadd.f32 %v1687_v5, %v6340_v49  ;;  %v7932_v55 = vld [vmem:[#allocation66_spill] sm:$0xff]  ;;  %v7938_v41 = vld [vmem:[#allocation7_spill] sm:$0xff] }
 0x27d   : > { %1360 = vmatprep.mubr.bf16.mxu0 %v1289_v3  ;;  %2018 = vmatmul.mubr.bf16.gmra.mrb[16].mxu1 %v1951_v2  ;;  %v1156_v3 = vsub.f32 %v7932_v55, %v1121_v13  ;;  %v6391_v2 = vpop.permute.xlu1 %2904  ;;  %v7942_v13 = vld [vmem:[#allocation51_spill] sm:$0xff] }
 0x27e   : > { %1361 = vmatmul.mubr.bf16.gmra.mrb[32].mxu0 %v1288_v29  ;;  %4927 = vpow2.f32 %v1837_v36  ;;  %v1131_v53 = vmax.f32 %v6353_v1, %v6358_v33  ;;  %v1766_v23 = vmax.f32 %v6363_v58, %v6366_v20  ;;  %v2196_v39 = vpop.permute.xlu0 %2195 }
 0x27f   : > { %4929 = vpow2.f32 %v1839_v15  ;;  %v2262_v35 = vadd.f32 %v7930_v47, %v2196_v39  ;;  %v2263_v6 = vadd.f32 %v7931_v17, %v2196_v39  ;;  %v1210_v63 = vmul.f32 1.442695, %v1156_v3 }
 0x281   : > { %v2294_v26 = vmul.f32 0.2, %v2262_v35  ;;  %v2295_v4 = vmul.f32 0.2, %v2263_v6  ;;  %4931 = vpow2.f32 %v1210_v63 }
 0x282   : > { %v6382_v40 = vpop.permute.xlu0 %2203 }
 0x283   : > { %1123 = vmax.xlane.f32.xlu1 %v1122_v62  ;;  %v2326_v31 = vmax.f32 %v2262_v35, %v2294_v26  ;;  %v2327_v7 = vmax.f32 %v2263_v6, %v2295_v4  ;;  %v7939_v62 = vld [vmem:[#allocation6_spill] sm:$0xff]  ;;  %v2260_v35 = vadd.f32 %v7930_v47, %v2192_v46  ;;  %v2261_v6 = vadd.f32 %v7931_v17, %v2192_v46 }
 0x285   : > { %v6395_v24 = vadd.f32 %v2326_v31, %v7934_v22  ;;  %v6398_v8 = vadd.f32 %v2327_v7, %v7936_v60 }
 0x286   : > { %v6386_v34 = vpop.permute.xlu0 %2211 }
 0x287   : > { %1761 = vmax.xlane.f32.xlu1 %v1760_v37  ;;  %7935 = vst [vmem:[#allocation31_spill] sm:$0xff] %v6395_v24  ;;  %7937 = vst [vmem:[#allocation32_spill] sm:$0xff] %v6398_v8  ;;  %v2392_v37 = vmax.f32 %v6395_v24, %v6398_v8  ;;  %v7976_v24 = vld [vmem:[#allocation41_spill] sm:$0xff] }
 0x288   : > { %v4928_v21 = vpop.eup %4927 }
 0x289   : > { %v4930_v32 = vpop.eup %4929  ;;  %v1953_v14 = vpack.c.bf16 %v4928_v21, %v4924_v10  ;;  %v7940_v21 = vld [vmem:[#allocation11_spill] sm:$0xff] }
 0x28a   : > { %v1954_v0 = vpack.c.bf16 %v4930_v32, %v4926_v18  ;;  %v6388_v29 = vpop.permute.xlu0 %2219  ;;  %v7941_v32 = vld [vmem:[#allocation10_spill] sm:$0xff] }
 0x28b   : > { %1132 = vmax.xlane.f32.xlu1 %v1131_v53  ;;  %v4932_v63 = vpop.eup %4931 }
 0x28c   : > { %3195 = vrot.lane.b32.xlu0 %v6371_v43, %s5329_s26  ;;  %2025 = vmatprep.mubr.bf16.mxu1 %v1954_v0 }
 0x28d   : > { %2026 = vmatmul.mubr.bf16.gmra.mrb[20].mxu1 %v1953_v14 }
 0x28e   : > { %v6400_v36 = vpop.permute.xlu0 %2227 }
 0x28f   : > { %1767 = vmax.xlane.f32.xlu1 %v1766_v23 }
 0x290   : > { %2532 = vrot.lane.b32.xlu0 %v5301_v48, %s5328_s25 }
 0x292   : > { %v6406_v18 = vpop.permute.xlu0 %2235 }
 0x294   : > { %3197 = vrot.lane.b32.xlu0 %v5301_v48, %s5329_s26  ;;  %v7943_v48 = vld [vmem:[#allocation16_spill] sm:$0xff] }
 0x296   : > { %v6414_v7 = vpop.permute.xlu0 %2247 }
 0x2ae   : > { %v1118_v15 = vpop.xlane.xlu1 %1117 }
 0x2af   : > { %v1154_v61 = vsub.f32 %v7938_v41, %v1118_v15  ;;  %v1155_v50 = vsub.f32 %v7939_v62, %v1118_v15  ;;  %v2292_v15 = vmul.f32 0.2, %v2260_v35 }
 0x2b1   : > { %v1206_v5 = vmul.f32 1.442695, %v1154_v61  ;;  %v1208_v56 = vmul.f32 1.442695, %v1155_v50  ;;  %v2293_v61 = vmul.f32 0.2, %v2261_v6 }
 0x2b2   : > { %v1753_v10 = vpop.xlane.xlu1 %1752 }
 0x2b3   : > { %4933 = vpow2.f32 %v1206_v5  ;;  %2393 = vmax.xlane.f32.xlu0 %v2392_v37  ;;  %v1789_v53 = vsub.f32 %v7940_v21, %v1753_v10  ;;  %v1790_v0 = vsub.f32 %v7941_v32, %v1753_v10  ;;  %v2325_v32 = vmax.f32 %v2261_v6, %v2293_v61 }
 0x2b4   : > { %4935 = vpow2.f32 %v1208_v56 }
 0x2b5   : > { %4937 = vpow2.f32 %v1212_v38  ;;  %v1841_v26 = vmul.f32 1.442695, %v1789_v53  ;;  %v1843_v55 = vmul.f32 1.442695, %v1790_v0  ;;  %v2324_v53 = vmax.f32 %v2260_v35, %v2292_v15 }
 0x2b6   : > { %v1756_v14 = vpop.xlane.xlu1 %1755 }
 0x2b7   : > { %v1791_v23 = vsub.f32 %v7942_v13, %v1756_v14  ;;  %v1792_v39 = vsub.f32 %v7943_v48, %v1756_v14 }
 0x2b9   : > { %v1845_v4 = vmul.f32 1.442695, %v1791_v23  ;;  %v1847_v31 = vmul.f32 1.442695, %v1792_v39  ;;  %v7945_v39 = vld [vmem:[#allocation29_spill] sm:$0xff] }
 0x2ba   : > { %v2188_v3 = vpop.permute.xlu1 %2187 }
 0x2bb   : > { %4939 = vpow2.f32 %v1845_v4  ;;  %v2258_v25 = vadd.f32 %v7930_v47, %v2188_v3  ;;  %v2259_v51 = vadd.f32 %v7931_v17, %v2188_v3  ;;  %v7947_v4 = vld [vmem:[#allocation30_spill] sm:$0xff] }
 0x2bc   : > { %4941 = vpow2.f32 %v1847_v31  ;;  %v6434_v35 = vadd.f32 %v2325_v32, %v7947_v4 }
 0x2bd   : > { %v4934_v41 = vpop.eup %4933  ;;  %4943 = vpow2.f32 %v1841_v26  ;;  %v2290_v62 = vmul.f32 0.2, %v2258_v25  ;;  %v2291_v46 = vmul.f32 0.2, %v2259_v51  ;;  %v6431_v26 = vadd.f32 %v2324_v53, %v7945_v39 }
 0x2be   : > { %v4936_v50 = vpop.eup %4935  ;;  %4945 = vpow2.f32 %v1843_v55  ;;  %v6418_v38 = vpop.xlane.xlu0 %1126  ;;  %v1290_v10 = vpack.c.bf16 %v4932_v63, %v4934_v41 }
 0x2bf   : > { %v4938_v5 = vpop.eup %4937  ;;  %v2322_v56 = vmax.f32 %v2258_v25, %v2290_v62  ;;  %v2323_v37 = vmax.f32 %v2259_v51, %v2291_v46  ;;  %7946 = vst [vmem:[#allocation38_spill] sm:$0xff] %v6431_v26  ;;  %v5302_v25 = vld [vmem:[%s7590_s0 + $0x10] sm:$0xff]   ;;  %v2389_v51 = vmax.f32 %v6431_v26, %v6434_v35  ;;  %v7948_v46 = vld [vmem:[#allocation23_spill] sm:$0xff] }
 0x2c0   : > { %v1291_v21 = vpack.c.bf16 %v4938_v5, %v4936_v50  ;;  %v2927_v50 = vadd.f32 %v7923_v54, %v7948_v46  ;;  %v2928_v5 = vadd.f32 %v7924_v44, %v7948_v46 }
 0x2c1   : > { %v6421_v0 = vadd.f32 %v2322_v56, %v7925_v42  ;;  %v6424_v14 = vadd.f32 %v2323_v37, %v7926_v11 }
 0x2c2   : > { %1368 = vmatprep.mubr.bf16.mxu0 %v1291_v21  ;;  %v6426_v13 = vpop.xlane.xlu0 %1758  ;;  %v2959_v56 = vmul.f32 0.2, %v2927_v50  ;;  %v2960_v37 = vmul.f32 0.2, %v2928_v5 }
 0x2c3   : > { %7944 = vst [vmem:[#allocation3_spill] sm:$0xff] %v6421_v0  ;;  %1369 = vmatmul.mubr.bf16.gmra.mrb[36].mxu0 %v1290_v10  ;;  %v2386_v48 = vmax.f32 %v6421_v0, %v6424_v14  ;;  %v6452_v10 = vpop.permute.xlu1 %2199 }
 0x2c4   : > { %v2991_v21 = vmax.f32 %v2927_v50, %v2959_v56  ;;  %v2992_v53 = vmax.f32 %v2928_v5, %v2960_v37  ;;  %v5303_v56 = vld [vmem:[%s7590_s0 + $0x18] sm:$0xff]  }
 0x2c5   : > { %v4940_v23 = vpop.eup %4939  ;;  %2387 = vmax.xlane.f32.xlu1 %v2386_v48 }
 0x2c6   : > { %v4942_v6 = vpop.eup %4941  ;;  %v6436_v42 = vpop.xlane.xlu0 %1129  ;;  %v6462_v48 = vadd.f32 %v2992_v53, %v7936_v60 }
 0x2c7   : > { %v4944_v31 = vpop.eup %4943  ;;  %v6456_v32 = vpop.permute.xlu1 %2207 }
 0x2c8   : > { %v4946_v11 = vpop.eup %4945  ;;  %v1955_v55 = vpack.c.bf16 %v4940_v23, %v4944_v31  ;;  %v6459_v23 = vadd.f32 %v2991_v21, %v7934_v22  ;;  %7950 = vst [vmem:[#allocation44_spill] sm:$0xff] %v6462_v48  ;;  %v7953_v21 = vld [vmem:[#allocation72_spill] sm:$0xff] }
 0x2c9   : > { %v1956_v3 = vpack.c.bf16 %v4942_v6, %v4946_v11  ;;  %2534 = vrot.lane.b32.xlu0 %v5302_v25, %s5328_s25  ;;  %2390 = vmax.xlane.f32.xlu1 %v2389_v51  ;;  %v7951_v11 = vld [vmem:[#allocation35_spill] sm:$0xff]  ;;  %v1160_v53 = vsub.f32 %v7953_v21, %v6418_v38  ;;  %v2266_v21 = vadd.f32 %v7930_v47, %v6382_v40 }
 0x2ca   : > { %v6444_v63 = vpop.xlane.xlu0 %1764  ;;  %7949 = vst [vmem:[#allocation27_spill] sm:$0xff] %v6459_v23  ;;  %v3057_v6 = vmax.f32 %v6459_v23, %v6462_v48 }
 0x2cb   : > { %2033 = vmatprep.mubr.bf16.mxu1 %v1956_v3  ;;  %v6466_v31 = vpop.permute.xlu1 %2215 }
 0x2cc   : > { %2034 = vmatmul.mubr.bf16.gmra.mrb[24].mxu1 %v1955_v55  ;;  %v2925_v55 = vadd.f32 %v7923_v54, %v7951_v11 }
 0x2ce   : > { %v2547_v15 = vpop.permute.xlu0 %2546  ;;  %v2957_v51 = vmul.f32 0.2, %v2925_v55 }
 0x2cf   : > { %v2587_v41 = vsel %vm1230_vm0, %v2547_v15, 1065369472  ;;  %v6472_v3 = vpop.permute.xlu1 %2223 }
 0x2d0   : > { %4534 = vmatprep.subr.bf16.mxu0 %v2587_v41  ;;  %v2989_v60 = vmax.f32 %v2925_v55, %v2957_v51  ;;  %v7955_v55 = vld [vmem:[#allocation76_spill] sm:$0xff] }
 0x2d2   : > { %v3212_v61 = vpop.permute.xlu0 %3211 }
 0x2d3   : > { %v3252_v62 = vsel %vm1230_vm0, %v3212_v61, 1065369472  ;;  %v6474_v15 = vpop.permute.xlu1 %2231 }
 0x2d4   : > { %4598 = vmatprep.subr.bf16.mxu1 %v3252_v62  ;;  %v6479_v62 = vadd.f32 %v2989_v60, %v7945_v39 }
 0x2d6   : > { %7952 = vst [vmem:[#allocation45_spill] sm:$0xff] %v6479_v62 }
 0x2d7   : > { %v6476_v61 = vpop.permute.xlu1 %2239 }
 0x2da   : > { %2530 = vrot.lane.b32.xlu1 %v6371_v43, %s5328_s25  ;;  %v2926_v43 = vadd.f32 %v7924_v44, %v7951_v11 }
 0x2db   : > { %v6487_v5 = vpop.permute.xlu1 %2243 }
 0x2dc   : > { %v2958_v22 = vmul.f32 0.2, %v2926_v43 }
 0x2de   : > { %v2990_v41 = vmax.f32 %v2926_v43, %v2958_v22  ;;  %v1793_v43 = vsub.f32 %v7955_v55, %v6426_v13  ;;  %v1218_v22 = vmul.f32 1.442695, %v1160_v53  ;;  %v2267_v53 = vadd.f32 %v7931_v17, %v6382_v40 }
 0x2df   : > { %v6495_v39 = vpop.permute.xlu1 %2908 }
 0x2e0   : > { %v6482_v46 = vadd.f32 %v2990_v41, %v7947_v4  ;;  %v7956_v41 = vld [vmem:[#allocation77_spill] sm:$0xff]  ;;  %4947 = vpow2.f32 %v1218_v22  ;;  %v2299_v22 = vmul.f32 0.2, %v2267_v53 }
 0x2e2   : > { %v3054_v50 = vmax.f32 %v6479_v62, %v6482_v46  ;;  %v2931_v62 = vadd.f32 %v7923_v54, %v7976_v24 }
 0x2e3   : > { %v6505_v51 = vpop.permute.xlu1 %2912 }
 0x2e8   : > { %3058 = vmax.xlane.f32.xlu0 %v3057_v6  ;;  %v7954_v6 = vld [vmem:[#allocation73_spill] sm:$0xff] }
 0x2e9   : > { %v1161_v11 = vsub.f32 %v7954_v6, %v6418_v38 }
 0x2eb   : > { %v1220_v60 = vmul.f32 1.442695, %v1161_v11 }
 0x2ed   : > { %4949 = vpow2.f32 %v1220_v60 }
 0x2fe   : > { %3199 = vrot.lane.b32.xlu0 %v5302_v25, %s5329_s26  ;;  %3055 = vmax.xlane.f32.xlu1 %v3054_v50  ;;  %v1794_v50 = vsub.f32 %v7956_v41, %v6426_v13  ;;  %v7957_v13 = vld [vmem:[#allocation78_spill] sm:$0xff]  ;;  %v7958_v41 = vld [vmem:[#allocation79_spill] sm:$0xff] }
 0x2ff   : > { %v1162_v6 = vsub.f32 %v7957_v13, %v6436_v42 }
 0x301   : > { %v1222_v60 = vmul.f32 1.442695, %v1162_v6  ;;  %v2331_v6 = vmax.f32 %v2267_v53, %v2299_v22 }
 0x302   : > { %2536 = vrot.lane.b32.xlu0 %v5303_v56, %s5328_s25 }
 0x303   : > { %v6493_v37 = vpop.xlane.xlu0 %3052 }
 0x306   : > { %3201 = vrot.lane.b32.xlu0 %v5303_v56, %s5329_s26  ;;  %v1849_v56 = vmul.f32 1.442695, %v1793_v43  ;;  %v1851_v43 = vmul.f32 1.442695, %v1794_v50 }
 0x307   : > { %v3196_v4 = vpop.permute.xlu0 %3195 }
 0x308   : > { %v3228_v25 = vsel %vm1230_vm0, %v3196_v4, 1065369472  ;;  %v5304_v4 = vld [vmem:[%s7590_s0 + $0x48] sm:$0xff]   ;;  %4951 = vpow2.f32 %v1849_v56 }
 0x309   : > { %4599 = vmatpush3.bf16.msra.mxu1 %v3228_v25 }
 0x30f   : > { %2548 = vrot.lane.b32.xlu1 %v5304_v4, %s5328_s25 }
 0x310   : > { %v1124_v23 = vpop.xlane.xlu1 %1123 }
 0x311   : > { %v1158_v38 = vsub.f32 %v6328_v9, %v1124_v23  ;;  %v1159_v25 = vsub.f32 %v6331_v59, %v1124_v23  ;;  %v1163_v9 = vsub.f32 %v7958_v41, %v6436_v42  ;;  %v2298_v23 = vmul.f32 0.2, %v2266_v21  ;;  %v7960_v42 = vld [vmem:[#allocation81_spill] sm:$0xff] }
 0x313   : > { %v1214_v11 = vmul.f32 1.442695, %v1158_v38  ;;  %v1216_v55 = vmul.f32 1.442695, %v1159_v25  ;;  %3213 = vrot.lane.b32.xlu1 %v5304_v4, %s5329_s26  ;;  %v7959_v38 = vld [vmem:[#allocation80_spill] sm:$0xff]  ;;  %v2330_v4 = vmax.f32 %v2266_v21, %v2298_v23 }
 0x314   : > { %v1762_v48 = vpop.xlane.xlu1 %1761  ;;  %v1797_v25 = vsub.f32 %v7959_v38, %v6444_v63  ;;  %v1224_v13 = vmul.f32 1.442695, %v1163_v9  ;;  %v4948_v9 = vpop.eup %4947 }
 0x315   : > { %4953 = vpow2.f32 %v1214_v11  ;;  %v1795_v59 = vsub.f32 %v6347_v12, %v1762_v48  ;;  %v1796_v40 = vsub.f32 %v6350_v19, %v1762_v48  ;;  %v1798_v11 = vsub.f32 %v7960_v42, %v6444_v63  ;;  %v6533_v12 = vld [vmem:[%s7590_s0 + $0x50] sm:$0xff]   ;;  %v4950_v38 = vpop.eup %4949 }
 0x316   : > { %4955 = vpow2.f32 %v1216_v55  ;;  %v1857_v55 = vmul.f32 1.442695, %v1797_v25 }
 0x317   : > { %v1853_v56 = vmul.f32 1.442695, %v1795_v59  ;;  %v1855_v50 = vmul.f32 1.442695, %v1796_v40  ;;  %4957 = vpow2.f32 %v1851_v43  ;;  %2550 = vrot.lane.b32.xlu1 %v6533_v12, %s5328_s25  ;;  %v1859_v59 = vmul.f32 1.442695, %v1798_v11 }
 0x318   : > { %v1133_v41 = vpop.xlane.xlu1 %1132 }
 0x319   : > { %4959 = vpow2.f32 %v1853_v56  ;;  %v1164_v19 = vsub.f32 %v6353_v1, %v1133_v41  ;;  %v1165_v48 = vsub.f32 %v6358_v33, %v1133_v41  ;;  %v4952_v1 = vpop.eup %4951  ;;  %v7961_v33 = vld [vmem:[#allocation56_spill] sm:$0xff] }
 0x31a   : > { %4961 = vpow2.f32 %v1855_v50  ;;  %v6542_v21 = vadd.f32 %v2330_v4, %v7961_v33 }
 0x31b   : > { %4963 = vpow2.f32 %v1222_v60  ;;  %v1226_v63 = vmul.f32 1.442695, %v1164_v19  ;;  %v1228_v43 = vmul.f32 1.442695, %v1165_v48  ;;  %v7963_v60 = vld [vmem:[#allocation57_spill] sm:$0xff] }
 0x31c   : > { %4965 = vpow2.f32 %v1224_v13  ;;  %v1768_v40 = vpop.xlane.xlu1 %1767  ;;  %7962 = vst [vmem:[#allocation4_spill] sm:$0xff] %v6542_v21  ;;  %v6545_v25 = vadd.f32 %v2331_v6, %v7963_v60 }
 0x31d   : > { %4967 = vpow2.f32 %v1226_v63  ;;  %v1799_v56 = vsub.f32 %v6363_v58, %v1768_v40  ;;  %v1800_v42 = vsub.f32 %v6366_v20, %v1768_v40 }
 0x31e   : > { %4969 = vpow2.f32 %v1228_v43  ;;  %7964 = vst [vmem:[#allocation26_spill] sm:$0xff] %v6545_v25  ;;  %v2398_v41 = vmax.f32 %v6542_v21, %v6545_v25 }
 0x31f   : > { %v4954_v53 = vpop.eup %4953  ;;  %4971 = vpow2.f32 %v1857_v55  ;;  %v1861_v23 = vmul.f32 1.442695, %v1799_v56  ;;  %v1863_v22 = vmul.f32 1.442695, %v1800_v42 }
 0x320   : > { %v4956_v50 = vpop.eup %4955  ;;  %4973 = vpow2.f32 %v1859_v59  ;;  %v1292_v13 = vpack.c.bf16 %v4948_v9, %v4954_v53 }
 0x321   : > { %4975 = vpow2.f32 %v1861_v23  ;;  %v1293_v11 = vpack.c.bf16 %v4950_v38, %v4956_v50  ;;  %v4958_v58 = vpop.eup %4957 }
 0x322   : > { %4977 = vpow2.f32 %v1863_v22 }
 0x323   : > { %v4960_v20 = vpop.eup %4959  ;;  %1376 = vmatprep.mubr.bf16.mxu0 %v1293_v11  ;;  %v2265_v11 = vadd.f32 %v7931_v17, %v6452_v10 }
 0x324   : > { %v4962_v19 = vpop.eup %4961  ;;  %1377 = vmatmul.mubr.bf16.gmra.mrb[40].mxu0 %v1292_v13  ;;  %v1957_v48 = vpack.c.bf16 %v4960_v20, %v4952_v1  ;;  %v4422_v55 = vpop.f32.mrb[16].mxu0  ;;  %v2264_v13 = vadd.f32 %v7930_v47, %v6452_v10 }
 0x325   : > { %v4964_v4 = vpop.eup %4963  ;;  %2399 = vmax.xlane.f32.xlu0 %v2398_v41  ;;  %v1958_v6 = vpack.c.bf16 %v4962_v19, %v4958_v58  ;;  %v4423_v43 = vpop.f32.mrb[17].mxu0 }
 0x326   : > { %v4966_v63 = vpop.eup %4965  ;;  %v6549_v9 = vadd.f32 %v4423_v43, %v4422_v55  ;;  %v4425_v40 = vpop.f32.mrb[18].mxu0  ;;  %v2297_v55 = vmul.f32 0.2, %v2265_v11 }
 0x327   : > { %v4968_v59 = vpop.eup %4967  ;;  %2041 = vmatprep.mubr.bf16.mxu1 %v1958_v6  ;;  %v4426_v56 = vpop.f32.mrb[19].mxu0 }
 0x328   : > { %7965 = vst [vmem:[#allocation36_spill] sm:$0xff] %v6549_v9  ;;  %v4970_v38 = vpop.eup %4969  ;;  %2042 = vmatmul.mubr.bf16.gmra.mrb[28].mxu1 %v1957_v48  ;;  %v1294_v42 = vpack.c.bf16 %v4968_v59, %v4964_v4  ;;  %v6551_v23 = vadd.f32 %v4426_v56, %v4425_v40  ;;  %v2296_v4 = vmul.f32 0.2, %v2264_v13 }
 0x329   : > { %v4972_v53 = vpop.eup %4971  ;;  %v1295_v22 = vpack.c.bf16 %v4970_v38, %v4966_v63 }
 0x32a   : > { %v4974_v1 = vpop.eup %4973 }
 0x32b   : > { %v4976_v50 = vpop.eup %4975  ;;  %1384 = vmatprep.mubr.bf16.mxu0 %v1295_v22 }
 0x32c   : > { %v4978_v58 = vpop.eup %4977  ;;  %1385 = vmatmul.mubr.bf16.gmra.mrb[44].mxu0 %v1294_v42  ;;  %v1959_v20 = vpack.c.bf16 %v4976_v50, %v4972_v53  ;;  %v4428_v41 = vpop.f32.mrb[20].mxu0  ;;  %v2328_v42 = vmax.f32 %v2264_v13, %v2296_v4  ;;  %v2329_v53 = vmax.f32 %v2265_v11, %v2297_v55  ;;  %v7968_v50 = vld [vmem:[#allocation24_spill] sm:$0xff]  ;;  %v6576_v13 = vld [vmem:[%s7590_s0 + $0x20] sm:$0xff]  }
 0x32d   : > { %v1960_v19 = vpack.c.bf16 %v4978_v58, %v4974_v1  ;;  %v4429_v48 = vpop.f32.mrb[21].mxu0 }
 0x32e   : > { %v6557_v6 = vadd.f32 %v4429_v48, %v4428_v41  ;;  %v4431_v63 = vpop.f32.mrb[22].mxu0  ;;  %v6566_v58 = vadd.f32 %v2328_v42, %v7968_v50  ;;  %v7970_v41 = vld [vmem:[#allocation25_spill] sm:$0xff] }
 0x32f   : > { %2049 = vmatprep.mubr.bf16.mxu1 %v1960_v19  ;;  %v4432_v43 = vpop.f32.mrb[23].mxu0  ;;  %v6569_v48 = vadd.f32 %v2329_v53, %v7970_v41 }
 0x330   : > { %7966 = vst [vmem:[#allocation9_spill] sm:$0xff] %v6557_v6  ;;  %v4486_v59 = vpop.f32.mrb[4].mxu1  ;;  %2050 = vmatmul.mubr.bf16.gmra.mrb[32].mxu1 %v1959_v20  ;;  %v6559_v40 = vadd.f32 %v4432_v43, %v4431_v63  ;;  %7969 = vst [vmem:[#allocation8_spill] sm:$0xff] %v6566_v58 }
 0x331   : > { %v4487_v38 = vpop.f32.mrb[5].mxu1  ;;  %7971 = vst [vmem:[#allocation40_spill] sm:$0xff] %v6569_v48  ;;  %v2395_v11 = vmax.f32 %v6566_v58, %v6569_v48 }
 0x332   : > { %7967 = vst [vmem:[#allocation50_spill] sm:$0xff] %v6559_v40  ;;  %v6561_v10 = vadd.f32 %v4487_v38, %v4486_v59  ;;  %v4489_v56 = vpop.f32.mrb[6].mxu1 }
 0x333   : > { %v4490_v22 = vpop.f32.mrb[7].mxu1 }
 0x334   : > { %v6563_v1 = vadd.f32 %v4490_v22, %v4489_v56 }
 0x338   : > { %v4492_v19 = vpop.f32.mrb[8].mxu1 }
 0x339   : > { %v4493_v21 = vpop.f32.mrb[9].mxu1 }
 0x33a   : > { %v6571_v20 = vadd.f32 %v4493_v21, %v4492_v19  ;;  %v4495_v63 = vpop.f32.mrb[10].mxu1 }
 0x33b   : > { %v4496_v43 = vpop.f32.mrb[11].mxu1  ;;  %2538 = vrot.lane.b32.xlu0 %v6576_v13, %s5328_s25  ;;  %2396 = vmax.xlane.f32.xlu1 %v2395_v11 }
 0x33c   : > { %v6582_v4 = vadd.f32 %v4496_v43, %v4495_v63  ;;  %v4434_v55 = vpop.f32.mrb[24].mxu0  ;;  %v2932_v63 = vadd.f32 %v7924_v44, %v7976_v24 }
 0x33d   : > { %v4435_v59 = vpop.f32.mrb[25].mxu0 }
 0x33e   : > { %7972 = vst [vmem:[#allocation13_spill] sm:$0xff] %v6582_v4  ;;  %v6584_v21 = vadd.f32 %v4435_v59, %v4434_v55  ;;  %v4437_v38 = vpop.f32.mrb[26].mxu0 }
 0x33f   : > { %v4438_v56 = vpop.f32.mrb[27].mxu0 }
 0x340   : > { %7973 = vst [vmem:[#allocation12_spill] sm:$0xff] %v6584_v21  ;;  %v6586_v42 = vadd.f32 %v4438_v56, %v4437_v38  ;;  %v2964_v21 = vmul.f32 0.2, %v2932_v63 }
 0x342   : > { %7974 = vst [vmem:[#allocation39_spill] sm:$0xff] %v6586_v42  ;;  %v2963_v42 = vmul.f32 0.2, %v2931_v62 }
 0x344   : > { %v4440_v53 = vpop.f32.mrb[28].mxu0 }
 0x345   : > { %v4441_v22 = vpop.f32.mrb[29].mxu0 }
 0x346   : > { %v6588_v19 = vadd.f32 %v4441_v22, %v4440_v53  ;;  %v4443_v25 = vpop.f32.mrb[30].mxu0  ;;  %v2995_v22 = vmax.f32 %v2931_v62, %v2963_v42 }
 0x347   : > { %v4444_v43 = vpop.f32.mrb[31].mxu0 }
 0x348   : > { %7975 = vst [vmem:[#allocation14_spill] sm:$0xff] %v6588_v19  ;;  %v4498_v11 = vpop.f32.mrb[12].mxu1  ;;  %v6594_v58 = vadd.f32 %v4444_v43, %v4443_v25  ;;  %v2996_v19 = vmax.f32 %v2932_v63, %v2964_v21 }
 0x349   : > { %v4499_v55 = vpop.f32.mrb[13].mxu1 }
 0x34a   : > { %7977 = vst [vmem:[#allocation22_spill] sm:$0xff] %v6594_v58  ;;  %v6596_v59 = vadd.f32 %v4499_v55, %v4498_v11  ;;  %v4501_v38 = vpop.f32.mrb[14].mxu1  ;;  %v6614_v62 = vadd.f32 %v2996_v19, %v7963_v60  ;;  %v7987_v19 = vld [vmem:[#allocation28_spill] sm:$0xff] }
 0x34b   : > { %v4502_v56 = vpop.f32.mrb[15].mxu1 }
 0x34c   : > { %7978 = vst [vmem:[#allocation19_spill] sm:$0xff] %v6596_v59  ;;  %v6598_v53 = vadd.f32 %v4502_v56, %v4501_v38  ;;  %3215 = vrot.lane.b32.xlu1 %v6533_v12, %s5329_s26  ;;  %v6611_v12 = vadd.f32 %v2995_v22, %v7961_v33  ;;  %7985 = vst [vmem:[#allocation18_spill] sm:$0xff] %v6614_v62 }
 0x34e   : > { %7979 = vst [vmem:[#allocation21_spill] sm:$0xff] %v6598_v53  ;;  %7984 = vst [vmem:[#allocation70_spill] sm:$0xff] %v6611_v12  ;;  %v8004_v53 = vld [vmem:[#allocation49_spill] sm:$0xff] }
 0x350   : > { %v4504_v8 = vpop.f32.mrb[16].mxu1 }
 0x351   : > { %v4446_v24 = vpop.f32.mrb[32].mxu0  ;;  %v4505_v0 = vpop.f32.mrb[17].mxu1 }
 0x352   : > { %v4447_v48 = vpop.f32.mrb[33].mxu0  ;;  %v6602_v25 = vadd.f32 %v4505_v0, %v4504_v8  ;;  %v4507_v43 = vpop.f32.mrb[18].mxu1 }
 0x353   : > { %v6604_v11 = vadd.f32 %v4447_v48, %v4446_v24  ;;  %v4449_v55 = vpop.f32.mrb[34].mxu0  ;;  %v4508_v58 = vpop.f32.mrb[19].mxu1  ;;  %v3063_v48 = vmax.f32 %v6611_v12, %v6614_v62  ;;  %v8020_v62 = vld [vmem:[#allocation55_spill] sm:$0xff] }
 0x354   : > { %7980 = vst [vmem:[#allocation42_spill] sm:$0xff] %v6602_v25  ;;  %v4450_v59 = vpop.f32.mrb[35].mxu0  ;;  %v6606_v26 = vadd.f32 %v4508_v58, %v4507_v43  ;;  %v6608_v38 = vpop.xlane.xlu1 %2387 }
 0x355   : > { %7981 = vst [vmem:[#allocation43_spill] sm:$0xff] %v6604_v11  ;;  %7983 = vst [vmem:[#allocation71_spill] sm:$0xff] %v6608_v38  ;;  %v6616_v21 = vadd.f32 %v4450_v59, %v4449_v55  ;;  %v2435_v8 = vsub.f32 %v6424_v14, %v6608_v38  ;;  %v2929_v14 = vadd.f32 %v7923_v54, %v7987_v19 }
 0x356   : > { %7982 = vst [vmem:[#allocation69_spill] sm:$0xff] %v6606_v26  ;;  %v2930_v59 = vadd.f32 %v7924_v44, %v7987_v19  ;;  %v8002_v26 = vld [vmem:[#allocation48_spill] sm:$0xff] }
 0x357   : > { %7986 = vst [vmem:[#allocation20_spill] sm:$0xff] %v6616_v21  ;;  %v2468_v58 = vmul.f32 1.442695, %v2435_v8 }
 0x358   : > { %v6620_v0 = vpop.xlane.xlu1 %2390  ;;  %v2962_v55 = vmul.f32 0.2, %v2930_v59 }
 0x359   : > { %v2437_v42 = vsub.f32 %v6434_v35, %v6620_v0  ;;  %4979 = vpow2.f32 %v2468_v58  ;;  %v2961_v35 = vmul.f32 0.2, %v2929_v14 }
 0x35a   : > { %3064 = vmax.xlane.f32.xlu0 %v3063_v48 }
 0x35b   : > { %v2472_v33 = vmul.f32 1.442695, %v2437_v42 }
 0x35c   : > { %v2531_v63 = vpop.permute.xlu1 %2530 }
 0x35d   : > { %v2563_v60 = vsel %vm1230_vm0, %v2531_v63, 1065369472  ;;  %4981 = vpow2.f32 %v2472_v33  ;;  %v2993_v33 = vmax.f32 %v2929_v14, %v2961_v35  ;;  %v2994_v63 = vmax.f32 %v2930_v59, %v2962_v55  ;;  %v5307_v14 = vld [vmem:[%s7590_s0 + $0x28] sm:$0xff]   ;;  %v2533_v59 = vpop.permute.xlu0 %2532  ;;  %v6664_v55 = vld [vmem:[%s7590_s0 + $0x60] sm:$0xff]  }
 0x35e   : > { %4535 = vmatpush3.bf16.msra.mxu0 %v2563_v60  ;;  %v3100_v35 = vsub.f32 %v6311_v57, %v6493_v37  ;;  %v7993_v57 = vld [vmem:[#allocation46_spill] sm:$0xff] }
 0x35f   : > { %v6636_v21 = vadd.f32 %v2993_v33, %v7968_v50  ;;  %v6639_v19 = vadd.f32 %v2994_v63, %v7970_v41  ;;  %v5308_v50 = vld [vmem:[%s7590_s0 + $0x58] sm:$0xff]   ;;  %v2270_v41 = vadd.f32 %v7930_v47, %v6386_v34 }
 0x360   : > { %v4510_v56 = vpop.f32.mrb[20].mxu1 }
 0x361   : > { %v4511_v22 = vpop.f32.mrb[21].mxu1  ;;  %7990 = vst [vmem:[#allocation33_spill] sm:$0xff] %v6636_v21  ;;  %7991 = vst [vmem:[#allocation34_spill] sm:$0xff] %v6639_v19  ;;  %v3198_v33 = vpop.permute.xlu0 %3197 }
 0x362   : > { %v6631_v24 = vadd.f32 %v4511_v22, %v4510_v56  ;;  %v4513_v43 = vpop.f32.mrb[22].mxu1  ;;  %v3060_v56 = vmax.f32 %v6636_v21, %v6639_v19  ;;  %v2302_v22 = vmul.f32 0.2, %v2270_v41 }
 0x363   : > { %v4514_v8 = vpop.f32.mrb[23].mxu1  ;;  %v4980_v58 = vpop.eup %4979 }
 0x364   : > { %7988 = vst [vmem:[#allocation66_spill] sm:$0xff] %v6631_v24  ;;  %v6633_v48 = vadd.f32 %v4514_v8, %v4513_v43  ;;  %v2334_v8 = vmax.f32 %v2270_v41, %v2302_v22  ;;  %v2566_v41 = vsel %vm1230_vm0, %v2533_v59, 1065369472 }
 0x366   : > { %7989 = vst [vmem:[#allocation67_spill] sm:$0xff] %v6633_v48 }
 0x367   : > { %v4982_v42 = vpop.eup %4981 }
 0x368   : > { %v2611_v60 = vpack.c.bf16 %v4982_v42, %v4980_v58 }
 0x36a   : > { %2658 = vmatprep.mubr.bf16.mxu0 %v2611_v60 }
 0x370   : > { %3203 = vrot.lane.b32.xlu0 %v6576_v13, %s5329_s26  ;;  %3061 = vmax.xlane.f32.xlu1 %v3060_v56  ;;  %v2271_v13 = vadd.f32 %v7931_v17, %v6386_v34  ;;  %v3133_v34 = vmul.f32 1.442695, %v3100_v35 }
 0x372   : > { %v2303_v43 = vmul.f32 0.2, %v2271_v13  ;;  %4983 = vpow2.f32 %v3133_v34 }
 0x374   : > { %2540 = vrot.lane.b32.xlu0 %v5307_v14, %s5328_s25  ;;  %v2335_v58 = vmax.f32 %v2271_v13, %v2303_v43  ;;  %v6680_v13 = vpop.xlane.xlu0 %2393 }
 0x375   : > { %7997 = vst [vmem:[#allocation10_spill] sm:$0xff] %v6680_v13 }
 0x378   : > { %3205 = vrot.lane.b32.xlu0 %v5307_v14, %s5329_s26  ;;  %v6673_v14 = vadd.f32 %v2334_v8, %v7993_v57  ;;  %v3231_v8 = vsel %vm1230_vm0, %v3198_v33, 1065369472  ;;  %v2535_v34 = vpop.permute.xlu0 %2534 }
 0x37a   : > { %7994 = vst [vmem:[#allocation6_spill] sm:$0xff] %v6673_v14 }
 0x381   : > { %2552 = vrot.lane.b32.xlu1 %v5308_v50, %s5328_s25 }
 0x385   : > { %3217 = vrot.lane.b32.xlu1 %v5308_v50, %s5329_s26  ;;  %v7995_v50 = vld [vmem:[#allocation47_spill] sm:$0xff] }
 0x386   : > { %v6676_v48 = vadd.f32 %v2335_v58, %v7995_v50 }
 0x388   : > { %7996 = vst [vmem:[#allocation11_spill] sm:$0xff] %v6676_v48 }
 0x389   : > { %2554 = vrot.lane.b32.xlu1 %v6664_v55, %s5328_s25 }
 0x38b   : > { %v6668_v42 = vpop.xlane.xlu1 %3055 }
 0x38c   : > { %7992 = vst [vmem:[#allocation7_spill] sm:$0xff] %v6668_v42  ;;  %v3102_v63 = vsub.f32 %v6482_v46, %v6668_v42  ;;  %v2404_v46 = vmax.f32 %v6673_v14, %v6676_v48 }
 0x38e   : > { %v3137_v60 = vmul.f32 1.442695, %v3102_v63 }
 0x38f   : > { %v2549_v56 = vpop.permute.xlu1 %2548 }
 0x390   : > { %v2590_v24 = vsel %vm1230_vm0, %v2549_v56, 1065369472  ;;  %4985 = vpow2.f32 %v3137_v60 }
 0x391   : > { %4536 = vmatprep.subr.bf16.mxu0 %v2590_v24  ;;  %v2569_v24 = vsel %vm1230_vm0, %v2535_v34, 1065369472  ;;  %4987 = vrcp.f32 %v6549_v9 }
 0x392   : > { %4537 = vmatpush3.bf16.msra.mxu0 %v2566_v41  ;;  %4989 = vrcp.f32 %v6551_v23 }
 0x393   : > { %v3214_v22 = vpop.permute.xlu1 %3213  ;;  %4991 = vrcp.f32 %v6561_v10 }
 0x394   : > { %v3255_v35 = vsel %vm1230_vm0, %v3214_v22, 1065369472  ;;  %v4984_v22 = vpop.eup %4983  ;;  %4993 = vrcp.f32 %v6563_v1 }
 0x395   : > { %4600 = vmatprep.subr.bf16.mxu1 %v3255_v35  ;;  %4995 = vrcp.f32 %v6557_v6 }
 0x396   : > { %v4452_v43 = vpop.f32.mrb[36].mxu0  ;;  %4601 = vmatpush3.bf16.msra.mxu1 %v3231_v8  ;;  %4997 = vrcp.f32 %v6559_v40 }
 0x397   : > { %v4453_v58 = vpop.f32.mrb[37].mxu0  ;;  %2405 = vmax.xlane.f32.xlu0 %v2404_v46  ;;  %v2551_v56 = vpop.permute.xlu1 %2550  ;;  %v2268_v46 = vadd.f32 %v7930_v47, %v6456_v32  ;;  %4999 = vrcp.f32 %v6571_v20 }
 0x398   : > { %v6686_v63 = vadd.f32 %v4453_v58, %v4452_v43  ;;  %v4455_v59 = vpop.f32.mrb[38].mxu0  ;;  %v2593_v11 = vsel %vm1230_vm0, %v2551_v56, 1065369472  ;;  %v2269_v43 = vadd.f32 %v7931_v17, %v6456_v32  ;;  %v5310_v32 = vld [vmem:[%s7590_s0 + $0x30] sm:$0xff]   ;;  %5001 = vrcp.f32 %v6582_v4 }
 0x399   : > { %v4456_v60 = vpop.f32.mrb[39].mxu0  ;;  %4538 = vmatprep.subr.bf16.mxu0 %v2593_v11  ;;  %v2300_v34 = vmul.f32 0.2, %v2268_v46 }
 0x39a   : > { %7998 = vst [vmem:[#allocation51_spill] sm:$0xff] %v6686_v63  ;;  %v6689_v41 = vadd.f32 %v4456_v60, %v4455_v59  ;;  %4539 = vmatpush3.bf16.msra.mxu0 %v2569_v24  ;;  %v4986_v33 = vpop.eup %4985  ;;  %v2301_v63 = vmul.f32 0.2, %v2269_v43 }
 0x39b   : > { %v3276_v35 = vpack.c.bf16 %v4986_v33, %v4984_v22  ;;  %v2332_v24 = vmax.f32 %v2268_v46, %v2300_v34  ;;  %v5330_v33 = vmov 32  }
 0x39c   : > { %7999 = vst [vmem:[#allocation16_spill] sm:$0xff] %v6689_v41  ;;  %v2333_v41 = vmax.f32 %v2269_v43, %v2301_v63  ;;  %4814 = vset.pattern.permute.xlu0 %v5330_v33  ;;  %4815 = vset.pattern.permute.xlu1 %v5330_v33  ;;  %v8006_v63 = vld [vmem:[#allocation37_spill] sm:$0xff] }
 0x39d   : > { %3323 = vmatprep.mubr.bf16.mxu1 %v3276_v35  ;;  %v6701_v25 = vadd.f32 %v2332_v24, %v8002_v26  ;;  %v2935_v46 = vadd.f32 %v7923_v54, %v8006_v63 }
 0x39e   : > { %v6704_v14 = vadd.f32 %v2333_v41, %v8004_v53  ;;  %v2936_v41 = vadd.f32 %v7924_v44, %v8006_v63 }
 0x39f   : > { %v4516_v8 = vpop.f32.mrb[24].mxu1  ;;  %8003 = vst [vmem:[#allocation23_spill] sm:$0xff] %v6701_v25  ;;  %v2967_v43 = vmul.f32 0.2, %v2935_v46 }
 0x3a0   : > { %v4517_v58 = vpop.f32.mrb[25].mxu1  ;;  %8005 = vst [vmem:[#allocation35_spill] sm:$0xff] %v6704_v14  ;;  %v2401_v22 = vmax.f32 %v6701_v25, %v6704_v14  ;;  %v2968_v35 = vmul.f32 0.2, %v2936_v41 }
 0x3a1   : > { %v6696_v59 = vadd.f32 %v4517_v58, %v4516_v8  ;;  %v4519_v60 = vpop.f32.mrb[26].mxu1  ;;  %v2999_v8 = vmax.f32 %v2935_v46, %v2967_v43 }
 0x3a2   : > { %v4520_v56 = vpop.f32.mrb[27].mxu1  ;;  %v3000_v58 = vmax.f32 %v2936_v41, %v2968_v35 }
 0x3a3   : > { %8000 = vst [vmem:[#allocation29_spill] sm:$0xff] %v6696_v59  ;;  %v6698_v11 = vadd.f32 %v4520_v56, %v4519_v60  ;;  %v6719_v34 = vadd.f32 %v2999_v8, %v7993_v57  ;;  %v6724_v56 = vpop.xlane.xlu0 %3058  ;;  %v8011_v57 = vld [vmem:[#allocation59_spill] sm:$0xff] }
 0x3a4   : > { %v6722_v60 = vadd.f32 %v3000_v58, %v7995_v50  ;;  %8009 = vst [vmem:[#allocation76_spill] sm:$0xff] %v6724_v56  ;;  %v2933_v50 = vadd.f32 %v7923_v54, %v8011_v57  ;;  %v2934_v41 = vadd.f32 %v7924_v44, %v8011_v57 }
 0x3a5   : > { %8001 = vst [vmem:[#allocation30_spill] sm:$0xff] %v6698_v11  ;;  %8007 = vst [vmem:[#allocation72_spill] sm:$0xff] %v6719_v34 }
 0x3a6   : > { %8008 = vst [vmem:[#allocation73_spill] sm:$0xff] %v6722_v60  ;;  %v2965_v43 = vmul.f32 0.2, %v2933_v50  ;;  %v2966_v35 = vmul.f32 0.2, %v2934_v41 }
 0x3a7   : > { %v3200_v33 = vpop.permute.xlu0 %3199 }
 0x3a8   : > { %v3234_v63 = vsel %vm1230_vm0, %v3200_v33, 1065369472  ;;  %v2997_v8 = vmax.f32 %v2933_v50, %v2965_v43  ;;  %v2998_v58 = vmax.f32 %v2934_v41, %v2966_v35  ;;  %v8015_v43 = vld [vmem:[#allocation58_spill] sm:$0xff] }
 0x3a9   : > { %v2939_v35 = vadd.f32 %v7923_v54, %v8015_v43 }
 0x3aa   : > { %v6740_v33 = vadd.f32 %v2998_v58, %v8004_v53  ;;  %v2276_v53 = vadd.f32 %v7930_v47, %v6472_v3 }
 0x3ab   : > { %v2537_v58 = vpop.permute.xlu0 %2536  ;;  %v8061_v6 = vld [vmem:[#allocation76_spill] sm:$0xff] }
 0x3ac   : > { %8013 = vst [vmem:[#allocation79_spill] sm:$0xff] %v6740_v33 }
 0x3ad   : > { %2542 = vrot.lane.b32.xlu0 %v5310_v32, %s5328_s25  ;;  %2402 = vmax.xlane.f32.xlu1 %v2401_v22  ;;  %v3069_v22 = vmax.f32 %v6719_v34, %v6722_v60  ;;  %v2278_v60 = vadd.f32 %v7930_v47, %v6400_v36 }
 0x3be   : > { %3219 = vrot.lane.b32.xlu1 %v6664_v55, %s5329_s26 }
 0x3c8   : > { %v6726_v24 = vpop.xlane.xlu1 %2396 }
 0x3c9   : > { %8010 = vst [vmem:[#allocation77_spill] sm:$0xff] %v6726_v24 }
 0x3cc   : > { %3070 = vmax.xlane.f32.xlu0 %v3069_v22  ;;  %v3216_v55 = vpop.permute.xlu1 %3215  ;;  %v6737_v22 = vadd.f32 %v2997_v8, %v8002_v26  ;;  %v5312_v26 = vld [vmem:[%s7590_s0 + $0x68] sm:$0xff]   ;;  %v2940_v8 = vadd.f32 %v7924_v44, %v8015_v43  ;;  %v2971_v43 = vmul.f32 0.2, %v2939_v35 }
 0x3cd   : > { %v3258_v46 = vsel %vm1230_vm0, %v3216_v55, 1065369472  ;;  %v5311_v55 = vld [vmem:[%s7590_s0 + $0x38] sm:$0xff]  }
 0x3ce   : > { %4602 = vmatprep.subr.bf16.mxu1 %v3258_v46  ;;  %8012 = vst [vmem:[#allocation78_spill] sm:$0xff] %v6737_v22  ;;  %v3003_v56 = vmax.f32 %v2939_v35, %v2971_v43 }
 0x3cf   : > { %4603 = vmatpush3.bf16.msra.mxu1 %v3234_v63  ;;  %v3066_v63 = vmax.f32 %v6737_v22, %v6740_v33  ;;  %v2944_v33 = vadd.f32 %v7924_v44, %v8020_v62 }
 0x3e2   : > { %3207 = vrot.lane.b32.xlu0 %v5310_v32, %s5329_s26  ;;  %3067 = vmax.xlane.f32.xlu1 %v3066_v63  ;;  %v2277_v32 = vadd.f32 %v7931_v17, %v6472_v3 }
 0x3e4   : > { %v2309_v11 = vmul.f32 0.2, %v2277_v32 }
 0x3e6   : > { %2544 = vrot.lane.b32.xlu0 %v5311_v55, %s5328_s25  ;;  %v2341_v12 = vmax.f32 %v2277_v32, %v2309_v11 }
 0x3ea   : > { %3209 = vrot.lane.b32.xlu0 %v5311_v55, %s5329_s26  ;;  %v2308_v55 = vmul.f32 0.2, %v2276_v53 }
 0x3f3   : > { %2556 = vrot.lane.b32.xlu1 %v5312_v26, %s5328_s25 }
 0x3f7   : > { %v4458_v46 = vpop.f32.mrb[40].mxu0  ;;  %3221 = vrot.lane.b32.xlu1 %v5312_v26, %s5329_s26  ;;  %v6770_v26 = vld [vmem:[%s7590_s0 + $0x70] sm:$0xff]  }
 0x3f8   : > { %v4459_v57 = vpop.f32.mrb[41].mxu0 }
 0x3f9   : > { %v6759_v50 = vadd.f32 %v4459_v57, %v4458_v46  ;;  %v4461_v41 = vpop.f32.mrb[42].mxu0 }
 0x3fa   : > { %v4462_v63 = vpop.f32.mrb[43].mxu0 }
 0x3fb   : > { %8014 = vst [vmem:[#allocation80_spill] sm:$0xff] %v6759_v50  ;;  %v6765_v59 = vadd.f32 %v4462_v63, %v4461_v41  ;;  %v4522_v3 = vpop.f32.mrb[28].mxu1  ;;  %2558 = vrot.lane.b32.xlu1 %v6770_v26, %s5328_s25  ;;  %v2972_v50 = vmul.f32 0.2, %v2940_v8  ;;  %v2279_v63 = vadd.f32 %v7931_v17, %v6400_v36 }
 0x3fc   : > { %v4523_v34 = vpop.f32.mrb[29].mxu1 }
 0x3fd   : > { %8016 = vst [vmem:[#allocation81_spill] sm:$0xff] %v6765_v59  ;;  %v6774_v46 = vadd.f32 %v4523_v34, %v4522_v3  ;;  %v4525_v57 = vpop.f32.mrb[30].mxu1  ;;  %v2340_v59 = vmax.f32 %v2276_v53, %v2308_v55  ;;  %v6782_v48 = vpop.xlane.xlu1 %3061  ;;  %v2943_v34 = vadd.f32 %v7923_v54, %v8020_v62  ;;  %v3004_v36 = vmax.f32 %v2940_v8, %v2972_v50 }
 0x3fe   : > { %v4526_v41 = vpop.f32.mrb[31].mxu1  ;;  %8019 = vst [vmem:[#allocation24_spill] sm:$0xff] %v6782_v48  ;;  %v3202_v3 = vpop.permute.xlu0 %3201  ;;  %v2310_v53 = vmul.f32 0.2, %v2278_v60  ;;  %v2311_v32 = vmul.f32 0.2, %v2279_v63  ;;  %v2282_v8 = vadd.f32 %v7930_v47, %v6406_v18 }
 0x3ff   : > { %8017 = vst [vmem:[#allocation56_spill] sm:$0xff] %v6774_v46  ;;  %v6780_v22 = vadd.f32 %v4526_v41, %v4525_v57  ;;  %v4464_v25 = vpop.f32.mrb[44].mxu0  ;;  %v8024_v48 = vld [vmem:[#allocation63_spill] sm:$0xff]  ;;  %v2975_v13 = vmul.f32 0.2, %v2943_v34 }
 0x400   : > { %v4465_v46 = vpop.f32.mrb[45].mxu0  ;;  %v6796_v42 = vadd.f32 %v2341_v12, %v8024_v48  ;;  %v2572_v50 = vsel %vm1230_vm0, %v2537_v58, 1065369472  ;;  %v2342_v58 = vmax.f32 %v2278_v60, %v2310_v53  ;;  %v2314_v60 = vmul.f32 0.2, %v2282_v8 }
 0x401   : > { %8018 = vst [vmem:[#allocation57_spill] sm:$0xff] %v6780_v22  ;;  %v6788_v21 = vadd.f32 %v4465_v46, %v4464_v25  ;;  %v4467_v14 = vpop.f32.mrb[46].mxu0  ;;  %v2553_v57 = vpop.permute.xlu1 %2552  ;;  %v8023_v22 = vld [vmem:[#allocation62_spill] sm:$0xff]  ;;  %v2976_v46 = vmul.f32 0.2, %v2944_v33  ;;  %v3007_v38 = vmax.f32 %v2943_v34, %v2975_v13 }
 0x402   : > { %v4468_v11 = vpop.f32.mrb[47].mxu0  ;;  %v6793_v19 = vadd.f32 %v2340_v59, %v8023_v22  ;;  %v2596_v25 = vsel %vm1230_vm0, %v2553_v57, 1065369472  ;;  %v2283_v59 = vadd.f32 %v7931_v17, %v6406_v18  ;;  %v6806_v43 = vpop.xlane.xlu0 %2399  ;;  %v8028_v57 = vld [vmem:[#allocation61_spill] sm:$0xff]  ;;  %v8031_v34 = vld [vmem:[#allocation2_spill] sm:$0xff] }
 0x403   : > { %8021 = vst [vmem:[#allocation25_spill] sm:$0xff] %v6788_v21  ;;  %v6790_v55 = vadd.f32 %v4468_v11, %v4467_v14  ;;  %v4528_v41 = vpop.f32.mrb[32].mxu1  ;;  %4540 = vmatprep.subr.bf16.mxu0 %v2596_v25  ;;  %8026 = vst [vmem:[#allocation46_spill] sm:$0xff] %v6806_v43  ;;  %v8027_v11 = vld [vmem:[#allocation60_spill] sm:$0xff]  ;;  %v6812_v21 = vadd.f32 %v3004_v36, %v8028_v57  ;;  %v3008_v43 = vmax.f32 %v2944_v33, %v2976_v46 }
 0x404   : > { %v4529_v62 = vpop.f32.mrb[33].mxu1  ;;  %4541 = vmatpush3.bf16.msra.mxu0 %v2572_v50  ;;  %v8030_v50 = vld [vmem:[#allocation15_spill] sm:$0xff]  ;;  %v3237_v36 = vsel %vm1230_vm0, %v3202_v3, 1065369472  ;;  %v6828_v46 = vadd.f32 %v2342_v58, %v8031_v34  ;;  %v2272_v58 = vadd.f32 %v7930_v47, %v6466_v31 }
 0x405   : > { %8022 = vst [vmem:[#allocation41_spill] sm:$0xff] %v6790_v55  ;;  %v6800_v35 = vadd.f32 %v4529_v62, %v4528_v41  ;;  %v4531_v14 = vpop.f32.mrb[34].mxu1  ;;  %v6809_v55 = vadd.f32 %v3003_v56, %v8027_v11  ;;  %v2343_v41 = vmax.f32 %v2279_v63, %v2311_v32  ;;  %v3218_v25 = vpop.permute.xlu1 %3217  ;;  %v2947_v24 = vadd.f32 %v7923_v54, %v8030_v50 }
 0x406   : > { %v4532_v12 = vpop.f32.mrb[35].mxu1  ;;  %v3261_v18 = vsel %vm1230_vm0, %v3218_v25, 1065369472  ;;  %v2948_v56 = vadd.f32 %v7924_v44, %v8030_v50  ;;  %v2315_v63 = vmul.f32 0.2, %v2283_v59  ;;  %v2539_v53 = vpop.permute.xlu0 %2538 }
 0x407   : > { %8025 = vst [vmem:[#allocation28_spill] sm:$0xff] %v6800_v35  ;;  %v6814_v62 = vadd.f32 %v4532_v12, %v4531_v14  ;;  %v2413_v35 = vmax.f32 %v6793_v19, %v6796_v42  ;;  %4604 = vmatprep.subr.bf16.mxu1 %v3261_v18  ;;  %v2575_v32 = vsel %vm1230_vm0, %v2539_v53, 1065369472  ;;  %v3075_v33 = vmax.f32 %v6809_v55, %v6812_v21  ;;  %v8032_v14 = vld [vmem:[#allocation17_spill] sm:$0xff] }
 0x408   : > { %4605 = vmatpush3.bf16.msra.mxu1 %v3237_v36  ;;  %v6831_v12 = vadd.f32 %v2343_v41, %v8032_v14  ;;  %v2979_v25 = vmul.f32 0.2, %v2947_v24  ;;  %v6835_v18 = vadd.f32 %v3007_v38, %v8031_v34  ;;  %v6838_v50 = vadd.f32 %v3008_v43, %v8032_v14 }
 0x409   : > { %8029 = vst [vmem:[#allocation47_spill] sm:$0xff] %v6814_v62  ;;  %2414 = vmax.xlane.f32.xlu0 %v2413_v35  ;;  %v2555_v13 = vpop.permute.xlu1 %2554  ;;  %v2980_v35 = vmul.f32 0.2, %v2948_v56  ;;  %v2346_v36 = vmax.f32 %v2282_v8, %v2314_v60  ;;  %v2347_v53 = vmax.f32 %v2283_v59, %v2315_v63  ;;  %v2273_v41 = vadd.f32 %v7931_v17, %v6466_v31 }
 0x40a   : > { %v2599_v3 = vsel %vm1230_vm0, %v2555_v13, 1065369472  ;;  %8033 = vst [vmem:[#allocation48_spill] sm:$0xff] %v6835_v18  ;;  %8034 = vst [vmem:[#allocation49_spill] sm:$0xff] %v6838_v50  ;;  %v2286_v13 = vadd.f32 %v7930_v47, %v6487_v5  ;;  %v2416_v38 = vmax.f32 %v6828_v46, %v6831_v12  ;;  %v3011_v43 = vmax.f32 %v2947_v24, %v2979_v25 }
 0x40b   : > { %4542 = vmatprep.subr.bf16.mxu0 %v2599_v3  ;;  %v3012_v34 = vmax.f32 %v2948_v56, %v2980_v35  ;;  %v3081_v8 = vmax.f32 %v6835_v18, %v6838_v50  ;;  %v2304_v59 = vmul.f32 0.2, %v2272_v58  ;;  %v2305_v60 = vmul.f32 0.2, %v2273_v41 }
 0x40c   : > { %4543 = vmatpush3.bf16.msra.mxu0 %v2575_v32  ;;  %v6853_v31 = vadd.f32 %v2346_v36, %v6193_v45  ;;  %v6856_v63 = vadd.f32 %v2347_v53, %v6195_v28  ;;  %v2318_v32 = vmul.f32 0.2, %v2286_v13  ;;  %v2952_v24 = vadd.f32 %v7924_v44, %v6495_v39 }
 0x40d   : > { %3076 = vmax.xlane.f32.xlu0 %v3075_v33  ;;  %v2287_v33 = vadd.f32 %v7931_v17, %v6487_v5  ;;  %v2951_v5 = vadd.f32 %v7923_v54, %v6495_v39  ;;  %v6863_v56 = vadd.f32 %v3011_v43, %v6193_v45  ;;  %v2336_v3 = vmax.f32 %v2272_v58, %v2304_v59  ;;  %v8037_v45 = vld [vmem:[#allocation53_spill] sm:$0xff]  ;;  %v8038_v59 = vld [vmem:[#allocation74_spill] sm:$0xff] }
 0x40e   : > { %v2337_v25 = vmax.f32 %v2273_v41, %v2305_v60  ;;  %v2422_v35 = vmax.f32 %v6853_v31, %v6856_v63  ;;  %v6868_v36 = vadd.f32 %v3012_v34, %v6195_v28  ;;  %v2350_v53 = vmax.f32 %v2286_v13, %v2318_v32  ;;  %v8040_v28 = vld [vmem:[#allocation75_spill] sm:$0xff] }
 0x40f   : > { %v2319_v14 = vmul.f32 0.2, %v2287_v33  ;;  %v2983_v62 = vmul.f32 0.2, %v2951_v5  ;;  %v2984_v50 = vmul.f32 0.2, %v2952_v24 }
 0x410   : > { %8035 = vst [vmem:[#allocation37_spill] sm:$0xff] %v6868_v36  ;;  %v3087_v39 = vmax.f32 %v6863_v56, %v6868_v36  ;;  %v6876_v58 = vadd.f32 %v2337_v25, %v8037_v45  ;;  %v6879_v60 = vadd.f32 %v2350_v53, %v8038_v59 }
 0x411   : > { %2417 = vmax.xlane.f32.xlu0 %v2416_v38  ;;  %v2351_v38 = vmax.f32 %v2287_v33, %v2319_v14  ;;  %v3015_v41 = vmax.f32 %v2951_v5, %v2983_v62  ;;  %v3016_v43 = vmax.f32 %v2952_v24, %v2984_v50  ;;  %v4988_v50 = vpop.eup %4987  ;;  %v6899_v5 = vpop.xlane.xlu0 %3064 }
 0x412   : > { %8039 = vst [vmem:[#allocation59_spill] sm:$0xff] %v6879_v60 }
 0x413   : > { %v6882_v13 = vadd.f32 %v2351_v38, %v8040_v28  ;;  %v6889_v32 = vadd.f32 %v3015_v41, %v8038_v59  ;;  %v6892_v14 = vadd.f32 %v3016_v43, %v8040_v28  ;;  %v8044_v38 = vld [vmem:[#allocation54_spill] sm:$0xff] }
 0x415   : > { %3082 = vmax.xlane.f32.xlu0 %v3081_v8  ;;  %v8036_v8 = vld [vmem:[#allocation52_spill] sm:$0xff]  ;;  %8041 = vst [vmem:[#allocation58_spill] sm:$0xff] %v6882_v13  ;;  %v2428_v34 = vmax.f32 %v6879_v60, %v6882_v13  ;;  %8042 = vst [vmem:[#allocation55_spill] sm:$0xff] %v6889_v32  ;;  %v3093_v62 = vmax.f32 %v6889_v32, %v6892_v14 }
 0x416   : > { %v6873_v18 = vadd.f32 %v2336_v3, %v8036_v8  ;;  %8043 = vst [vmem:[#allocation62_spill] sm:$0xff] %v6892_v14  ;;  %v3204_v3 = vpop.permute.xlu0 %3203 }
 0x417   : > { %v3240_v25 = vsel %vm1230_vm0, %v3204_v3, 1065369472 }
 0x418   : > { %v2407_v33 = vmax.f32 %v6873_v18, %v6876_v58 }
 0x419   : > { %2423 = vmax.xlane.f32.xlu0 %v2422_v35 }
 0x41a   : > { %v2541_v3 = vpop.permute.xlu0 %2540 }
 0x41d   : > { %3088 = vmax.xlane.f32.xlu0 %v3087_v39  ;;  %v2937_v39 = vadd.f32 %v7923_v54, %v8044_v38 }
 0x41f   : > { %2408 = vmax.xlane.f32.xlu1 %v2407_v33  ;;  %v2969_v41 = vmul.f32 0.2, %v2937_v39 }
 0x421   : > { %2429 = vmax.xlane.f32.xlu0 %v2428_v34  ;;  %v3001_v59 = vmax.f32 %v2937_v39, %v2969_v41 }
 0x423   : > { %v6910_v33 = vadd.f32 %v3001_v59, %v8036_v8  ;;  %v3206_v8 = vpop.permute.xlu0 %3205  ;;  %v2275_v59 = vadd.f32 %v7931_v17, %v6388_v29 }
 0x424   : > { %v3243_v41 = vsel %vm1230_vm0, %v3206_v8, 1065369472 }
 0x425   : > { %3094 = vmax.xlane.f32.xlu0 %v3093_v62 }
 0x430   : > { %3223 = vrot.lane.b32.xlu1 %v6770_v26, %s5329_s26  ;;  %v2938_v26 = vadd.f32 %v7924_v44, %v8044_v38  ;;  %v6926_v38 = vpop.xlane.xlu0 %2405 }
 0x432   : > { %v2970_v43 = vmul.f32 0.2, %v2938_v26 }
 0x434   : > { %v3002_v28 = vmax.f32 %v2938_v26, %v2970_v43  ;;  %v2274_v43 = vadd.f32 %v7930_v47, %v6388_v29 }
 0x436   : > { %v6913_v34 = vadd.f32 %v3002_v28, %v8037_v45  ;;  %v2543_v28 = vpop.permute.xlu0 %2542 }
 0x438   : > { %v3072_v62 = vmax.f32 %v6910_v33, %v6913_v34 }
 0x43a   : > { %v6901_v24 = vpop.xlane.xlu1 %2402 }
 0x43b   : > { %1411 = vperm.xlu0 %4814, %v4988_v50   ;;  %v5314_v50 = vld [vmem:[%s7590_s0 + $0x78] sm:$0xff]  }
 0x43e   : > { %v3220_v35 = vpop.permute.xlu1 %3219 }
 0x43f   : > { %v3264_v53 = vsel %vm1230_vm0, %v3220_v35, 1065369472 }
 0x440   : > { %4606 = vmatprep.subr.bf16.mxu1 %v3264_v53  ;;  %v2578_v53 = vsel %vm1230_vm0, %v2541_v3, 1065369472 }
 0x441   : > { %4607 = vmatpush3.bf16.msra.mxu1 %v3240_v25 }
 0x454   : > { %3073 = vmax.xlane.f32.xlu1 %v3072_v62  ;;  %v2581_v62 = vsel %vm1230_vm0, %v2543_v28, 1065369472  ;;  %v2281_v28 = vadd.f32 %v7931_v17, %v6474_v15 }
 0x465   : > { %2560 = vrot.lane.b32.xlu1 %v5314_v50, %s5328_s25 }
 0x469   : > { %3225 = vrot.lane.b32.xlu1 %v5314_v50, %s5329_s26 }
 0x46f   : > { %v6922_v25 = vpop.xlane.xlu1 %3067 }
 0x473   : > { %v2557_v35 = vpop.permute.xlu1 %2556 }
 0x474   : > { %v2602_v45 = vsel %vm1230_vm0, %v2557_v35, 1065369472  ;;  %v8045_v35 = vld [vmem:[#allocation5_spill] sm:$0xff] }
 0x475   : > { %4544 = vmatprep.subr.bf16.mxu0 %v2602_v45  ;;  %v2941_v45 = vadd.f32 %v7923_v54, %v8045_v35  ;;  %v2942_v8 = vadd.f32 %v7924_v44, %v8045_v35 }
 0x476   : > { %4545 = vmatpush3.bf16.msra.mxu0 %v2578_v53  ;;  %v2306_v53 = vmul.f32 0.2, %v2274_v43 }
 0x477   : > { %v3222_v39 = vpop.permute.xlu1 %3221  ;;  %v2974_v9 = vmul.f32 0.2, %v2942_v8 }
 0x478   : > { %v3267_v26 = vsel %vm1230_vm0, %v3222_v39, 1065369472  ;;  %v2307_v39 = vmul.f32 0.2, %v2275_v59  ;;  %v2338_v29 = vmax.f32 %v2274_v43, %v2306_v53  ;;  %v2313_v53 = vmul.f32 0.2, %v2281_v28 }
 0x479   : > { %4608 = vmatprep.subr.bf16.mxu1 %v3267_v26  ;;  %v2973_v26 = vmul.f32 0.2, %v2941_v45  ;;  %v3006_v13 = vmax.f32 %v2942_v8, %v2974_v9 }
 0x47a   : > { %4609 = vmatpush3.bf16.msra.mxu1 %v3243_v41  ;;  %v2339_v14 = vmax.f32 %v2275_v59, %v2307_v39  ;;  %v2280_v41 = vadd.f32 %v7930_v47, %v6474_v15 }
 0x47b   : > { %v2559_v50 = vpop.permute.xlu1 %2558  ;;  %v3005_v35 = vmax.f32 %v2941_v45, %v2973_v26  ;;  %v2345_v45 = vmax.f32 %v2281_v28, %v2313_v53  ;;  %v2949_v26 = vadd.f32 %v7923_v54, %v6391_v2  ;;  %v2289_v53 = vadd.f32 %v7931_v17, %v6414_v7 }
 0x47c   : > { %v2605_v3 = vsel %vm1230_vm0, %v2559_v50, 1065369472  ;;  %v8046_v50 = vld [vmem:[#allocation68_spill] sm:$0xff]  ;;  %v6952_v43 = vadd.f32 %v2339_v14, %v8028_v57  ;;  %v2312_v59 = vmul.f32 0.2, %v2280_v41  ;;  %v2285_v57 = vadd.f32 %v7931_v17, %v6476_v61 }
 0x47d   : > { %4546 = vmatprep.subr.bf16.mxu0 %v2605_v3  ;;  %v2945_v3 = vadd.f32 %v7923_v54, %v8046_v50  ;;  %v2946_v32 = vadd.f32 %v7924_v44, %v8046_v50  ;;  %v6957_v36 = vadd.f32 %v3005_v35, %v8023_v22  ;;  %v6960_v50 = vadd.f32 %v3006_v13, %v8024_v48  ;;  %v8048_v35 = vld [vmem:[#allocation65_spill] sm:$0xff] }
 0x47e   : > { %4547 = vmatpush3.bf16.msra.mxu0 %v2581_v62  ;;  %v6949_v62 = vadd.f32 %v2338_v29, %v8027_v11  ;;  %v2344_v9 = vmax.f32 %v2280_v41, %v2312_v59  ;;  %v2284_v11 = vadd.f32 %v7930_v47, %v6476_v61  ;;  %v2950_v22 = vadd.f32 %v7924_v44, %v6391_v2  ;;  %v8047_v41 = vld [vmem:[#allocation64_spill] sm:$0xff] }
 0x47f   : > { %v2977_v39 = vmul.f32 0.2, %v2945_v3  ;;  %v2978_v60 = vmul.f32 0.2, %v2946_v32  ;;  %v3078_v48 = vmax.f32 %v6957_v36, %v6960_v50  ;;  %v2317_v29 = vmul.f32 0.2, %v2285_v57 }
 0x480   : > { %v2410_v15 = vmax.f32 %v6949_v62, %v6952_v43  ;;  %v2316_v13 = vmul.f32 0.2, %v2284_v11  ;;  %v6973_v28 = vadd.f32 %v2344_v9, %v8047_v41  ;;  %v6976_v59 = vadd.f32 %v2345_v45, %v8048_v35 }
 0x481   : > { %v3009_v14 = vmax.f32 %v2945_v3, %v2977_v39  ;;  %v3010_v8 = vmax.f32 %v2946_v32, %v2978_v60  ;;  %v2981_v32 = vmul.f32 0.2, %v2949_v26  ;;  %v2982_v2 = vmul.f32 0.2, %v2950_v22 }
 0x482   : > { %v2288_v3 = vadd.f32 %v7930_v47, %v6414_v7  ;;  %v2348_v39 = vmax.f32 %v2284_v11, %v2316_v13  ;;  %v2419_v9 = vmax.f32 %v6973_v28, %v6976_v59  ;;  %v2954_v47 = vadd.f32 %v7924_v44, %v6505_v51 }
 0x483   : > { %v6979_v61 = vadd.f32 %v3009_v14, %v8047_v41  ;;  %v6982_v60 = vadd.f32 %v3010_v8, %v8048_v35  ;;  %v3013_v14 = vmax.f32 %v2949_v26, %v2981_v32  ;;  %v3014_v8 = vmax.f32 %v2950_v22, %v2982_v2 }
 0x484   : > { %v2321_v41 = vmul.f32 0.2, %v2289_v53  ;;  %v2953_v35 = vadd.f32 %v7923_v54, %v6505_v51  ;;  %v6997_v17 = vadd.f32 %v2348_v39, %v6173_v30  ;;  %v2986_v54 = vmul.f32 0.2, %v2954_v47 }
 0x485   : > { %v3084_v45 = vmax.f32 %v6979_v61, %v6982_v60  ;;  %v7006_v26 = vadd.f32 %v3014_v8, %v7929_v16 }
 0x486   : > { %v2353_v22 = vmax.f32 %v2289_v53, %v2321_v41  ;;  %v2985_v13 = vmul.f32 0.2, %v2953_v35  ;;  %v3018_v32 = vmax.f32 %v2954_v47, %v2986_v54  ;;  %v8049_v54 = vld [vmem:[#allocation38_spill] sm:$0xff] }
 0x488   : > { %v7024_v53 = vadd.f32 %v3018_v32, %v6342_v27 }
 0x48d   : > { %2411 = vmax.xlane.f32.xlu1 %v2410_v15  ;;  %v2349_v15 = vmax.f32 %v2285_v57, %v2317_v29  ;;  %v7003_v57 = vadd.f32 %v3013_v14, %v6173_v30  ;;  %v3017_v29 = vmax.f32 %v2953_v35, %v2985_v13  ;;  %v7016_v30 = vadd.f32 %v2353_v22, %v6342_v27  ;;  %v4990_v27 = vpop.eup %4989 }
 0x48e   : > { %v3099_v13 = vsub.f32 %v6308_v52, %v6493_v37  ;;  %v8059_v52 = vld [vmem:[#allocation34_spill] sm:$0xff] }
 0x48f   : > { %v7000_v7 = vadd.f32 %v2349_v15, %v7929_v16  ;;  %v3090_v51 = vmax.f32 %v7003_v57, %v7006_v26  ;;  %v7028_v15 = vpop.xlane.xlu0 %3070 }
 0x491   : > { %3079 = vmax.xlane.f32.xlu1 %v3078_v48  ;;  %v2320_v48 = vmul.f32 0.2, %v2288_v3  ;;  %v2425_v44 = vmax.f32 %v6997_v17, %v7000_v7 }
 0x493   : > { %v2352_v11 = vmax.f32 %v2288_v3, %v2320_v48  ;;  %v7021_v3 = vadd.f32 %v3017_v29, %v6340_v49  ;;  %v4992_v48 = vpop.eup %4991  ;;  %v8051_v29 = vld [vmem:[#allocation40_spill] sm:$0xff] }
 0x494   : > { %v4994_v41 = vpop.eup %4993 }
 0x495   : > { %2420 = vmax.xlane.f32.xlu1 %v2419_v9  ;;  %v7013_v2 = vadd.f32 %v2352_v11, %v6340_v49  ;;  %v3096_v39 = vmax.f32 %v7021_v3, %v7024_v53  ;;  %v4996_v35 = vpop.eup %4995 }
 0x496   : > { %v4998_v47 = vpop.eup %4997 }
 0x497   : > { %v2431_v16 = vmax.f32 %v7013_v2, %v7016_v30  ;;  %v5000_v11 = vpop.eup %4999 }
 0x498   : > { %v5002_v22 = vpop.eup %5001 }
 0x499   : > { %3085 = vmax.xlane.f32.xlu1 %v3084_v45  ;;  %v3208_v45 = vpop.permute.xlu0 %3207 }
 0x49a   : > { %v3246_v14 = vsel %vm1230_vm0, %v3208_v45, 1065369472 }
 0x49d   : > { %2426 = vmax.xlane.f32.xlu1 %v2425_v44  ;;  %v2436_v44 = vsub.f32 %v8049_v54, %v6620_v0  ;;  %v8060_v0 = vld [vmem:[#allocation31_spill] sm:$0xff] }
 0x4a1   : > { %3091 = vmax.xlane.f32.xlu1 %v3090_v51  ;;  %v8050_v51 = vld [vmem:[#allocation77_spill] sm:$0xff] }
 0x4a2   : > { %v2441_v32 = vsub.f32 %v8051_v29, %v8050_v51 }
 0x4a5   : > { %2432 = vmax.xlane.f32.xlu1 %v2431_v16  ;;  %v8052_v16 = vld [vmem:[#allocation71_spill] sm:$0xff] }
 0x4a9   : > { %3097 = vmax.xlane.f32.xlu1 %v3096_v39  ;;  %v8053_v39 = vld [vmem:[#allocation3_spill] sm:$0xff] }
 0x4aa   : > { %v2434_v45 = vsub.f32 %v8053_v39, %v8052_v16  ;;  %v8062_v16 = vld [vmem:[#allocation44_spill] sm:$0xff] }
 0x4ac   : > { %v7030_v9 = vpop.xlane.xlu1 %2408  ;;  %v2466_v40 = vmul.f32 1.442695, %v2434_v45 }
 0x4b0   : > { %v3224_v8 = vpop.permute.xlu1 %3223 }
 0x4b1   : > { %v3270_v49 = vsel %vm1230_vm0, %v3224_v8, 1065369472  ;;  %v8054_v8 = vld [vmem:[#allocation10_spill] sm:$0xff] }
 0x4b2   : > { %4610 = vmatprep.subr.bf16.mxu1 %v3270_v49  ;;  %v8055_v49 = vld [vmem:[#allocation32_spill] sm:$0xff]  ;;  %v2438_v54 = vsub.f32 %v8060_v0, %v8054_v8  ;;  %v8067_v0 = vld [vmem:[#allocation26_spill] sm:$0xff] }
 0x4b3   : > { %4611 = vmatpush3.bf16.msra.mxu1 %v3246_v14  ;;  %v3131_v14 = vmul.f32 1.442695, %v3099_v13  ;;  %v3104_v13 = vsub.f32 %v8062_v16, %v8061_v6 }
 0x4b5   : > { %5003 = vpow2.f32 %v3131_v14  ;;  %v3141_v14 = vmul.f32 1.442695, %v3104_v13 }
 0x4ba   : > { %1416 = vperm.xlu1 %4815, %v4990_v27   ;;  %v2439_v27 = vsub.f32 %v8055_v49, %v8054_v8  ;;  %v8065_v8 = vld [vmem:[#allocation27_spill] sm:$0xff] }
 0x4bb   : > { %v3103_v45 = vsub.f32 %v8065_v8, %v8061_v6  ;;  %v2449_v8 = vsub.f32 %v6876_v58, %v7030_v9 }
 0x4bc   : > { %v2476_v29 = vmul.f32 1.442695, %v2439_v27  ;;  %v8066_v27 = vld [vmem:[#allocation46_spill] sm:$0xff] }
 0x4bd   : > { %v2443_v16 = vsub.f32 %v8067_v0, %v8066_v27 }
 0x4be   : > { %2076 = vperm.xlu1 %4815, %v4992_v48   ;;  %v2470_v48 = vmul.f32 1.442695, %v2436_v44  ;;  %v8063_v44 = vld [vmem:[#allocation8_spill] sm:$0xff] }
 0x4bf   : > { %v2440_v49 = vsub.f32 %v8063_v44, %v8050_v51  ;;  %v2484_v6 = vmul.f32 1.442695, %v2443_v16 }
 0x4c0   : > { %5005 = vpow2.f32 %v2470_v48 }
 0x4c1   : > { %v2478_v48 = vmul.f32 1.442695, %v2440_v49  ;;  %v8071_v49 = vld [vmem:[#allocation23_spill] sm:$0xff] }
 0x4c2   : > { %2081 = vperm.xlu1 %4815, %v4994_v41   ;;  %v8056_v41 = vld [vmem:[#allocation7_spill] sm:$0xff] }
 0x4c6   : > { %1421 = vperm.xlu1 %4815, %v4996_v35   ;;  %v8057_v35 = vld [vmem:[#allocation45_spill] sm:$0xff] }
 0x4ca   : > { %1426 = vperm.xlu1 %4815, %v4998_v47   ;;  %v3101_v47 = vsub.f32 %v8057_v35, %v8056_v41 }
 0x4cc   : > { %v3135_v39 = vmul.f32 1.442695, %v3101_v47  ;;  %v8068_v47 = vld [vmem:[#allocation33_spill] sm:$0xff] }
 0x4ce   : > { %2086 = vperm.xlu1 %4815, %v5000_v11   ;;  %v2480_v11 = vmul.f32 1.442695, %v2441_v32  ;;  %v8064_v32 = vld [vmem:[#allocation35_spill] sm:$0xff] }
 0x4cf   : > { %v2445_v35 = vsub.f32 %v8064_v32, %v6901_v24  ;;  %v2444_v32 = vsub.f32 %v8071_v49, %v6901_v24  ;;  %v8073_v24 = vld [vmem:[#allocation11_spill] sm:$0xff] }
 0x4d0   : > { %5007 = vpow2.f32 %v2480_v11 }
 0x4d1   : > { %5009 = vpow2.f32 %v2466_v40  ;;  %v2488_v11 = vmul.f32 1.442695, %v2445_v35  ;;  %v3139_v40 = vmul.f32 1.442695, %v3103_v45  ;;  %v8072_v45 = vld [vmem:[#allocation4_spill] sm:$0xff] }
 0x4d2   : > { %2091 = vperm.xlu1 %4815, %v5002_v22   ;;  %v8058_v22 = vld [vmem:[#allocation24_spill] sm:$0xff]  ;;  %5011 = vpow2.f32 %v2476_v29  ;;  %v8070_v29 = vld [vmem:[#allocation18_spill] sm:$0xff]  ;;  %v2486_v58 = vmul.f32 1.442695, %v2444_v32 }
 0x4d3   : > { %v3106_v37 = vsub.f32 %v8059_v52, %v8058_v22  ;;  %v2474_v52 = vmul.f32 1.442695, %v2438_v54  ;;  %5013 = vpow2.f32 %v3135_v39  ;;  %v3105_v51 = vsub.f32 %v8068_v47, %v8058_v22  ;;  %v2545_v22 = vpop.permute.xlu0 %2544 }
 0x4d4   : > { %v3108_v13 = vsub.f32 %v8070_v29, %v6899_v5 }
 0x4d5   : > { %v3145_v41 = vmul.f32 1.442695, %v3106_v37  ;;  %v8069_v37 = vld [vmem:[#allocation79_spill] sm:$0xff]  ;;  %v3143_v39 = vmul.f32 1.442695, %v3105_v51  ;;  %v2447_v51 = vsub.f32 %v8073_v24, %v6926_v38 }
 0x4d6   : > { %v3110_v44 = vsub.f32 %v8069_v37, %v6922_v25  ;;  %v3149_v47 = vmul.f32 1.442695, %v3108_v13 }
 0x4d7   : > { %5015 = vpow2.f32 %v3145_v41  ;;  %v5004_v41 = vpop.eup %5003  ;;  %v3210_v24 = vpop.permute.xlu0 %3209 }
 0x4d8   : > { %5017 = vpow2.f32 %v2474_v52  ;;  %v3153_v35 = vmul.f32 1.442695, %v3110_v44  ;;  %v5006_v52 = vpop.eup %5005  ;;  %v8074_v44 = vld [vmem:[#allocation78_spill] sm:$0xff] }
 0x4d9   : > { %5019 = vpow2.f32 %v3141_v14  ;;  %v2442_v14 = vsub.f32 %v8072_v45, %v8066_v27  ;;  %v2496_v27 = vmul.f32 1.442695, %v2449_v8 }
 0x4da   : > { %5021 = vpow2.f32 %v2478_v48  ;;  %v5008_v48 = vpop.eup %5007 }
 0x4db   : > { %5023 = vpow2.f32 %v2488_v11  ;;  %v2584_v11 = vsel %vm1230_vm0, %v2545_v22, 1065369472  ;;  %v5010_v37 = vpop.eup %5009  ;;  %v2482_v45 = vmul.f32 1.442695, %v2442_v14  ;;  %v8075_v22 = vld [vmem:[#allocation70_spill] sm:$0xff] }
 0x4dc   : > { %5025 = vpow2.f32 %v3139_v40  ;;  %v3109_v40 = vsub.f32 %v8074_v44, %v6922_v25  ;;  %v5012_v29 = vpop.eup %5011  ;;  %v2610_v49 = vpack.c.bf16 %v5006_v52, %v5010_v37  ;;  %v2492_v25 = vmul.f32 1.442695, %v2447_v51  ;;  %v8077_v44 = vld [vmem:[#allocation6_spill] sm:$0xff] }
 0x4dd   : > { %5027 = vpow2.f32 %v2484_v6  ;;  %v2613_v32 = vpack.c.bf16 %v5008_v48, %v5012_v29  ;;  %v2446_v29 = vsub.f32 %v8077_v44, %v6926_v38  ;;  %v8078_v38 = vld [vmem:[#allocation72_spill] sm:$0xff] }
 0x4de   : > { %5029 = vpow2.f32 %v3143_v39  ;;  %v3151_v52 = vmul.f32 1.442695, %v3109_v40 }
 0x4df   : > { %5031 = vpow2.f32 %v3153_v35  ;;  %v8076_v35 = vld [vmem:[#allocation73_spill] sm:$0xff] }
 0x4e0   : > { %5033 = vpow2.f32 %v3149_v47  ;;  %v3112_v8 = vsub.f32 %v8076_v35, %v7028_v15 }
 0x4e1   : > { %v7071_v54 = vpop.xlane.xlu1 %3073  ;;  %5035 = vpow2.f32 %v2486_v58 }
 0x4e2   : > { %v3114_v6 = vsub.f32 %v6913_v34, %v7071_v54  ;;  %5037 = vpow2.f32 %v2496_v27  ;;  %v3157_v58 = vmul.f32 1.442695, %v3112_v8 }
 0x4e3   : > { %5039 = vpow2.f32 %v2482_v45 }
 0x4e4   : > { %v3161_v48 = vmul.f32 1.442695, %v3114_v6  ;;  %5041 = vpow2.f32 %v2492_v25 }
 0x4e5   : > { %v2561_v0 = vpop.permute.xlu1 %2560  ;;  %5043 = vpow2.f32 %v3151_v52 }
 0x4e6   : > { %v2608_v16 = vsel %vm1230_vm0, %v2561_v0, 1065369472  ;;  %v5014_v0 = vpop.eup %5013  ;;  %5045 = vpow2.f32 %v3161_v48 }
 0x4e7   : > { %4548 = vmatprep.subr.bf16.mxu0 %v2608_v16  ;;  %v3107_v16 = vsub.f32 %v8075_v22, %v6899_v5  ;;  %v5016_v4 = vpop.eup %5015  ;;  %v2448_v5 = vsub.f32 %v6873_v18, %v7030_v9  ;;  %v3275_v47 = vpack.c.bf16 %v5014_v0, %v5004_v41  ;;  %v3113_v9 = vsub.f32 %v6910_v33, %v7071_v54 }
 0x4e8   : > { %4549 = vmatpush3.bf16.msra.mxu0 %v2584_v11  ;;  %v3249_v11 = vsel %vm1230_vm0, %v3210_v24, 1065369472  ;;  %v5018_v34 = vpop.eup %5017  ;;  %v2490_v0 = vmul.f32 1.442695, %v2446_v29 }
 0x4e9   : > { %v3226_v13 = vpop.permute.xlu1 %3225  ;;  %v5020_v14 = vpop.eup %5019  ;;  %v3147_v37 = vmul.f32 1.442695, %v3107_v16  ;;  %v2494_v18 = vmul.f32 1.442695, %v2448_v5  ;;  %v3159_v16 = vmul.f32 1.442695, %v3113_v9 }
 0x4ea   : > { %v3273_v39 = vsel %vm1230_vm0, %v3226_v13, 1065369472  ;;  %v5022_v51 = vpop.eup %5021  ;;  %v3278_v13 = vpack.c.bf16 %v5016_v4, %v5020_v14  ;;  %v3111_v4 = vsub.f32 %v8078_v38, %v7028_v15 }
 0x4eb   : > { %2659 = vmatmul.mubr.bf16.vlgmr.msra.gmra.mrb[48].mxu0 %v2610_v49  ;;  %4612 = vmatprep.subr.bf16.mxu1 %v3273_v39  ;;  %v5024_v49 = vpop.eup %5023  ;;  %v2612_v41 = vpack.c.bf16 %v5022_v51, %v5018_v34  ;;  %5047 = vpow2.f32 %v3147_v37 }
 0x4ec   : > { %2666 = vmatprep.mubr.bf16.mxu0 %v2613_v32  ;;  %4613 = vmatpush3.bf16.msra.mxu1 %v3249_v11  ;;  %v5026_v40 = vpop.eup %5025  ;;  %5049 = vpow2.f32 %v3157_v58  ;;  %v3155_v54 = vmul.f32 1.442695, %v3111_v4 }
 0x4ed   : > { %v5028_v27 = vpop.eup %5027  ;;  %5051 = vpow2.f32 %v2494_v18 }
 0x4ee   : > { %v5030_v6 = vpop.eup %5029  ;;  %v2615_v45 = vpack.c.bf16 %v5024_v49, %v5028_v27  ;;  %5053 = vpow2.f32 %v2490_v0  ;;  %v2415_v49 = vpop.xlane.xlu0 %2414 }
 0x4ef   : > { %3324 = vmatmul.mubr.bf16.vlgmr.msra.gmra.mrb[36].mxu1 %v3275_v47  ;;  %v5032_v22 = vpop.eup %5031  ;;  %v3277_v39 = vpack.c.bf16 %v5030_v6, %v5026_v40  ;;  %5055 = vpow2.f32 %v3159_v16  ;;  %v2452_v9 = vsub.f32 %v6793_v19, %v2415_v49  ;;  %v2453_v27 = vsub.f32 %v6796_v42, %v2415_v49 }
 0x4f0   : > { %3331 = vmatprep.mubr.bf16.mxu1 %v3278_v13  ;;  %v5034_v24 = vpop.eup %5033  ;;  %5057 = vpow2.f32 %v3155_v54 }
 0x4f1   : > { %v5036_v33 = vpop.eup %5035  ;;  %v3280_v32 = vpack.c.bf16 %v5032_v22, %v5034_v24  ;;  %v2502_v38 = vmul.f32 1.442695, %v2452_v9  ;;  %v2504_v4 = vmul.f32 1.442695, %v2453_v27 }
 0x4f2   : > { %v5038_v25 = vpop.eup %5037  ;;  %v3077_v40 = vpop.xlane.xlu0 %3076 }
 0x4f3   : > { %2667 = vmatmul.mubr.bf16.gmra.mrb[52].mxu0 %v2612_v41  ;;  %v5040_v35 = vpop.eup %5039  ;;  %v3115_v41 = vsub.f32 %v6809_v55, %v3077_v40  ;;  %v3116_v6 = vsub.f32 %v6812_v21, %v3077_v40  ;;  %5059 = vpow2.f32 %v2502_v38 }
 0x4f4   : > { %2674 = vmatprep.mubr.bf16.mxu0 %v2615_v45  ;;  %v5042_v8 = vpop.eup %5041  ;;  %v2614_v15 = vpack.c.bf16 %v5036_v33, %v5040_v35  ;;  %5061 = vpow2.f32 %v2504_v4 }
 0x4f5   : > { %v5044_v11 = vpop.eup %5043  ;;  %v2617_v34 = vpack.c.bf16 %v5038_v25, %v5042_v8  ;;  %v3163_v45 = vmul.f32 1.442695, %v3115_v41  ;;  %v3165_v16 = vmul.f32 1.442695, %v3116_v6  ;;  %v8079_v25 = vld [vmem:[#allocation48_spill] sm:$0xff] }
 0x4f6   : > { %v5046_v52 = vpop.eup %5045  ;;  %v2418_v18 = vpop.xlane.xlu0 %2417 }
 0x4f7   : > { %3332 = vmatmul.mubr.bf16.gmra.mrb[40].mxu1 %v3277_v39  ;;  %v5048_v5 = vpop.eup %5047  ;;  %v2454_v22 = vsub.f32 %v6828_v46, %v2418_v18  ;;  %v2455_v24 = vsub.f32 %v6831_v12, %v2418_v18  ;;  %5063 = vpow2.f32 %v3163_v45 }
 0x4f8   : > { %3339 = vmatprep.mubr.bf16.mxu1 %v3280_v32  ;;  %v5050_v14 = vpop.eup %5049  ;;  %v3279_v48 = vpack.c.bf16 %v5044_v11, %v5048_v5  ;;  %5065 = vpow2.f32 %v3165_v16 }
 0x4f9   : > { %v5052_v47 = vpop.eup %5051  ;;  %v3282_v51 = vpack.c.bf16 %v5046_v52, %v5050_v14  ;;  %v2506_v55 = vmul.f32 1.442695, %v2454_v22  ;;  %v2508_v32 = vmul.f32 1.442695, %v2455_v24 }
 0x4fa   : > { %v5054_v37 = vpop.eup %5053  ;;  %v3083_v0 = vpop.xlane.xlu0 %3082 }
 0x4fb   : > { %2675 = vmatmul.mubr.bf16.gmra.mrb[56].mxu0 %v2614_v15  ;;  %v2616_v44 = vpack.c.bf16 %v5052_v47, %v5054_v37  ;;  %v5056_v29 = vpop.eup %5055  ;;  %v3119_v35 = vsub.f32 %v8079_v25, %v3083_v0 }
 0x4fc   : > { %2682 = vmatprep.mubr.bf16.mxu0 %v2617_v34  ;;  %v5058_v13 = vpop.eup %5057 }
 0x4fd   : > { %v3281_v58 = vpack.c.bf16 %v5056_v29, %v5058_v13  ;;  %v3171_v34 = vmul.f32 1.442695, %v3119_v35 }
 0x4fe   : > { %v2424_v42 = vpop.xlane.xlu0 %2423 }
 0x4ff   : > { %3340 = vmatmul.mubr.bf16.gmra.mrb[44].mxu1 %v3279_v48  ;;  %v2458_v52 = vsub.f32 %v6853_v31, %v2424_v42 }
 0x500   : > { %3347 = vmatprep.mubr.bf16.mxu1 %v3282_v51  ;;  %v2459_v51 = vsub.f32 %v6856_v63, %v2424_v42 }
 0x501   : > { %v2514_v13 = vmul.f32 1.442695, %v2458_v52 }
 0x502   : > { %v3089_v5 = vpop.xlane.xlu0 %3088  ;;  %v2516_v63 = vmul.f32 1.442695, %v2459_v51 }
 0x503   : > { %2683 = vmatmul.mubr.bf16.gmra.mrb[60].mxu0 %v2616_v44  ;;  %v3123_v49 = vsub.f32 %v6863_v56, %v3089_v5 }
 0x505   : > { %v3179_v56 = vmul.f32 1.442695, %v3123_v49 }
 0x506   : > { %v2430_v18 = vpop.xlane.xlu0 %2429 }
 0x507   : > { %3348 = vmatmul.mubr.bf16.gmra.mrb[48].mxu1 %v3281_v58 }
 0x50a   : > { %v3095_v35 = vpop.xlane.xlu0 %3094 }
 0x51a   : > { %v2412_v39 = vpop.xlane.xlu1 %2411 }
 0x51b   : > { %v2450_v33 = vsub.f32 %v6949_v62, %v2412_v39  ;;  %v2451_v19 = vsub.f32 %v6952_v43, %v2412_v39  ;;  %v8080_v62 = vld [vmem:[#allocation49_spill] sm:$0xff] }
 0x51c   : > { %v3120_v43 = vsub.f32 %v8080_v62, %v3083_v0  ;;  %v8081_v0 = vld [vmem:[#allocation37_spill] sm:$0xff] }
 0x51d   : > { %v2498_v21 = vmul.f32 1.442695, %v2450_v33  ;;  %v2500_v54 = vmul.f32 1.442695, %v2451_v19  ;;  %v3124_v38 = vsub.f32 %v8081_v0, %v3089_v5  ;;  %v8082_v33 = vld [vmem:[#allocation59_spill] sm:$0xff] }
 0x51e   : > { %v3080_v46 = vpop.xlane.xlu1 %3079  ;;  %v2462_v19 = vsub.f32 %v8082_v33, %v2430_v18 }
 0x51f   : > { %5067 = vpow2.f32 %v2498_v21  ;;  %v3117_v12 = vsub.f32 %v6957_v36, %v3080_v46  ;;  %v3118_v8 = vsub.f32 %v6960_v50, %v3080_v46  ;;  %v5060_v36 = vpop.eup %5059  ;;  %v3173_v50 = vmul.f32 1.442695, %v3120_v43 }
 0x520   : > { %5069 = vpow2.f32 %v2500_v54  ;;  %v5062_v29 = vpop.eup %5061  ;;  %v3181_v54 = vmul.f32 1.442695, %v3124_v38 }
 0x521   : > { %5071 = vpow2.f32 %v2506_v55  ;;  %v3167_v15 = vmul.f32 1.442695, %v3117_v12  ;;  %v3169_v11 = vmul.f32 1.442695, %v3118_v8  ;;  %v5064_v58 = vpop.eup %5063 }
 0x522   : > { %5073 = vpow2.f32 %v2508_v32  ;;  %v2421_v14 = vpop.xlane.xlu1 %2420  ;;  %v8083_v32 = vld [vmem:[#allocation58_spill] sm:$0xff] }
 0x523   : > { %5075 = vpow2.f32 %v3167_v15  ;;  %v2456_v48 = vsub.f32 %v6973_v28, %v2421_v14  ;;  %v2457_v47 = vsub.f32 %v6976_v59, %v2421_v14  ;;  %v5066_v59 = vpop.eup %5065  ;;  %v2463_v25 = vsub.f32 %v8083_v32, %v2430_v18 }
 0x524   : > { %5077 = vpow2.f32 %v3169_v11  ;;  %v2522_v15 = vmul.f32 1.442695, %v2462_v19  ;;  %v8084_v11 = vld [vmem:[#allocation55_spill] sm:$0xff] }
 0x525   : > { %v2510_v37 = vmul.f32 1.442695, %v2456_v48  ;;  %v2512_v44 = vmul.f32 1.442695, %v2457_v47  ;;  %5079 = vpow2.f32 %v3171_v34  ;;  %v3127_v34 = vsub.f32 %v8084_v11, %v3095_v35  ;;  %v8085_v47 = vld [vmem:[#allocation62_spill] sm:$0xff] }
 0x526   : > { %v3086_v31 = vpop.xlane.xlu1 %3085  ;;  %v2524_v48 = vmul.f32 1.442695, %v2463_v25 }
 0x527   : > { %5081 = vpow2.f32 %v2510_v37  ;;  %v3121_v40 = vsub.f32 %v6979_v61, %v3086_v31  ;;  %v3122_v28 = vsub.f32 %v6982_v60, %v3086_v31  ;;  %v3187_v49 = vmul.f32 1.442695, %v3127_v34 }
 0x528   : > { %5083 = vpow2.f32 %v2512_v44 }
 0x529   : > { %v5068_v9 = vpop.eup %5067  ;;  %5085 = vpow2.f32 %v3173_v50  ;;  %v3175_v27 = vmul.f32 1.442695, %v3121_v40  ;;  %v3177_v41 = vmul.f32 1.442695, %v3122_v28 }
 0x52a   : > { %v5070_v6 = vpop.eup %5069  ;;  %5087 = vpow2.f32 %v2514_v13  ;;  %v2427_v4 = vpop.xlane.xlu1 %2426  ;;  %v2618_v45 = vpack.c.bf16 %v5060_v36, %v5068_v9  ;;  %v3128_v36 = vsub.f32 %v8085_v47, %v3095_v35 }
 0x52b   : > { %v5072_v22 = vpop.eup %5071  ;;  %5089 = vpow2.f32 %v3175_v27  ;;  %v2460_v61 = vsub.f32 %v6997_v17, %v2427_v4  ;;  %v2461_v60 = vsub.f32 %v7000_v7, %v2427_v4  ;;  %v2619_v16 = vpack.c.bf16 %v5062_v29, %v5070_v6 }
 0x52c   : > { %v5074_v24 = vpop.eup %5073  ;;  %5091 = vpow2.f32 %v3177_v41  ;;  %v3189_v28 = vmul.f32 1.442695, %v3128_v36 }
 0x52d   : > { %v5076_v39 = vpop.eup %5075  ;;  %5093 = vpow2.f32 %v2516_v63  ;;  %v2518_v42 = vmul.f32 1.442695, %v2460_v61  ;;  %v2520_v55 = vmul.f32 1.442695, %v2461_v60  ;;  %2690 = vmatprep.mubr.bf16.mxu0 %v2619_v16 }
 0x52e   : > { %v5078_v21 = vpop.eup %5077  ;;  %5095 = vpow2.f32 %v3179_v56  ;;  %2691 = vmatmul.mubr.bf16.gmra.mrb[64].mxu0 %v2618_v45  ;;  %v3092_v17 = vpop.xlane.xlu1 %3091  ;;  %v3283_v46 = vpack.c.bf16 %v5076_v39, %v5064_v58 }
 0x52f   : > { %5097 = vpow2.f32 %v2518_v42  ;;  %v3125_v7 = vsub.f32 %v7003_v57, %v3092_v17  ;;  %v3126_v12 = vsub.f32 %v7006_v26, %v3092_v17  ;;  %v3284_v8 = vpack.c.bf16 %v5078_v21, %v5066_v59  ;;  %v5080_v62 = vpop.eup %5079 }
 0x530   : > { %5099 = vpow2.f32 %v2520_v55 }
 0x531   : > { %v5082_v43 = vpop.eup %5081  ;;  %v3183_v52 = vmul.f32 1.442695, %v3125_v7  ;;  %v3185_v5 = vmul.f32 1.442695, %v3126_v12  ;;  %3355 = vmatprep.mubr.bf16.mxu1 %v3284_v8  ;;  %5101 = vpow2.f32 %v3181_v54 }
 0x532   : > { %v5084_v14 = vpop.eup %5083  ;;  %3356 = vmatmul.mubr.bf16.gmra.mrb[52].mxu1 %v3283_v46  ;;  %v2433_v50 = vpop.xlane.xlu1 %2432  ;;  %v2620_v57 = vpack.c.bf16 %v5082_v43, %v5072_v22 }
 0x533   : > { %v5086_v51 = vpop.eup %5085  ;;  %5103 = vpow2.f32 %v3183_v52  ;;  %v2464_v26 = vsub.f32 %v7013_v2, %v2433_v50  ;;  %v2465_v37 = vsub.f32 %v7016_v30, %v2433_v50  ;;  %v2621_v44 = vpack.c.bf16 %v5084_v14, %v5074_v24 }
 0x534   : > { %v5088_v29 = vpop.eup %5087  ;;  %5105 = vpow2.f32 %v3185_v5 }
 0x535   : > { %v5090_v13 = vpop.eup %5089  ;;  %5107 = vpow2.f32 %v2522_v15  ;;  %v2526_v31 = vmul.f32 1.442695, %v2464_v26  ;;  %v2528_v58 = vmul.f32 1.442695, %v2465_v37  ;;  %2698 = vmatprep.mubr.bf16.mxu0 %v2621_v44 }
 0x536   : > { %v5092_v40 = vpop.eup %5091  ;;  %5109 = vpow2.f32 %v2524_v48  ;;  %2699 = vmatmul.mubr.bf16.gmra.mrb[68].mxu0 %v2620_v57  ;;  %v3098_v59 = vpop.xlane.xlu1 %3097  ;;  %v3285_v18 = vpack.c.bf16 %v5090_v13, %v5080_v62 }
 0x537   : > { %v5094_v9 = vpop.eup %5093  ;;  %5111 = vpow2.f32 %v2526_v31  ;;  %v3129_v2 = vsub.f32 %v7021_v3, %v3098_v59  ;;  %v3130_v30 = vsub.f32 %v7024_v53, %v3098_v59  ;;  %v3286_v63 = vpack.c.bf16 %v5092_v40, %v5086_v51 }
 0x538   : > { %v5096_v27 = vpop.eup %5095  ;;  %5113 = vpow2.f32 %v2528_v58 }
 0x539   : > { %v5098_v41 = vpop.eup %5097  ;;  %5115 = vpow2.f32 %v3187_v49  ;;  %v3191_v6 = vmul.f32 1.442695, %v3129_v2  ;;  %v3193_v0 = vmul.f32 1.442695, %v3130_v30  ;;  %3363 = vmatprep.mubr.bf16.mxu1 %v3286_v63 }
 0x53a   : > { %v5100_v38 = vpop.eup %5099  ;;  %5117 = vpow2.f32 %v3189_v28  ;;  %3364 = vmatmul.mubr.bf16.gmra.mrb[56].mxu1 %v3285_v18  ;;  %v2622_v56 = vpack.c.bf16 %v5098_v41, %v5088_v29 }
 0x53b   : > { %5119 = vpow2.f32 %v3191_v6  ;;  %v2623_v4 = vpack.c.bf16 %v5100_v38, %v5094_v9  ;;  %v5102_v45 = vpop.eup %5101 }
 0x53c   : > { %5121 = vpow2.f32 %v3193_v0  ;;  %v8086_v0 = vld [vmem:[#allocation12_spill] sm:$0xff] }
 0x53d   : > { %v5104_v22 = vpop.eup %5103  ;;  %2706 = vmatprep.mubr.bf16.mxu0 %v2623_v4 }
 0x53e   : > { %v5106_v3 = vpop.eup %5105  ;;  %2707 = vmatmul.mubr.bf16.gmra.mrb[72].mxu0 %v2622_v56  ;;  %v3287_v53 = vpack.c.bf16 %v5104_v22, %v5096_v27  ;;  %v8087_v22 = vld [vmem:[#allocation39_spill] sm:$0xff] }
 0x53f   : > { %v5108_v61 = vpop.eup %5107  ;;  %v3288_v60 = vpack.c.bf16 %v5106_v3, %v5102_v45 }
 0x540   : > { %v5110_v16 = vpop.eup %5109 }
 0x541   : > { %v5112_v24 = vpop.eup %5111  ;;  %3371 = vmatprep.mubr.bf16.mxu1 %v3288_v60 }
 0x542   : > { %v5114_v39 = vpop.eup %5113  ;;  %3372 = vmatmul.mubr.bf16.gmra.mrb[60].mxu1 %v3287_v53  ;;  %v2624_v33 = vpack.c.bf16 %v5112_v24, %v5108_v61 }
 0x543   : > { %v5116_v19 = vpop.eup %5115  ;;  %v2625_v42 = vpack.c.bf16 %v5114_v39, %v5110_v16  ;;  %v8088_v16 = vld [vmem:[#allocation19_spill] sm:$0xff] }
 0x544   : > { %v5118_v55 = vpop.eup %5117 }
 0x545   : > { %v5120_v21 = vpop.eup %5119  ;;  %2714 = vmatprep.mubr.bf16.mxu0 %v2625_v42  ;;  %v8089_v42 = vld [vmem:[#allocation21_spill] sm:$0xff] }
 0x546   : > { %v5122_v54 = vpop.eup %5121  ;;  %2715 = vmatmul.mubr.bf16.gmra.mrb[76].mxu0 %v2624_v33  ;;  %v3289_v32 = vpack.c.bf16 %v5120_v21, %v5116_v19 }
 0x547   : > { %v3290_v25 = vpack.c.bf16 %v5122_v54, %v5118_v55 }
 0x549   : > { %3379 = vmatprep.mubr.bf16.mxu1 %v3290_v25  ;;  %v8090_v25 = vld [vmem:[#allocation14_spill] sm:$0xff] }
 0x54a   : > { %3380 = vmatmul.mubr.bf16.gmra.mrb[64].mxu1 %v3289_v32 }
 0x5be   : > { %v4550_v35 = vpop.f32.mrb[48].mxu0 }
 0x5bf   : > { %v4551_v17 = vpop.f32.mrb[49].mxu0 }
 0x5c0   : > { %v7135_v46 = vadd.f32 %v4551_v17, %v4550_v35  ;;  %v4553_v7 = vpop.f32.mrb[50].mxu0 }
 0x5c1   : > { %v4554_v12 = vpop.f32.mrb[51].mxu0 }
 0x5c2   : > { %5123 = vrcp.f32 %v7135_v46  ;;  %v7138_v8 = vadd.f32 %v4554_v12, %v4553_v7  ;;  %v4614_v62 = vpop.f32.mrb[36].mxu1  ;;  %v8091_v7 = vld [vmem:[#allocation22_spill] sm:$0xff] }
 0x5c3   : > { %v4615_v43 = vpop.f32.mrb[37].mxu1 }
 0x5c4   : > { %5125 = vrcp.f32 %v7138_v8  ;;  %v7141_v15 = vadd.f32 %v4615_v43, %v4614_v62  ;;  %v4617_v11 = vpop.f32.mrb[38].mxu1  ;;  %v8092_v62 = vld [vmem:[#allocation42_spill] sm:$0xff] }
 0x5c5   : > { %v4618_v34 = vpop.f32.mrb[39].mxu1 }
 0x5c6   : > { %v7143_v52 = vadd.f32 %v4618_v34, %v4617_v11  ;;  %v4556_v5 = vpop.f32.mrb[52].mxu0  ;;  %v8093_v11 = vld [vmem:[#allocation69_spill] sm:$0xff] }
 0x5c7   : > { %v4557_v14 = vpop.f32.mrb[53].mxu0 }
 0x5c8   : > { %v7145_v48 = vadd.f32 %v4557_v14, %v4556_v5  ;;  %v4559_v47 = vpop.f32.mrb[54].mxu0 }
 0x5c9   : > { %v4560_v36 = vpop.f32.mrb[55].mxu0 }
 0x5ca   : > { %5127 = vrcp.f32 %v7145_v48  ;;  %v7148_v50 = vadd.f32 %v4560_v36, %v4559_v47  ;;  %v4620_v57 = vpop.f32.mrb[40].mxu1 }
 0x5cb   : > { %v4621_v51 = vpop.f32.mrb[41].mxu1 }
 0x5cc   : > { %v5124_v26 = vpop.eup %5123  ;;  %5129 = vrcp.f32 %v7148_v50  ;;  %v7151_v37 = vadd.f32 %v4621_v51, %v4620_v57  ;;  %v4623_v44 = vpop.f32.mrb[42].mxu1 }
 0x5cd   : > { %2741 = vperm.xlu0 %4814, %v5124_v26   ;;  %v4624_v29 = vpop.f32.mrb[43].mxu1  ;;  %5131 = vrcp.f32 %v7141_v15 }
 0x5ce   : > { %v5126_v13 = vpop.eup %5125  ;;  %v7154_v49 = vadd.f32 %v4624_v29, %v4623_v44  ;;  %v4562_v31 = vpop.f32.mrb[56].mxu0  ;;  %5133 = vrcp.f32 %v7143_v52  ;;  %v8094_v29 = vld [vmem:[#allocation43_spill] sm:$0xff] }
 0x5cf   : > { %v4563_v58 = vpop.f32.mrb[57].mxu0  ;;  %2746 = vperm.xlu1 %4815, %v5126_v13   ;;  %5135 = vrcp.f32 %v7151_v37 }
 0x5d0   : > { %v7157_v40 = vadd.f32 %v4563_v58, %v4562_v31  ;;  %v4565_v28 = vpop.f32.mrb[58].mxu0  ;;  %5137 = vrcp.f32 %v7154_v49  ;;  %v8095_v31 = vld [vmem:[#allocation20_spill] sm:$0xff] }
 0x5d1   : > { %v4566_v59 = vpop.f32.mrb[59].mxu0  ;;  %5139 = vrcp.f32 %v8086_v0 }
 0x5d2   : > { %v7160_v18 = vadd.f32 %v4566_v59, %v4565_v28  ;;  %v4626_v9 = vpop.f32.mrb[44].mxu1  ;;  %5141 = vrcp.f32 %v8087_v22  ;;  %v8096_v28 = vld [vmem:[#allocation66_spill] sm:$0xff] }
 0x5d3   : > { %v4627_v2 = vpop.f32.mrb[45].mxu1  ;;  %5143 = vrcp.f32 %v8088_v16  ;;  %v4848_v59 = vld [vmem:[%s7596_s6] sm:$0xff]  }
 0x5d4   : > { %v5128_v30 = vpop.eup %5127  ;;  %v7163_v63 = vadd.f32 %v4627_v2, %v4626_v9  ;;  %v4629_v27 = vpop.f32.mrb[46].mxu1  ;;  %5145 = vrcp.f32 %v8089_v42  ;;  %v4849_v9 = vld [vmem:[%s7596_s6 + $0x8] sm:$0xff]   ;;  %4713 = vmatprep.subr.bf16.mxu0 %v4848_v59  ;;  %4751 = vmatprep.subr.bf16.mxu1 %v4848_v59 }
 0x5d5   : > { %2751 = vperm.xlu0 %4814, %v5128_v30   ;;  %v4630_v41 = vpop.f32.mrb[47].mxu1  ;;  %5147 = vrcp.f32 %v8090_v25  ;;  %v8097_v30 = vld [vmem:[#allocation67_spill] sm:$0xff]  ;;  %4714 = vmatpush3.bf16.msra.mxu0 %v4848_v59 }
 0x5d6   : > { %v5130_v6 = vpop.eup %5129  ;;  %v7166_v38 = vadd.f32 %v4630_v41, %v4629_v27  ;;  %v4568_v56 = vpop.f32.mrb[60].mxu0  ;;  %5149 = vrcp.f32 %v8091_v7  ;;  %v8098_v41 = vld [vmem:[#allocation51_spill] sm:$0xff]  ;;  %4715 = vmatprep.subr.bf16.mxu0 %v4849_v9  ;;  %4753 = vmatpush3.bf16.msra.mxu1 %v4848_v59 }
 0x5d7   : > { %v4569_v4 = vpop.f32.mrb[61].mxu0  ;;  %2756 = vperm.xlu1 %4815, %v5130_v6   ;;  %v5132_v45 = vpop.eup %5131  ;;  %5151 = vrcp.f32 %v8092_v62  ;;  %4752 = vmatprep.subr.bf16.mxu1 %v4849_v9 }
 0x5d8   : > { %v7169_v3 = vadd.f32 %v4569_v4, %v4568_v56  ;;  %v4571_v53 = vpop.f32.mrb[62].mxu0  ;;  %v5134_v60 = vpop.eup %5133  ;;  %5153 = vrcp.f32 %v8093_v11  ;;  %v8099_v56 = vld [vmem:[#allocation16_spill] sm:$0xff] }
 0x5d9   : > { %v4572_v61 = vpop.f32.mrb[63].mxu0  ;;  %3406 = vperm.xlu0 %4814, %v5132_v45   ;;  %v5136_v19 = vpop.eup %5135  ;;  %5155 = vrcp.f32 %v7157_v40  ;;  %4716 = vmatpush3.bf16.msra.mxu0 %v4849_v9 }
 0x5da   : > { %v7172_v24 = vadd.f32 %v4572_v61, %v4571_v53  ;;  %v4632_v39 = vpop.f32.mrb[48].mxu1  ;;  %v5138_v32 = vpop.eup %5137  ;;  %5157 = vrcp.f32 %v7160_v18  ;;  %v8100_v53 = vld [vmem:[#allocation29_spill] sm:$0xff]  ;;  %4754 = vmatpush3.bf16.msra.mxu1 %v4849_v9 }
 0x5db   : > { %v4633_v33 = vpop.f32.mrb[49].mxu1  ;;  %3411 = vperm.xlu1 %4815, %v5134_v60   ;;  %v5140_v17 = vpop.eup %5139  ;;  %5159 = vrcp.f32 %v7169_v3 }
 0x5dc   : > { %v7175_v55 = vadd.f32 %v4633_v33, %v4632_v39  ;;  %v4635_v21 = vpop.f32.mrb[50].mxu1  ;;  %v5142_v12 = vpop.eup %5141  ;;  %5161 = vrcp.f32 %v7172_v24 }
 0x5dd   : > { %v4636_v54 = vpop.f32.mrb[51].mxu1  ;;  %3416 = vperm.xlu0 %4814, %v5136_v19   ;;  %v5144_v43 = vpop.eup %5143  ;;  %5163 = vrcp.f32 %v7163_v63  ;;  %v8101_v19 = vld [vmem:[#allocation30_spill] sm:$0xff] }
 0x5de   : > { %v7178_v35 = vadd.f32 %v4636_v54, %v4635_v21  ;;  %v5146_v34 = vpop.eup %5145  ;;  %5165 = vrcp.f32 %v7166_v38 }
 0x5df   : > { %3421 = vperm.xlu1 %4815, %v5138_v32   ;;  %v5148_v5 = vpop.eup %5147  ;;  %5167 = vrcp.f32 %v7175_v55 }
 0x5e0   : > { %v5150_v14 = vpop.eup %5149  ;;  %5169 = vrcp.f32 %v7178_v35 }
 0x5e1   : > { %1431 = vperm.xlu0 %4814, %v5140_v17   ;;  %v5152_v47 = vpop.eup %5151  ;;  %5171 = vrcp.f32 %v8094_v29 }
 0x5e2   : > { %v5154_v36 = vpop.eup %5153  ;;  %5173 = vrcp.f32 %v8095_v31 }
 0x5e3   : > { %1436 = vperm.xlu1 %4815, %v5142_v12   ;;  %v5156_v57 = vpop.eup %5155  ;;  %5175 = vrcp.f32 %v8096_v28 }
 0x5e4   : > { %v5158_v51 = vpop.eup %5157  ;;  %5177 = vrcp.f32 %v8097_v30 }
 0x5e5   : > { %2096 = vperm.xlu0 %4814, %v5144_v43   ;;  %v5160_v26 = vpop.eup %5159  ;;  %5179 = vrcp.f32 %v8098_v41 }
 0x5e6   : > { %v5162_v44 = vpop.eup %5161  ;;  %5181 = vrcp.f32 %v8099_v56 }
 0x5e7   : > { %2101 = vperm.xlu1 %4815, %v5146_v34   ;;  %v5164_v13 = vpop.eup %5163  ;;  %5183 = vrcp.f32 %v8100_v53 }
 0x5e8   : > { %v5166_v58 = vpop.eup %5165  ;;  %5185 = vrcp.f32 %v8101_v19 }
 0x5e9   : > { %1441 = vperm.xlu0 %4814, %v5148_v5   ;;  %v5168_v2 = vpop.eup %5167 }
 0x5ea   : > { %v5170_v27 = vpop.eup %5169 }
 0x5eb   : > { %1446 = vperm.xlu1 %4815, %v5150_v14   ;;  %v5172_v6 = vpop.eup %5171 }
 0x5ec   : > { %v5174_v45 = vpop.eup %5173 }
 0x5ed   : > { %2106 = vperm.xlu0 %4814, %v5152_v47   ;;  %v5176_v33 = vpop.eup %5175 }
 0x5ee   : > { %v5178_v17 = vpop.eup %5177 }
 0x5ef   : > { %2111 = vperm.xlu1 %4815, %v5154_v36   ;;  %v5180_v5 = vpop.eup %5179 }
 0x5f1   : > { %2761 = vperm.xlu0 %4814, %v5156_v57   ;;  %v5182_v57 = vpop.eup %5181 }
 0x5f3   : > { %2766 = vperm.xlu1 %4815, %v5158_v51  }
 0x5f5   : > { %2771 = vperm.xlu0 %4814, %v5160_v26  }
 0x5f7   : > { %2776 = vperm.xlu1 %4815, %v5162_v44  }
 0x5f9   : > { %3426 = vperm.xlu0 %4814, %v5164_v13   ;;  %v5184_v13 = vpop.eup %5183 }
 0x5fb   : > { %3431 = vperm.xlu1 %4815, %v5166_v58  }
 0x5fd   : > { %3436 = vperm.xlu0 %4814, %v5168_v2   ;;  %v5186_v2 = vpop.eup %5185 }
 0x5ff   : > { %3441 = vperm.xlu1 %4815, %v5170_v27  }
 0x601   : > { %v4574_v4 = vpop.f32.mrb[64].mxu0  ;;  %1451 = vperm.xlu0 %4814, %v5172_v6  }
 0x602   : > { %v4575_v61 = vpop.f32.mrb[65].mxu0 }
 0x603   : > { %v7204_v60 = vadd.f32 %v4575_v61, %v4574_v4  ;;  %v4577_v39 = vpop.f32.mrb[66].mxu0  ;;  %1456 = vperm.xlu1 %4815, %v5174_v45  }
 0x604   : > { %v4578_v21 = vpop.f32.mrb[67].mxu0 }
 0x605   : > { %v7207_v54 = vadd.f32 %v4578_v21, %v4577_v39  ;;  %v4638_v32 = vpop.f32.mrb[52].mxu1  ;;  %2116 = vperm.xlu0 %4814, %v5176_v33   ;;  %5187 = vrcp.f32 %v7204_v60 }
 0x606   : > { %v4639_v12 = vpop.f32.mrb[53].mxu1 }
 0x607   : > { %v7210_v43 = vadd.f32 %v4639_v12, %v4638_v32  ;;  %v4641_v34 = vpop.f32.mrb[54].mxu1  ;;  %2121 = vperm.xlu1 %4815, %v5178_v17   ;;  %5189 = vrcp.f32 %v7207_v54 }
 0x608   : > { %v4642_v14 = vpop.f32.mrb[55].mxu1 }
 0x609   : > { %v7213_v47 = vadd.f32 %v4642_v14, %v4641_v34  ;;  %v4580_v36 = vpop.f32.mrb[68].mxu0  ;;  %1461 = vperm.xlu0 %4814, %v5180_v5  }
 0x60a   : > { %v4581_v51 = vpop.f32.mrb[69].mxu0 }
 0x60b   : > { %8102 = vst [vmem:[#allocation63_spill] sm:$0xff] %v7213_v47  ;;  %v7215_v26 = vadd.f32 %v4581_v51, %v4580_v36  ;;  %v4583_v44 = vpop.f32.mrb[70].mxu0  ;;  %1466 = vperm.xlu1 %4815, %v5182_v57  }
 0x60c   : > { %v4584_v58 = vpop.f32.mrb[71].mxu0 }
 0x60d   : > { %5191 = vrcp.f32 %v7215_v26  ;;  %v7218_v59 = vadd.f32 %v4584_v58, %v4583_v44  ;;  %v4644_v9 = vpop.f32.mrb[56].mxu1  ;;  %2126 = vperm.xlu0 %4814, %v5184_v13  }
 0x60e   : > { %v4645_v27 = vpop.f32.mrb[57].mxu1 }
 0x60f   : > { %8103 = vst [vmem:[#allocation60_spill] sm:$0xff] %v7218_v59  ;;  %5193 = vrcp.f32 %v7218_v59  ;;  %v7221_v6 = vadd.f32 %v4645_v27, %v4644_v9  ;;  %v4647_v4 = vpop.f32.mrb[58].mxu1  ;;  %2131 = vperm.xlu1 %4815, %v5186_v2   ;;  %v5188_v45 = vpop.eup %5187  ;;  %v8109_v9 = vld [vmem:[#allocation80_spill] sm:$0xff] }
 0x610   : > { %v4648_v61 = vpop.f32.mrb[59].mxu1  ;;  %5195 = vrcp.f32 %v7210_v43 }
 0x611   : > { %8104 = vst [vmem:[#allocation61_spill] sm:$0xff] %v7221_v6  ;;  %v7224_v39 = vadd.f32 %v4648_v61, %v4647_v4  ;;  %v4586_v33 = vpop.f32.mrb[72].mxu0  ;;  %2781 = vperm.xlu0 %4814, %v5188_v45   ;;  %v5190_v21 = vpop.eup %5189  ;;  %5197 = vrcp.f32 %v7213_v47  ;;  %v8111_v61 = vld [vmem:[#allocation81_spill] sm:$0xff] }
 0x612   : > { %v4587_v32 = vpop.f32.mrb[73].mxu0  ;;  %5199 = vrcp.f32 %v7221_v6  ;;  %v8123_v47 = vld [vmem:[#allocation13_spill] sm:$0xff] }
 0x613   : > { %8105 = vst [vmem:[#allocation15_spill] sm:$0xff] %v7224_v39  ;;  %v7227_v17 = vadd.f32 %v4587_v32, %v4586_v33  ;;  %v4589_v12 = vpop.f32.mrb[74].mxu0  ;;  %2786 = vperm.xlu1 %4815, %v5190_v21   ;;  %5201 = vrcp.f32 %v7224_v39 }
 0x614   : > { %v4590_v34 = vpop.f32.mrb[75].mxu0  ;;  %5203 = vrcp.f32 %v8109_v9 }
 0x615   : > { %8106 = vst [vmem:[#allocation2_spill] sm:$0xff] %v7227_v17  ;;  %v7230_v5 = vadd.f32 %v4590_v34, %v4589_v12  ;;  %v4650_v14 = vpop.f32.mrb[60].mxu1  ;;  %5205 = vrcp.f32 %v8111_v61  ;;  %v8113_v34 = vld [vmem:[#allocation56_spill] sm:$0xff]  ;;  %v8117_v61 = vld [vmem:[#allocation25_spill] sm:$0xff] }
 0x616   : > { %v4651_v36 = vpop.f32.mrb[61].mxu1  ;;  %5207 = vrcp.f32 %v8113_v34 }
 0x617   : > { %8107 = vst [vmem:[#allocation17_spill] sm:$0xff] %v7230_v5  ;;  %v5192_v57 = vpop.eup %5191  ;;  %v7233_v51 = vadd.f32 %v4651_v36, %v4650_v14  ;;  %v4653_v44 = vpop.f32.mrb[62].mxu1 }
 0x618   : > { %2791 = vperm.xlu0 %4814, %v5192_v57   ;;  %v4654_v13 = vpop.f32.mrb[63].mxu1 }
 0x619   : > { %8108 = vst [vmem:[#allocation52_spill] sm:$0xff] %v7233_v51  ;;  %v5194_v58 = vpop.eup %5193  ;;  %v7236_v2 = vadd.f32 %v4654_v13, %v4653_v44  ;;  %v4592_v27 = vpop.f32.mrb[76].mxu0  ;;  %v8115_v13 = vld [vmem:[#allocation57_spill] sm:$0xff] }
 0x61a   : > { %2796 = vperm.xlu1 %4815, %v5194_v58   ;;  %v4593_v4 = vpop.f32.mrb[77].mxu0  ;;  %v5196_v45 = vpop.eup %5195  ;;  %5209 = vrcp.f32 %v8115_v13 }
 0x61b   : > { %8110 = vst [vmem:[#allocation53_spill] sm:$0xff] %v7236_v2  ;;  %v7239_v33 = vadd.f32 %v4593_v4, %v4592_v27  ;;  %v4595_v21 = vpop.f32.mrb[78].mxu0  ;;  %v5198_v12 = vpop.eup %5197  ;;  %5211 = vrcp.f32 %v8117_v61 }
 0x61c   : > { %3446 = vperm.xlu0 %4814, %v5196_v45   ;;  %v4596_v32 = vpop.f32.mrb[79].mxu0  ;;  %v5200_v44 = vpop.eup %5199 }
 0x61d   : > { %8112 = vst [vmem:[#allocation74_spill] sm:$0xff] %v7239_v33  ;;  %v7242_v14 = vadd.f32 %v4596_v32, %v4595_v21  ;;  %v4656_v36 = vpop.f32.mrb[64].mxu1  ;;  %v5202_v4 = vpop.eup %5201  ;;  %v8119_v21 = vld [vmem:[#allocation41_spill] sm:$0xff] }
 0x61e   : > { %3451 = vperm.xlu1 %4815, %v5198_v12   ;;  %v4657_v57 = vpop.f32.mrb[65].mxu1  ;;  %v5204_v34 = vpop.eup %5203  ;;  %5213 = vrcp.f32 %v8119_v21  ;;  %v8120_v12 = vld [vmem:[#allocation28_spill] sm:$0xff] }
 0x61f   : > { %8114 = vst [vmem:[#allocation75_spill] sm:$0xff] %v7242_v14  ;;  %v7245_v58 = vadd.f32 %v4657_v57, %v4656_v36  ;;  %v4659_v9 = vpop.f32.mrb[66].mxu1  ;;  %v5206_v32 = vpop.eup %5205  ;;  %5215 = vrcp.f32 %v8120_v12  ;;  %v8121_v36 = vld [vmem:[#allocation47_spill] sm:$0xff] }
 0x620   : > { %3456 = vperm.xlu0 %4814, %v5200_v44   ;;  %v4660_v27 = vpop.f32.mrb[67].mxu1  ;;  %v5208_v13 = vpop.eup %5207  ;;  %5217 = vrcp.f32 %v8121_v36 }
 0x621   : > { %8116 = vst [vmem:[#allocation54_spill] sm:$0xff] %v7245_v58  ;;  %v7248_v45 = vadd.f32 %v4660_v27, %v4659_v9  ;;  %5219 = vrcp.f32 %v7227_v17  ;;  %v1417_v44 = vpop.permute.xlu1 %1416 }
 0x622   : > { %3461 = vperm.xlu1 %4815, %v5202_v4   ;;  %5221 = vrcp.f32 %v7230_v5  ;;  %v8122_v5 = vld [vmem:[#allocation36_spill] sm:$0xff] }
 0x623   : > { %8118 = vst [vmem:[#allocation5_spill] sm:$0xff] %v7248_v45  ;;  %5223 = vrcp.f32 %v7239_v33 }
 0x624   : > { %1471 = vperm.xlu0 %4814, %v5204_v34   ;;  %v5210_v57 = vpop.eup %5209  ;;  %5225 = vrcp.f32 %v7242_v14 }
 0x625   : > { %v5212_v9 = vpop.eup %5211  ;;  %v2077_v4 = vpop.permute.xlu1 %2076  ;;  %5227 = vrcp.f32 %v7233_v51 }
 0x626   : > { %1476 = vperm.xlu1 %4815, %v5206_v32   ;;  %5229 = vrcp.f32 %v7236_v2 }
 0x627   : > { %5231 = vrcp.f32 %v7245_v58  ;;  %v1412_v58 = vpop.permute.xlu0 %1411 }
 0x628   : > { %2136 = vperm.xlu0 %4814, %v5208_v13   ;;  %v5214_v27 = vpop.eup %5213  ;;  %5233 = vrcp.f32 %v7248_v45  ;;  %v2154_v45 = vmul.f32 %v6561_v10, %v2077_v4  ;;  %v1489_v12 = vmul.f32 %v8122_v5, %v1412_v58  ;;  %v8124_v10 = vld [vmem:[#allocation9_spill] sm:$0xff] }
 0x629   : > { %v5216_v34 = vpop.eup %5215 }
 0x62a   : > { %2141 = vperm.xlu1 %4815, %v5210_v57   ;;  %v5218_v32 = vpop.eup %5217  ;;  %v2170_v17 = vadd.f32 %v2154_v45, %v1489_v12 }
 0x62b   : > { %v5220_v13 = vpop.eup %5219 }
 0x62c   : > { %1481 = vperm.xlu0 %4814, %v5212_v9   ;;  %v5222_v57 = vpop.eup %5221  ;;  %v2082_v9 = vpop.permute.xlu1 %2081 }
 0x62d   : > { %v5224_v21 = vpop.eup %5223 }
 0x62e   : > { %1486 = vperm.xlu1 %4815, %v5214_v27   ;;  %v5226_v27 = vpop.eup %5225 }
 0x630   : > { %2146 = vperm.xlu0 %4814, %v5216_v34   ;;  %v5228_v34 = vpop.eup %5227  ;;  %v1422_v14 = vpop.permute.xlu1 %1421 }
 0x631   : > { %v5230_v51 = vpop.eup %5229  ;;  %v1491_v4 = vmul.f32 %v8124_v10, %v1422_v14 }
 0x632   : > { %2151 = vperm.xlu1 %4815, %v5218_v32   ;;  %v5232_v32 = vpop.eup %5231 }
 0x633   : > { %v5234_v2 = vpop.eup %5233 }
 0x634   : > { %2801 = vperm.xlu0 %4814, %v5220_v13   ;;  %v1427_v13 = vpop.permute.xlu1 %1426 }
 0x636   : > { %2806 = vperm.xlu1 %4815, %v5222_v57  }
 0x638   : > { %2811 = vperm.xlu0 %4814, %v5224_v21   ;;  %v2087_v33 = vpop.permute.xlu1 %2086  ;;  %v2155_v21 = vmul.f32 %v6563_v1, %v2082_v9 }
 0x63a   : > { %2816 = vperm.xlu1 %4815, %v5226_v27  }
 0x63c   : > { %3466 = vperm.xlu0 %4814, %v5228_v34   ;;  %v2092_v36 = vpop.permute.xlu1 %2091 }
 0x63d   : > { %v2157_v59 = vmul.f32 %v8123_v47, %v2092_v36 }
 0x63e   : > { %3471 = vperm.xlu1 %4815, %v5230_v51   ;;  %v1490_v51 = vmul.f32 %v6551_v23, %v1417_v44 }
 0x640   : > { %3476 = vperm.xlu0 %4814, %v5232_v32   ;;  %v2171_v6 = vadd.f32 %v2155_v21, %v1490_v51 }
 0x642   : > { %3481 = vperm.xlu1 %4815, %v5234_v2   ;;  %v2156_v2 = vmul.f32 %v6571_v20, %v2087_v33  ;;  %v7277_v20 = vld [vmem:[%s7594_s4] ss:$0 sm:$0xff] }
 0x64c   : > { %v2742_v57 = vpop.permute.xlu0 %2741 }
 0x64d   : > { %v2819_v34 = vmul.f32 %v7135_v46, %v2742_v57  ;;  %v8125_v46 = vld [vmem:[#allocation50_spill] sm:$0xff] }
 0x64e   : > { %v2747_v61 = vpop.permute.xlu1 %2746  ;;  %v1492_v58 = vmul.f32 %v8125_v46, %v1427_v13 }
 0x64f   : > { %v2820_v39 = vmul.f32 %v7138_v8, %v2747_v61  ;;  %v2835_v1 = vadd.f32 %v2819_v34, %v2170_v17  ;;  %v2172_v61 = vadd.f32 %v2156_v2, %v1491_v4 }
 0x650   : > { %v2173_v17 = vadd.f32 %v2157_v59, %v1492_v58 }
 0x651   : > { %v2836_v47 = vadd.f32 %v2820_v39, %v2171_v6 }
 0x654   : > { %v2752_v27 = vpop.permute.xlu0 %2751 }
 0x655   : > { %v2821_v9 = vmul.f32 %v7145_v48, %v2752_v27 }
 0x656   : > { %v2757_v32 = vpop.permute.xlu1 %2756 }
 0x657   : > { %v2822_v23 = vmul.f32 %v7148_v50, %v2757_v32 }
 0x658   : > { %v3407_v56 = vpop.permute.xlu0 %3406 }
 0x659   : > { %v3484_v5 = vmul.f32 %v7141_v15, %v3407_v56  ;;  %v7283_v15 = vld [vmem:[%s7595_s5] ss:$0 sm:$0xff]  ;;  %v2837_v56 = vadd.f32 %v2821_v9, %v2172_v61  ;;  %v2838_v36 = vadd.f32 %v2822_v23, %v2173_v17 }
 0x65a   : > { %v3412_v8 = vpop.permute.xlu1 %3411 }
 0x65b   : > { %v3500_v33 = vadd.f32 %v3484_v5, %v2835_v1  ;;  %v3485_v14 = vmul.f32 %v7143_v52, %v3412_v8 }
 0x65c   : > { %v3417_v48 = vpop.permute.xlu0 %3416 }
 0x65d   : > { %v3523_v50 = vmul.f32 %v7277_v20, %v3500_v33  ;;  %v3501_v45 = vadd.f32 %v3485_v14, %v2836_v47  ;;  %v3486_v12 = vmul.f32 %v7151_v37, %v3417_v48 }
 0x65e   : > { %v3422_v44 = vpop.permute.xlu1 %3421 }
 0x65f   : > { %v3546_v6 = vadd.f32 %v7283_v15, %v3523_v50  ;;  %v3524_v39 = vmul.f32 %v7277_v20, %v3501_v45  ;;  %v3502_v52 = vadd.f32 %v3486_v12, %v2837_v56  ;;  %v3487_v59 = vmul.f32 %v7154_v49, %v3422_v44 }
 0x660   : > { %v1432_v13 = vpop.permute.xlu0 %1431 }
 0x661   : > { %v3578_v57 = vmin.f32 %v3546_v6, 0.0  ;;  %v3547_v21 = vadd.f32 %v7283_v15, %v3524_v39  ;;  %v3525_v27 = vmul.f32 %v7277_v20, %v3502_v52  ;;  %v3503_v34 = vadd.f32 %v3487_v59, %v2838_v36 }
 0x662   : > { %v1437_v51 = vpop.permute.xlu1 %1436  ;;  %v1493_v44 = vmul.f32 %v8086_v0, %v1432_v13  ;;  %vm3562_vm1 = vcmp.gt.f32.partialorder %v3546_v6, 0.0 }
 0x663   : > { %v3594_v32 = vmul.f32 1.442695, %v3578_v57  ;;  %v3579_v2 = vmin.f32 %v3547_v21, 0.0  ;;  %v3548_v37 = vadd.f32 %v7283_v15, %v3525_v27  ;;  %v3526_v10 = vmul.f32 %v7277_v20, %v3503_v34 }
 0x664   : > { %v2097_v4 = vpop.permute.xlu0 %2096  ;;  %vm3563_vm2 = vcmp.gt.f32.partialorder %v3547_v21, 0.0 }
 0x665   : > { %5235 = vpow2.f32 %v3594_v32  ;;  %v3596_v1 = vmul.f32 1.442695, %v3579_v2  ;;  %v3580_v9 = vmin.f32 %v3548_v37, 0.0  ;;  %v3549_v49 = vadd.f32 %v7283_v15, %v3526_v10 }
 0x666   : > { %v2102_v5 = vpop.permute.xlu1 %2101  ;;  %v2158_v50 = vmul.f32 %v8088_v16, %v2097_v4  ;;  %vm3564_vm3 = vcmp.gt.f32.partialorder %v3548_v37, 0.0  ;;  %v1494_v16 = vmul.f32 %v8087_v22, %v1437_v51 }
 0x667   : > { %5237 = vpow2.f32 %v3596_v1  ;;  %v3598_v46 = vmul.f32 1.442695, %v3580_v9  ;;  %v3581_v58 = vmin.f32 %v3549_v49, 0.0  ;;  %v2159_v39 = vmul.f32 %v8089_v42, %v2102_v5 }
 0x668   : > { %v1442_v23 = vpop.permute.xlu0 %1441  ;;  %v2174_v10 = vadd.f32 %v2158_v50, %v1493_v44  ;;  %vm3565_vm4 = vcmp.gt.f32.partialorder %v3549_v49, 0.0 }
 0x669   : > { %5239 = vpow2.f32 %v3598_v46  ;;  %v3600_v8 = vmul.f32 1.442695, %v3581_v58  ;;  %v1495_v42 = vmul.f32 %v8090_v25, %v1442_v23 }
 0x66a   : > { %v1447_v61 = vpop.permute.xlu1 %1446 }
 0x66b   : > { %5241 = vpow2.f32 %v3600_v8 }
 0x66c   : > { %v2107_v47 = vpop.permute.xlu0 %2106 }
 0x66d   : > { %v2160_v0 = vmul.f32 %v8092_v62, %v2107_v47  ;;  %v1496_v62 = vmul.f32 %v8091_v7, %v1447_v61 }
 0x66e   : > { %v2112_v33 = vpop.permute.xlu1 %2111 }
 0x66f   : > { %v5236_v14 = vpop.eup %5235  ;;  %v2176_v47 = vadd.f32 %v2160_v0, %v1495_v42 }
 0x670   : > { %v2762_v17 = vpop.permute.xlu0 %2761  ;;  %v4314_v48 = vadd.f32 -1.0, %v5236_v14 }
 0x671   : > { %v5238_v56 = vpop.eup %5237  ;;  %v2823_v52 = vmul.f32 %v7157_v40, %v2762_v17  ;;  %v2175_v40 = vadd.f32 %v2159_v39, %v1494_v16 }
 0x672   : > { %v2767_v45 = vpop.permute.xlu1 %2766  ;;  %v4315_v12 = vadd.f32 -1.0, %v5238_v56  ;;  %v3642_v57 = vsel %vm3562_vm1, %v3546_v6, %v4314_v48  ;;  %v2161_v6 = vmul.f32 %v8093_v11, %v2112_v33 }
 0x673   : > { %v5240_v36 = vpop.eup %5239  ;;  %v2824_v13 = vmul.f32 %v7160_v18, %v2767_v45 }
 0x674   : > { %v2772_v59 = vpop.permute.xlu0 %2771  ;;  %v3643_v27 = vsel %vm3563_vm2, %v3547_v21, %v4315_v12  ;;  %v4316_v34 = vadd.f32 -1.0, %v5240_v36  ;;  %v2839_v21 = vadd.f32 %v2823_v52, %v2174_v10  ;;  %v2177_v11 = vadd.f32 %v2161_v6, %v1496_v62 }
 0x675   : > { %v3658_v32 = vpack.c.bf16 %v3643_v27, %v3642_v57  ;;  %v5242_v2 = vpop.eup %5241  ;;  %v2825_v22 = vmul.f32 %v7169_v3, %v2772_v59  ;;  %v2840_v14 = vadd.f32 %v2824_v13, %v2175_v40  ;;  %vm3833_vm2 = vcmask 130048  }
 0x676   : > { %v2777_v4 = vpop.permute.xlu1 %2776  ;;  %v4317_v1 = vadd.f32 -1.0, %v5242_v2  ;;  %v3644_v5 = vsel %vm3564_vm3, %v3548_v37, %v4316_v34 }
 0x677   : > { %4717 = vmatprep.mubr.msk.bf16.mxu0 %vm1230_vm0, %v3658_v32  ;;  %v2826_v18 = vmul.f32 %v7172_v24, %v2777_v4 }
 0x678   : > { %v3427_v9 = vpop.permute.xlu0 %3426  ;;  %v3645_v46 = vsel %vm3565_vm4, %v3549_v49, %v4317_v1  ;;  %v2841_v49 = vadd.f32 %v2825_v22, %v2176_v47 }
 0x679   : > { %v3488_v51 = vmul.f32 %v7163_v63, %v3427_v9  ;;  %v3659_v58 = vpack.c.bf16 %v3645_v46, %v3644_v5  ;;  %v2842_v33 = vadd.f32 %v2826_v18, %v2177_v11 }
 0x67a   : > { %v3432_v8 = vpop.permute.xlu1 %3431 }
 0x67b   : > { %v3504_v17 = vadd.f32 %v3488_v51, %v2839_v21  ;;  %v3489_v25 = vmul.f32 %v7166_v38, %v3432_v8  ;;  %4718 = vmatmul.mubr.msk.bf16.vlgmr.msra.gmra.mrb[80].mxu0 %vm1230_vm0, %v3659_v58 }
 0x67c   : > { %v3437_v37 = vpop.permute.xlu0 %3436 }
 0x67d   : > { %v3527_v3 = vmul.f32 %v7277_v20, %v3504_v17  ;;  %v3505_v23 = vadd.f32 %v3489_v25, %v2840_v14  ;;  %v3490_v63 = vmul.f32 %v7175_v55, %v3437_v37 }
 0x67e   : > { %v3442_v7 = vpop.permute.xlu1 %3441 }
 0x67f   : > { %v3550_v24 = vadd.f32 %v7283_v15, %v3527_v3  ;;  %v3528_v61 = vmul.f32 %v7277_v20, %v3505_v23  ;;  %v3506_v48 = vadd.f32 %v3490_v63, %v2841_v49  ;;  %v3491_v56 = vmul.f32 %v7178_v35, %v3442_v7 }
 0x680   : > { %v1452_v38 = vpop.permute.xlu0 %1451 }
 0x681   : > { %v3582_v50 = vmin.f32 %v3550_v24, 0.0  ;;  %v3551_v45 = vadd.f32 %v7283_v15, %v3528_v61  ;;  %v3529_v12 = vmul.f32 %v7277_v20, %v3506_v48  ;;  %v3507_v36 = vadd.f32 %v3491_v56, %v2842_v33  ;;  %v8126_v56 = vld [vmem:[#allocation16_spill] sm:$0xff] }
 0x682   : > { %v1457_v44 = vpop.permute.xlu1 %1456  ;;  %vm3566_vm5 = vcmp.gt.f32.partialorder %v3550_v24, 0.0  ;;  %v1497_v25 = vmul.f32 %v8094_v29, %v1452_v38 }
 0x683   : > { %v3602_v39 = vmul.f32 1.442695, %v3582_v50  ;;  %v3583_v52 = vmin.f32 %v3551_v45, 0.0  ;;  %v3552_v55 = vadd.f32 %v7283_v15, %v3529_v12  ;;  %v3530_v59 = vmul.f32 %v7277_v20, %v3507_v36  ;;  %v8127_v50 = vld [vmem:[#allocation60_spill] sm:$0xff] }
 0x684   : > { %v2117_v57 = vpop.permute.xlu0 %2116  ;;  %vm3567_vm6 = vcmp.gt.f32.partialorder %v3551_v45, 0.0  ;;  %v1498_v3 = vmul.f32 %v8095_v31, %v1457_v44  ;;  %v8128_v44 = vld [vmem:[#allocation63_spill] sm:$0xff] }
 0x685   : > { %5243 = vpow2.f32 %v3602_v39  ;;  %v3604_v27 = vmul.f32 1.442695, %v3583_v52  ;;  %v3584_v34 = vmin.f32 %v3552_v55, 0.0  ;;  %v3553_v35 = vadd.f32 %v7283_v15, %v3530_v59 }
 0x686   : > { %v2122_v32 = vpop.permute.xlu1 %2121  ;;  %v2162_v8 = vmul.f32 %v8096_v28, %v2117_v57  ;;  %vm3568_vm7 = vcmp.gt.f32.partialorder %v3552_v55, 0.0  ;;  %v8129_v57 = vld [vmem:[#allocation61_spill] sm:$0xff] }
 0x687   : > { %5245 = vpow2.f32 %v3604_v27  ;;  %v3606_v2 = vmul.f32 1.442695, %v3584_v34  ;;  %v3585_v16 = vmin.f32 %v3553_v35, 0.0  ;;  %v2163_v14 = vmul.f32 %v8097_v30, %v2122_v32 }
 0x688   : > { %v1462_v10 = vpop.permute.xlu0 %1461  ;;  %vm3569_vm8 = vcmp.gt.f32.partialorder %v3553_v35, 0.0  ;;  %v2178_v33 = vadd.f32 %v2162_v8, %v1497_v25 }
 0x689   : > { %5247 = vpow2.f32 %v3606_v2  ;;  %v3608_v4 = vmul.f32 1.442695, %v3585_v16  ;;  %v2179_v7 = vadd.f32 %v2163_v14, %v1498_v3  ;;  %v1499_v29 = vmul.f32 %v8098_v41, %v1462_v10  ;;  %v8130_v2 = vld [vmem:[#allocation15_spill] sm:$0xff] }
 0x68a   : > { %v1467_v1 = vpop.permute.xlu1 %1466 }
 0x68b   : > { %5249 = vpow2.f32 %v3608_v4  ;;  %v1500_v38 = vmul.f32 %v8126_v56, %v1467_v1 }
 0x68c   : > { %v2127_v0 = vpop.permute.xlu0 %2126 }
 0x68d   : > { %v2164_v28 = vmul.f32 %v8100_v53, %v2127_v0 }
 0x68e   : > { %v2132_v40 = vpop.permute.xlu1 %2131 }
 0x68f   : > { %v5244_v13 = vpop.eup %5243  ;;  %v2180_v12 = vadd.f32 %v2164_v28, %v1499_v29 }
 0x690   : > { %v4318_v42 = vadd.f32 -1.0, %v5244_v13  ;;  %v2782_v5 = vpop.permute.xlu0 %2781 }
 0x691   : > { %v5246_v6 = vpop.eup %5245  ;;  %v2827_v11 = vmul.f32 %v7204_v60, %v2782_v5 }
 0x692   : > { %v4319_v21 = vadd.f32 -1.0, %v5246_v6  ;;  %v3646_v46 = vsel %vm3566_vm5, %v3550_v24, %v4318_v42  ;;  %v2787_v62 = vpop.permute.xlu1 %2786  ;;  %v2165_v24 = vmul.f32 %v8101_v19, %v2132_v40 }
 0x693   : > { %v5248_v9 = vpop.eup %5247  ;;  %v2828_v30 = vmul.f32 %v7207_v54, %v2787_v62  ;;  %v2843_v60 = vadd.f32 %v2827_v11, %v2178_v33 }
 0x694   : > { %v3647_v22 = vsel %vm3567_vm6, %v3551_v45, %v4319_v21  ;;  %v4320_v51 = vadd.f32 -1.0, %v5248_v9  ;;  %v2181_v39 = vadd.f32 %v2165_v24, %v1500_v38 }
 0x695   : > { %v5250_v58 = vpop.eup %5249  ;;  %v3660_v18 = vpack.c.bf16 %v3647_v22, %v3646_v46  ;;  %v2844_v54 = vadd.f32 %v2828_v30, %v2179_v7  ;;  %v8132_v7 = vld [vmem:[#allocation80_spill] sm:$0xff] }
 0x696   : > { %v4321_v47 = vadd.f32 -1.0, %v5250_v58  ;;  %v3648_v37 = vsel %vm3568_vm7, %v3552_v55, %v4320_v51 }
 0x697   : > { %v2792_v17 = vpop.permute.xlu0 %2791  ;;  %4721 = vmatprep.mubr.msk.bf16.mxu0 %vm1230_vm0, %v3660_v18 }
 0x698   : > { %v3649_v49 = vsel %vm3569_vm8, %v3553_v35, %v4321_v47  ;;  %v2829_v48 = vmul.f32 %v7215_v26, %v2792_v17 }
 0x699   : > { %v2797_v23 = vpop.permute.xlu1 %2796  ;;  %v3661_v63 = vpack.c.bf16 %v3649_v49, %v3648_v37 }
 0x69a   : > { %v2830_v45 = vmul.f32 %v8127_v50, %v2797_v23  ;;  %v2845_v55 = vadd.f32 %v2829_v48, %v2180_v12  ;;  %v8131_v23 = vld [vmem:[#allocation56_spill] sm:$0xff]  ;;  %v8135_v12 = vld [vmem:[#allocation81_spill] sm:$0xff] }
 0x69b   : > { %v3447_v61 = vpop.permute.xlu0 %3446  ;;  %4722 = vmatmul.mubr.msk.bf16.gmra.mrb[84].mxu0 %vm1230_vm0, %v3661_v63 }
 0x69c   : > { %v3492_v31 = vmul.f32 %v7210_v43, %v3447_v61  ;;  %v2846_v27 = vadd.f32 %v2830_v45, %v2181_v39  ;;  %v8133_v61 = vld [vmem:[#allocation57_spill] sm:$0xff]  ;;  %v8136_v39 = vld [vmem:[#allocation28_spill] sm:$0xff] }
 0x69d   : > { %v3452_v53 = vpop.permute.xlu1 %3451 }
 0x69e   : > { %v3508_v36 = vadd.f32 %v3492_v31, %v2843_v60  ;;  %v3493_v19 = vmul.f32 %v8128_v44, %v3452_v53  ;;  %v8134_v60 = vld [vmem:[#allocation2_spill] sm:$0xff] }
 0x69f   : > { %v3457_v52 = vpop.permute.xlu0 %3456 }
 0x6a0   : > { %v3531_v41 = vmul.f32 %v7277_v20, %v3508_v36  ;;  %v3509_v59 = vadd.f32 %v3493_v19, %v2844_v54  ;;  %v3494_v26 = vmul.f32 %v8129_v57, %v3457_v52  ;;  %v8138_v57 = vld [vmem:[#allocation25_spill] sm:$0xff] }
 0x6a1   : > { %v3462_v43 = vpop.permute.xlu1 %3461 }
 0x6a2   : > { %v3554_v34 = vadd.f32 %v7283_v15, %v3531_v41  ;;  %v3532_v35 = vmul.f32 %v7277_v20, %v3509_v59  ;;  %v3510_v32 = vadd.f32 %v3494_v26, %v2845_v55  ;;  %v3495_v16 = vmul.f32 %v8130_v2, %v3462_v43  ;;  %v8137_v55 = vld [vmem:[#allocation17_spill] sm:$0xff] }
 0x6a3   : > { %v1472_v10 = vpop.permute.xlu0 %1471 }
 0x6a4   : > { %v3586_v4 = vmin.f32 %v3554_v34, 0.0  ;;  %v3555_v1 = vadd.f32 %v7283_v15, %v3532_v35  ;;  %v3533_v0 = vmul.f32 %v7277_v20, %v3510_v32  ;;  %v3511_v13 = vadd.f32 %v3495_v16, %v2846_v27  ;;  %v8139_v27 = vld [vmem:[#allocation47_spill] sm:$0xff]  ;;  %v8140_v16 = vld [vmem:[#allocation74_spill] sm:$0xff] }
 0x6a5   : > { %v1477_v40 = vpop.permute.xlu1 %1476  ;;  %v1501_v24 = vmul.f32 %v8132_v7, %v1472_v10  ;;  %vm3570_vm9 = vcmp.gt.f32.partialorder %v3554_v34, 0.0 }
 0x6a6   : > { %v3610_v42 = vmul.f32 1.442695, %v3586_v4  ;;  %v3587_v6 = vmin.f32 %v3555_v1, 0.0  ;;  %v3556_v21 = vadd.f32 %v7283_v15, %v3533_v0  ;;  %v3534_v9 = vmul.f32 %v7277_v20, %v3511_v13  ;;  %v8141_v4 = vld [vmem:[#allocation52_spill] sm:$0xff]  ;;  %v8142_v13 = vld [vmem:[#allocation41_spill] sm:$0xff] }
 0x6a7   : > { %v2137_v5 = vpop.permute.xlu0 %2136  ;;  %vm3571_vm10 = vcmp.gt.f32.partialorder %v3555_v1, 0.0  ;;  %v1502_v54 = vmul.f32 %v8135_v12, %v1477_v40 }
 0x6a8   : > { %5251 = vpow2.f32 %v3610_v42  ;;  %v3612_v46 = vmul.f32 1.442695, %v3587_v6  ;;  %v3588_v22 = vmin.f32 %v3556_v21, 0.0  ;;  %v3557_v51 = vadd.f32 %v7283_v15, %v3534_v9  ;;  %v8143_v42 = vld [vmem:[#allocation75_spill] sm:$0xff] }
 0x6a9   : > { %v2142_v58 = vpop.permute.xlu1 %2141  ;;  %v2166_v63 = vmul.f32 %v8131_v23, %v2137_v5  ;;  %vm3572_vm11 = vcmp.gt.f32.partialorder %v3556_v21, 0.0  ;;  %v8146_v23 = vld [vmem:[#allocation5_spill] sm:$0xff] }
 0x6aa   : > { %5253 = vpow2.f32 %v3612_v46  ;;  %v3614_v62 = vmul.f32 1.442695, %v3588_v22  ;;  %v3589_v18 = vmin.f32 %v3557_v51, 0.0  ;;  %v2167_v29 = vmul.f32 %v8133_v61, %v2142_v58  ;;  %v8144_v58 = vld [vmem:[#allocation53_spill] sm:$0xff] }
 0x6ab   : > { %v1482_v8 = vpop.permute.xlu0 %1481  ;;  %v2182_v36 = vadd.f32 %v2166_v63, %v1501_v24  ;;  %vm3573_vm12 = vcmp.gt.f32.partialorder %v3557_v51, 0.0 }
 0x6ac   : > { %5255 = vpow2.f32 %v3614_v62  ;;  %v3616_v47 = vmul.f32 1.442695, %v3589_v18  ;;  %v2183_v59 = vadd.f32 %v2167_v29, %v1502_v54  ;;  %v1503_v26 = vmul.f32 %v8138_v57, %v1482_v8 }
 0x6ad   : > { %v1487_v14 = vpop.permute.xlu1 %1486 }
 0x6ae   : > { %5257 = vpow2.f32 %v3616_v47  ;;  %v1504_v40 = vmul.f32 %v8142_v13, %v1487_v14 }
 0x6af   : > { %v2147_v17 = vpop.permute.xlu0 %2146 }
 0x6b0   : > { %v2168_v52 = vmul.f32 %v8136_v39, %v2147_v17  ;;  %v8145_v17 = vld [vmem:[#allocation54_spill] sm:$0xff] }
 0x6b1   : > { %v2152_v25 = vpop.permute.xlu1 %2151 }
 0x6b2   : > { %v5252_v11 = vpop.eup %5251  ;;  %v2169_v43 = vmul.f32 %v8139_v27, %v2152_v25  ;;  %v2184_v5 = vadd.f32 %v2168_v52, %v1503_v26 }
 0x6b3   : > { %v2802_v37 = vpop.permute.xlu0 %2801  ;;  %v4322_v49 = vadd.f32 -1.0, %v5252_v11 }
 0x6b4   : > { %v5254_v3 = vpop.eup %5253  ;;  %v2831_v48 = vmul.f32 %v8134_v60, %v2802_v37  ;;  %v2185_v18 = vadd.f32 %v2169_v43, %v1504_v40  ;;  %v4330_v43 = vld [vmem:[%s7597_s7] ss:$0 sm:$0xff] }
 0x6b5   : > { %v2807_v33 = vpop.permute.xlu1 %2806  ;;  %v4323_v28 = vadd.f32 -1.0, %v5254_v3  ;;  %v3650_v56 = vsel %vm3570_vm9, %v3554_v34, %v4322_v49 }
 0x6b6   : > { %v5256_v30 = vpop.eup %5255  ;;  %v2832_v41 = vmul.f32 %v8137_v55, %v2807_v33  ;;  %v2847_v34 = vadd.f32 %v2831_v48, %v2182_v36 }
 0x6b7   : > { %v2812_v31 = vpop.permute.xlu0 %2811  ;;  %v3651_v38 = vsel %vm3571_vm10, %v3555_v1, %v4323_v28  ;;  %v4324_v50 = vadd.f32 -1.0, %v5256_v30 }
 0x6b8   : > { %v3662_v45 = vpack.c.bf16 %v3651_v38, %v3650_v56  ;;  %v5258_v53 = vpop.eup %5257  ;;  %v2833_v10 = vmul.f32 %v8140_v16, %v2812_v31  ;;  %v2848_v46 = vadd.f32 %v2832_v41, %v2183_v59 }
 0x6b9   : > { %v2817_v44 = vpop.permute.xlu1 %2816  ;;  %v4325_v19 = vadd.f32 -1.0, %v5258_v53  ;;  %v3652_v32 = vsel %vm3572_vm11, %v3556_v21, %v4324_v50 }
 0x6ba   : > { %4725 = vmatprep.mubr.msk.bf16.mxu1 %vm1230_vm0, %v3662_v45  ;;  %v2834_v6 = vmul.f32 %v8143_v42, %v2817_v44  ;;  %v4850_v44 = vld [vmem:[%s7598_s8] sm:$0xff]  }
 0x6bb   : > { %v3467_v35 = vpop.permute.xlu0 %3466  ;;  %v3653_v2 = vsel %vm3573_vm12, %v3557_v51, %v4325_v19  ;;  %v2849_v51 = vadd.f32 %v2833_v10, %v2184_v5  ;;  %4733 = vmatprep.subr.bf16.mxu0 %v4850_v44 }
 0x6bc   : > { %v3496_v1 = vmul.f32 %v8141_v4, %v3467_v35  ;;  %v3663_v0 = vpack.c.bf16 %v3653_v2, %v3652_v32  ;;  %v2850_v11 = vadd.f32 %v2834_v6, %v2185_v18  ;;  %4734 = vmatpush3.bf16.msra.mxu0 %v4850_v44 }
 0x6bd   : > { %v3472_v9 = vpop.permute.xlu1 %3471 }
 0x6be   : > { %v3512_v22 = vadd.f32 %v3496_v1, %v2847_v34  ;;  %v3497_v62 = vmul.f32 %v8144_v58, %v3472_v9  ;;  %4726 = vmatmul.mubr.msk.bf16.vlgmr.msra.gmra.mrb[68].mxu1 %vm1230_vm0, %v3663_v0 }
 0x6bf   : > { %v3477_v21 = vpop.permute.xlu0 %3476 }
 0x6c0   : > { %v3535_v8 = vmul.f32 %v7277_v20, %v3512_v22  ;;  %v3513_v47 = vadd.f32 %v3497_v62, %v2848_v46  ;;  %v3498_v25 = vmul.f32 %v8145_v17, %v3477_v21 }
 0x6c1   : > { %v3482_v14 = vpop.permute.xlu1 %3481 }
 0x6c2   : > { %v3558_v37 = vadd.f32 %v7283_v15, %v3535_v8  ;;  %v3536_v49 = vmul.f32 %v7277_v20, %v3513_v47  ;;  %v3514_v3 = vadd.f32 %v3498_v25, %v2849_v51  ;;  %v3499_v63 = vmul.f32 %v8146_v23, %v3482_v14 }
 0x6c4   : > { %v3590_v33 = vmin.f32 %v3558_v37, 0.0  ;;  %v3559_v28 = vadd.f32 %v7283_v15, %v3536_v49  ;;  %v3537_v30 = vmul.f32 %v7277_v20, %v3514_v3  ;;  %v3515_v7 = vadd.f32 %v3499_v63, %v2850_v11 }
 0x6c5   : > { %vm3574_vm13 = vcmp.gt.f32.partialorder %v3558_v37, 0.0 }
 0x6c6   : > { %v3618_v24 = vmul.f32 1.442695, %v3590_v33  ;;  %v3591_v61 = vmin.f32 %v3559_v28, 0.0  ;;  %v3560_v29 = vadd.f32 %v7283_v15, %v3537_v30  ;;  %v3538_v60 = vmul.f32 %v7277_v20, %v3515_v7 }
 0x6c7   : > { %vm3575_vm14 = vcmp.gt.f32.partialorder %v3559_v28, 0.0 }
 0x6c8   : > { %5259 = vpow2.f32 %v3618_v24  ;;  %v3620_v48 = vmul.f32 1.442695, %v3591_v61  ;;  %v3592_v31 = vmin.f32 %v3560_v29, 0.0  ;;  %v3561_v56 = vadd.f32 %v7283_v15, %v3538_v60 }
 0x6c9   : > { %vm3576_vm15 = vcmp.gt.f32.partialorder %v3560_v29, 0.0 }
 0x6ca   : > { %5261 = vpow2.f32 %v3620_v48  ;;  %v3622_v38 = vmul.f32 1.442695, %v3592_v31  ;;  %v3593_v50 = vmin.f32 %v3561_v56, 0.0  ;;  %vm3577_vm1 = vcmp.gt.f32.partialorder %v3561_v56, 0.0 }
 0x6cc   : > { %5263 = vpow2.f32 %v3622_v38  ;;  %v3624_v45 = vmul.f32 1.442695, %v3593_v50 }
 0x6ce   : > { %5265 = vpow2.f32 %v3624_v45 }
 0x6d2   : > { %v5260_v53 = vpop.eup %5259 }
 0x6d3   : > { %v4326_v12 = vadd.f32 -1.0, %v5260_v53 }
 0x6d4   : > { %v5262_v54 = vpop.eup %5261 }
 0x6d5   : > { %v4327_v36 = vadd.f32 -1.0, %v5262_v54  ;;  %v3654_v19 = vsel %vm3574_vm13, %v3558_v37, %v4326_v12 }
 0x6d6   : > { %v5264_v20 = vpop.eup %5263 }
 0x6d7   : > { %v3655_v39 = vsel %vm3575_vm14, %v3559_v28, %v4327_v36  ;;  %v4328_v15 = vadd.f32 -1.0, %v5264_v20 }
 0x6d8   : > { %v5266_v52 = vpop.eup %5265  ;;  %v3664_v55 = vpack.c.bf16 %v3655_v39, %v3654_v19 }
 0x6d9   : > { %v4329_v41 = vadd.f32 -1.0, %v5266_v52  ;;  %v3656_v59 = vsel %vm3576_vm15, %v3560_v29, %v4328_v15  ;;  %v7440_v29 = vld [vmem:[%s7599_s9] ss:$0 sm:$0xff] }
 0x6da   : > { %4729 = vmatprep.mubr.msk.bf16.mxu1 %vm1230_vm0, %v3664_v55 }
 0x6db   : > { %v3657_v57 = vsel %vm3577_vm1, %v3561_v56, %v4329_v41 }
 0x6dc   : > { %v3665_v26 = vpack.c.bf16 %v3657_v57, %v3656_v59  ;;  %v7449_v59 = vld [vmem:[%s7600_s10] ss:$0 sm:$0xff] }
 0x6de   : > { %4730 = vmatmul.mubr.msk.bf16.gmra.mrb[72].mxu1 %vm1230_vm0, %v3665_v26 }
 0x74e   : > { %v4719_v27 = vpop.f32.mrb[80].mxu0 }
 0x74f   : > { %v3747_v34 = vpop.f32.mrb[81].mxu0  ;;  %v7387_v4 = vadd.f32 %v4719_v27, %v4330_v43 }
 0x750   : > { %v4720_v35 = vpop.f32.mrb[82].mxu0  ;;  %v7383_v16 = vadd.f32 %v4330_v43, %v3747_v34 }
 0x751   : > { %v7381_v32 = vadd.f32 %v4720_v35, %v4330_v43  ;;  %v3750_v2 = vpop.f32.mrb[83].mxu0  ;;  %v7454_v35 = vld [vmem:[%s7601_s11] ss:$0 sm:$0xff] }
 0x752   : > { %v7385_v10 = vadd.f32 %v4330_v43, %v3750_v2 }
 0x753   : > { %v3811_v0 = vpack.c.bf16 %v7381_v32, %v7387_v4 }
 0x754   : > { %v3810_v1 = vpack.c.bf16 %v7385_v10, %v7383_v16 }
 0x756   : > { %4735 = vmatprep.mubr.msk.bf16.mxu0 %vm3833_vm2, %v3810_v1 }
 0x757   : > { %4736 = vmatmul.mubr.msk.bf16.vlgmr.msra.gmra.mrb[88].mxu0 %vm3833_vm2, %v3811_v0 }
 0x76e   : > { %v4723_v13 = vpop.f32.mrb[84].mxu0 }
 0x76f   : > { %v3763_v40 = vpop.f32.mrb[85].mxu0  ;;  %v7401_v22 = vadd.f32 %v4723_v13, %v4330_v43 }
 0x770   : > { %v4724_v42 = vpop.f32.mrb[86].mxu0  ;;  %v7397_v5 = vadd.f32 %v4330_v43, %v3763_v40 }
 0x771   : > { %v7395_v6 = vadd.f32 %v4724_v42, %v4330_v43  ;;  %v3766_v9 = vpop.f32.mrb[87].mxu0 }
 0x772   : > { %v7399_v46 = vadd.f32 %v4330_v43, %v3766_v9 }
 0x773   : > { %v3813_v62 = vpack.c.bf16 %v7395_v6, %v7401_v22 }
 0x774   : > { %v3812_v58 = vpack.c.bf16 %v7399_v46, %v7397_v5 }
 0x776   : > { %4739 = vmatprep.mubr.msk.bf16.mxu0 %vm3833_vm2, %v3812_v58 }
 0x777   : > { %4740 = vmatmul.mubr.msk.bf16.gmra.mrb[92].mxu0 %vm3833_vm2, %v3813_v62 }
 0x791   : > { %v4727_v18 = vpop.f32.mrb[68].mxu1 }
 0x792   : > { %v3779_v21 = vpop.f32.mrb[69].mxu1  ;;  %v7415_v11 = vadd.f32 %v4727_v18, %v4330_v43 }
 0x793   : > { %v4728_v51 = vpop.f32.mrb[70].mxu1  ;;  %v7411_v17 = vadd.f32 %v4330_v43, %v3779_v21 }
 0x794   : > { %v7409_v8 = vadd.f32 %v4728_v51, %v4330_v43  ;;  %v3782_v47 = vpop.f32.mrb[71].mxu1 }
 0x795   : > { %v7413_v25 = vadd.f32 %v4330_v43, %v3782_v47 }
 0x796   : > { %v3815_v37 = vpack.c.bf16 %v7409_v8, %v7415_v11 }
 0x797   : > { %v3814_v14 = vpack.c.bf16 %v7413_v25, %v7411_v17 }
 0x799   : > { %4743 = vmatprep.mubr.msk.bf16.mxu0 %vm3833_vm2, %v3814_v14 }
 0x79a   : > { %4744 = vmatmul.mubr.msk.bf16.gmra.mrb[96].mxu0 %vm3833_vm2, %v3815_v37 }
 0x7b1   : > { %v4731_v49 = vpop.f32.mrb[72].mxu1 }
 0x7b2   : > { %v3795_v3 = vpop.f32.mrb[73].mxu1  ;;  %v7429_v7 = vadd.f32 %v4731_v49, %v4330_v43 }
 0x7b3   : > { %v4732_v23 = vpop.f32.mrb[74].mxu1  ;;  %v7425_v28 = vadd.f32 %v4330_v43, %v3795_v3 }
 0x7b4   : > { %v7423_v63 = vadd.f32 %v4732_v23, %v4330_v43  ;;  %v3798_v33 = vpop.f32.mrb[75].mxu1 }
 0x7b5   : > { %v7427_v30 = vadd.f32 %v4330_v43, %v3798_v33 }
 0x7b6   : > { %v3817_v61 = vpack.c.bf16 %v7423_v63, %v7429_v7 }
 0x7b7   : > { %v3816_v24 = vpack.c.bf16 %v7427_v30, %v7425_v28 }
 0x7b9   : > { %4747 = vmatprep.mubr.msk.bf16.mxu0 %vm3833_vm2, %v3816_v24 }
 0x7ba   : > { %4748 = vmatmul.mubr.msk.bf16.gmra.mrb[100].mxu0 %vm3833_vm2, %v3817_v61 }
 0x82a   : > { %v4737_v60 = vpop.f32.mrb[88].mxu0 }
 0x82b   : > { %v3901_v48 = vadd.f32 %v4737_v60, %v7440_v29  ;;  %v3892_v31 = vpop.f32.mrb[89].mxu0 }
 0x82c   : > { %v3893_v56 = vadd.f32 %v7440_v29, %v3892_v31  ;;  %v4738_v38 = vpop.f32.mrb[90].mxu0 }
 0x82d   : > { %v3973_v50 = vmin.f32 %v3901_v48, 0.0  ;;  %v3904_v45 = vadd.f32 %v4738_v38, %v7440_v29  ;;  %v3895_v53 = vpop.f32.mrb[91].mxu0  ;;  %vm3957_vm0 = vcmp.gt.f32.partialorder %v3901_v48, 0.0 }
 0x82e   : > { %v3971_v12 = vmin.f32 %v3893_v56, 0.0  ;;  %v3896_v54 = vadd.f32 %v7440_v29, %v3895_v53  ;;  %vm3955_vm3 = vcmp.gt.f32.partialorder %v3893_v56, 0.0 }
 0x82f   : > { %v3991_v36 = vmul.f32 1.442695, %v3973_v50  ;;  %v3974_v44 = vmin.f32 %v3904_v45, 0.0  ;;  %vm3958_vm4 = vcmp.gt.f32.partialorder %v3904_v45, 0.0 }
 0x830   : > { %v3987_v20 = vmul.f32 1.442695, %v3971_v12  ;;  %v3972_v19 = vmin.f32 %v3896_v54, 0.0  ;;  %vm3956_vm5 = vcmp.gt.f32.partialorder %v3896_v54, 0.0 }
 0x831   : > { %5267 = vpow2.f32 %v3991_v36  ;;  %v3993_v39 = vmul.f32 1.442695, %v3974_v44 }
 0x832   : > { %5269 = vpow2.f32 %v3987_v20  ;;  %v3989_v15 = vmul.f32 1.442695, %v3972_v19 }
 0x833   : > { %5271 = vpow2.f32 %v3993_v39 }
 0x834   : > { %5273 = vpow2.f32 %v3989_v15 }
 0x83b   : > { %v5268_v52 = vpop.eup %5267 }
 0x83c   : > { %v5270_v55 = vpop.eup %5269  ;;  %v4353_v41 = vadd.f32 -1.0, %v5268_v52 }
 0x83d   : > { %v5272_v57 = vpop.eup %5271  ;;  %v4351_v26 = vadd.f32 -1.0, %v5270_v55 }
 0x83e   : > { %v5274_v27 = vpop.eup %5273  ;;  %v4037_v43 = vsel %vm3957_vm0, %v3901_v48, %v4353_v41  ;;  %v4354_v34 = vadd.f32 -1.0, %v5272_v57 }
 0x83f   : > { %v4060_v2 = vmul.f32 %v7449_v59, %v4037_v43  ;;  %v4035_v1 = vsel %vm3955_vm3, %v3893_v56, %v4351_v26  ;;  %v4352_v0 = vadd.f32 -1.0, %v5274_v27  ;;  %vm4177_vm3 = vcmask 195584  }
 0x840   : > { %v4038_v13 = vsel %vm3958_vm4, %v3904_v45, %v4354_v34  ;;  %v4058_v40 = vmul.f32 %v7449_v59, %v4035_v1 }
 0x841   : > { %v4061_v42 = vmul.f32 %v7449_v59, %v4038_v13  ;;  %v4036_v9 = vsel %vm3956_vm5, %v3896_v54, %v4352_v0  ;;  %v4083_v58 = vadd.f32 %v7454_v35, %v4060_v2 }
 0x842   : > { %v4059_v62 = vmul.f32 %v7449_v59, %v4036_v9  ;;  %v4081_v21 = vadd.f32 %v7454_v35, %v4058_v40 }
 0x843   : > { %4117 = vrot.lane.b32.xlu0 %v4083_v58, %s5331_s15  ;;  %v4084_v18 = vadd.f32 %v7454_v35, %v4061_v42 }
 0x844   : > { %v4082_v51 = vadd.f32 %v7454_v35, %v4059_v62 }
 0x845   : > { %4119 = vrot.lane.b32.xlu1 %v4084_v18, %s5331_s15 }
 0x847   : > { %4113 = vrot.lane.b32.xlu0 %v4081_v21, %s5331_s15 }
 0x849   : > { %4115 = vrot.lane.b32.xlu1 %v4082_v51, %s5331_s15 }
 0x84a   : > { %v4741_v47 = vpop.f32.mrb[92].mxu0 }
 0x84b   : > { %v3917_v14 = vadd.f32 %v4741_v47, %v7440_v29  ;;  %v3908_v37 = vpop.f32.mrb[93].mxu0 }
 0x84c   : > { %v3909_v49 = vadd.f32 %v7440_v29, %v3908_v37  ;;  %v4742_v3 = vpop.f32.mrb[94].mxu0 }
 0x84d   : > { %v3977_v23 = vmin.f32 %v3917_v14, 0.0  ;;  %v3920_v33 = vadd.f32 %v4742_v3, %v7440_v29  ;;  %v3911_v24 = vpop.f32.mrb[95].mxu0  ;;  %vm3961_vm6 = vcmp.gt.f32.partialorder %v3917_v14, 0.0 }
 0x84e   : > { %v3975_v61 = vmin.f32 %v3909_v49, 0.0  ;;  %v3912_v60 = vadd.f32 %v7440_v29, %v3911_v24  ;;  %vm3959_vm7 = vcmp.gt.f32.partialorder %v3909_v49, 0.0 }
 0x84f   : > { %v3999_v48 = vmul.f32 1.442695, %v3977_v23  ;;  %v3978_v31 = vmin.f32 %v3920_v33, 0.0  ;;  %vm3962_vm8 = vcmp.gt.f32.partialorder %v3920_v33, 0.0 }
 0x850   : > { %v3995_v56 = vmul.f32 1.442695, %v3975_v61  ;;  %v3976_v38 = vmin.f32 %v3912_v60, 0.0  ;;  %vm3960_vm9 = vcmp.gt.f32.partialorder %v3912_v60, 0.0 }
 0x851   : > { %5275 = vpow2.f32 %v3999_v48  ;;  %v4001_v50 = vmul.f32 1.442695, %v3978_v31 }
 0x852   : > { %5277 = vpow2.f32 %v3995_v56  ;;  %v3997_v45 = vmul.f32 1.442695, %v3976_v38 }
 0x853   : > { %5279 = vpow2.f32 %v4001_v50 }
 0x854   : > { %5281 = vpow2.f32 %v3997_v45 }
 0x85b   : > { %v5276_v53 = vpop.eup %5275 }
 0x85c   : > { %v5278_v12 = vpop.eup %5277  ;;  %v4357_v54 = vadd.f32 -1.0, %v5276_v53 }
 0x85d   : > { %v5280_v36 = vpop.eup %5279  ;;  %v4355_v44 = vadd.f32 -1.0, %v5278_v12 }
 0x85e   : > { %v5282_v20 = vpop.eup %5281  ;;  %v4041_v19 = vsel %vm3961_vm6, %v3917_v14, %v4357_v54  ;;  %v4358_v39 = vadd.f32 -1.0, %v5280_v36 }
 0x85f   : > { %v4064_v15 = vmul.f32 %v7449_v59, %v4041_v19  ;;  %v4039_v52 = vsel %vm3959_vm7, %v3909_v49, %v4355_v44  ;;  %v4356_v55 = vadd.f32 -1.0, %v5282_v20 }
 0x860   : > { %v4042_v41 = vsel %vm3962_vm8, %v3920_v33, %v4358_v39  ;;  %v4062_v57 = vmul.f32 %v7449_v59, %v4039_v52 }
 0x861   : > { %v4065_v26 = vmul.f32 %v7449_v59, %v4042_v41  ;;  %v4040_v27 = vsel %vm3960_vm9, %v3912_v60, %v4356_v55  ;;  %v4087_v43 = vadd.f32 %v7454_v35, %v4064_v15 }
 0x862   : > { %v4063_v34 = vmul.f32 %v7449_v59, %v4040_v27  ;;  %v4085_v1 = vadd.f32 %v7454_v35, %v4062_v57 }
 0x863   : > { %4125 = vrot.lane.b32.xlu0 %v4087_v43, %s5331_s15  ;;  %v4088_v2 = vadd.f32 %v7454_v35, %v4065_v26 }
 0x864   : > { %v4086_v0 = vadd.f32 %v7454_v35, %v4063_v34 }
 0x865   : > { %4127 = vrot.lane.b32.xlu1 %v4088_v2, %s5331_s15 }
 0x867   : > { %4121 = vrot.lane.b32.xlu0 %v4085_v1, %s5331_s15 }
 0x869   : > { %4123 = vrot.lane.b32.xlu1 %v4086_v0, %s5331_s15 }
 0x86d   : > { %v4745_v13 = vpop.f32.mrb[96].mxu0 }
 0x86e   : > { %v3933_v40 = vadd.f32 %v4745_v13, %v7440_v29  ;;  %v3924_v42 = vpop.f32.mrb[97].mxu0 }
 0x86f   : > { %v3925_v9 = vadd.f32 %v7440_v29, %v3924_v42  ;;  %v4746_v58 = vpop.f32.mrb[98].mxu0 }
 0x870   : > { %v3981_v62 = vmin.f32 %v3933_v40, 0.0  ;;  %v3936_v18 = vadd.f32 %v4746_v58, %v7440_v29  ;;  %v3927_v21 = vpop.f32.mrb[99].mxu0  ;;  %vm3965_vm10 = vcmp.gt.f32.partialorder %v3933_v40, 0.0 }
 0x871   : > { %v3979_v51 = vmin.f32 %v3925_v9, 0.0  ;;  %v3928_v47 = vadd.f32 %v7440_v29, %v3927_v21  ;;  %vm3963_vm11 = vcmp.gt.f32.partialorder %v3925_v9, 0.0 }
 0x872   : > { %v4007_v14 = vmul.f32 1.442695, %v3981_v62  ;;  %v3982_v37 = vmin.f32 %v3936_v18, 0.0  ;;  %vm3966_vm12 = vcmp.gt.f32.partialorder %v3936_v18, 0.0 }
 0x873   : > { %v4003_v49 = vmul.f32 1.442695, %v3979_v51  ;;  %v3980_v3 = vmin.f32 %v3928_v47, 0.0  ;;  %vm3964_vm13 = vcmp.gt.f32.partialorder %v3928_v47, 0.0 }
 0x874   : > { %5283 = vpow2.f32 %v4007_v14  ;;  %v4009_v23 = vmul.f32 1.442695, %v3982_v37 }
 0x875   : > { %5285 = vpow2.f32 %v4003_v49  ;;  %v4005_v33 = vmul.f32 1.442695, %v3980_v3 }
 0x876   : > { %5287 = vpow2.f32 %v4009_v23 }
 0x877   : > { %5289 = vpow2.f32 %v4005_v33 }
 0x87e   : > { %v5284_v24 = vpop.eup %5283 }
 0x87f   : > { %v5286_v61 = vpop.eup %5285  ;;  %v4361_v60 = vadd.f32 -1.0, %v5284_v24 }
 0x880   : > { %v5288_v48 = vpop.eup %5287  ;;  %v4359_v31 = vadd.f32 -1.0, %v5286_v61 }
 0x881   : > { %v5290_v56 = vpop.eup %5289  ;;  %v4045_v38 = vsel %vm3965_vm10, %v3933_v40, %v4361_v60  ;;  %v4362_v50 = vadd.f32 -1.0, %v5288_v48 }
 0x882   : > { %v4068_v45 = vmul.f32 %v7449_v59, %v4045_v38  ;;  %v4043_v53 = vsel %vm3963_vm11, %v3925_v9, %v4359_v31  ;;  %v4360_v12 = vadd.f32 -1.0, %v5290_v56 }
 0x883   : > { %v4046_v54 = vsel %vm3966_vm12, %v3936_v18, %v4362_v50  ;;  %v4066_v36 = vmul.f32 %v7449_v59, %v4043_v53 }
 0x884   : > { %v4069_v44 = vmul.f32 %v7449_v59, %v4046_v54  ;;  %v4044_v20 = vsel %vm3964_vm13, %v3928_v47, %v4360_v12  ;;  %v4091_v19 = vadd.f32 %v7454_v35, %v4068_v45 }
 0x885   : > { %v4067_v39 = vmul.f32 %v7449_v59, %v4044_v20  ;;  %v4089_v52 = vadd.f32 %v7454_v35, %v4066_v36 }
 0x886   : > { %4133 = vrot.lane.b32.xlu0 %v4091_v19, %s5331_s15  ;;  %v4092_v15 = vadd.f32 %v7454_v35, %v4069_v44 }
 0x887   : > { %v4090_v55 = vadd.f32 %v7454_v35, %v4067_v39 }
 0x888   : > { %4135 = vrot.lane.b32.xlu1 %v4092_v15, %s5331_s15 }
 0x88a   : > { %4129 = vrot.lane.b32.xlu0 %v4089_v52, %s5331_s15 }
 0x88c   : > { %4131 = vrot.lane.b32.xlu1 %v4090_v55, %s5331_s15 }
 0x88d   : > { %v4749_v41 = vpop.f32.mrb[100].mxu0 }
 0x88e   : > { %v3949_v57 = vadd.f32 %v4749_v41, %v7440_v29  ;;  %v3940_v26 = vpop.f32.mrb[101].mxu0 }
 0x88f   : > { %v3941_v27 = vadd.f32 %v7440_v29, %v3940_v26  ;;  %v4750_v43 = vpop.f32.mrb[102].mxu0 }
 0x890   : > { %v3985_v34 = vmin.f32 %v3949_v57, 0.0  ;;  %v3952_v2 = vadd.f32 %v4750_v43, %v7440_v29  ;;  %v3943_v1 = vpop.f32.mrb[103].mxu0  ;;  %vm3969_vm14 = vcmp.gt.f32.partialorder %v3949_v57, 0.0 }
 0x891   : > { %v3983_v0 = vmin.f32 %v3941_v27, 0.0  ;;  %v3944_v13 = vadd.f32 %v7440_v29, %v3943_v1  ;;  %vm3967_vm15 = vcmp.gt.f32.partialorder %v3941_v27, 0.0 }
 0x892   : > { %v4015_v40 = vmul.f32 1.442695, %v3985_v34  ;;  %v3986_v42 = vmin.f32 %v3952_v2, 0.0  ;;  %vm3970_vm1 = vcmp.gt.f32.partialorder %v3952_v2, 0.0 }
 0x893   : > { %v4011_v9 = vmul.f32 1.442695, %v3983_v0  ;;  %v3984_v58 = vmin.f32 %v3944_v13, 0.0  ;;  %vm3968_vm0 = vcmp.gt.f32.partialorder %v3944_v13, 0.0 }
 0x894   : > { %5291 = vpow2.f32 %v4015_v40  ;;  %v4017_v62 = vmul.f32 1.442695, %v3986_v42 }
 0x895   : > { %5293 = vpow2.f32 %v4011_v9  ;;  %v4013_v18 = vmul.f32 1.442695, %v3984_v58 }
 0x896   : > { %5295 = vpow2.f32 %v4017_v62 }
 0x897   : > { %5297 = vpow2.f32 %v4013_v18 }
 0x89e   : > { %v5292_v21 = vpop.eup %5291 }
 0x89f   : > { %v5294_v51 = vpop.eup %5293  ;;  %v4365_v47 = vadd.f32 -1.0, %v5292_v21 }
 0x8a0   : > { %v5296_v14 = vpop.eup %5295  ;;  %v4363_v37 = vadd.f32 -1.0, %v5294_v51 }
 0x8a1   : > { %v5298_v49 = vpop.eup %5297  ;;  %v4366_v3 = vadd.f32 -1.0, %v5296_v14  ;;  %v4049_v29 = vsel %vm3969_vm14, %v3949_v57, %v4365_v47 }
 0x8a2   : > { %v4047_v23 = vsel %vm3967_vm15, %v3941_v27, %v4363_v37  ;;  %v4364_v33 = vadd.f32 -1.0, %v5298_v49  ;;  %v4072_v48 = vmul.f32 %v7449_v59, %v4049_v29 }
 0x8a3   : > { %v4070_v24 = vmul.f32 %v7449_v59, %v4047_v23  ;;  %v4050_v61 = vsel %vm3970_vm1, %v3952_v2, %v4366_v3 }
 0x8a4   : > { %v4048_v60 = vsel %vm3968_vm0, %v3944_v13, %v4364_v33  ;;  %v4073_v38 = vmul.f32 %v7449_v59, %v4050_v61  ;;  %v4095_v45 = vadd.f32 %v7454_v35, %v4072_v48 }
 0x8a5   : > { %v4071_v31 = vmul.f32 %v7449_v59, %v4048_v60  ;;  %v4093_v56 = vadd.f32 %v7454_v35, %v4070_v24 }
 0x8a6   : > { %v4096_v53 = vadd.f32 %v7454_v35, %v4073_v38 }
 0x8a7   : > { %4137 = vrot.lane.b32.xlu0 %v4093_v56, %s5331_s15  ;;  %v4094_v50 = vadd.f32 %v7454_v35, %v4071_v31 }
 0x8a9   : > { %4139 = vrot.lane.b32.xlu1 %v4094_v50, %s5331_s15 }
 0x8ab   : > { %4141 = vrot.lane.b32.xlu0 %v4095_v45, %s5331_s15 }
 0x8ad   : > { %4143 = vrot.lane.b32.xlu1 %v4096_v53, %s5331_s15 }
 0x8b5   : > { %v4118_v59 = vpop.permute.xlu0 %4117 }
 0x8b6   : > { %v4163_v12 = vsel %vm3833_vm2, %v7387_v4, %v4118_v59 }
 0x8b7   : > { %v4180_v54 = vsel %vm4177_vm3, %v4163_v12, 0.0  ;;  %v4120_v35 = vpop.permute.xlu1 %4119 }
 0x8b8   : > { %4196 = vst [vmem:[%s7521_s29 + $0x10] sm:$0xff] %v4180_v54  ;;  %v4164_v36 = vsel %vm3833_vm2, %v7381_v32, %v4120_v35 }
 0x8b9   : > { %v4181_v44 = vsel %vm4177_vm3, %v4164_v36, 0.0  ;;  %v4114_v20 = vpop.permute.xlu0 %4113 }
 0x8ba   : > { %4197 = vst [vmem:[%s7521_s29 + $0x18] sm:$0xff] %v4181_v44  ;;  %v4161_v19 = vsel %vm3833_vm2, %v7383_v16, %v4114_v20 }
 0x8bb   : > { %v4178_v39 = vsel %vm4177_vm3, %v4161_v19, 0.0  ;;  %v4116_v15 = vpop.permute.xlu1 %4115 }
 0x8bc   : > { %4194 = vst [vmem:[%s7521_s29] sm:$0xff] %v4178_v39  ;;  %v4162_v4 = vsel %vm3833_vm2, %v7385_v10, %v4116_v15 }
 0x8bd   : > { %v4179_v52 = vsel %vm4177_vm3, %v4162_v4, 0.0 }
 0x8be   : > { %4195 = vst [vmem:[%s7521_s29 + $0x8] sm:$0xff] %v4179_v52 }
 0x8d5   : > { %v4126_v32 = vpop.permute.xlu0 %4125 }
 0x8d6   : > { %v4167_v55 = vsel %vm3833_vm2, %v7401_v22, %v4126_v32 }
 0x8d7   : > { %v4184_v41 = vsel %vm4177_vm3, %v4167_v55, 0.0  ;;  %v4128_v57 = vpop.permute.xlu1 %4127 }
 0x8d8   : > { %4200 = vst [vmem:[%s7521_s29 + $0x30] sm:$0xff] %v4184_v41  ;;  %v4168_v16 = vsel %vm3833_vm2, %v7395_v6, %v4128_v57 }
 0x8d9   : > { %v4185_v26 = vsel %vm4177_vm3, %v4168_v16, 0.0  ;;  %v4122_v27 = vpop.permute.xlu0 %4121 }
 0x8da   : > { %4201 = vst [vmem:[%s7521_s29 + $0x38] sm:$0xff] %v4185_v26  ;;  %v4165_v10 = vsel %vm3833_vm2, %v7397_v5, %v4122_v27 }
 0x8db   : > { %v4182_v43 = vsel %vm4177_vm3, %v4165_v10, 0.0  ;;  %v4124_v34 = vpop.permute.xlu1 %4123 }
 0x8dc   : > { %4198 = vst [vmem:[%s7521_s29 + $0x20] sm:$0xff] %v4182_v43  ;;  %v4166_v22 = vsel %vm3833_vm2, %v7399_v46, %v4124_v34 }
 0x8dd   : > { %v4183_v2 = vsel %vm4177_vm3, %v4166_v22, 0.0 }
 0x8de   : > { %4199 = vst [vmem:[%s7521_s29 + $0x28] sm:$0xff] %v4183_v2 }
 0x8f8   : > { %v4134_v6 = vpop.permute.xlu0 %4133 }
 0x8f9   : > { %v4171_v1 = vsel %vm3833_vm2, %v7415_v11, %v4134_v6 }
 0x8fa   : > { %v4188_v0 = vsel %vm4177_vm3, %v4171_v1, 0.0  ;;  %v4136_v13 = vpop.permute.xlu1 %4135 }
 0x8fb   : > { %4204 = vst [vmem:[%s7521_s29 + $0x50] sm:$0xff] %v4188_v0  ;;  %v4172_v5 = vsel %vm3833_vm2, %v7409_v8, %v4136_v13 }
 0x8fc   : > { %v4189_v40 = vsel %vm4177_vm3, %v4172_v5, 0.0  ;;  %v4130_v42 = vpop.permute.xlu0 %4129 }
 0x8fd   : > { %4205 = vst [vmem:[%s7521_s29 + $0x58] sm:$0xff] %v4189_v40  ;;  %v4169_v46 = vsel %vm3833_vm2, %v7411_v17, %v4130_v42 }
 0x8fe   : > { %v4186_v9 = vsel %vm4177_vm3, %v4169_v46, 0.0  ;;  %v4132_v58 = vpop.permute.xlu1 %4131 }
 0x8ff   : > { %4202 = vst [vmem:[%s7521_s29 + $0x40] sm:$0xff] %v4186_v9  ;;  %v4170_v11 = vsel %vm3833_vm2, %v7413_v25, %v4132_v58 }
 0x900   : > { %v4187_v62 = vsel %vm4177_vm3, %v4170_v11, 0.0 }
 0x901   : > { %4203 = vst [vmem:[%s7521_s29 + $0x48] sm:$0xff] %v4187_v62 }
 0x919   : > { %v4138_v8 = vpop.permute.xlu0 %4137 }
 0x91a   : > { %v4173_v18 = vsel %vm3833_vm2, %v7425_v28, %v4138_v8 }
 0x91b   : > { %v4190_v21 = vsel %vm4177_vm3, %v4173_v18, 0.0  ;;  %v4140_v51 = vpop.permute.xlu1 %4139 }
 0x91c   : > { %4206 = vst [vmem:[%s7521_s29 + $0x60] sm:$0xff] %v4190_v21  ;;  %v4174_v17 = vsel %vm3833_vm2, %v7427_v30, %v4140_v51 }
 0x91d   : > { %v4191_v47 = vsel %vm4177_vm3, %v4174_v17, 0.0  ;;  %v4142_v14 = vpop.permute.xlu0 %4141 }
 0x91e   : > { %4207 = vst [vmem:[%s7521_s29 + $0x68] sm:$0xff] %v4191_v47  ;;  %v4175_v25 = vsel %vm3833_vm2, %v7429_v7, %v4142_v14 }
 0x91f   : > { %v4192_v37 = vsel %vm4177_vm3, %v4175_v25, 0.0  ;;  %v4144_v49 = vpop.permute.xlu1 %4143 }
 0x920   : > { %4208 = vst [vmem:[%s7521_s29 + $0x70] sm:$0xff] %v4192_v37  ;;  %v4176_v28 = vsel %vm3833_vm2, %v7423_v63, %v4144_v49 }
 0x921   : > { %v4193_v3 = vsel %vm4177_vm3, %v4176_v28, 0.0 }
 0x922   : > { %4209 = vst [vmem:[%s7521_s29 + $0x78] sm:$0xff] %v4193_v3 }
 0x923 PF: > { %s22_s21 = sadd.s32 1, %s5321_s21  }
 0x924   : > { %p19_p4 = scmp.ge.s32.totalorder %s22_s21, 4  }
 0x926   :  { %21 = sbr.rel (!%p19_p4) target bundleno = 1 (0x1), region = 99 }

</bundles_post_ra>
